<compile_context>
chip_gen: v7x
topology: tpu7x:2x2x1
jax: 0.10.0
libtpu: 0.0.40
codegen_flags: <defaults>
</compile_context>

<pallas_src>
import jax
import jax.numpy as jnp
from jax.experimental import pallas as pl
from jax.experimental.pallas import tpu as pltpu

# ---- hyperparameters (structure matches MoE.py; n_layer reduced for demo) ----
VOCAB_SIZE = 64            # len(chars) stand-in
VOCAB_PAD = 128            # lane-dense LM-head output, sliced back to VOCAB_SIZE
N_EMBED = 128
N_HEAD = 8
HEAD_SIZE = N_EMBED // N_HEAD      # 16
BLOCK_SIZE = 32
NUM_EXPERTS = 8
TOP_K = 2
CAPACITY_FACTOR = 1.0
N_LAYER = 2                # module uses 8; reduced for a quick synthetic run
HIDDEN = 4 * N_EMBED       # expert MLP hidden dim
EPS = 1e-5
ACT_DTYPE = jnp.bfloat16
W_DTYPE = jnp.bfloat16


def _pick_row_tile(n):
    """Largest (8,128)-friendly row tile (<=1024) that keeps >=2 programs."""
    for cand in (1024, 512, 256, 128, 64, 32, 16, 8):
        if n % cand == 0 and n // cand >= 2:
            return cand
    return n


def _ln_f32(xf, g, b):
    mu = jnp.mean(xf, axis=-1, keepdims=True)
    var = jnp.mean((xf - mu) ** 2, axis=-1, keepdims=True)
    return (xf - mu) * jax.lax.rsqrt(var + EPS) * g + b


# --------------------------- Pallas kernels ---------------------------------

def attn_block_kernel(x_ref, g1_ref, b1_ref, wqkv_ref, wp_ref, bp_ref,
                      g2_ref, b2_ref, wrn_ref, brn_ref, o_ref, rn_ref):
    """LN1 + fused QKV + causal attention + out-proj + residual, plus epilogue
    LN2 + fused router/noise logits.  One grid step = `bb` batch elements."""
    bb, t, c = x_ref.shape
    n = bb * t
    d = HEAD_SIZE

    xf = x_ref[...].reshape(n, c).astype(jnp.float32)          # (n, C)
    ln1 = _ln_f32(xf, g1_ref[...], b1_ref[...])

    # Single lane-dense QKV projection: (n, C) @ (C, 3C).
    qkv = jnp.dot(ln1.astype(jnp.bfloat16), wqkv_ref[...],
                  preferred_element_type=jnp.float32)           # (n, 3C) f32
    scale = float(c) ** -0.5                                    # reference: c = n_embed
    q3 = (qkv[:, 0 * c:1 * c] * scale).astype(jnp.bfloat16).reshape(bb, t, c)
    k3 = qkv[:, 1 * c:2 * c].astype(jnp.bfloat16).reshape(bb, t, c)
    v3 = qkv[:, 2 * c:3 * c].astype(jnp.bfloat16).reshape(bb, t, c)

    row = jax.lax.broadcasted_iota(jnp.int32, (t, t), 0)
    col = jax.lax.broadcasted_iota(jnp.int32, (t, t), 1)
    causal = (row >= col)[None]                                 # (1, t, t)

    out = jnp.zeros((n, c), jnp.float32)
    for h in range(N_HEAD):                                     # static unroll
        sl = slice(h * d, (h + 1) * d)
        qh, kh, vh = q3[..., sl], k3[..., sl], v3[..., sl]      # (bb, t, d) bf16
        s = jnp.einsum("btd,bsd->bts", qh, kh,
                       preferred_element_type=jnp.float32)      # (bb, t, t)
        s = jnp.where(causal, s, -jnp.inf)
        s = s - jnp.max(s, axis=-1, keepdims=True)
        p = jnp.exp(s)
        # approx reciprocal (EUP): ~1e-3 rel err vs exact divide, fine for eval
        p = p * pl.reciprocal(jnp.sum(p, axis=-1, keepdims=True), approx=True)
        ctx = jnp.einsum("bts,bsd->btd", p.astype(jnp.bfloat16), vh,
                         preferred_element_type=jnp.float32)    # (bb, t, d)
        # per-head contribution to the output projection (no concat)
        out = out + jnp.dot(ctx.reshape(n, d).astype(jnp.bfloat16),
                            wp_ref[sl, :],
                            preferred_element_type=jnp.float32)

    x_new = xf + out + bp_ref[...]                              # fused residual
    o_ref[...] = x_new.reshape(bb, t, c).astype(o_ref.dtype)

    # Epilogue: LN2 + fused router/noise logits for the noisy-top-k router.
    ln2 = _ln_f32(x_new, g2_ref[...], b2_ref[...])
    rn = jnp.dot(ln2.astype(jnp.bfloat16), wrn_ref[...],
                 preferred_element_type=jnp.float32) + brn_ref[...]
    rn_ref[...] = rn.reshape(bb, t, 2 * NUM_EXPERTS)


def attention_block(x, p):
    b, t, c = x.shape
    e2 = 2 * NUM_EXPERTS
    bb = b // 2 if (b % 2 == 0 and b > 1) else 1   # >=2 programs for v7x megacore
    return pl.pallas_call(
        attn_block_kernel,
        out_shape=(jax.ShapeDtypeStruct((b, t, c), x.dtype),
                   jax.ShapeDtypeStruct((b, t, e2), jnp.float32)),
        grid=(b // bb,),
        in_specs=[
            pl.BlockSpec((bb, t, c), lambda i: (i, 0, 0)),
            pl.BlockSpec((1, c), lambda i: (0, 0)),
            pl.BlockSpec((1, c), lambda i: (0, 0)),
            pl.BlockSpec((c, 3 * c), lambda i: (0, 0)),
            pl.BlockSpec((c, c), lambda i: (0, 0)),
            pl.BlockSpec((1, c), lambda i: (0, 0)),
            pl.BlockSpec((1, c), lambda i: (0, 0)),
            pl.BlockSpec((1, c), lambda i: (0, 0)),
            pl.BlockSpec((c, e2), lambda i: (0, 0)),
            pl.BlockSpec((1, e2), lambda i: (0, 0)),
        ],
        out_specs=(pl.BlockSpec((bb, t, c), lambda i: (i, 0, 0)),
                   pl.BlockSpec((bb, t, e2), lambda i: (i, 0, 0))),
        compiler_params=pltpu.CompilerParams(dimension_semantics=("parallel",)),
    )(x, p["ln1_g"].reshape(1, c), p["ln1_b"].reshape(1, c),
      p["wqkv"], p["wp"], p["bp"].reshape(1, c),
      p["ln2_g"].reshape(1, c), p["ln2_b"].reshape(1, c),
      p["wrn"], p["brn"].reshape(1, e2))


def moe_block_kernel(x_ref, g2_ref, b2_ref, gates_ref,
                     w1_ref, eb1_ref, w2_ref, eb2_ref, o_ref):
    """LN2 (recomputed) + all-expert MLPs + gated accumulate + residual.
    Grid is over row tiles only; all expert weights stay VMEM-resident."""
    xf = x_ref[...].astype(jnp.float32)                          # (rt, C)
    ln2 = _ln_f32(xf, g2_ref[...], b2_ref[...]).astype(jnp.bfloat16)
    gates = gates_ref[...]                                       # (rt, E) f32
    acc = xf                                                     # residual folded in
    for e in range(NUM_EXPERTS):                                 # static unroll
        h = jnp.dot(ln2, w1_ref[e], preferred_element_type=jnp.float32) + eb1_ref[e]
        h = jnp.maximum(h, 0.0)                                  # ReLU
        y = jnp.dot(h.astype(jnp.bfloat16), w2_ref[e],
                    preferred_element_type=jnp.float32) + eb2_ref[e]
        acc = acc + y * gates[:, e:e + 1]                        # zero gate => dropped/unrouted
    o_ref[...] = acc.astype(o_ref.dtype)                         # single write per block


def moe_block(x2d, gates, p):
    # TODO(synk): at production N, exploit top-k routing sparsity (group tokens
    # per expert + PrefetchScalarGridSpec data-dependent index_map) instead of
    # dense all-expert compute masked by zero gates.
    n, c = x2d.shape
    e, _, hid = p["w1"].shape
    rt = _pick_row_tile(n)
    return pl.pallas_call(
        moe_block_kernel,
        out_shape=jax.ShapeDtypeStruct((n, c), x2d.dtype),
        grid=(n // rt,),
        in_specs=[
            pl.BlockSpec((rt, c), lambda r: (r, 0)),              # x (residual)
            pl.BlockSpec((1, c), lambda r: (0, 0)),               # ln2 gamma
            pl.BlockSpec((1, c), lambda r: (0, 0)),               # ln2 beta
            pl.BlockSpec((rt, e), lambda r: (r, 0)),              # gates (lane-dense)
            pl.BlockSpec((e, c, hid), lambda r: (0, 0, 0)),       # w1 (fetched once)
            pl.BlockSpec((e, 1, hid), lambda r: (0, 0, 0)),       # b1
            pl.BlockSpec((e, hid, c), lambda r: (0, 0, 0)),       # w2 (fetched once)
            pl.BlockSpec((e, 1, c), lambda r: (0, 0, 0)),         # b2
        ],
        out_specs=pl.BlockSpec((rt, c), lambda r: (r, 0)),
        compiler_params=pltpu.CompilerParams(dimension_semantics=("parallel",)),
    )(x2d, p["ln2_g"].reshape(1, c), p["ln2_b"].reshape(1, c), gates,
      p["w1"], p["b1"].reshape(e, 1, hid), p["w2"], p["b2"].reshape(e, 1, c))


def lnf_head_kernel(x_ref, g_ref, b_ref, w_ref, bw_ref, o_ref):
    xf = x_ref[...].astype(jnp.float32)
    ln = _ln_f32(xf, g_ref[...], b_ref[...])
    o_ref[...] = jnp.dot(ln.astype(jnp.bfloat16), w_ref[...],
                         preferred_element_type=jnp.float32) + bw_ref[...]


def lnf_lm_head(x2d, gamma, beta, w_pad, b_pad):
    n, c = x2d.shape
    vpad = w_pad.shape[1]
    rt = _pick_row_tile(n)
    return pl.pallas_call(
        lnf_head_kernel,
        out_shape=jax.ShapeDtypeStruct((n, vpad), jnp.float32),
        grid=(n // rt,),
        in_specs=[
            pl.BlockSpec((rt, c), lambda i: (i, 0)),
            pl.BlockSpec((1, c), lambda i: (0, 0)),
            pl.BlockSpec((1, c), lambda i: (0, 0)),
            pl.BlockSpec((c, vpad), lambda i: (0, 0)),
            pl.BlockSpec((1, vpad), lambda i: (0, 0)),
        ],
        out_specs=pl.BlockSpec((rt, vpad), lambda i: (i, 0)),
        compiler_params=pltpu.CompilerParams(dimension_semantics=("parallel",)),
    )(x2d, gamma.reshape(1, c), beta.reshape(1, c), w_pad, b_pad.reshape(1, vpad))


# --------------------------- JAX glue (router / capacity) -------------------

def router_gates(rn2d, key):
    """noisy-top-k routing + softmax + reference expert-capacity drop policy."""
    n = rn2d.shape[0]
    logits = rn2d[:, :NUM_EXPERTS]
    noise_logits = rn2d[:, NUM_EXPERTS:]
    noise = jax.random.normal(key, logits.shape, jnp.float32) * jax.nn.softplus(noise_logits)
    noisy = logits + noise
    top_vals, top_idx = jax.lax.top_k(noisy, TOP_K)
    sparse = jnp.full_like(noisy, -jnp.inf)
    rows = jnp.arange(n)[:, None]
    sparse = sparse.at[rows, top_idx].set(top_vals)
    gating = jax.nn.softmax(sparse, axis=-1)            # zeros off the top-k
    # reference drop policy: per expert, keep the first `capacity` selected
    # tokens in flat (B*T) order
    capacity = int(n * TOP_K / NUM_EXPERTS * CAPACITY_FACTOR)
    sel = (top_idx[:, :, None] == jnp.arange(NUM_EXPERTS)[None, None, :]).any(axis=1)
    cum = jnp.cumsum(sel.astype(jnp.int32), axis=0)
    keep = sel & (cum <= capacity)
    return (gating * keep.astype(gating.dtype)).astype(jnp.float32)   # (N, E)


def block_forward(x, p, key):
    b, t, c = x.shape
    x, rn = attention_block(x, p)                        # fused LN1+attn+proj+resid+LN2+router logits
    gates = router_gates(rn.reshape(b * t, 2 * NUM_EXPERTS), key)
    x2d = moe_block(x.reshape(b * t, c), gates, p)       # fused experts + residual
    return x2d.reshape(b, t, c)


def model_forward(params, idx, noise_keys):
    b, t = idx.shape
    tok = params["tok_emb"][idx]                         # (B, T, C) gather (XLA glue)
    pos = params["pos_emb"][:t]                          # (T, C)
    x = (tok + pos).astype(ACT_DTYPE)
    for layer in range(N_LAYER):
        x = block_forward(x, params["blocks"][layer], noise_keys[layer])
    c = x.shape[-1]
    logits_pad = lnf_lm_head(x.reshape(b * t, c), params["lnf_g"], params["lnf_b"],
                             params["lm_w_pad"], params["lm_b_pad"])
    logits = logits_pad[:, :VOCAB_SIZE]
    # TODO(synk): cross-entropy loss branch (targets is not None) omitted;
    # forward runs the targets=None eval path.
    return logits.reshape(b, t, VOCAB_SIZE)


# --------------------------- deterministic parameter init -------------------

def _normal(key, shape, fan_in, dtype):
    return (jax.random.normal(key, shape, jnp.float32) / jnp.sqrt(fan_in)).astype(dtype)


def init_params(key):
    kk = iter(jax.random.split(key, 3 + N_LAYER * 5))
    params = {
        "tok_emb": (0.02 * jax.random.normal(next(kk), (VOCAB_SIZE, N_EMBED),
                                             jnp.float32)).astype(W_DTYPE),
        "pos_emb": (0.02 * jax.random.normal(next(kk), (BLOCK_SIZE, N_EMBED),
                                             jnp.float32)).astype(W_DTYPE),
        "lnf_g": jnp.ones((N_EMBED,), jnp.float32),
        "lnf_b": jnp.zeros((N_EMBED,), jnp.float32),
        "blocks": [],
    }
    lm_w = _normal(next(kk), (N_EMBED, VOCAB_SIZE), N_EMBED, jnp.float32)
    params["lm_w_pad"] = jnp.pad(lm_w, ((0, 0), (0, VOCAB_PAD - VOCAB_SIZE))).astype(W_DTYPE)
    params["lm_b_pad"] = jnp.zeros((VOCAB_PAD,), jnp.float32)
    for _ in range(N_LAYER):
        blk = {
            "ln1_g": jnp.ones((N_EMBED,), jnp.float32),
            "ln1_b": jnp.zeros((N_EMBED,), jnp.float32),
            "ln2_g": jnp.ones((N_EMBED,), jnp.float32),
            "ln2_b": jnp.zeros((N_EMBED,), jnp.float32),
            # fused QKV weight: columns [0:C]=Q heads, [C:2C]=K, [2C:3C]=V,
            # each head occupying a contiguous 16-lane sub-block.
            "wqkv": _normal(next(kk), (N_EMBED, 3 * N_EMBED), N_EMBED, W_DTYPE),
            # output projection (proj.weight^T): row block h*16:(h+1)*16 = head h
            "wp": _normal(next(kk), (N_EMBED, N_EMBED), N_EMBED, W_DTYPE),
            "bp": jnp.zeros((N_EMBED,), jnp.float32),
            # fused router/noise linear: cols [0:E]=router, [E:2E]=noise
            "wrn": _normal(next(kk), (N_EMBED, 2 * NUM_EXPERTS), N_EMBED, W_DTYPE),
            "brn": jnp.zeros((2 * NUM_EXPERTS,), jnp.float32),
            "w1": _normal(next(kk), (NUM_EXPERTS, N_EMBED, HIDDEN), N_EMBED, W_DTYPE),
            "b1": jnp.zeros((NUM_EXPERTS, HIDDEN), jnp.float32),
            "w2": _normal(next(kk), (NUM_EXPERTS, HIDDEN, N_EMBED), HIDDEN, W_DTYPE),
            "b2": jnp.zeros((NUM_EXPERTS, N_EMBED), jnp.float32),
        }
        params["blocks"].append(blk)
    return params


# --------------------------- main -------------------------------------------

if __name__ == "__main__":
    key = jax.random.PRNGKey(0)
    pkey, dkey, nkey = jax.random.split(key, 3)

    params = init_params(pkey)

    B, T = 4, 32                                           # T == block_size
    idx = jax.random.randint(dkey, (B, T), 0, VOCAB_SIZE, dtype=jnp.int32)
    noise_keys = jax.random.split(nkey, N_LAYER)           # router noise, deterministic

    fwd = jax.jit(model_forward)
    logits = jax.block_until_ready(fwd(params, idx, noise_keys))

    assert logits.shape == (B, T, VOCAB_SIZE), logits.shape
    assert bool(jnp.all(jnp.isfinite(logits)))
    print("KERNEL_OK")
</pallas_src>

<mosaic_0001>
module attributes {stable_mosaic.version = 11 : i64} {
  func.func @attn_block_kernel(%arg0: i32, %arg1: memref<2x32x128xbf16, #tpu.memory_space<vmem>>, %arg2: memref<1x128xf32, #tpu.memory_space<vmem>>, %arg3: memref<1x128xf32, #tpu.memory_space<vmem>>, %arg4: memref<128x384xbf16, #tpu.memory_space<vmem>>, %arg5: memref<128x128xbf16, #tpu.memory_space<vmem>>, %arg6: memref<1x128xf32, #tpu.memory_space<vmem>>, %arg7: memref<1x128xf32, #tpu.memory_space<vmem>>, %arg8: memref<1x128xf32, #tpu.memory_space<vmem>>, %arg9: memref<128x16xbf16, #tpu.memory_space<vmem>>, %arg10: memref<1x16xf32, #tpu.memory_space<vmem>>, %arg11: memref<2x32x128xbf16, #tpu.memory_space<vmem>>, %arg12: memref<2x32x16xf32, #tpu.memory_space<vmem>>) attributes {dimension_semantics = [#tpu.dimension_semantics<parallel>], iteration_bounds = array<i64: 2>, scalar_prefetch = 0 : i64, scratch_operands = 0 : i64, tpu.core_type = #tpu.core_type<tc>, window_params = [{transform_indices = @transform_0, window_bounds = array<i64: 2, 32, 128>}, {pipeline_mode = #tpu.pipeline_mode<synchronous>, transform_indices = @transform_1, window_bounds = array<i64: 1, 128>}, {pipeline_mode = #tpu.pipeline_mode<synchronous>, transform_indices = @transform_2, window_bounds = array<i64: 1, 128>}, {pipeline_mode = #tpu.pipeline_mode<synchronous>, transform_indices = @transform_3, window_bounds = array<i64: 128, 384>}, {pipeline_mode = #tpu.pipeline_mode<synchronous>, transform_indices = @transform_4, window_bounds = array<i64: 128, 128>}, {pipeline_mode = #tpu.pipeline_mode<synchronous>, transform_indices = @transform_5, window_bounds = array<i64: 1, 128>}, {pipeline_mode = #tpu.pipeline_mode<synchronous>, transform_indices = @transform_6, window_bounds = array<i64: 1, 128>}, {pipeline_mode = #tpu.pipeline_mode<synchronous>, transform_indices = @transform_7, window_bounds = array<i64: 1, 128>}, {pipeline_mode = #tpu.pipeline_mode<synchronous>, transform_indices = @transform_8, window_bounds = array<i64: 128, 16>}, {pipeline_mode = #tpu.pipeline_mode<synchronous>, transform_indices = @transform_9, window_bounds = array<i64: 1, 16>}, {transform_indices = @transform_10, window_bounds = array<i64: 2, 32, 128>}, {transform_indices = @transform_11, window_bounds = array<i64: 2, 32, 16>}]} {
    %c0 = arith.constant 0 : index
    %c0_0 = arith.constant 0 : index
    %c0_1 = arith.constant 0 : index
    %0 = vector.load %arg1[%c0, %c0_0, %c0_1] : memref<2x32x128xbf16, #tpu.memory_space<vmem>>, vector<2x32x128xbf16>
    %1 = vector.shape_cast %0 : vector<2x32x128xbf16> to vector<64x128xbf16>
    %2 = arith.extf %1 : vector<64x128xbf16> to vector<64x128xf32>
    %c0_2 = arith.constant 0 : index
    %c0_3 = arith.constant 0 : index
    %3 = vector.load %arg2[%c0_2, %c0_3] : memref<1x128xf32, #tpu.memory_space<vmem>>, vector<1x128xf32>
    %c0_4 = arith.constant 0 : index
    %c0_5 = arith.constant 0 : index
    %4 = vector.load %arg3[%c0_4, %c0_5] : memref<1x128xf32, #tpu.memory_space<vmem>>, vector<1x128xf32>
    %cst = arith.constant dense<0.000000e+00> : vector<64xf32>
    %5 = vector.multi_reduction <add>, %2, %cst [1] : vector<64x128xf32> to vector<64xf32>
    %6 = vector.shape_cast %5 : vector<64xf32> to vector<64x1xf32>
    %cst_6 = arith.constant 1.280000e+02 : f32
    %7 = vector.broadcast %cst_6 : f32 to vector<64x1xf32>
    %8 = arith.divf %6, %7 : vector<64x1xf32>
    %9 = vector.broadcast %8 : vector<64x1xf32> to vector<64x128xf32>
    %10 = arith.subf %2, %9 : vector<64x128xf32>
    %11 = arith.mulf %10, %10 : vector<64x128xf32>
    %cst_7 = arith.constant dense<0.000000e+00> : vector<64xf32>
    %12 = vector.multi_reduction <add>, %11, %cst_7 [1] : vector<64x128xf32> to vector<64xf32>
    %13 = vector.shape_cast %12 : vector<64xf32> to vector<64x1xf32>
    %cst_8 = arith.constant 1.280000e+02 : f32
    %14 = vector.broadcast %cst_8 : f32 to vector<64x1xf32>
    %15 = arith.divf %13, %14 : vector<64x1xf32>
    %16 = vector.broadcast %8 : vector<64x1xf32> to vector<64x128xf32>
    %17 = arith.subf %2, %16 : vector<64x128xf32>
    %cst_9 = arith.constant 9.99999974E-6 : f32
    %18 = vector.broadcast %cst_9 : f32 to vector<64x1xf32>
    %19 = arith.addf %15, %18 : vector<64x1xf32>
    %20 = math.rsqrt %19 : vector<64x1xf32>
    %21 = vector.broadcast %20 : vector<64x1xf32> to vector<64x128xf32>
    %22 = arith.mulf %17, %21 : vector<64x128xf32>
    %23 = vector.broadcast %3 : vector<1x128xf32> to vector<64x128xf32>
    %24 = arith.mulf %22, %23 : vector<64x128xf32>
    %25 = vector.broadcast %4 : vector<1x128xf32> to vector<64x128xf32>
    %26 = arith.addf %24, %25 : vector<64x128xf32>
    %27 = arith.truncf %26 : vector<64x128xf32> to vector<64x128xbf16>
    %c0_10 = arith.constant 0 : index
    %c0_11 = arith.constant 0 : index
    %28 = vector.load %arg4[%c0_10, %c0_11] : memref<128x384xbf16, #tpu.memory_space<vmem>>, vector<128x384xbf16>
    %cst_12 = arith.constant dense<0.000000e+00> : vector<64x384xf32>
    %29 = tpu.matmul %27, %28, %cst_12 {dimension_numbers = #tpu.dot_dimension_numbers<[1], [0], [0], [1], [0, 0, 1, 1], [], []>} : vector<64x128xbf16>, vector<128x384xbf16>, vector<64x384xf32> -> vector<64x384xf32>
    %30 = vector.extract_strided_slice %29 {offsets = [0, 0], sizes = [64, 128], strides = [1, 1]} : vector<64x384xf32> to vector<64x128xf32>
    %cst_13 = arith.constant 0.0883883461 : f32
    %31 = vector.broadcast %cst_13 : f32 to vector<64x128xf32>
    %32 = arith.mulf %30, %31 : vector<64x128xf32>
    %33 = arith.truncf %32 : vector<64x128xf32> to vector<64x128xbf16>
    %34 = vector.shape_cast %33 : vector<64x128xbf16> to vector<2x32x128xbf16>
    %35 = vector.extract_strided_slice %29 {offsets = [0, 128], sizes = [64, 128], strides = [1, 1]} : vector<64x384xf32> to vector<64x128xf32>
    %36 = arith.truncf %35 : vector<64x128xf32> to vector<64x128xbf16>
    %37 = vector.shape_cast %36 : vector<64x128xbf16> to vector<2x32x128xbf16>
    %38 = vector.extract_strided_slice %29 {offsets = [0, 256], sizes = [64, 128], strides = [1, 1]} : vector<64x384xf32> to vector<64x128xf32>
    %39 = arith.truncf %38 : vector<64x128xf32> to vector<64x128xbf16>
    %40 = vector.shape_cast %39 : vector<64x128xbf16> to vector<2x32x128xbf16>
    %41 = tpu.iota {dimensions = array<i32: 0>} : vector<32x32xi32>
    %42 = tpu.iota {dimensions = array<i32: 1>} : vector<32x32xi32>
    %43 = arith.cmpi sge, %41, %42 : vector<32x32xi32>
    %44 = vector.shape_cast %43 : vector<32x32xi1> to vector<1x32x32xi1>
    %cst_14 = arith.constant 0.000000e+00 : f32
    %45 = vector.broadcast %cst_14 : f32 to vector<64x128xf32>
    %46 = vector.extract_strided_slice %34 {offsets = [0, 0, 0], sizes = [2, 32, 16], strides = [1, 1, 1]} : vector<2x32x128xbf16> to vector<2x32x16xbf16>
    %47 = vector.extract_strided_slice %37 {offsets = [0, 0, 0], sizes = [2, 32, 16], strides = [1, 1, 1]} : vector<2x32x128xbf16> to vector<2x32x16xbf16>
    %48 = vector.extract_strided_slice %40 {offsets = [0, 0, 0], sizes = [2, 32, 16], strides = [1, 1, 1]} : vector<2x32x128xbf16> to vector<2x32x16xbf16>
    "tpu.trace_start"() <{level = 10 : i32, message = "btd,bsd->bts"}> : () -> ()
    %cst_15 = arith.constant dense<0.000000e+00> : vector<2x32x32xf32>
    %49 = tpu.matmul %46, %47, %cst_15 {dimension_numbers = #tpu.dot_dimension_numbers<[2], [2], [1], [1], [0, 0, 0, 1, 1, 1], [0], [0]>} : vector<2x32x16xbf16>, vector<2x32x16xbf16>, vector<2x32x32xf32> -> vector<2x32x32xf32>
    %cst_16 = arith.constant 0xFF800000 : f32
    "tpu.trace_stop"() : () -> ()
    %50 = vector.shape_cast %44 : vector<1x32x32xi1> to vector<1x32x32xi1>
    %51 = vector.broadcast %50 : vector<1x32x32xi1> to vector<2x32x32xi1>
    %52 = vector.broadcast %cst_16 : f32 to vector<2x32x32xf32>
    %53 = arith.select %51, %49, %52 : vector<2x32x32xi1>, vector<2x32x32xf32>
    %cst_17 = arith.constant dense<0xFF800000> : vector<2x32xf32>
    %54 = vector.multi_reduction <maximumf>, %53, %cst_17 [2] : vector<2x32x32xf32> to vector<2x32xf32>
    %55 = vector.shape_cast %54 : vector<2x32xf32> to vector<2x32x1xf32>
    %56 = vector.broadcast %55 : vector<2x32x1xf32> to vector<2x32x32xf32>
    %57 = arith.subf %53, %56 : vector<2x32x32xf32>
    %58 = math.exp %57 : vector<2x32x32xf32>
    %cst_18 = arith.constant dense<0.000000e+00> : vector<2x32xf32>
    %59 = vector.multi_reduction <add>, %58, %cst_18 [2] : vector<2x32x32xf32> to vector<2x32xf32>
    %60 = vector.shape_cast %59 : vector<2x32xf32> to vector<2x32x1xf32>
    %61 = tpu.reciprocal %60 {approx = true} : vector<2x32x1xf32> -> vector<2x32x1xf32>
    %62 = vector.broadcast %61 : vector<2x32x1xf32> to vector<2x32x32xf32>
    %63 = arith.mulf %58, %62 : vector<2x32x32xf32>
    %64 = arith.truncf %63 : vector<2x32x32xf32> to vector<2x32x32xbf16>
    "tpu.trace_start"() <{level = 10 : i32, message = "bts,bsd->btd"}> : () -> ()
    %cst_19 = arith.constant dense<0.000000e+00> : vector<2x32x16xf32>
    %65 = tpu.matmul %64, %48, %cst_19 {dimension_numbers = #tpu.dot_dimension_numbers<[2], [1], [1], [2], [0, 0, 0, 1, 1, 2], [0], [0]>} : vector<2x32x32xbf16>, vector<2x32x16xbf16>, vector<2x32x16xf32> -> vector<2x32x16xf32>
    "tpu.trace_stop"() : () -> ()
    %66 = vector.shape_cast %65 : vector<2x32x16xf32> to vector<64x16xf32>
    %67 = arith.truncf %66 : vector<64x16xf32> to vector<64x16xbf16>
    %c0_20 = arith.constant 0 : index
    %c0_21 = arith.constant 0 : index
    %68 = vector.load %arg5[%c0_20, %c0_21] : memref<128x128xbf16, #tpu.memory_space<vmem>>, vector<16x128xbf16>
    %cst_22 = arith.constant dense<0.000000e+00> : vector<64x128xf32>
    %69 = tpu.matmul %67, %68, %cst_22 {dimension_numbers = #tpu.dot_dimension_numbers<[1], [0], [0], [1], [0, 0, 1, 1], [], []>} : vector<64x16xbf16>, vector<16x128xbf16>, vector<64x128xf32> -> vector<64x128xf32>
    %70 = arith.addf %45, %69 : vector<64x128xf32>
    %71 = vector.extract_strided_slice %34 {offsets = [0, 0, 16], sizes = [2, 32, 16], strides = [1, 1, 1]} : vector<2x32x128xbf16> to vector<2x32x16xbf16>
    %72 = vector.extract_strided_slice %37 {offsets = [0, 0, 16], sizes = [2, 32, 16], strides = [1, 1, 1]} : vector<2x32x128xbf16> to vector<2x32x16xbf16>
    %73 = vector.extract_strided_slice %40 {offsets = [0, 0, 16], sizes = [2, 32, 16], strides = [1, 1, 1]} : vector<2x32x128xbf16> to vector<2x32x16xbf16>
    "tpu.trace_start"() <{level = 10 : i32, message = "btd,bsd->bts"}> : () -> ()
    %cst_23 = arith.constant dense<0.000000e+00> : vector<2x32x32xf32>
    %74 = tpu.matmul %71, %72, %cst_23 {dimension_numbers = #tpu.dot_dimension_numbers<[2], [2], [1], [1], [0, 0, 0, 1, 1, 1], [0], [0]>} : vector<2x32x16xbf16>, vector<2x32x16xbf16>, vector<2x32x32xf32> -> vector<2x32x32xf32>
    %cst_24 = arith.constant 0xFF800000 : f32
    "tpu.trace_stop"() : () -> ()
    %75 = vector.shape_cast %44 : vector<1x32x32xi1> to vector<1x32x32xi1>
    %76 = vector.broadcast %75 : vector<1x32x32xi1> to vector<2x32x32xi1>
    %77 = vector.broadcast %cst_24 : f32 to vector<2x32x32xf32>
    %78 = arith.select %76, %74, %77 : vector<2x32x32xi1>, vector<2x32x32xf32>
    %cst_25 = arith.constant dense<0xFF800000> : vector<2x32xf32>
    %79 = vector.multi_reduction <maximumf>, %78, %cst_25 [2] : vector<2x32x32xf32> to vector<2x32xf32>
    %80 = vector.shape_cast %79 : vector<2x32xf32> to vector<2x32x1xf32>
    %81 = vector.broadcast %80 : vector<2x32x1xf32> to vector<2x32x32xf32>
    %82 = arith.subf %78, %81 : vector<2x32x32xf32>
    %83 = math.exp %82 : vector<2x32x32xf32>
    %cst_26 = arith.constant dense<0.000000e+00> : vector<2x32xf32>
    %84 = vector.multi_reduction <add>, %83, %cst_26 [2] : vector<2x32x32xf32> to vector<2x32xf32>
    %85 = vector.shape_cast %84 : vector<2x32xf32> to vector<2x32x1xf32>
    %86 = tpu.reciprocal %85 {approx = true} : vector<2x32x1xf32> -> vector<2x32x1xf32>
    %87 = vector.broadcast %86 : vector<2x32x1xf32> to vector<2x32x32xf32>
    %88 = arith.mulf %83, %87 : vector<2x32x32xf32>
    %89 = arith.truncf %88 : vector<2x32x32xf32> to vector<2x32x32xbf16>
    "tpu.trace_start"() <{level = 10 : i32, message = "bts,bsd->btd"}> : () -> ()
    %cst_27 = arith.constant dense<0.000000e+00> : vector<2x32x16xf32>
    %90 = tpu.matmul %89, %73, %cst_27 {dimension_numbers = #tpu.dot_dimension_numbers<[2], [1], [1], [2], [0, 0, 0, 1, 1, 2], [0], [0]>} : vector<2x32x32xbf16>, vector<2x32x16xbf16>, vector<2x32x16xf32> -> vector<2x32x16xf32>
    "tpu.trace_stop"() : () -> ()
    %91 = vector.shape_cast %90 : vector<2x32x16xf32> to vector<64x16xf32>
    %92 = arith.truncf %91 : vector<64x16xf32> to vector<64x16xbf16>
    %c16 = arith.constant 16 : index
    %c0_28 = arith.constant 0 : index
    %93 = vector.load %arg5[%c16, %c0_28] : memref<128x128xbf16, #tpu.memory_space<vmem>>, vector<16x128xbf16>
    %cst_29 = arith.constant dense<0.000000e+00> : vector<64x128xf32>
    %94 = tpu.matmul %92, %93, %cst_29 {dimension_numbers = #tpu.dot_dimension_numbers<[1], [0], [0], [1], [0, 0, 1, 1], [], []>} : vector<64x16xbf16>, vector<16x128xbf16>, vector<64x128xf32> -> vector<64x128xf32>
    %95 = arith.addf %70, %94 : vector<64x128xf32>
    %96 = vector.extract_strided_slice %34 {offsets = [0, 0, 32], sizes = [2, 32, 16], strides = [1, 1, 1]} : vector<2x32x128xbf16> to vector<2x32x16xbf16>
    %97 = vector.extract_strided_slice %37 {offsets = [0, 0, 32], sizes = [2, 32, 16], strides = [1, 1, 1]} : vector<2x32x128xbf16> to vector<2x32x16xbf16>
    %98 = vector.extract_strided_slice %40 {offsets = [0, 0, 32], sizes = [2, 32, 16], strides = [1, 1, 1]} : vector<2x32x128xbf16> to vector<2x32x16xbf16>
    "tpu.trace_start"() <{level = 10 : i32, message = "btd,bsd->bts"}> : () -> ()
    %cst_30 = arith.constant dense<0.000000e+00> : vector<2x32x32xf32>
    %99 = tpu.matmul %96, %97, %cst_30 {dimension_numbers = #tpu.dot_dimension_numbers<[2], [2], [1], [1], [0, 0, 0, 1, 1, 1], [0], [0]>} : vector<2x32x16xbf16>, vector<2x32x16xbf16>, vector<2x32x32xf32> -> vector<2x32x32xf32>
    %cst_31 = arith.constant 0xFF800000 : f32
    "tpu.trace_stop"() : () -> ()
    %100 = vector.shape_cast %44 : vector<1x32x32xi1> to vector<1x32x32xi1>
    %101 = vector.broadcast %100 : vector<1x32x32xi1> to vector<2x32x32xi1>
    %102 = vector.broadcast %cst_31 : f32 to vector<2x32x32xf32>
    %103 = arith.select %101, %99, %102 : vector<2x32x32xi1>, vector<2x32x32xf32>
    %cst_32 = arith.constant dense<0xFF800000> : vector<2x32xf32>
    %104 = vector.multi_reduction <maximumf>, %103, %cst_32 [2] : vector<2x32x32xf32> to vector<2x32xf32>
    %105 = vector.shape_cast %104 : vector<2x32xf32> to vector<2x32x1xf32>
    %106 = vector.broadcast %105 : vector<2x32x1xf32> to vector<2x32x32xf32>
    %107 = arith.subf %103, %106 : vector<2x32x32xf32>
    %108 = math.exp %107 : vector<2x32x32xf32>
    %cst_33 = arith.constant dense<0.000000e+00> : vector<2x32xf32>
    %109 = vector.multi_reduction <add>, %108, %cst_33 [2] : vector<2x32x32xf32> to vector<2x32xf32>
    %110 = vector.shape_cast %109 : vector<2x32xf32> to vector<2x32x1xf32>
    %111 = tpu.reciprocal %110 {approx = true} : vector<2x32x1xf32> -> vector<2x32x1xf32>
    %112 = vector.broadcast %111 : vector<2x32x1xf32> to vector<2x32x32xf32>
    %113 = arith.mulf %108, %112 : vector<2x32x32xf32>
    %114 = arith.truncf %113 : vector<2x32x32xf32> to vector<2x32x32xbf16>
    "tpu.trace_start"() <{level = 10 : i32, message = "bts,bsd->btd"}> : () -> ()
    %cst_34 = arith.constant dense<0.000000e+00> : vector<2x32x16xf32>
    %115 = tpu.matmul %114, %98, %cst_34 {dimension_numbers = #tpu.dot_dimension_numbers<[2], [1], [1], [2], [0, 0, 0, 1, 1, 2], [0], [0]>} : vector<2x32x32xbf16>, vector<2x32x16xbf16>, vector<2x32x16xf32> -> vector<2x32x16xf32>
    "tpu.trace_stop"() : () -> ()
    %116 = vector.shape_cast %115 : vector<2x32x16xf32> to vector<64x16xf32>
    %117 = arith.truncf %116 : vector<64x16xf32> to vector<64x16xbf16>
    %c32 = arith.constant 32 : index
    %c0_35 = arith.constant 0 : index
    %118 = vector.load %arg5[%c32, %c0_35] : memref<128x128xbf16, #tpu.memory_space<vmem>>, vector<16x128xbf16>
    %cst_36 = arith.constant dense<0.000000e+00> : vector<64x128xf32>
    %119 = tpu.matmul %117, %118, %cst_36 {dimension_numbers = #tpu.dot_dimension_numbers<[1], [0], [0], [1], [0, 0, 1, 1], [], []>} : vector<64x16xbf16>, vector<16x128xbf16>, vector<64x128xf32> -> vector<64x128xf32>
    %120 = arith.addf %95, %119 : vector<64x128xf32>
    %121 = vector.extract_strided_slice %34 {offsets = [0, 0, 48], sizes = [2, 32, 16], strides = [1, 1, 1]} : vector<2x32x128xbf16> to vector<2x32x16xbf16>
    %122 = vector.extract_strided_slice %37 {offsets = [0, 0, 48], sizes = [2, 32, 16], strides = [1, 1, 1]} : vector<2x32x128xbf16> to vector<2x32x16xbf16>
    %123 = vector.extract_strided_slice %40 {offsets = [0, 0, 48], sizes = [2, 32, 16], strides = [1, 1, 1]} : vector<2x32x128xbf16> to vector<2x32x16xbf16>
    "tpu.trace_start"() <{level = 10 : i32, message = "btd,bsd->bts"}> : () -> ()
    %cst_37 = arith.constant dense<0.000000e+00> : vector<2x32x32xf32>
    %124 = tpu.matmul %121, %122, %cst_37 {dimension_numbers = #tpu.dot_dimension_numbers<[2], [2], [1], [1], [0, 0, 0, 1, 1, 1], [0], [0]>} : vector<2x32x16xbf16>, vector<2x32x16xbf16>, vector<2x32x32xf32> -> vector<2x32x32xf32>
    %cst_38 = arith.constant 0xFF800000 : f32
    "tpu.trace_stop"() : () -> ()
    %125 = vector.shape_cast %44 : vector<1x32x32xi1> to vector<1x32x32xi1>
    %126 = vector.broadcast %125 : vector<1x32x32xi1> to vector<2x32x32xi1>
    %127 = vector.broadcast %cst_38 : f32 to vector<2x32x32xf32>
    %128 = arith.select %126, %124, %127 : vector<2x32x32xi1>, vector<2x32x32xf32>
    %cst_39 = arith.constant dense<0xFF800000> : vector<2x32xf32>
    %129 = vector.multi_reduction <maximumf>, %128, %cst_39 [2] : vector<2x32x32xf32> to vector<2x32xf32>
    %130 = vector.shape_cast %129 : vector<2x32xf32> to vector<2x32x1xf32>
    %131 = vector.broadcast %130 : vector<2x32x1xf32> to vector<2x32x32xf32>
    %132 = arith.subf %128, %131 : vector<2x32x32xf32>
    %133 = math.exp %132 : vector<2x32x32xf32>
    %cst_40 = arith.constant dense<0.000000e+00> : vector<2x32xf32>
    %134 = vector.multi_reduction <add>, %133, %cst_40 [2] : vector<2x32x32xf32> to vector<2x32xf32>
    %135 = vector.shape_cast %134 : vector<2x32xf32> to vector<2x32x1xf32>
    %136 = tpu.reciprocal %135 {approx = true} : vector<2x32x1xf32> -> vector<2x32x1xf32>
    %137 = vector.broadcast %136 : vector<2x32x1xf32> to vector<2x32x32xf32>
    %138 = arith.mulf %133, %137 : vector<2x32x32xf32>
    %139 = arith.truncf %138 : vector<2x32x32xf32> to vector<2x32x32xbf16>
    "tpu.trace_start"() <{level = 10 : i32, message = "bts,bsd->btd"}> : () -> ()
    %cst_41 = arith.constant dense<0.000000e+00> : vector<2x32x16xf32>
    %140 = tpu.matmul %139, %123, %cst_41 {dimension_numbers = #tpu.dot_dimension_numbers<[2], [1], [1], [2], [0, 0, 0, 1, 1, 2], [0], [0]>} : vector<2x32x32xbf16>, vector<2x32x16xbf16>, vector<2x32x16xf32> -> vector<2x32x16xf32>
    "tpu.trace_stop"() : () -> ()
    %141 = vector.shape_cast %140 : vector<2x32x16xf32> to vector<64x16xf32>
    %142 = arith.truncf %141 : vector<64x16xf32> to vector<64x16xbf16>
    %c48 = arith.constant 48 : index
    %c0_42 = arith.constant 0 : index
    %143 = vector.load %arg5[%c48, %c0_42] : memref<128x128xbf16, #tpu.memory_space<vmem>>, vector<16x128xbf16>
    %cst_43 = arith.constant dense<0.000000e+00> : vector<64x128xf32>
    %144 = tpu.matmul %142, %143, %cst_43 {dimension_numbers = #tpu.dot_dimension_numbers<[1], [0], [0], [1], [0, 0, 1, 1], [], []>} : vector<64x16xbf16>, vector<16x128xbf16>, vector<64x128xf32> -> vector<64x128xf32>
    %145 = arith.addf %120, %144 : vector<64x128xf32>
    %146 = vector.extract_strided_slice %34 {offsets = [0, 0, 64], sizes = [2, 32, 16], strides = [1, 1, 1]} : vector<2x32x128xbf16> to vector<2x32x16xbf16>
    %147 = vector.extract_strided_slice %37 {offsets = [0, 0, 64], sizes = [2, 32, 16], strides = [1, 1, 1]} : vector<2x32x128xbf16> to vector<2x32x16xbf16>
    %148 = vector.extract_strided_slice %40 {offsets = [0, 0, 64], sizes = [2, 32, 16], strides = [1, 1, 1]} : vector<2x32x128xbf16> to vector<2x32x16xbf16>
    "tpu.trace_start"() <{level = 10 : i32, message = "btd,bsd->bts"}> : () -> ()
    %cst_44 = arith.constant dense<0.000000e+00> : vector<2x32x32xf32>
    %149 = tpu.matmul %146, %147, %cst_44 {dimension_numbers = #tpu.dot_dimension_numbers<[2], [2], [1], [1], [0, 0, 0, 1, 1, 1], [0], [0]>} : vector<2x32x16xbf16>, vector<2x32x16xbf16>, vector<2x32x32xf32> -> vector<2x32x32xf32>
    %cst_45 = arith.constant 0xFF800000 : f32
    "tpu.trace_stop"() : () -> ()
    %150 = vector.shape_cast %44 : vector<1x32x32xi1> to vector<1x32x32xi1>
    %151 = vector.broadcast %150 : vector<1x32x32xi1> to vector<2x32x32xi1>
    %152 = vector.broadcast %cst_45 : f32 to vector<2x32x32xf32>
    %153 = arith.select %151, %149, %152 : vector<2x32x32xi1>, vector<2x32x32xf32>
    %cst_46 = arith.constant dense<0xFF800000> : vector<2x32xf32>
    %154 = vector.multi_reduction <maximumf>, %153, %cst_46 [2] : vector<2x32x32xf32> to vector<2x32xf32>
    %155 = vector.shape_cast %154 : vector<2x32xf32> to vector<2x32x1xf32>
    %156 = vector.broadcast %155 : vector<2x32x1xf32> to vector<2x32x32xf32>
    %157 = arith.subf %153, %156 : vector<2x32x32xf32>
    %158 = math.exp %157 : vector<2x32x32xf32>
    %cst_47 = arith.constant dense<0.000000e+00> : vector<2x32xf32>
    %159 = vector.multi_reduction <add>, %158, %cst_47 [2] : vector<2x32x32xf32> to vector<2x32xf32>
    %160 = vector.shape_cast %159 : vector<2x32xf32> to vector<2x32x1xf32>
    %161 = tpu.reciprocal %160 {approx = true} : vector<2x32x1xf32> -> vector<2x32x1xf32>
    %162 = vector.broadcast %161 : vector<2x32x1xf32> to vector<2x32x32xf32>
    %163 = arith.mulf %158, %162 : vector<2x32x32xf32>
    %164 = arith.truncf %163 : vector<2x32x32xf32> to vector<2x32x32xbf16>
    "tpu.trace_start"() <{level = 10 : i32, message = "bts,bsd->btd"}> : () -> ()
    %cst_48 = arith.constant dense<0.000000e+00> : vector<2x32x16xf32>
    %165 = tpu.matmul %164, %148, %cst_48 {dimension_numbers = #tpu.dot_dimension_numbers<[2], [1], [1], [2], [0, 0, 0, 1, 1, 2], [0], [0]>} : vector<2x32x32xbf16>, vector<2x32x16xbf16>, vector<2x32x16xf32> -> vector<2x32x16xf32>
    "tpu.trace_stop"() : () -> ()
    %166 = vector.shape_cast %165 : vector<2x32x16xf32> to vector<64x16xf32>
    %167 = arith.truncf %166 : vector<64x16xf32> to vector<64x16xbf16>
    %c64 = arith.constant 64 : index
    %c0_49 = arith.constant 0 : index
    %168 = vector.load %arg5[%c64, %c0_49] : memref<128x128xbf16, #tpu.memory_space<vmem>>, vector<16x128xbf16>
    %cst_50 = arith.constant dense<0.000000e+00> : vector<64x128xf32>
    %169 = tpu.matmul %167, %168, %cst_50 {dimension_numbers = #tpu.dot_dimension_numbers<[1], [0], [0], [1], [0, 0, 1, 1], [], []>} : vector<64x16xbf16>, vector<16x128xbf16>, vector<64x128xf32> -> vector<64x128xf32>
    %170 = arith.addf %145, %169 : vector<64x128xf32>
    %171 = vector.extract_strided_slice %34 {offsets = [0, 0, 80], sizes = [2, 32, 16], strides = [1, 1, 1]} : vector<2x32x128xbf16> to vector<2x32x16xbf16>
    %172 = vector.extract_strided_slice %37 {offsets = [0, 0, 80], sizes = [2, 32, 16], strides = [1, 1, 1]} : vector<2x32x128xbf16> to vector<2x32x16xbf16>
    %173 = vector.extract_strided_slice %40 {offsets = [0, 0, 80], sizes = [2, 32, 16], strides = [1, 1, 1]} : vector<2x32x128xbf16> to vector<2x32x16xbf16>
    "tpu.trace_start"() <{level = 10 : i32, message = "btd,bsd->bts"}> : () -> ()
    %cst_51 = arith.constant dense<0.000000e+00> : vector<2x32x32xf32>
    %174 = tpu.matmul %171, %172, %cst_51 {dimension_numbers = #tpu.dot_dimension_numbers<[2], [2], [1], [1], [0, 0, 0, 1, 1, 1], [0], [0]>} : vector<2x32x16xbf16>, vector<2x32x16xbf16>, vector<2x32x32xf32> -> vector<2x32x32xf32>
    %cst_52 = arith.constant 0xFF800000 : f32
    "tpu.trace_stop"() : () -> ()
    %175 = vector.shape_cast %44 : vector<1x32x32xi1> to vector<1x32x32xi1>
    %176 = vector.broadcast %175 : vector<1x32x32xi1> to vector<2x32x32xi1>
    %177 = vector.broadcast %cst_52 : f32 to vector<2x32x32xf32>
    %178 = arith.select %176, %174, %177 : vector<2x32x32xi1>, vector<2x32x32xf32>
    %cst_53 = arith.constant dense<0xFF800000> : vector<2x32xf32>
    %179 = vector.multi_reduction <maximumf>, %178, %cst_53 [2] : vector<2x32x32xf32> to vector<2x32xf32>
    %180 = vector.shape_cast %179 : vector<2x32xf32> to vector<2x32x1xf32>
    %181 = vector.broadcast %180 : vector<2x32x1xf32> to vector<2x32x32xf32>
    %182 = arith.subf %178, %181 : vector<2x32x32xf32>
    %183 = math.exp %182 : vector<2x32x32xf32>
    %cst_54 = arith.constant dense<0.000000e+00> : vector<2x32xf32>
    %184 = vector.multi_reduction <add>, %183, %cst_54 [2] : vector<2x32x32xf32> to vector<2x32xf32>
    %185 = vector.shape_cast %184 : vector<2x32xf32> to vector<2x32x1xf32>
    %186 = tpu.reciprocal %185 {approx = true} : vector<2x32x1xf32> -> vector<2x32x1xf32>
    %187 = vector.broadcast %186 : vector<2x32x1xf32> to vector<2x32x32xf32>
    %188 = arith.mulf %183, %187 : vector<2x32x32xf32>
    %189 = arith.truncf %188 : vector<2x32x32xf32> to vector<2x32x32xbf16>
    "tpu.trace_start"() <{level = 10 : i32, message = "bts,bsd->btd"}> : () -> ()
    %cst_55 = arith.constant dense<0.000000e+00> : vector<2x32x16xf32>
    %190 = tpu.matmul %189, %173, %cst_55 {dimension_numbers = #tpu.dot_dimension_numbers<[2], [1], [1], [2], [0, 0, 0, 1, 1, 2], [0], [0]>} : vector<2x32x32xbf16>, vector<2x32x16xbf16>, vector<2x32x16xf32> -> vector<2x32x16xf32>
    "tpu.trace_stop"() : () -> ()
    %191 = vector.shape_cast %190 : vector<2x32x16xf32> to vector<64x16xf32>
    %192 = arith.truncf %191 : vector<64x16xf32> to vector<64x16xbf16>
    %c80 = arith.constant 80 : index
    %c0_56 = arith.constant 0 : index
    %193 = vector.load %arg5[%c80, %c0_56] : memref<128x128xbf16, #tpu.memory_space<vmem>>, vector<16x128xbf16>
    %cst_57 = arith.constant dense<0.000000e+00> : vector<64x128xf32>
    %194 = tpu.matmul %192, %193, %cst_57 {dimension_numbers = #tpu.dot_dimension_numbers<[1], [0], [0], [1], [0, 0, 1, 1], [], []>} : vector<64x16xbf16>, vector<16x128xbf16>, vector<64x128xf32> -> vector<64x128xf32>
    %195 = arith.addf %170, %194 : vector<64x128xf32>
    %196 = vector.extract_strided_slice %34 {offsets = [0, 0, 96], sizes = [2, 32, 16], strides = [1, 1, 1]} : vector<2x32x128xbf16> to vector<2x32x16xbf16>
    %197 = vector.extract_strided_slice %37 {offsets = [0, 0, 96], sizes = [2, 32, 16], strides = [1, 1, 1]} : vector<2x32x128xbf16> to vector<2x32x16xbf16>
    %198 = vector.extract_strided_slice %40 {offsets = [0, 0, 96], sizes = [2, 32, 16], strides = [1, 1, 1]} : vector<2x32x128xbf16> to vector<2x32x16xbf16>
    "tpu.trace_start"() <{level = 10 : i32, message = "btd,bsd->bts"}> : () -> ()
    %cst_58 = arith.constant dense<0.000000e+00> : vector<2x32x32xf32>
    %199 = tpu.matmul %196, %197, %cst_58 {dimension_numbers = #tpu.dot_dimension_numbers<[2], [2], [1], [1], [0, 0, 0, 1, 1, 1], [0], [0]>} : vector<2x32x16xbf16>, vector<2x32x16xbf16>, vector<2x32x32xf32> -> vector<2x32x32xf32>
    %cst_59 = arith.constant 0xFF800000 : f32
    "tpu.trace_stop"() : () -> ()
    %200 = vector.shape_cast %44 : vector<1x32x32xi1> to vector<1x32x32xi1>
    %201 = vector.broadcast %200 : vector<1x32x32xi1> to vector<2x32x32xi1>
    %202 = vector.broadcast %cst_59 : f32 to vector<2x32x32xf32>
    %203 = arith.select %201, %199, %202 : vector<2x32x32xi1>, vector<2x32x32xf32>
    %cst_60 = arith.constant dense<0xFF800000> : vector<2x32xf32>
    %204 = vector.multi_reduction <maximumf>, %203, %cst_60 [2] : vector<2x32x32xf32> to vector<2x32xf32>
    %205 = vector.shape_cast %204 : vector<2x32xf32> to vector<2x32x1xf32>
    %206 = vector.broadcast %205 : vector<2x32x1xf32> to vector<2x32x32xf32>
    %207 = arith.subf %203, %206 : vector<2x32x32xf32>
    %208 = math.exp %207 : vector<2x32x32xf32>
    %cst_61 = arith.constant dense<0.000000e+00> : vector<2x32xf32>
    %209 = vector.multi_reduction <add>, %208, %cst_61 [2] : vector<2x32x32xf32> to vector<2x32xf32>
    %210 = vector.shape_cast %209 : vector<2x32xf32> to vector<2x32x1xf32>
    %211 = tpu.reciprocal %210 {approx = true} : vector<2x32x1xf32> -> vector<2x32x1xf32>
    %212 = vector.broadcast %211 : vector<2x32x1xf32> to vector<2x32x32xf32>
    %213 = arith.mulf %208, %212 : vector<2x32x32xf32>
    %214 = arith.truncf %213 : vector<2x32x32xf32> to vector<2x32x32xbf16>
    "tpu.trace_start"() <{level = 10 : i32, message = "bts,bsd->btd"}> : () -> ()
    %cst_62 = arith.constant dense<0.000000e+00> : vector<2x32x16xf32>
    %215 = tpu.matmul %214, %198, %cst_62 {dimension_numbers = #tpu.dot_dimension_numbers<[2], [1], [1], [2], [0, 0, 0, 1, 1, 2], [0], [0]>} : vector<2x32x32xbf16>, vector<2x32x16xbf16>, vector<2x32x16xf32> -> vector<2x32x16xf32>
    "tpu.trace_stop"() : () -> ()
    %216 = vector.shape_cast %215 : vector<2x32x16xf32> to vector<64x16xf32>
    %217 = arith.truncf %216 : vector<64x16xf32> to vector<64x16xbf16>
    %c96 = arith.constant 96 : index
    %c0_63 = arith.constant 0 : index
    %218 = vector.load %arg5[%c96, %c0_63] : memref<128x128xbf16, #tpu.memory_space<vmem>>, vector<16x128xbf16>
    %cst_64 = arith.constant dense<0.000000e+00> : vector<64x128xf32>
    %219 = tpu.matmul %217, %218, %cst_64 {dimension_numbers = #tpu.dot_dimension_numbers<[1], [0], [0], [1], [0, 0, 1, 1], [], []>} : vector<64x16xbf16>, vector<16x128xbf16>, vector<64x128xf32> -> vector<64x128xf32>
    %220 = arith.addf %195, %219 : vector<64x128xf32>
    %221 = vector.extract_strided_slice %34 {offsets = [0, 0, 112], sizes = [2, 32, 16], strides = [1, 1, 1]} : vector<2x32x128xbf16> to vector<2x32x16xbf16>
    %222 = vector.extract_strided_slice %37 {offsets = [0, 0, 112], sizes = [2, 32, 16], strides = [1, 1, 1]} : vector<2x32x128xbf16> to vector<2x32x16xbf16>
    %223 = vector.extract_strided_slice %40 {offsets = [0, 0, 112], sizes = [2, 32, 16], strides = [1, 1, 1]} : vector<2x32x128xbf16> to vector<2x32x16xbf16>
    "tpu.trace_start"() <{level = 10 : i32, message = "btd,bsd->bts"}> : () -> ()
    %cst_65 = arith.constant dense<0.000000e+00> : vector<2x32x32xf32>
    %224 = tpu.matmul %221, %222, %cst_65 {dimension_numbers = #tpu.dot_dimension_numbers<[2], [2], [1], [1], [0, 0, 0, 1, 1, 1], [0], [0]>} : vector<2x32x16xbf16>, vector<2x32x16xbf16>, vector<2x32x32xf32> -> vector<2x32x32xf32>
    %cst_66 = arith.constant 0xFF800000 : f32
    "tpu.trace_stop"() : () -> ()
    %225 = vector.shape_cast %44 : vector<1x32x32xi1> to vector<1x32x32xi1>
    %226 = vector.broadcast %225 : vector<1x32x32xi1> to vector<2x32x32xi1>
    %227 = vector.broadcast %cst_66 : f32 to vector<2x32x32xf32>
    %228 = arith.select %226, %224, %227 : vector<2x32x32xi1>, vector<2x32x32xf32>
    %cst_67 = arith.constant dense<0xFF800000> : vector<2x32xf32>
    %229 = vector.multi_reduction <maximumf>, %228, %cst_67 [2] : vector<2x32x32xf32> to vector<2x32xf32>
    %230 = vector.shape_cast %229 : vector<2x32xf32> to vector<2x32x1xf32>
    %231 = vector.broadcast %230 : vector<2x32x1xf32> to vector<2x32x32xf32>
    %232 = arith.subf %228, %231 : vector<2x32x32xf32>
    %233 = math.exp %232 : vector<2x32x32xf32>
    %cst_68 = arith.constant dense<0.000000e+00> : vector<2x32xf32>
    %234 = vector.multi_reduction <add>, %233, %cst_68 [2] : vector<2x32x32xf32> to vector<2x32xf32>
    %235 = vector.shape_cast %234 : vector<2x32xf32> to vector<2x32x1xf32>
    %236 = tpu.reciprocal %235 {approx = true} : vector<2x32x1xf32> -> vector<2x32x1xf32>
    %237 = vector.broadcast %236 : vector<2x32x1xf32> to vector<2x32x32xf32>
    %238 = arith.mulf %233, %237 : vector<2x32x32xf32>
    %239 = arith.truncf %238 : vector<2x32x32xf32> to vector<2x32x32xbf16>
    "tpu.trace_start"() <{level = 10 : i32, message = "bts,bsd->btd"}> : () -> ()
    %cst_69 = arith.constant dense<0.000000e+00> : vector<2x32x16xf32>
    %240 = tpu.matmul %239, %223, %cst_69 {dimension_numbers = #tpu.dot_dimension_numbers<[2], [1], [1], [2], [0, 0, 0, 1, 1, 2], [0], [0]>} : vector<2x32x32xbf16>, vector<2x32x16xbf16>, vector<2x32x16xf32> -> vector<2x32x16xf32>
    "tpu.trace_stop"() : () -> ()
    %241 = vector.shape_cast %240 : vector<2x32x16xf32> to vector<64x16xf32>
    %242 = arith.truncf %241 : vector<64x16xf32> to vector<64x16xbf16>
    %c112 = arith.constant 112 : index
    %c0_70 = arith.constant 0 : index
    %243 = vector.load %arg5[%c112, %c0_70] : memref<128x128xbf16, #tpu.memory_space<vmem>>, vector<16x128xbf16>
    %cst_71 = arith.constant dense<0.000000e+00> : vector<64x128xf32>
    %244 = tpu.matmul %242, %243, %cst_71 {dimension_numbers = #tpu.dot_dimension_numbers<[1], [0], [0], [1], [0, 0, 1, 1], [], []>} : vector<64x16xbf16>, vector<16x128xbf16>, vector<64x128xf32> -> vector<64x128xf32>
    %245 = arith.addf %220, %244 : vector<64x128xf32>
    %246 = arith.addf %2, %245 : vector<64x128xf32>
    %c0_72 = arith.constant 0 : index
    %c0_73 = arith.constant 0 : index
    %247 = vector.load %arg6[%c0_72, %c0_73] : memref<1x128xf32, #tpu.memory_space<vmem>>, vector<1x128xf32>
    %248 = vector.broadcast %247 : vector<1x128xf32> to vector<64x128xf32>
    %249 = arith.addf %246, %248 : vector<64x128xf32>
    %250 = vector.shape_cast %249 : vector<64x128xf32> to vector<2x32x128xf32>
    %251 = arith.truncf %250 : vector<2x32x128xf32> to vector<2x32x128xbf16>
    %c0_74 = arith.constant 0 : index
    %c0_75 = arith.constant 0 : index
    %c0_76 = arith.constant 0 : index
    %252 = vector.load %arg11[%c0_74, %c0_75, %c0_76] : memref<2x32x128xbf16, #tpu.memory_space<vmem>>, vector<2x32x128xbf16>
    tpu.vector_store %arg11[%c0_74, %c0_75, %c0_76], %251 {strides = array<i32>} : memref<2x32x128xbf16, #tpu.memory_space<vmem>>, vector<2x32x128xbf16>,
    %c0_77 = arith.constant 0 : index
    %c0_78 = arith.constant 0 : index
    %253 = vector.load %arg7[%c0_77, %c0_78] : memref<1x128xf32, #tpu.memory_space<vmem>>, vector<1x128xf32>
    %c0_79 = arith.constant 0 : index
    %c0_80 = arith.constant 0 : index
    %254 = vector.load %arg8[%c0_79, %c0_80] : memref<1x128xf32, #tpu.memory_space<vmem>>, vector<1x128xf32>
    %cst_81 = arith.constant dense<0.000000e+00> : vector<64xf32>
    %255 = vector.multi_reduction <add>, %249, %cst_81 [1] : vector<64x128xf32> to vector<64xf32>
    %256 = vector.shape_cast %255 : vector<64xf32> to vector<64x1xf32>
    %cst_82 = arith.constant 1.280000e+02 : f32
    %257 = vector.broadcast %cst_82 : f32 to vector<64x1xf32>
    %258 = arith.divf %256, %257 : vector<64x1xf32>
    %259 = vector.broadcast %258 : vector<64x1xf32> to vector<64x128xf32>
    %260 = arith.subf %249, %259 : vector<64x128xf32>
    %261 = arith.mulf %260, %260 : vector<64x128xf32>
    %cst_83 = arith.constant dense<0.000000e+00> : vector<64xf32>
    %262 = vector.multi_reduction <add>, %261, %cst_83 [1] : vector<64x128xf32> to vector<64xf32>
    %263 = vector.shape_cast %262 : vector<64xf32> to vector<64x1xf32>
    %cst_84 = arith.constant 1.280000e+02 : f32
    %264 = vector.broadcast %cst_84 : f32 to vector<64x1xf32>
    %265 = arith.divf %263, %264 : vector<64x1xf32>
    %266 = vector.broadcast %258 : vector<64x1xf32> to vector<64x128xf32>
    %267 = arith.subf %249, %266 : vector<64x128xf32>
    %cst_85 = arith.constant 9.99999974E-6 : f32
    %268 = vector.broadcast %cst_85 : f32 to vector<64x1xf32>
    %269 = arith.addf %265, %268 : vector<64x1xf32>
    %270 = math.rsqrt %269 : vector<64x1xf32>
    %271 = vector.broadcast %270 : vector<64x1xf32> to vector<64x128xf32>
    %272 = arith.mulf %267, %271 : vector<64x128xf32>
    %273 = vector.broadcast %253 : vector<1x128xf32> to vector<64x128xf32>
    %274 = arith.mulf %272, %273 : vector<64x128xf32>
    %275 = vector.broadcast %254 : vector<1x128xf32> to vector<64x128xf32>
    %276 = arith.addf %274, %275 : vector<64x128xf32>
    %277 = arith.truncf %276 : vector<64x128xf32> to vector<64x128xbf16>
    %c0_86 = arith.constant 0 : index
    %c0_87 = arith.constant 0 : index
    %278 = vector.load %arg9[%c0_86, %c0_87] : memref<128x16xbf16, #tpu.memory_space<vmem>>, vector<128x16xbf16>
    %cst_88 = arith.constant dense<0.000000e+00> : vector<64x16xf32>
    %279 = tpu.matmul %277, %278, %cst_88 {dimension_numbers = #tpu.dot_dimension_numbers<[1], [0], [0], [1], [0, 0, 1, 1], [], []>} : vector<64x128xbf16>, vector<128x16xbf16>, vector<64x16xf32> -> vector<64x16xf32>
    %c0_89 = arith.constant 0 : index
    %c0_90 = arith.constant 0 : index
    %280 = vector.load %arg10[%c0_89, %c0_90] : memref<1x16xf32, #tpu.memory_space<vmem>>, vector<1x16xf32>
    %281 = vector.broadcast %280 : vector<1x16xf32> to vector<64x16xf32>
    %282 = arith.addf %279, %281 : vector<64x16xf32>
    %283 = vector.shape_cast %282 : vector<64x16xf32> to vector<2x32x16xf32>
    %c0_91 = arith.constant 0 : index
    %c0_92 = arith.constant 0 : index
    %c0_93 = arith.constant 0 : index
    %284 = vector.load %arg12[%c0_91, %c0_92, %c0_93] : memref<2x32x16xf32, #tpu.memory_space<vmem>>, vector<2x32x16xf32>
    tpu.vector_store %arg12[%c0_91, %c0_92, %c0_93], %283 {strides = array<i32>} : memref<2x32x16xf32, #tpu.memory_space<vmem>>, vector<2x32x16xf32>,
    return
  }
  func.func @transform_0(%arg0: i32) -> (i32, i32, i32) {
    %c0_i32 = arith.constant 0 : i32
    %c0_i32_0 = arith.constant 0 : i32
    %c0_i32_1 = arith.constant 0 : i32
    return %arg0, %c0_i32, %c0_i32_0 : i32, i32, i32
  }
  func.func @transform_1(%arg0: i32) -> (i32, i32) {
    %c0_i32 = arith.constant 0 : i32
    %c0_i32_0 = arith.constant 0 : i32
    %c0_i32_1 = arith.constant 0 : i32
    return %c0_i32, %c0_i32_0 : i32, i32
  }
  func.func @transform_2(%arg0: i32) -> (i32, i32) {
    %c0_i32 = arith.constant 0 : i32
    %c0_i32_0 = arith.constant 0 : i32
    %c0_i32_1 = arith.constant 0 : i32
    return %c0_i32, %c0_i32_0 : i32, i32
  }
  func.func @transform_3(%arg0: i32) -> (i32, i32) {
    %c0_i32 = arith.constant 0 : i32
    %c0_i32_0 = arith.constant 0 : i32
    %c0_i32_1 = arith.constant 0 : i32
    return %c0_i32, %c0_i32_0 : i32, i32
  }
  func.func @transform_4(%arg0: i32) -> (i32, i32) {
    %c0_i32 = arith.constant 0 : i32
    %c0_i32_0 = arith.constant 0 : i32
    %c0_i32_1 = arith.constant 0 : i32
    return %c0_i32, %c0_i32_0 : i32, i32
  }
  func.func @transform_5(%arg0: i32) -> (i32, i32) {
    %c0_i32 = arith.constant 0 : i32
    %c0_i32_0 = arith.constant 0 : i32
    %c0_i32_1 = arith.constant 0 : i32
    return %c0_i32, %c0_i32_0 : i32, i32
  }
  func.func @transform_6(%arg0: i32) -> (i32, i32) {
    %c0_i32 = arith.constant 0 : i32
    %c0_i32_0 = arith.constant 0 : i32
    %c0_i32_1 = arith.constant 0 : i32
    return %c0_i32, %c0_i32_0 : i32, i32
  }
  func.func @transform_7(%arg0: i32) -> (i32, i32) {
    %c0_i32 = arith.constant 0 : i32
    %c0_i32_0 = arith.constant 0 : i32
    %c0_i32_1 = arith.constant 0 : i32
    return %c0_i32, %c0_i32_0 : i32, i32
  }
  func.func @transform_8(%arg0: i32) -> (i32, i32) {
    %c0_i32 = arith.constant 0 : i32
    %c0_i32_0 = arith.constant 0 : i32
    %c0_i32_1 = arith.constant 0 : i32
    return %c0_i32, %c0_i32_0 : i32, i32
  }
  func.func @transform_9(%arg0: i32) -> (i32, i32) {
    %c0_i32 = arith.constant 0 : i32
    %c0_i32_0 = arith.constant 0 : i32
    %c0_i32_1 = arith.constant 0 : i32
    return %c0_i32, %c0_i32_0 : i32, i32
  }
  func.func @transform_10(%arg0: i32) -> (i32, i32, i32) {
    %c0_i32 = arith.constant 0 : i32
    %c0_i32_0 = arith.constant 0 : i32
    %c0_i32_1 = arith.constant 0 : i32
    return %arg0, %c0_i32, %c0_i32_0 : i32, i32, i32
  }
  func.func @transform_11(%arg0: i32) -> (i32, i32, i32) {
    %c0_i32 = arith.constant 0 : i32
    %c0_i32_0 = arith.constant 0 : i32
    %c0_i32_1 = arith.constant 0 : i32
    return %arg0, %c0_i32, %c0_i32_0 : i32, i32, i32
  }
}

module attributes {stable_mosaic.version = 11 : i64} {
  func.func @moe_block_kernel(%arg0: i32, %arg1: memref<64x128xbf16, #tpu.memory_space<vmem>>, %arg2: memref<1x128xf32, #tpu.memory_space<vmem>>, %arg3: memref<1x128xf32, #tpu.memory_space<vmem>>, %arg4: memref<64x8xf32, #tpu.memory_space<vmem>>, %arg5: memref<8x128x512xbf16, #tpu.memory_space<vmem>>, %arg6: memref<8x1x512xf32, #tpu.memory_space<vmem>>, %arg7: memref<8x512x128xbf16, #tpu.memory_space<vmem>>, %arg8: memref<8x1x128xf32, #tpu.memory_space<vmem>>, %arg9: memref<64x128xbf16, #tpu.memory_space<vmem>>) attributes {dimension_semantics = [#tpu.dimension_semantics<parallel>], iteration_bounds = array<i64: 2>, scalar_prefetch = 0 : i64, scratch_operands = 0 : i64, tpu.core_type = #tpu.core_type<tc>, window_params = [{transform_indices = @transform_0, window_bounds = array<i64: 64, 128>}, {pipeline_mode = #tpu.pipeline_mode<synchronous>, transform_indices = @transform_1, window_bounds = array<i64: 1, 128>}, {pipeline_mode = #tpu.pipeline_mode<synchronous>, transform_indices = @transform_2, window_bounds = array<i64: 1, 128>}, {transform_indices = @transform_3, window_bounds = array<i64: 64, 8>}, {pipeline_mode = #tpu.pipeline_mode<synchronous>, transform_indices = @transform_4, window_bounds = array<i64: 8, 128, 512>}, {pipeline_mode = #tpu.pipeline_mode<synchronous>, transform_indices = @transform_5, window_bounds = array<i64: 8, 1, 512>}, {pipeline_mode = #tpu.pipeline_mode<synchronous>, transform_indices = @transform_6, window_bounds = array<i64: 8, 512, 128>}, {pipeline_mode = #tpu.pipeline_mode<synchronous>, transform_indices = @transform_7, window_bounds = array<i64: 8, 1, 128>}, {transform_indices = @transform_8, window_bounds = array<i64: 64, 128>}]} {
    %c0 = arith.constant 0 : index
    %c0_0 = arith.constant 0 : index
    %0 = vector.load %arg1[%c0, %c0_0] : memref<64x128xbf16, #tpu.memory_space<vmem>>, vector<64x128xbf16>
    %1 = arith.extf %0 : vector<64x128xbf16> to vector<64x128xf32>
    %c0_1 = arith.constant 0 : index
    %c0_2 = arith.constant 0 : index
    %2 = vector.load %arg2[%c0_1, %c0_2] : memref<1x128xf32, #tpu.memory_space<vmem>>, vector<1x128xf32>
    %c0_3 = arith.constant 0 : index
    %c0_4 = arith.constant 0 : index
    %3 = vector.load %arg3[%c0_3, %c0_4] : memref<1x128xf32, #tpu.memory_space<vmem>>, vector<1x128xf32>
    %cst = arith.constant dense<0.000000e+00> : vector<64xf32>
    %4 = vector.multi_reduction <add>, %1, %cst [1] : vector<64x128xf32> to vector<64xf32>
    %5 = vector.shape_cast %4 : vector<64xf32> to vector<64x1xf32>
    %cst_5 = arith.constant 1.280000e+02 : f32
    %6 = vector.broadcast %cst_5 : f32 to vector<64x1xf32>
    %7 = arith.divf %5, %6 : vector<64x1xf32>
    %8 = vector.broadcast %7 : vector<64x1xf32> to vector<64x128xf32>
    %9 = arith.subf %1, %8 : vector<64x128xf32>
    %10 = arith.mulf %9, %9 : vector<64x128xf32>
    %cst_6 = arith.constant dense<0.000000e+00> : vector<64xf32>
    %11 = vector.multi_reduction <add>, %10, %cst_6 [1] : vector<64x128xf32> to vector<64xf32>
    %12 = vector.shape_cast %11 : vector<64xf32> to vector<64x1xf32>
    %cst_7 = arith.constant 1.280000e+02 : f32
    %13 = vector.broadcast %cst_7 : f32 to vector<64x1xf32>
    %14 = arith.divf %12, %13 : vector<64x1xf32>
    %15 = vector.broadcast %7 : vector<64x1xf32> to vector<64x128xf32>
    %16 = arith.subf %1, %15 : vector<64x128xf32>
    %cst_8 = arith.constant 9.99999974E-6 : f32
    %17 = vector.broadcast %cst_8 : f32 to vector<64x1xf32>
    %18 = arith.addf %14, %17 : vector<64x1xf32>
    %19 = math.rsqrt %18 : vector<64x1xf32>
    %20 = vector.broadcast %19 : vector<64x1xf32> to vector<64x128xf32>
    %21 = arith.mulf %16, %20 : vector<64x128xf32>
    %22 = vector.broadcast %2 : vector<1x128xf32> to vector<64x128xf32>
    %23 = arith.mulf %21, %22 : vector<64x128xf32>
    %24 = vector.broadcast %3 : vector<1x128xf32> to vector<64x128xf32>
    %25 = arith.addf %23, %24 : vector<64x128xf32>
    %26 = arith.truncf %25 : vector<64x128xf32> to vector<64x128xbf16>
    %c0_9 = arith.constant 0 : index
    %c0_10 = arith.constant 0 : index
    %27 = vector.load %arg4[%c0_9, %c0_10] : memref<64x8xf32, #tpu.memory_space<vmem>>, vector<64x8xf32>
    %c0_11 = arith.constant 0 : index
    %c0_12 = arith.constant 0 : index
    %c0_13 = arith.constant 0 : index
    %28 = vector.load %arg5[%c0_11, %c0_12, %c0_13] : memref<8x128x512xbf16, #tpu.memory_space<vmem>>, vector<1x128x512xbf16>
    %29 = vector.shape_cast %28 : vector<1x128x512xbf16> to vector<128x512xbf16>
    %cst_14 = arith.constant dense<0.000000e+00> : vector<64x512xf32>
    %30 = tpu.matmul %26, %29, %cst_14 {dimension_numbers = #tpu.dot_dimension_numbers<[1], [0], [0], [1], [0, 0, 1, 1], [], []>} : vector<64x128xbf16>, vector<128x512xbf16>, vector<64x512xf32> -> vector<64x512xf32>
    %c0_15 = arith.constant 0 : index
    %c0_16 = arith.constant 0 : index
    %c0_17 = arith.constant 0 : index
    %31 = vector.load %arg6[%c0_15, %c0_16, %c0_17] : memref<8x1x512xf32, #tpu.memory_space<vmem>>, vector<1x1x512xf32>
    %32 = vector.shape_cast %31 : vector<1x1x512xf32> to vector<1x512xf32>
    %33 = vector.broadcast %32 : vector<1x512xf32> to vector<64x512xf32>
    %34 = arith.addf %30, %33 : vector<64x512xf32>
    %cst_18 = arith.constant 0.000000e+00 : f32
    %35 = vector.broadcast %cst_18 : f32 to vector<64x512xf32>
    %36 = arith.maximumf %34, %35 : vector<64x512xf32>
    %37 = arith.truncf %36 : vector<64x512xf32> to vector<64x512xbf16>
    %c0_19 = arith.constant 0 : index
    %c0_20 = arith.constant 0 : index
    %c0_21 = arith.constant 0 : index
    %38 = vector.load %arg7[%c0_19, %c0_20, %c0_21] : memref<8x512x128xbf16, #tpu.memory_space<vmem>>, vector<1x512x128xbf16>
    %39 = vector.shape_cast %38 : vector<1x512x128xbf16> to vector<512x128xbf16>
    %cst_22 = arith.constant dense<0.000000e+00> : vector<64x128xf32>
    %40 = tpu.matmul %37, %39, %cst_22 {dimension_numbers = #tpu.dot_dimension_numbers<[1], [0], [0], [1], [0, 0, 1, 1], [], []>} : vector<64x512xbf16>, vector<512x128xbf16>, vector<64x128xf32> -> vector<64x128xf32>
    %c0_23 = arith.constant 0 : index
    %c0_24 = arith.constant 0 : index
    %c0_25 = arith.constant 0 : index
    %41 = vector.load %arg8[%c0_23, %c0_24, %c0_25] : memref<8x1x128xf32, #tpu.memory_space<vmem>>, vector<1x1x128xf32>
    %42 = vector.shape_cast %41 : vector<1x1x128xf32> to vector<1x128xf32>
    %43 = vector.broadcast %42 : vector<1x128xf32> to vector<64x128xf32>
    %44 = arith.addf %40, %43 : vector<64x128xf32>
    %45 = vector.extract_strided_slice %27 {offsets = [0, 0], sizes = [64, 1], strides = [1, 1]} : vector<64x8xf32> to vector<64x1xf32>
    %46 = vector.broadcast %45 : vector<64x1xf32> to vector<64x128xf32>
    %47 = arith.mulf %44, %46 : vector<64x128xf32>
    %48 = arith.addf %1, %47 : vector<64x128xf32>
    %c1 = arith.constant 1 : index
    %c0_26 = arith.constant 0 : index
    %c0_27 = arith.constant 0 : index
    %49 = vector.load %arg5[%c1, %c0_26, %c0_27] : memref<8x128x512xbf16, #tpu.memory_space<vmem>>, vector<1x128x512xbf16>
    %50 = vector.shape_cast %49 : vector<1x128x512xbf16> to vector<128x512xbf16>
    %cst_28 = arith.constant dense<0.000000e+00> : vector<64x512xf32>
    %51 = tpu.matmul %26, %50, %cst_28 {dimension_numbers = #tpu.dot_dimension_numbers<[1], [0], [0], [1], [0, 0, 1, 1], [], []>} : vector<64x128xbf16>, vector<128x512xbf16>, vector<64x512xf32> -> vector<64x512xf32>
    %c1_29 = arith.constant 1 : index
    %c0_30 = arith.constant 0 : index
    %c0_31 = arith.constant 0 : index
    %52 = vector.load %arg6[%c1_29, %c0_30, %c0_31] : memref<8x1x512xf32, #tpu.memory_space<vmem>>, vector<1x1x512xf32>
    %53 = vector.shape_cast %52 : vector<1x1x512xf32> to vector<1x512xf32>
    %54 = vector.broadcast %53 : vector<1x512xf32> to vector<64x512xf32>
    %55 = arith.addf %51, %54 : vector<64x512xf32>
    %cst_32 = arith.constant 0.000000e+00 : f32
    %56 = vector.broadcast %cst_32 : f32 to vector<64x512xf32>
    %57 = arith.maximumf %55, %56 : vector<64x512xf32>
    %58 = arith.truncf %57 : vector<64x512xf32> to vector<64x512xbf16>
    %c1_33 = arith.constant 1 : index
    %c0_34 = arith.constant 0 : index
    %c0_35 = arith.constant 0 : index
    %59 = vector.load %arg7[%c1_33, %c0_34, %c0_35] : memref<8x512x128xbf16, #tpu.memory_space<vmem>>, vector<1x512x128xbf16>
    %60 = vector.shape_cast %59 : vector<1x512x128xbf16> to vector<512x128xbf16>
    %cst_36 = arith.constant dense<0.000000e+00> : vector<64x128xf32>
    %61 = tpu.matmul %58, %60, %cst_36 {dimension_numbers = #tpu.dot_dimension_numbers<[1], [0], [0], [1], [0, 0, 1, 1], [], []>} : vector<64x512xbf16>, vector<512x128xbf16>, vector<64x128xf32> -> vector<64x128xf32>
    %c1_37 = arith.constant 1 : index
    %c0_38 = arith.constant 0 : index
    %c0_39 = arith.constant 0 : index
    %62 = vector.load %arg8[%c1_37, %c0_38, %c0_39] : memref<8x1x128xf32, #tpu.memory_space<vmem>>, vector<1x1x128xf32>
    %63 = vector.shape_cast %62 : vector<1x1x128xf32> to vector<1x128xf32>
    %64 = vector.broadcast %63 : vector<1x128xf32> to vector<64x128xf32>
    %65 = arith.addf %61, %64 : vector<64x128xf32>
    %66 = vector.extract_strided_slice %27 {offsets = [0, 1], sizes = [64, 1], strides = [1, 1]} : vector<64x8xf32> to vector<64x1xf32>
    %67 = vector.broadcast %66 : vector<64x1xf32> to vector<64x128xf32>
    %68 = arith.mulf %65, %67 : vector<64x128xf32>
    %69 = arith.addf %48, %68 : vector<64x128xf32>
    %c2 = arith.constant 2 : index
    %c0_40 = arith.constant 0 : index
    %c0_41 = arith.constant 0 : index
    %70 = vector.load %arg5[%c2, %c0_40, %c0_41] : memref<8x128x512xbf16, #tpu.memory_space<vmem>>, vector<1x128x512xbf16>
    %71 = vector.shape_cast %70 : vector<1x128x512xbf16> to vector<128x512xbf16>
    %cst_42 = arith.constant dense<0.000000e+00> : vector<64x512xf32>
    %72 = tpu.matmul %26, %71, %cst_42 {dimension_numbers = #tpu.dot_dimension_numbers<[1], [0], [0], [1], [0, 0, 1, 1], [], []>} : vector<64x128xbf16>, vector<128x512xbf16>, vector<64x512xf32> -> vector<64x512xf32>
    %c2_43 = arith.constant 2 : index
    %c0_44 = arith.constant 0 : index
    %c0_45 = arith.constant 0 : index
    %73 = vector.load %arg6[%c2_43, %c0_44, %c0_45] : memref<8x1x512xf32, #tpu.memory_space<vmem>>, vector<1x1x512xf32>
    %74 = vector.shape_cast %73 : vector<1x1x512xf32> to vector<1x512xf32>
    %75 = vector.broadcast %74 : vector<1x512xf32> to vector<64x512xf32>
    %76 = arith.addf %72, %75 : vector<64x512xf32>
    %cst_46 = arith.constant 0.000000e+00 : f32
    %77 = vector.broadcast %cst_46 : f32 to vector<64x512xf32>
    %78 = arith.maximumf %76, %77 : vector<64x512xf32>
    %79 = arith.truncf %78 : vector<64x512xf32> to vector<64x512xbf16>
    %c2_47 = arith.constant 2 : index
    %c0_48 = arith.constant 0 : index
    %c0_49 = arith.constant 0 : index
    %80 = vector.load %arg7[%c2_47, %c0_48, %c0_49] : memref<8x512x128xbf16, #tpu.memory_space<vmem>>, vector<1x512x128xbf16>
    %81 = vector.shape_cast %80 : vector<1x512x128xbf16> to vector<512x128xbf16>
    %cst_50 = arith.constant dense<0.000000e+00> : vector<64x128xf32>
    %82 = tpu.matmul %79, %81, %cst_50 {dimension_numbers = #tpu.dot_dimension_numbers<[1], [0], [0], [1], [0, 0, 1, 1], [], []>} : vector<64x512xbf16>, vector<512x128xbf16>, vector<64x128xf32> -> vector<64x128xf32>
    %c2_51 = arith.constant 2 : index
    %c0_52 = arith.constant 0 : index
    %c0_53 = arith.constant 0 : index
    %83 = vector.load %arg8[%c2_51, %c0_52, %c0_53] : memref<8x1x128xf32, #tpu.memory_space<vmem>>, vector<1x1x128xf32>
    %84 = vector.shape_cast %83 : vector<1x1x128xf32> to vector<1x128xf32>
    %85 = vector.broadcast %84 : vector<1x128xf32> to vector<64x128xf32>
    %86 = arith.addf %82, %85 : vector<64x128xf32>
    %87 = vector.extract_strided_slice %27 {offsets = [0, 2], sizes = [64, 1], strides = [1, 1]} : vector<64x8xf32> to vector<64x1xf32>
    %88 = vector.broadcast %87 : vector<64x1xf32> to vector<64x128xf32>
    %89 = arith.mulf %86, %88 : vector<64x128xf32>
    %90 = arith.addf %69, %89 : vector<64x128xf32>
    %c3 = arith.constant 3 : index
    %c0_54 = arith.constant 0 : index
    %c0_55 = arith.constant 0 : index
    %91 = vector.load %arg5[%c3, %c0_54, %c0_55] : memref<8x128x512xbf16, #tpu.memory_space<vmem>>, vector<1x128x512xbf16>
    %92 = vector.shape_cast %91 : vector<1x128x512xbf16> to vector<128x512xbf16>
    %cst_56 = arith.constant dense<0.000000e+00> : vector<64x512xf32>
    %93 = tpu.matmul %26, %92, %cst_56 {dimension_numbers = #tpu.dot_dimension_numbers<[1], [0], [0], [1], [0, 0, 1, 1], [], []>} : vector<64x128xbf16>, vector<128x512xbf16>, vector<64x512xf32> -> vector<64x512xf32>
    %c3_57 = arith.constant 3 : index
    %c0_58 = arith.constant 0 : index
    %c0_59 = arith.constant 0 : index
    %94 = vector.load %arg6[%c3_57, %c0_58, %c0_59] : memref<8x1x512xf32, #tpu.memory_space<vmem>>, vector<1x1x512xf32>
    %95 = vector.shape_cast %94 : vector<1x1x512xf32> to vector<1x512xf32>
    %96 = vector.broadcast %95 : vector<1x512xf32> to vector<64x512xf32>
    %97 = arith.addf %93, %96 : vector<64x512xf32>
    %cst_60 = arith.constant 0.000000e+00 : f32
    %98 = vector.broadcast %cst_60 : f32 to vector<64x512xf32>
    %99 = arith.maximumf %97, %98 : vector<64x512xf32>
    %100 = arith.truncf %99 : vector<64x512xf32> to vector<64x512xbf16>
    %c3_61 = arith.constant 3 : index
    %c0_62 = arith.constant 0 : index
    %c0_63 = arith.constant 0 : index
    %101 = vector.load %arg7[%c3_61, %c0_62, %c0_63] : memref<8x512x128xbf16, #tpu.memory_space<vmem>>, vector<1x512x128xbf16>
    %102 = vector.shape_cast %101 : vector<1x512x128xbf16> to vector<512x128xbf16>
    %cst_64 = arith.constant dense<0.000000e+00> : vector<64x128xf32>
    %103 = tpu.matmul %100, %102, %cst_64 {dimension_numbers = #tpu.dot_dimension_numbers<[1], [0], [0], [1], [0, 0, 1, 1], [], []>} : vector<64x512xbf16>, vector<512x128xbf16>, vector<64x128xf32> -> vector<64x128xf32>
    %c3_65 = arith.constant 3 : index
    %c0_66 = arith.constant 0 : index
    %c0_67 = arith.constant 0 : index
    %104 = vector.load %arg8[%c3_65, %c0_66, %c0_67] : memref<8x1x128xf32, #tpu.memory_space<vmem>>, vector<1x1x128xf32>
    %105 = vector.shape_cast %104 : vector<1x1x128xf32> to vector<1x128xf32>
    %106 = vector.broadcast %105 : vector<1x128xf32> to vector<64x128xf32>
    %107 = arith.addf %103, %106 : vector<64x128xf32>
    %108 = vector.extract_strided_slice %27 {offsets = [0, 3], sizes = [64, 1], strides = [1, 1]} : vector<64x8xf32> to vector<64x1xf32>
    %109 = vector.broadcast %108 : vector<64x1xf32> to vector<64x128xf32>
    %110 = arith.mulf %107, %109 : vector<64x128xf32>
    %111 = arith.addf %90, %110 : vector<64x128xf32>
    %c4 = arith.constant 4 : index
    %c0_68 = arith.constant 0 : index
    %c0_69 = arith.constant 0 : index
    %112 = vector.load %arg5[%c4, %c0_68, %c0_69] : memref<8x128x512xbf16, #tpu.memory_space<vmem>>, vector<1x128x512xbf16>
    %113 = vector.shape_cast %112 : vector<1x128x512xbf16> to vector<128x512xbf16>
    %cst_70 = arith.constant dense<0.000000e+00> : vector<64x512xf32>
    %114 = tpu.matmul %26, %113, %cst_70 {dimension_numbers = #tpu.dot_dimension_numbers<[1], [0], [0], [1], [0, 0, 1, 1], [], []>} : vector<64x128xbf16>, vector<128x512xbf16>, vector<64x512xf32> -> vector<64x512xf32>
    %c4_71 = arith.constant 4 : index
    %c0_72 = arith.constant 0 : index
    %c0_73 = arith.constant 0 : index
    %115 = vector.load %arg6[%c4_71, %c0_72, %c0_73] : memref<8x1x512xf32, #tpu.memory_space<vmem>>, vector<1x1x512xf32>
    %116 = vector.shape_cast %115 : vector<1x1x512xf32> to vector<1x512xf32>
    %117 = vector.broadcast %116 : vector<1x512xf32> to vector<64x512xf32>
    %118 = arith.addf %114, %117 : vector<64x512xf32>
    %cst_74 = arith.constant 0.000000e+00 : f32
    %119 = vector.broadcast %cst_74 : f32 to vector<64x512xf32>
    %120 = arith.maximumf %118, %119 : vector<64x512xf32>
    %121 = arith.truncf %120 : vector<64x512xf32> to vector<64x512xbf16>
    %c4_75 = arith.constant 4 : index
    %c0_76 = arith.constant 0 : index
    %c0_77 = arith.constant 0 : index
    %122 = vector.load %arg7[%c4_75, %c0_76, %c0_77] : memref<8x512x128xbf16, #tpu.memory_space<vmem>>, vector<1x512x128xbf16>
    %123 = vector.shape_cast %122 : vector<1x512x128xbf16> to vector<512x128xbf16>
    %cst_78 = arith.constant dense<0.000000e+00> : vector<64x128xf32>
    %124 = tpu.matmul %121, %123, %cst_78 {dimension_numbers = #tpu.dot_dimension_numbers<[1], [0], [0], [1], [0, 0, 1, 1], [], []>} : vector<64x512xbf16>, vector<512x128xbf16>, vector<64x128xf32> -> vector<64x128xf32>
    %c4_79 = arith.constant 4 : index
    %c0_80 = arith.constant 0 : index
    %c0_81 = arith.constant 0 : index
    %125 = vector.load %arg8[%c4_79, %c0_80, %c0_81] : memref<8x1x128xf32, #tpu.memory_space<vmem>>, vector<1x1x128xf32>
    %126 = vector.shape_cast %125 : vector<1x1x128xf32> to vector<1x128xf32>
    %127 = vector.broadcast %126 : vector<1x128xf32> to vector<64x128xf32>
    %128 = arith.addf %124, %127 : vector<64x128xf32>
    %129 = vector.extract_strided_slice %27 {offsets = [0, 4], sizes = [64, 1], strides = [1, 1]} : vector<64x8xf32> to vector<64x1xf32>
    %130 = vector.broadcast %129 : vector<64x1xf32> to vector<64x128xf32>
    %131 = arith.mulf %128, %130 : vector<64x128xf32>
    %132 = arith.addf %111, %131 : vector<64x128xf32>
    %c5 = arith.constant 5 : index
    %c0_82 = arith.constant 0 : index
    %c0_83 = arith.constant 0 : index
    %133 = vector.load %arg5[%c5, %c0_82, %c0_83] : memref<8x128x512xbf16, #tpu.memory_space<vmem>>, vector<1x128x512xbf16>
    %134 = vector.shape_cast %133 : vector<1x128x512xbf16> to vector<128x512xbf16>
    %cst_84 = arith.constant dense<0.000000e+00> : vector<64x512xf32>
    %135 = tpu.matmul %26, %134, %cst_84 {dimension_numbers = #tpu.dot_dimension_numbers<[1], [0], [0], [1], [0, 0, 1, 1], [], []>} : vector<64x128xbf16>, vector<128x512xbf16>, vector<64x512xf32> -> vector<64x512xf32>
    %c5_85 = arith.constant 5 : index
    %c0_86 = arith.constant 0 : index
    %c0_87 = arith.constant 0 : index
    %136 = vector.load %arg6[%c5_85, %c0_86, %c0_87] : memref<8x1x512xf32, #tpu.memory_space<vmem>>, vector<1x1x512xf32>
    %137 = vector.shape_cast %136 : vector<1x1x512xf32> to vector<1x512xf32>
    %138 = vector.broadcast %137 : vector<1x512xf32> to vector<64x512xf32>
    %139 = arith.addf %135, %138 : vector<64x512xf32>
    %cst_88 = arith.constant 0.000000e+00 : f32
    %140 = vector.broadcast %cst_88 : f32 to vector<64x512xf32>
    %141 = arith.maximumf %139, %140 : vector<64x512xf32>
    %142 = arith.truncf %141 : vector<64x512xf32> to vector<64x512xbf16>
    %c5_89 = arith.constant 5 : index
    %c0_90 = arith.constant 0 : index
    %c0_91 = arith.constant 0 : index
    %143 = vector.load %arg7[%c5_89, %c0_90, %c0_91] : memref<8x512x128xbf16, #tpu.memory_space<vmem>>, vector<1x512x128xbf16>
    %144 = vector.shape_cast %143 : vector<1x512x128xbf16> to vector<512x128xbf16>
    %cst_92 = arith.constant dense<0.000000e+00> : vector<64x128xf32>
    %145 = tpu.matmul %142, %144, %cst_92 {dimension_numbers = #tpu.dot_dimension_numbers<[1], [0], [0], [1], [0, 0, 1, 1], [], []>} : vector<64x512xbf16>, vector<512x128xbf16>, vector<64x128xf32> -> vector<64x128xf32>
    %c5_93 = arith.constant 5 : index
    %c0_94 = arith.constant 0 : index
    %c0_95 = arith.constant 0 : index
    %146 = vector.load %arg8[%c5_93, %c0_94, %c0_95] : memref<8x1x128xf32, #tpu.memory_space<vmem>>, vector<1x1x128xf32>
    %147 = vector.shape_cast %146 : vector<1x1x128xf32> to vector<1x128xf32>
    %148 = vector.broadcast %147 : vector<1x128xf32> to vector<64x128xf32>
    %149 = arith.addf %145, %148 : vector<64x128xf32>
    %150 = vector.extract_strided_slice %27 {offsets = [0, 5], sizes = [64, 1], strides = [1, 1]} : vector<64x8xf32> to vector<64x1xf32>
    %151 = vector.broadcast %150 : vector<64x1xf32> to vector<64x128xf32>
    %152 = arith.mulf %149, %151 : vector<64x128xf32>
    %153 = arith.addf %132, %152 : vector<64x128xf32>
    %c6 = arith.constant 6 : index
    %c0_96 = arith.constant 0 : index
    %c0_97 = arith.constant 0 : index
    %154 = vector.load %arg5[%c6, %c0_96, %c0_97] : memref<8x128x512xbf16, #tpu.memory_space<vmem>>, vector<1x128x512xbf16>
    %155 = vector.shape_cast %154 : vector<1x128x512xbf16> to vector<128x512xbf16>
    %cst_98 = arith.constant dense<0.000000e+00> : vector<64x512xf32>
    %156 = tpu.matmul %26, %155, %cst_98 {dimension_numbers = #tpu.dot_dimension_numbers<[1], [0], [0], [1], [0, 0, 1, 1], [], []>} : vector<64x128xbf16>, vector<128x512xbf16>, vector<64x512xf32> -> vector<64x512xf32>
    %c6_99 = arith.constant 6 : index
    %c0_100 = arith.constant 0 : index
    %c0_101 = arith.constant 0 : index
    %157 = vector.load %arg6[%c6_99, %c0_100, %c0_101] : memref<8x1x512xf32, #tpu.memory_space<vmem>>, vector<1x1x512xf32>
    %158 = vector.shape_cast %157 : vector<1x1x512xf32> to vector<1x512xf32>
    %159 = vector.broadcast %158 : vector<1x512xf32> to vector<64x512xf32>
    %160 = arith.addf %156, %159 : vector<64x512xf32>
    %cst_102 = arith.constant 0.000000e+00 : f32
    %161 = vector.broadcast %cst_102 : f32 to vector<64x512xf32>
    %162 = arith.maximumf %160, %161 : vector<64x512xf32>
    %163 = arith.truncf %162 : vector<64x512xf32> to vector<64x512xbf16>
    %c6_103 = arith.constant 6 : index
    %c0_104 = arith.constant 0 : index
    %c0_105 = arith.constant 0 : index
    %164 = vector.load %arg7[%c6_103, %c0_104, %c0_105] : memref<8x512x128xbf16, #tpu.memory_space<vmem>>, vector<1x512x128xbf16>
    %165 = vector.shape_cast %164 : vector<1x512x128xbf16> to vector<512x128xbf16>
    %cst_106 = arith.constant dense<0.000000e+00> : vector<64x128xf32>
    %166 = tpu.matmul %163, %165, %cst_106 {dimension_numbers = #tpu.dot_dimension_numbers<[1], [0], [0], [1], [0, 0, 1, 1], [], []>} : vector<64x512xbf16>, vector<512x128xbf16>, vector<64x128xf32> -> vector<64x128xf32>
    %c6_107 = arith.constant 6 : index
    %c0_108 = arith.constant 0 : index
    %c0_109 = arith.constant 0 : index
    %167 = vector.load %arg8[%c6_107, %c0_108, %c0_109] : memref<8x1x128xf32, #tpu.memory_space<vmem>>, vector<1x1x128xf32>
    %168 = vector.shape_cast %167 : vector<1x1x128xf32> to vector<1x128xf32>
    %169 = vector.broadcast %168 : vector<1x128xf32> to vector<64x128xf32>
    %170 = arith.addf %166, %169 : vector<64x128xf32>
    %171 = vector.extract_strided_slice %27 {offsets = [0, 6], sizes = [64, 1], strides = [1, 1]} : vector<64x8xf32> to vector<64x1xf32>
    %172 = vector.broadcast %171 : vector<64x1xf32> to vector<64x128xf32>
    %173 = arith.mulf %170, %172 : vector<64x128xf32>
    %174 = arith.addf %153, %173 : vector<64x128xf32>
    %c7 = arith.constant 7 : index
    %c0_110 = arith.constant 0 : index
    %c0_111 = arith.constant 0 : index
    %175 = vector.load %arg5[%c7, %c0_110, %c0_111] : memref<8x128x512xbf16, #tpu.memory_space<vmem>>, vector<1x128x512xbf16>
    %176 = vector.shape_cast %175 : vector<1x128x512xbf16> to vector<128x512xbf16>
    %cst_112 = arith.constant dense<0.000000e+00> : vector<64x512xf32>
    %177 = tpu.matmul %26, %176, %cst_112 {dimension_numbers = #tpu.dot_dimension_numbers<[1], [0], [0], [1], [0, 0, 1, 1], [], []>} : vector<64x128xbf16>, vector<128x512xbf16>, vector<64x512xf32> -> vector<64x512xf32>
    %c7_113 = arith.constant 7 : index
    %c0_114 = arith.constant 0 : index
    %c0_115 = arith.constant 0 : index
    %178 = vector.load %arg6[%c7_113, %c0_114, %c0_115] : memref<8x1x512xf32, #tpu.memory_space<vmem>>, vector<1x1x512xf32>
    %179 = vector.shape_cast %178 : vector<1x1x512xf32> to vector<1x512xf32>
    %180 = vector.broadcast %179 : vector<1x512xf32> to vector<64x512xf32>
    %181 = arith.addf %177, %180 : vector<64x512xf32>
    %cst_116 = arith.constant 0.000000e+00 : f32
    %182 = vector.broadcast %cst_116 : f32 to vector<64x512xf32>
    %183 = arith.maximumf %181, %182 : vector<64x512xf32>
    %184 = arith.truncf %183 : vector<64x512xf32> to vector<64x512xbf16>
    %c7_117 = arith.constant 7 : index
    %c0_118 = arith.constant 0 : index
    %c0_119 = arith.constant 0 : index
    %185 = vector.load %arg7[%c7_117, %c0_118, %c0_119] : memref<8x512x128xbf16, #tpu.memory_space<vmem>>, vector<1x512x128xbf16>
    %186 = vector.shape_cast %185 : vector<1x512x128xbf16> to vector<512x128xbf16>
    %cst_120 = arith.constant dense<0.000000e+00> : vector<64x128xf32>
    %187 = tpu.matmul %184, %186, %cst_120 {dimension_numbers = #tpu.dot_dimension_numbers<[1], [0], [0], [1], [0, 0, 1, 1], [], []>} : vector<64x512xbf16>, vector<512x128xbf16>, vector<64x128xf32> -> vector<64x128xf32>
    %c7_121 = arith.constant 7 : index
    %c0_122 = arith.constant 0 : index
    %c0_123 = arith.constant 0 : index
    %188 = vector.load %arg8[%c7_121, %c0_122, %c0_123] : memref<8x1x128xf32, #tpu.memory_space<vmem>>, vector<1x1x128xf32>
    %189 = vector.shape_cast %188 : vector<1x1x128xf32> to vector<1x128xf32>
    %190 = vector.broadcast %189 : vector<1x128xf32> to vector<64x128xf32>
    %191 = arith.addf %187, %190 : vector<64x128xf32>
    %192 = vector.extract_strided_slice %27 {offsets = [0, 7], sizes = [64, 1], strides = [1, 1]} : vector<64x8xf32> to vector<64x1xf32>
    %193 = vector.broadcast %192 : vector<64x1xf32> to vector<64x128xf32>
    %194 = arith.mulf %191, %193 : vector<64x128xf32>
    %195 = arith.addf %174, %194 : vector<64x128xf32>
    %196 = arith.truncf %195 : vector<64x128xf32> to vector<64x128xbf16>
    %c0_124 = arith.constant 0 : index
    %c0_125 = arith.constant 0 : index
    %197 = vector.load %arg9[%c0_124, %c0_125] : memref<64x128xbf16, #tpu.memory_space<vmem>>, vector<64x128xbf16>
    tpu.vector_store %arg9[%c0_124, %c0_125], %196 {strides = array<i32>} : memref<64x128xbf16, #tpu.memory_space<vmem>>, vector<64x128xbf16>,
    return
  }
  func.func @transform_0(%arg0: i32) -> (i32, i32) {
    %c0_i32 = arith.constant 0 : i32
    %c0_i32_0 = arith.constant 0 : i32
    return %arg0, %c0_i32 : i32, i32
  }
  func.func @transform_1(%arg0: i32) -> (i32, i32) {
    %c0_i32 = arith.constant 0 : i32
    %c0_i32_0 = arith.constant 0 : i32
    %c0_i32_1 = arith.constant 0 : i32
    return %c0_i32, %c0_i32_0 : i32, i32
  }
  func.func @transform_2(%arg0: i32) -> (i32, i32) {
    %c0_i32 = arith.constant 0 : i32
    %c0_i32_0 = arith.constant 0 : i32
    %c0_i32_1 = arith.constant 0 : i32
    return %c0_i32, %c0_i32_0 : i32, i32
  }
  func.func @transform_3(%arg0: i32) -> (i32, i32) {
    %c0_i32 = arith.constant 0 : i32
    %c0_i32_0 = arith.constant 0 : i32
    return %arg0, %c0_i32 : i32, i32
  }
  func.func @transform_4(%arg0: i32) -> (i32, i32, i32) {
    %c0_i32 = arith.constant 0 : i32
    %c0_i32_0 = arith.constant 0 : i32
    %c0_i32_1 = arith.constant 0 : i32
    %c0_i32_2 = arith.constant 0 : i32
    return %c0_i32, %c0_i32_0, %c0_i32_1 : i32, i32, i32
  }
  func.func @transform_5(%arg0: i32) -> (i32, i32, i32) {
    %c0_i32 = arith.constant 0 : i32
    %c0_i32_0 = arith.constant 0 : i32
    %c0_i32_1 = arith.constant 0 : i32
    %c0_i32_2 = arith.constant 0 : i32
    return %c0_i32, %c0_i32_0, %c0_i32_1 : i32, i32, i32
  }
  func.func @transform_6(%arg0: i32) -> (i32, i32, i32) {
    %c0_i32 = arith.constant 0 : i32
    %c0_i32_0 = arith.constant 0 : i32
    %c0_i32_1 = arith.constant 0 : i32
    %c0_i32_2 = arith.constant 0 : i32
    return %c0_i32, %c0_i32_0, %c0_i32_1 : i32, i32, i32
  }
  func.func @transform_7(%arg0: i32) -> (i32, i32, i32) {
    %c0_i32 = arith.constant 0 : i32
    %c0_i32_0 = arith.constant 0 : i32
    %c0_i32_1 = arith.constant 0 : i32
    %c0_i32_2 = arith.constant 0 : i32
    return %c0_i32, %c0_i32_0, %c0_i32_1 : i32, i32, i32
  }
  func.func @transform_8(%arg0: i32) -> (i32, i32) {
    %c0_i32 = arith.constant 0 : i32
    %c0_i32_0 = arith.constant 0 : i32
    return %arg0, %c0_i32 : i32, i32
  }
}

module attributes {stable_mosaic.version = 11 : i64} {
  func.func @lnf_head_kernel(%arg0: i32, %arg1: memref<64x128xbf16, #tpu.memory_space<vmem>>, %arg2: memref<1x128xf32, #tpu.memory_space<vmem>>, %arg3: memref<1x128xf32, #tpu.memory_space<vmem>>, %arg4: memref<128x128xbf16, #tpu.memory_space<vmem>>, %arg5: memref<1x128xf32, #tpu.memory_space<vmem>>, %arg6: memref<64x128xf32, #tpu.memory_space<vmem>>) attributes {dimension_semantics = [#tpu.dimension_semantics<parallel>], iteration_bounds = array<i64: 2>, scalar_prefetch = 0 : i64, scratch_operands = 0 : i64, tpu.core_type = #tpu.core_type<tc>, window_params = [{transform_indices = @transform_0, window_bounds = array<i64: 64, 128>}, {pipeline_mode = #tpu.pipeline_mode<synchronous>, transform_indices = @transform_1, window_bounds = array<i64: 1, 128>}, {pipeline_mode = #tpu.pipeline_mode<synchronous>, transform_indices = @transform_2, window_bounds = array<i64: 1, 128>}, {pipeline_mode = #tpu.pipeline_mode<synchronous>, transform_indices = @transform_3, window_bounds = array<i64: 128, 128>}, {pipeline_mode = #tpu.pipeline_mode<synchronous>, transform_indices = @transform_4, window_bounds = array<i64: 1, 128>}, {transform_indices = @transform_5, window_bounds = array<i64: 64, 128>}]} {
    %c0 = arith.constant 0 : index
    %c0_0 = arith.constant 0 : index
    %0 = vector.load %arg1[%c0, %c0_0] : memref<64x128xbf16, #tpu.memory_space<vmem>>, vector<64x128xbf16>
    %1 = arith.extf %0 : vector<64x128xbf16> to vector<64x128xf32>
    %c0_1 = arith.constant 0 : index
    %c0_2 = arith.constant 0 : index
    %2 = vector.load %arg2[%c0_1, %c0_2] : memref<1x128xf32, #tpu.memory_space<vmem>>, vector<1x128xf32>
    %c0_3 = arith.constant 0 : index
    %c0_4 = arith.constant 0 : index
    %3 = vector.load %arg3[%c0_3, %c0_4] : memref<1x128xf32, #tpu.memory_space<vmem>>, vector<1x128xf32>
    %cst = arith.constant dense<0.000000e+00> : vector<64xf32>
    %4 = vector.multi_reduction <add>, %1, %cst [1] : vector<64x128xf32> to vector<64xf32>
    %5 = vector.shape_cast %4 : vector<64xf32> to vector<64x1xf32>
    %cst_5 = arith.constant 1.280000e+02 : f32
    %6 = vector.broadcast %cst_5 : f32 to vector<64x1xf32>
    %7 = arith.divf %5, %6 : vector<64x1xf32>
    %8 = vector.broadcast %7 : vector<64x1xf32> to vector<64x128xf32>
    %9 = arith.subf %1, %8 : vector<64x128xf32>
    %10 = arith.mulf %9, %9 : vector<64x128xf32>
    %cst_6 = arith.constant dense<0.000000e+00> : vector<64xf32>
    %11 = vector.multi_reduction <add>, %10, %cst_6 [1] : vector<64x128xf32> to vector<64xf32>
    %12 = vector.shape_cast %11 : vector<64xf32> to vector<64x1xf32>
    %cst_7 = arith.constant 1.280000e+02 : f32
    %13 = vector.broadcast %cst_7 : f32 to vector<64x1xf32>
    %14 = arith.divf %12, %13 : vector<64x1xf32>
    %15 = vector.broadcast %7 : vector<64x1xf32> to vector<64x128xf32>
    %16 = arith.subf %1, %15 : vector<64x128xf32>
    %cst_8 = arith.constant 9.99999974E-6 : f32
    %17 = vector.broadcast %cst_8 : f32 to vector<64x1xf32>
    %18 = arith.addf %14, %17 : vector<64x1xf32>
    %19 = math.rsqrt %18 : vector<64x1xf32>
    %20 = vector.broadcast %19 : vector<64x1xf32> to vector<64x128xf32>
    %21 = arith.mulf %16, %20 : vector<64x128xf32>
    %22 = vector.broadcast %2 : vector<1x128xf32> to vector<64x128xf32>
    %23 = arith.mulf %21, %22 : vector<64x128xf32>
    %24 = vector.broadcast %3 : vector<1x128xf32> to vector<64x128xf32>
    %25 = arith.addf %23, %24 : vector<64x128xf32>
    %26 = arith.truncf %25 : vector<64x128xf32> to vector<64x128xbf16>
    %c0_9 = arith.constant 0 : index
    %c0_10 = arith.constant 0 : index
    %27 = vector.load %arg4[%c0_9, %c0_10] : memref<128x128xbf16, #tpu.memory_space<vmem>>, vector<128x128xbf16>
    %cst_11 = arith.constant dense<0.000000e+00> : vector<64x128xf32>
    %28 = tpu.matmul %26, %27, %cst_11 {dimension_numbers = #tpu.dot_dimension_numbers<[1], [0], [0], [1], [0, 0, 1, 1], [], []>} : vector<64x128xbf16>, vector<128x128xbf16>, vector<64x128xf32> -> vector<64x128xf32>
    %c0_12 = arith.constant 0 : index
    %c0_13 = arith.constant 0 : index
    %29 = vector.load %arg5[%c0_12, %c0_13] : memref<1x128xf32, #tpu.memory_space<vmem>>, vector<1x128xf32>
    %30 = vector.broadcast %29 : vector<1x128xf32> to vector<64x128xf32>
    %31 = arith.addf %28, %30 : vector<64x128xf32>
    %c0_14 = arith.constant 0 : index
    %c0_15 = arith.constant 0 : index
    %32 = vector.load %arg6[%c0_14, %c0_15] : memref<64x128xf32, #tpu.memory_space<vmem>>, vector<64x128xf32>
    tpu.vector_store %arg6[%c0_14, %c0_15], %31 {strides = array<i32>} : memref<64x128xf32, #tpu.memory_space<vmem>>, vector<64x128xf32>,
    return
  }
  func.func @transform_0(%arg0: i32) -> (i32, i32) {
    %c0_i32 = arith.constant 0 : i32
    %c0_i32_0 = arith.constant 0 : i32
    return %arg0, %c0_i32 : i32, i32
  }
  func.func @transform_1(%arg0: i32) -> (i32, i32) {
    %c0_i32 = arith.constant 0 : i32
    %c0_i32_0 = arith.constant 0 : i32
    %c0_i32_1 = arith.constant 0 : i32
    return %c0_i32, %c0_i32_0 : i32, i32
  }
  func.func @transform_2(%arg0: i32) -> (i32, i32) {
    %c0_i32 = arith.constant 0 : i32
    %c0_i32_0 = arith.constant 0 : i32
    %c0_i32_1 = arith.constant 0 : i32
    return %c0_i32, %c0_i32_0 : i32, i32
  }
  func.func @transform_3(%arg0: i32) -> (i32, i32) {
    %c0_i32 = arith.constant 0 : i32
    %c0_i32_0 = arith.constant 0 : i32
    %c0_i32_1 = arith.constant 0 : i32
    return %c0_i32, %c0_i32_0 : i32, i32
  }
  func.func @transform_4(%arg0: i32) -> (i32, i32) {
    %c0_i32 = arith.constant 0 : i32
    %c0_i32_0 = arith.constant 0 : i32
    %c0_i32_1 = arith.constant 0 : i32
    return %c0_i32, %c0_i32_0 : i32, i32
  }
  func.func @transform_5(%arg0: i32) -> (i32, i32) {
    %c0_i32 = arith.constant 0 : i32
    %c0_i32_0 = arith.constant 0 : i32
    return %arg0, %c0_i32 : i32, i32
  }
}

</mosaic_0001>

<bundles_post_ra>
// kernel: model_forward.9
= control target key start
LH: loop header
LB: loop body
LE: loop exit
PB: predicated region body
PF: predicated region fallthrough
CT: control target
= control target key end

     0   :  { %10 = vsyncpa [#allocation3], 0  ;;  %s1022_s0 = inlined_call_operand.vmem [shape: bf16[128,128], index: 0, kind: input, shape index: {}]   ;;  %s1023_s1 = inlined_call_operand.vmem [shape: f32[1,128], index: 1, kind: input, shape index: {}]   ;;  %s1024_s2 = inlined_call_operand.vmem [shape: f32[1,128], index: 2, kind: input, shape index: {}]   ;;  %s1025_s3 = inlined_call_operand.vmem [shape: bf16[128,128], index: 3, kind: input, shape index: {}]   ;;  %s1026_s4 = inlined_call_operand.vmem [shape: f32[1,128], index: 4, kind: input, shape index: {}]   ;;  %s1027_s5 = inlined_call_operand.hbm [shape: f32[128,128], index: 5, kind: output, shape index: {}]  }
   0x1   :  { %12 = vsyncpa [#allocation3 + $0x1], 0  ;;  %s843_s18 = smov 0   ;;  %s845_s19 = smov 0  }
   0x2   :  { %s847_s20 = smov 0   ;;  %s849_s21 = smov 0  }
   0x3 LB: > { %s864_s22 = sadd.s32 4294967295, %s808_s21   ;;  %s586_s23 = sadd.s32 4294967294, %s808_s21   ;;  %s808_s21 = sphi %s849_s21, %s1033_s21   ;;  %s804_s20 = sphi %s847_s20, %s1032_s20   ;;  %s800_s19 = sphi %s845_s19, %s1031_s19   ;;  %s796_s18 = sphi %s843_s18, %s1030_s18  }
   0x4   : > { %s868_s24 = sadd.s32 1, %s808_s21   ;;  %s135_s25 = sadd.s32 1, %s804_s20 }
   0x5   : > { %s132_s26 = ssub.s32 %s808_s21, %s868_s24  ;;  %p145_p0 = scmp.ne.s32.totalorder %s804_s20, %s800_s19 }
   0x6   : > { %p133_p1 = scmp.eq.s32.totalorder %s132_s26, 0  ;;  %p146_p2 = scmp.eq.s32.totalorder %s864_s22, 1 }
   0x7   : > { %p151_p3 = scmp.ne.s32.totalorder %s800_s19, %s796_s18  ;;  %p152_p4 = scmp.eq.s32.totalorder %s586_s23, 1 }
   0x8   : > { %s879_s27 = scalar_select %p133_p1, %s804_s20, %s135_s25  }
   0x9   : > { %p881_p5 = por %p146_p2, %p145_p0  ;;  %p885_p6 = por %p152_p4, %p151_p3 }
   0xa   : > { %p589_p7 = scmp.ge.s32.totalorder %s808_s21, 1  ;;  %p191_p8 = scmp.lt.s32.totalorder %s808_s21, 3 }
   0xc   : > { %p192_p9 = pnand %p589_p7, %p191_p8 }
   0xd   : > { %s591_s30 = sshll.u32 (!%p192_p9), %s864_s22, 3  ;;  %v722_v44 = vld [vmem:[%s1025_s3] sm:$0xff] (!%p192_p9)   ;;  %v723_v45 = vld [vmem:[%s1025_s3 + $0x8] sm:$0xff] (!%p192_p9)   ;;  %v724_v46 = vld [vmem:[%s1025_s3 + $0x10] sm:$0xff] (!%p192_p9)   ;;  %s216_s14 = sand.u32 (!%p192_p9), 1, %s800_s19  }
   0xe   : > { %195 = sbr.rel (%p192_p9) target bundleno = 588 (0x24c), region = 40  ;;  %p220_p10 = scmp.lt.s32.totalorder (!%p192_p9), %s591_s30, 15  ;;  %641 = vmatprep.subr.bf16.mxu0 (!%p192_p9), %v722_v44  ;;  %665 = vmatprep.subr.bf16.mxu1 (!%p192_p9), %v722_v44  ;;  %v725_v47 = vld [vmem:[%s1025_s3 + $0x18] sm:$0xff] (!%p192_p9)   ;;  %v726_v48 = vld [vmem:[%s1025_s3 + $0x20] sm:$0xff] (!%p192_p9)   ;;  %v727_v49 = vld [vmem:[%s1025_s3 + $0x28] sm:$0xff] (!%p192_p9)  }
   0xf   : > { %642 = vmatpush3.bf16.msra.mxu0 (!%p192_p9), %v722_v44  ;;  %673 = vmatpush3.bf16.msra.mxu1 (!%p192_p9), %v722_v44  ;;  %v728_v50 = vld [vmem:[%s1025_s3 + $0x30] sm:$0xff] (!%p192_p9)   ;;  %v729_v51 = vld [vmem:[%s1025_s3 + $0x38] sm:$0xff] (!%p192_p9)   ;;  %s590_s15 = sshll.u32 (!%p192_p9), %s216_s14, 6  ;;  %s609_s25 = sshll.u32 (!%p192_p9), %s864_s22, 10 }
  0x10   : > { %643 = vmatprep.subr.bf16.mxu0 (!%p192_p9), %v723_v45  ;;  %666 = vmatprep.subr.bf16.mxu1 (!%p192_p9), %v723_v45  ;;  %s218_s23 = scalar_lea.vmem (!%p192_p9), [#allocation2], %s590_s15  ;;  %s975_s7 = scalar_lea.hbm (!%p192_p9), %s1027_s5, %s609_s25 }
  0x11   : > { %s524_s26 = sshll.u32 (!%p192_p9), %s218_s23, 4  ;;  %s981_s22 = scalar_lea.sflag (!%p192_p9), [#allocation3], %s216_s14  ;;  %s977_s26 = int_to_ptr.vmem [resolvable:$true] %s524_s26 }
  0x12   : > { %s746_s8 = scalar_lea.vmem (!%p192_p9), %s977_s26, 1024 }
  0x13   : > { %644 = vmatpush3.bf16.msra.mxu0 (!%p192_p9), %v723_v45  ;;  %674 = vmatpush3.bf16.msra.mxu1 (!%p192_p9), %v723_v45  ;;  %p747_p11 = scmp.ne.s32.totalorder (!%p192_p9), %s977_s26, %s746_s8 }
  0x14   : > { %645 = vmatprep.subr.bf16.mxu0 (!%p192_p9), %v724_v46  ;;  %667 = vmatprep.subr.bf16.mxu1 (!%p192_p9), %v724_v46 }
  0x15   : > { %s1035_s30 = smov (!%p220_p10, %s591_s30), 15  ;;  %p748_p12 = pnand %p747_p11, %p881_p5 }
  0x16   : > { %s592_s6 = sshll.u32 %s1035_s30, 2 }
  0x17   : > { %s223_s9 = scalar_lea.vmem %s1022_s0, %s592_s6  ;;  %646 = vmatpush3.bf16.msra.mxu0 %v724_v46  ;;  %675 = vmatpush3.bf16.msra.mxu1 %v724_v46  ;;  %p749_p13 = pneg %p748_p12 }
  0x18   : > { %v611_v0 = vld [vmem:[%s223_s9] sm:$0xff]   ;;  %v627_v1 = vld [vmem:[%s223_s9 + $0x10] sm:$0xff]   ;;  %v626_v6 = vld [vmem:[%s223_s9 + $0x8] sm:$0xff]   ;;  %647 = vmatprep.subr.bf16.mxu0 %v725_v47  ;;  %668 = vmatprep.subr.bf16.mxu1 %v725_v47 }
  0x19   : > { %v612_v2 = vunpack.c.l.bf16 %v611_v0  ;;  %v620_v3 = vunpack.c.l.bf16 %v627_v1  ;;  %v613_v4 = vunpack.c.h.bf16 %v611_v0  ;;  %v621_v5 = vunpack.c.h.bf16 %v627_v1  ;;  %v628_v9 = vld [vmem:[%s223_s9 + $0x18] sm:$0xff]   ;;  %s810_s9 = smov [#allocation2]  }
  0x1a   : > { %v616_v7 = vunpack.c.l.bf16 %v626_v6  ;;  %v617_v8 = vunpack.c.h.bf16 %v626_v6  ;;  %v624_v10 = vunpack.c.l.bf16 %v628_v9  ;;  %v625_v11 = vunpack.c.h.bf16 %v628_v9  ;;  %s750_s10 = sshll.u32 %s810_s9, 4  ;;  %s751_s10 = int_to_ptr.vmem [resolvable:$false] %s750_s10 }
  0x1b   : > { %245 = vadd.xlane.f32.xlu0 %v612_v2  ;;  %253 = vadd.xlane.f32.xlu1 %v620_v3  ;;  %s752_s11 = scalar_lea.vmem %s751_s10, 2048  ;;  %p753_p0 = scmp.lt.s32.totalorder %s977_s26, %s751_s10 }
  0x1c   : > { %648 = vmatpush3.bf16.msra.mxu0 %v725_v47  ;;  %676 = vmatpush3.bf16.msra.mxu1 %v725_v47  ;;  %p754_p1 = scmp.lt.s32.totalorder %s752_s11, %s746_s8 }
  0x1d   : > { %649 = vmatprep.subr.bf16.mxu0 %v726_v48  ;;  %669 = vmatprep.subr.bf16.mxu1 %v726_v48 }
  0x1e   : > { %p755_p2 = por %p754_p1, %p753_p0 }
  0x1f   : > { %247 = vadd.xlane.f32.xlu0 %v613_v4  ;;  %255 = vadd.xlane.f32.xlu1 %v621_v5 }
  0x20   : > { %650 = vmatpush3.bf16.msra.mxu0 %v726_v48  ;;  %677 = vmatpush3.bf16.msra.mxu1 %v726_v48  ;;  %p756_p3 = pnand %p755_p2, %p749_p13 }
  0x21   : > { %651 = vmatprep.subr.bf16.mxu0 %v727_v49  ;;  %670 = vmatprep.subr.bf16.mxu1 %v727_v49 }
  0x23   : > { %249 = vadd.xlane.f32.xlu0 %v616_v7  ;;  %251 = vadd.xlane.f32.xlu1 %v617_v8 }
  0x24   : > { %652 = vmatpush3.bf16.msra.mxu0 %v727_v49  ;;  %678 = vmatpush3.bf16.msra.mxu1 %v727_v49 }
  0x25   : > { %653 = vmatprep.subr.bf16.mxu0 %v728_v50  ;;  %671 = vmatprep.subr.bf16.mxu1 %v728_v50 }
  0x27   : > { %257 = vadd.xlane.f32.xlu0 %v624_v10  ;;  %259 = vadd.xlane.f32.xlu1 %v625_v11 }
  0x28   : > { %654 = vmatpush3.bf16.msra.mxu0 %v728_v50  ;;  %679 = vmatpush3.bf16.msra.mxu1 %v728_v50 }
  0x29   : > { %655 = vmatprep.subr.bf16.mxu0 %v729_v51  ;;  %672 = vmatprep.subr.bf16.mxu1 %v729_v51 }
  0x2c   : > { %656 = vmatpush3.bf16.msra.mxu0 %v729_v51  ;;  %680 = vmatpush3.bf16.msra.mxu1 %v729_v51 }
  0xa8   : > { %v246_v12 = vpop.xlane.xlu0 %245  ;;  %v254_v13 = vpop.xlane.xlu1 %253 }
  0xa9   : > { %v262_v14 = vmul.f32 0.0078125, %v246_v12  ;;  %v266_v15 = vmul.f32 0.0078125, %v254_v13  ;;  %v593_v13 = vld [vmem:[%s1023_s1] ss:$0 sm:$0xff] }
  0xab   : > { %v895_v16 = vsub.f32 %v612_v2, %v262_v14  ;;  %v897_v17 = vsub.f32 %v620_v3, %v266_v15 }
  0xac   : > { %v248_v18 = vpop.xlane.xlu0 %247  ;;  %v256_v19 = vpop.xlane.xlu1 %255 }
  0xad   : > { %v263_v20 = vmul.f32 0.0078125, %v248_v18  ;;  %v278_v21 = vmul.f32 %v895_v16, %v895_v16  ;;  %v267_v22 = vmul.f32 0.0078125, %v256_v19  ;;  %v282_v25 = vmul.f32 %v897_v17, %v897_v17 }
  0xaf   : > { %v901_v23 = vsub.f32 %v613_v4, %v263_v20  ;;  %286 = vadd.xlane.f32.xlu0 %v278_v21  ;;  %v903_v24 = vsub.f32 %v621_v5, %v267_v22  ;;  %v594_v21 = vld [vmem:[%s1024_s2] ss:$0 sm:$0xff] }
  0xb0   : > { %v250_v26 = vpop.xlane.xlu0 %249  ;;  %v252_v27 = vpop.xlane.xlu1 %251 }
  0xb1   : > { %v264_v28 = vmul.f32 0.0078125, %v250_v26  ;;  %v279_v29 = vmul.f32 %v901_v23, %v901_v23  ;;  %v265_v30 = vmul.f32 0.0078125, %v252_v27  ;;  %v283_v33 = vmul.f32 %v903_v24, %v903_v24 }
  0xb3   : > { %v909_v31 = vsub.f32 %v616_v7, %v264_v28  ;;  %294 = vadd.xlane.f32.xlu0 %v282_v25  ;;  %288 = vadd.xlane.f32.xlu1 %v279_v29  ;;  %v911_v32 = vsub.f32 %v617_v8, %v265_v30 }
  0xb4   : > { %v258_v34 = vpop.xlane.xlu0 %257  ;;  %v260_v35 = vpop.xlane.xlu1 %259 }
  0xb5   : > { %v268_v36 = vmul.f32 0.0078125, %v258_v34  ;;  %v280_v37 = vmul.f32 %v909_v31, %v909_v31  ;;  %v269_v38 = vmul.f32 0.0078125, %v260_v35  ;;  %v281_v41 = vmul.f32 %v911_v32, %v911_v32 }
  0xb7   : > { %v917_v39 = vsub.f32 %v624_v10, %v268_v36  ;;  %296 = vadd.xlane.f32.xlu1 %v283_v33  ;;  %290 = vadd.xlane.f32.xlu0 %v280_v37  ;;  %v919_v40 = vsub.f32 %v625_v11, %v269_v38 }
  0xb9   : > { %v284_v42 = vmul.f32 %v917_v39, %v917_v39  ;;  %v285_v43 = vmul.f32 %v919_v40, %v919_v40 }
  0xbb   : > { %292 = vadd.xlane.f32.xlu1 %v281_v41  ;;  %298 = vadd.xlane.f32.xlu0 %v284_v42 }
  0xbf   : > { %300 = vadd.xlane.f32.xlu1 %v285_v43 }
 0x13c   : > { %v287_v52 = vpop.xlane.xlu0 %286 }
 0x13d   : > { %v302_v53 = vmul.f32 0.0078125, %v287_v52 }
 0x13f   : > { %v310_v54 = vadd.f32 1e-05, %v302_v53 }
 0x140   : > { %v289_v55 = vpop.xlane.xlu1 %288  ;;  %v295_v56 = vpop.xlane.xlu0 %294 }
 0x141   : > { %730 = vrsqrt.f32 %v310_v54  ;;  %v303_v57 = vmul.f32 0.0078125, %v289_v55  ;;  %v306_v58 = vmul.f32 0.0078125, %v295_v56 }
 0x143   : > { %v311_v59 = vadd.f32 1e-05, %v303_v57  ;;  %v314_v60 = vadd.f32 1e-05, %v306_v58 }
 0x144   : > { %v297_v61 = vpop.xlane.xlu1 %296  ;;  %v291_v62 = vpop.xlane.xlu0 %290 }
 0x145   : > { %732 = vrsqrt.f32 %v311_v59  ;;  %v307_v63 = vmul.f32 0.0078125, %v297_v61  ;;  %v304_v0 = vmul.f32 0.0078125, %v291_v62 }
 0x146   : > { %734 = vrsqrt.f32 %v314_v60 }
 0x147   : > { %v315_v1 = vadd.f32 1e-05, %v307_v63  ;;  %v312_v2 = vadd.f32 1e-05, %v304_v0 }
 0x148   : > { %v293_v3 = vpop.xlane.xlu1 %292  ;;  %v299_v4 = vpop.xlane.xlu0 %298 }
 0x149   : > { %736 = vrsqrt.f32 %v315_v1  ;;  %v305_v5 = vmul.f32 0.0078125, %v293_v3  ;;  %v308_v6 = vmul.f32 0.0078125, %v299_v4 }
 0x14a   : > { %738 = vrsqrt.f32 %v312_v2 }
 0x14b   : > { %v731_v7 = vpop.eup %730  ;;  %v313_v8 = vadd.f32 1e-05, %v305_v5  ;;  %v316_v9 = vadd.f32 1e-05, %v308_v6 }
 0x14c   : > { %v301_v10 = vpop.xlane.xlu1 %300  ;;  %v326_v11 = vmul.f32 %v731_v7, %v895_v16 }
 0x14d   : > { %740 = vrsqrt.f32 %v313_v8  ;;  %v309_v12 = vmul.f32 0.0078125, %v301_v10 }
 0x14e   : > { %742 = vrsqrt.f32 %v316_v9  ;;  %v340_v20 = vmul.f32 %v593_v13, %v326_v11 }
 0x14f   : > { %v733_v14 = vpop.eup %732  ;;  %v317_v15 = vadd.f32 1e-05, %v309_v12 }
 0x150   : > { %v735_v18 = vpop.eup %734  ;;  %v327_v19 = vmul.f32 %v733_v14, %v901_v23  ;;  %v354_v27 = vadd.f32 %v594_v21, %v340_v20 }
 0x151   : > { %744 = vrsqrt.f32 %v317_v15  ;;  %v330_v16 = vmul.f32 %v735_v18, %v897_v17 }
 0x152   : > { %v341_v22 = vmul.f32 %v593_v13, %v327_v19 }
 0x153   : > { %v737_v25 = vpop.eup %736  ;;  %v344_v30 = vmul.f32 %v593_v13, %v330_v16 }
 0x154   : > { %v739_v26 = vpop.eup %738  ;;  %v355_v28 = vadd.f32 %v594_v21, %v341_v22  ;;  %v331_v29 = vmul.f32 %v737_v25, %v903_v24 }
 0x155   : > { %v328_v33 = vmul.f32 %v739_v26, %v909_v31  ;;  %v358_v37 = vadd.f32 %v594_v21, %v344_v30 }
 0x156   : > { %v362_v34 = vpack.c.bf16 %v355_v28, %v354_v27  ;;  %v345_v23 = vmul.f32 %v593_v13, %v331_v29 }
 0x157   : > { %v741_v35 = vpop.eup %740  ;;  %v342_v17 = vmul.f32 %v593_v13, %v328_v33 }
 0x158   : > { %v743_v36 = vpop.eup %742  ;;  %657 = vmatprep.mubr.bf16.mxu0 %v362_v34  ;;  %v359_v38 = vadd.f32 %v594_v21, %v345_v23  ;;  %v329_v41 = vmul.f32 %v741_v35, %v911_v32 }
 0x159   : > { %v332_v42 = vmul.f32 %v743_v36, %v917_v39  ;;  %v356_v45 = vadd.f32 %v594_v21, %v342_v17  ;;  %v595_v39 = vld [vmem:[%s1026_s4] ss:$0 sm:$0xff] }
 0x15a   : > { %v364_v43 = vpack.c.bf16 %v359_v38, %v358_v37  ;;  %v343_v44 = vmul.f32 %v593_v13, %v329_v41 }
 0x15b   : > { %v745_v24 = vpop.eup %744  ;;  %v346_v47 = vmul.f32 %v593_v13, %v332_v42 }
 0x15c   : > { %661 = vmatprep.mubr.bf16.mxu1 %v364_v43  ;;  %v357_v31 = vadd.f32 %v594_v21, %v343_v44  ;;  %v333_v46 = vmul.f32 %v745_v24, %v919_v40 }
 0x15d   : > { %v360_v50 = vadd.f32 %v594_v21, %v346_v47 }
 0x15e   : > { %v363_v48 = vpack.c.bf16 %v357_v31, %v356_v45  ;;  %v347_v49 = vmul.f32 %v593_v13, %v333_v46 }
 0x160   : > { %658 = vmatmul.mubr.bf16.vlgmr.msra.gmra.mrb[0].mxu0 %v363_v48  ;;  %v361_v51 = vadd.f32 %v594_v21, %v347_v49 }
 0x162   : > { %v365_v32 = vpack.c.bf16 %v361_v51, %v360_v50 }
 0x164   : > { %662 = vmatmul.mubr.bf16.vlgmr.msra.gmra.mrb[0].mxu1 %v365_v32 }
 0x233   : > { %v659_v52 = vpop.f32.mrb[0].mxu0 }
 0x234   : > { %v480_v53 = vadd.f32 %v659_v52, %v595_v39  ;;  %v471_v54 = vpop.f32.mrb[1].mxu0 }
 0x235   : > { %v472_v40 = vadd.f32 %v595_v39, %v471_v54  ;;  %v660_v55 = vpop.f32.mrb[2].mxu0 }
 0x236   : > { %504 = vst [vmem:[%s218_s23 + $0x10] sm:$0xff] %v480_v53  ;;  %v483_v56 = vadd.f32 %v660_v55, %v595_v39  ;;  %v474_v57 = vpop.f32.mrb[3].mxu0 }
 0x237   : > { %502 = vst [vmem:[%s218_s23] sm:$0xff] %v472_v40  ;;  %v475_v58 = vadd.f32 %v595_v39, %v474_v57  ;;  %v663_v59 = vpop.f32.mrb[0].mxu1 }
 0x238   : > { %505 = vst [vmem:[%s218_s23 + $0x18] sm:$0xff] %v483_v56  ;;  %v496_v60 = vadd.f32 %v663_v59, %v595_v39  ;;  %v487_v61 = vpop.f32.mrb[1].mxu1 }
 0x239   : > { %503 = vst [vmem:[%s218_s23 + $0x8] sm:$0xff] %v475_v58  ;;  %v488_v62 = vadd.f32 %v595_v39, %v487_v61  ;;  %v664_v63 = vpop.f32.mrb[2].mxu1 }
 0x23a   : > { %508 = vst [vmem:[%s218_s23 + $0x30] sm:$0xff] %v496_v60  ;;  %v499_v0 = vadd.f32 %v664_v63, %v595_v39  ;;  %v490_v1 = vpop.f32.mrb[3].mxu1 }
 0x23b   : > { %506 = vst [vmem:[%s218_s23 + $0x20] sm:$0xff] %v488_v62  ;;  %v491_v2 = vadd.f32 %v595_v39, %v490_v1 }
 0x23c   : > { %509 = vst [vmem:[%s218_s23 + $0x38] sm:$0xff] %v499_v0 }
 0x23d   : > { %507 = vst [vmem:[%s218_s23 + $0x28] sm:$0xff] %v491_v2 }
 0x23e   : > { %759 = shalt.err (!%p756_p3)
}
 0x23f   : > { %s760_s12 = scalar_lea.hbm %s975_s7, 1024  ;;  %s764_s15 = scalar_lea.hbm %s1027_s5, 2048 }
 0x240   : > { %p761_p4 = scmp.ne.s32.totalorder %s975_s7, %s760_s12  ;;  %p765_p9 = scmp.lt.u32.totalorder %s975_s7, %s1027_s5 }
 0x241   : > { %p766_p10 = scmp.lt.u32.totalorder %s764_s15, %s760_s12  ;;  %p768_p12 = scmp.lt.u32.totalorder %s760_s12, %s975_s7 }
 0x242   : > { %p762_p7 = pnand %p761_p4, %p881_p5 }
 0x243   : > { %p767_p11 = por %p766_p10, %p765_p9 }
 0x244   : > { %p763_p8 = pneg %p762_p7 }
 0x245   : > { %p769_p13 = por %p768_p12, %p767_p11 }
 0x247   : > { %p770_p0 = pnand %p769_p13, %p763_p8 }
 0x249   : > { %773 = shalt.err (!%p770_p0)
}
 0x24a   : > { %s811_s23 = smov 128   ;;  %s812_s25 = smov 8  }
 0x24b   : > { %681 = dma.vmem_to_hbm [thread:$0]  (%p881_p5), %s977_s26, 1024, %s975_s7, %s981_s22, %s811_s23, %s811_s23, %s812_s25  }
 0x24c PF: > { %p687_p1 = scmp.ge.s32.totalorder %s808_s21, 2  ;;  %s539_s30 = sand.u32 1, %s796_s18  }
 0x24d   : > { %s540_s6 = scalar_lea.sflag [#allocation3], %s539_s30 }
 0x24e   : > { %p684_p2 = pnand %p687_p1, %p885_p6 }
 0x250   : > { %791 = dma.done.wait (!%p684_p2), %s540_s6, 1024  }
 0x251   : > { %793 = vsyncadd (!%p684_p2), %s540_s6, 4294966272  ;;  %p15_p3 = scmp.ge.s32.totalorder %s868_s24, 4   ;;  %s1030_s18 = smov %s800_s19 }
 0x252   : > { %s1031_s19 = smov %s804_s20  ;;  %s1032_s20 = smov %s879_s27 }
 0x253   : > { %s1033_s21 = smov %s868_s24  ;;  %17 = sbr.rel (!%p15_p3) target bundleno = 3 (0x3), region = 75 }
 0x25a   :  { %545 = vsyncpa [#allocation3], 1 }
 0x25b   :  { %547 = vsyncpa [#allocation3 + $0x1], 1 }

// kernel: model_forward.5
= control target key start
LH: loop header
LB: loop body
LE: loop exit
PB: predicated region body
PF: predicated region fallthrough
CT: control target
= control target key end

     0   :  { %s6248_s17 = smov 0   ;;  %s7400_s0 = inlined_call_operand.vmem [shape: bf16[4,32,128], index: 0, kind: input, shape index: {}]   ;;  %s7401_s1 = inlined_call_operand.vmem [shape: f32[1,128], index: 1, kind: input, shape index: {}]   ;;  %s7402_s2 = inlined_call_operand.vmem [shape: f32[1,128], index: 2, kind: input, shape index: {}]   ;;  %s7403_s3 = inlined_call_operand.vmem [shape: bf16[128,384], index: 3, kind: input, shape index: {}]   ;;  %s7404_s4 = inlined_call_operand.vmem [shape: bf16[128,128], index: 4, kind: input, shape index: {}]   ;;  %s7405_s5 = inlined_call_operand.vmem [shape: f32[1,128], index: 5, kind: input, shape index: {}]   ;;  %s7406_s6 = inlined_call_operand.vmem [shape: f32[1,128], index: 6, kind: input, shape index: {}]   ;;  %s7407_s7 = inlined_call_operand.vmem [shape: f32[1,128], index: 7, kind: input, shape index: {}]   ;;  %s7408_s8 = inlined_call_operand.vmem [shape: bf16[128,16], index: 8, kind: input, shape index: {}]   ;;  %s7409_s9 = inlined_call_operand.vmem [shape: f32[1,16], index: 9, kind: input, shape index: {}]   ;;  %s7410_s10 = inlined_call_operand.vmem [shape: bf16[4,32,128], index: 10, kind: output, shape index: {0}]   ;;  %s7411_s11 = inlined_call_operand.vmem [shape: f32[4,32,16], index: 11, kind: output, shape index: {1}]  }
   0x1 LB: > { %s4937_s18 = sadd.s32 4294967295, %s6178_s17   ;;  %p4941_p0 = scmp.ge.s32.totalorder %s6178_s17, 1  ;;  %s6178_s17 = sphi %s6248_s17, %s22_s17  }
   0x2   : > { %p342_p1 = scmp.lt.s32.totalorder %s6178_s17, 3 }
   0x4   : > { %p343_p2 = pnand %p4941_p0, %p342_p1 }
   0x5   : > { %s4942_s19 = sshll.u32 (!%p343_p2), %s4937_s18, 1  ;;  %v5836_v12 = vld [vmem:[%s7403_s3 + $0x4] ss:$12 sps:$4 sm:$0xff] (!%p343_p2)   ;;  %v5838_v13 = vld [vmem:[%s7403_s3] ss:$12 sps:$4 sm:$0xff] (!%p343_p2)   ;;  %vm880_vm0 = vcmask (!%p343_p2), 130048  }
   0x6   : > { %346 = sbr.rel (%p343_p2) target bundleno = 7119 (0x1bcf), region = 60  ;;  %p391_p3 = scmp.lt.s32.totalorder (!%p343_p2), %s4942_s19, 3  ;;  %v5839_v14 = vld [vmem:[%s7403_s3 + $0x1c] ss:$12 sps:$4 sm:$0xff] (!%p343_p2)   ;;  %711 = vmatprep.subr.bf16.mxu0 (!%p343_p2), %v5836_v12  ;;  %v5842_v48 = vld [vmem:[%s7403_s3 + $0x18] ss:$12 sps:$4 sm:$0xff] (!%p343_p2)  }
   0x7   : > { %v5841_v15 = vld [vmem:[%s7403_s3 + $0x8] ss:$12 sps:$4 sm:$0xff] (!%p343_p2)   ;;  %712 = vmatpush1.bf16.msra.mxu0 (!%p343_p2), %v5838_v13  ;;  %v5845_v50 = vld [vmem:[%s7403_s3 + $0x20] ss:$12 sps:$4 sm:$0xff] (!%p343_p2)   ;;  %v5846_v51 = vld [vmem:[%s7403_s3 + $0x30] ss:$12 sps:$4 sm:$0xff] (!%p343_p2)  }
   0x8   : > { %5348 = vmatprep.subr.bf16.mxu1 (!%p343_p2), %v5841_v15  ;;  %713 = vmatprep.subr.bf16.mxu0 (!%p343_p2), %v5839_v14  ;;  %v5843_v49 = vld [vmem:[%s7403_s3 + $0x34] ss:$12 sps:$4 sm:$0xff] (!%p343_p2)   ;;  %v5847_v52 = vld [vmem:[%s7403_s3 + $0x4c] ss:$12 sps:$4 sm:$0xff] (!%p343_p2)   ;;  %v5851_v55 = vld [vmem:[%s7403_s3 + $0x64] ss:$12 sps:$4 sm:$0xff] (!%p343_p2)  }
   0x9   : > { %5349 = vmatpush3.bf16.msra.mxu1 (!%p343_p2), %v5841_v15  ;;  %v5849_v53 = vld [vmem:[%s7403_s3 + $0x38] ss:$12 sps:$4 sm:$0xff] (!%p343_p2)   ;;  %v5850_v54 = vld [vmem:[%s7403_s3 + $0x48] ss:$12 sps:$4 sm:$0xff] (!%p343_p2)   ;;  %v5853_v56 = vld [vmem:[%s7403_s3 + $0x50] ss:$12 sps:$4 sm:$0xff] (!%p343_p2)  }
   0xa   : > { %5350 = vmatprep.subr.bf16.mxu1 (!%p343_p2), %v5845_v50  ;;  %v5854_v57 = vld [vmem:[%s7403_s3 + $0x60] ss:$12 sps:$4 sm:$0xff] (!%p343_p2)   ;;  %v5855_v58 = vld [vmem:[%s7403_s3 + $0x7c] ss:$12 sps:$4 sm:$0xff] (!%p343_p2)   ;;  %v5858_v60 = vld [vmem:[%s7403_s3 + $0x78] ss:$12 sps:$4 sm:$0xff] (!%p343_p2)  }
   0xb   : > { %714 = vmatpush1.bf16.msra.mxu0 (!%p343_p2), %v5842_v48  ;;  %v5857_v59 = vld [vmem:[%s7403_s3 + $0x68] ss:$12 sps:$4 sm:$0xff] (!%p343_p2)   ;;  %v5861_v62 = vld [vmem:[%s7403_s3 + $0x80] ss:$12 sps:$4 sm:$0xff] (!%p343_p2)   ;;  %v5862_v63 = vld [vmem:[%s7403_s3 + $0x90] ss:$12 sps:$4 sm:$0xff] (!%p343_p2)  }
   0xc   : > { %715 = vmatprep.subr.bf16.mxu0 (!%p343_p2), %v5843_v49  ;;  %v5859_v61 = vld [vmem:[%s7403_s3 + $0x94] ss:$12 sps:$4 sm:$0xff] (!%p343_p2)   ;;  %v5867_v12 = vld [vmem:[%s7403_s3 + $0xb0] ss:$12 sps:$4 sm:$0xff] (!%p343_p2)   ;;  %vm1019_vm2 = vcmask (!%p343_p2), 261120   ;;  %s6181_s28 = smov (!%p343_p2), 112  }
   0xd   : > { %s7424_s19 = smov (!%p391_p3, %s4942_s19), 3  ;;  %5351 = vmatpush3.bf16.msra.mxu1 %v5845_v50  ;;  %s6182_s29 = smov 96  }
   0xe   : > { %s5103_s20 = sshll.u32 %s7424_s19, 4  ;;  %5352 = vmatprep.subr.bf16.mxu1 %v5849_v53  ;;  %s6183_s15 = smov 80  }
   0xf   : > { %s395_s23 = scalar_lea.vmem %s7400_s0, %s5103_s20  ;;  %716 = vmatpush1.bf16.msra.mxu0 %v5846_v51  ;;  %s6184_s21 = smov 64  }
  0x10   : > { %v5115_v0 = vld [vmem:[%s395_s23] sm:$0xff]   ;;  %v5150_v1 = vld [vmem:[%s395_s23 + $0x8] sm:$0xff]   ;;  %v5151_v4 = vld [vmem:[%s395_s23 + $0x10] sm:$0xff]   ;;  %717 = vmatprep.subr.bf16.mxu0 %v5847_v52  ;;  %s6185_s24 = smov 48   ;;  %s6186_s27 = smov 32  }
  0x11   : > { %v6264_v2 = vunpack.c.l.bf16 %v5115_v0  ;;  %v6266_v3 = vunpack.c.l.bf16 %v5150_v1  ;;  %v6270_v5 = vunpack.c.h.bf16 %v5115_v0  ;;  %v6272_v6 = vunpack.c.h.bf16 %v5150_v1  ;;  %v5152_v7 = vld [vmem:[%s395_s23 + $0x18] sm:$0xff]   ;;  %5353 = vmatpush3.bf16.msra.mxu1 %v5849_v53  ;;  %v4952_v52 = vld [vmem:[%s7402_s2] ss:$0 sm:$0xff]  ;;  %s6187_s30 = smov 16   ;;  %s402_s23 = scalar_lea.vmem %s7410_s10, %s5103_s20 }
  0x12   : > { %v6276_v8 = vunpack.c.l.bf16 %v5151_v4  ;;  %v6278_v9 = vunpack.c.h.bf16 %v5151_v4  ;;  %v6282_v10 = vunpack.c.l.bf16 %v5152_v7  ;;  %v6284_v11 = vunpack.c.h.bf16 %v5152_v7  ;;  %5354 = vmatprep.subr.bf16.mxu1 %v5853_v56  ;;  %v5863_v0 = vld [vmem:[%s7403_s3 + $0xac] ss:$12 sps:$4 sm:$0xff]   ;;  %v5866_v4 = vld [vmem:[%s7403_s3 + $0xa8] ss:$12 sps:$4 sm:$0xff]   ;;  %s5105_s26 = sshll.u32 %s7424_s19, 5 }
  0x13   : > { %430 = vadd.xlane.f32.xlu0 %v6264_v2  ;;  %434 = vadd.xlane.f32.xlu1 %v6266_v3  ;;  %v5865_v1 = vld [vmem:[%s7403_s3 + $0x98] ss:$12 sps:$4 sm:$0xff]   ;;  %v6180_v7 = vmov 0   ;;  %s409_s12 = scalar_lea.vmem %s7411_s11, %s5105_s26 }
  0x14   : > { %718 = vmatpush1.bf16.msra.mxu0 %v5850_v54  ;;  %743 = vmatprep.mubr.bf16.mxu0 %v6180_v7 }
  0x15   : > { %719 = vmatprep.subr.bf16.mxu0 %v5851_v55  ;;  %5355 = vmatpush3.bf16.msra.mxu1 %v5853_v56 }
  0x16   : > { %5356 = vmatprep.subr.bf16.mxu1 %v5857_v59 }
  0x17   : > { %432 = vadd.xlane.f32.xlu0 %v6270_v5  ;;  %436 = vadd.xlane.f32.xlu1 %v6272_v6 }
  0x18   : > { %720 = vmatpush1.bf16.msra.mxu0 %v5854_v57 }
  0x19   : > { %721 = vmatprep.subr.bf16.mxu0 %v5855_v58  ;;  %5357 = vmatpush3.bf16.msra.mxu1 %v5857_v59 }
  0x1a   : > { %5358 = vmatprep.subr.bf16.mxu1 %v5861_v62 }
  0x1b   : > { %438 = vadd.xlane.f32.xlu0 %v6276_v8  ;;  %440 = vadd.xlane.f32.xlu1 %v6278_v9 }
  0x1c   : > { %722 = vmatpush1.bf16.msra.mxu0 %v5858_v60 }
  0x1d   : > { %723 = vmatprep.subr.bf16.mxu0 %v5859_v61  ;;  %5359 = vmatpush3.bf16.msra.mxu1 %v5861_v62 }
  0x1e   : > { %5360 = vmatprep.subr.bf16.mxu1 %v5865_v1 }
  0x1f   : > { %442 = vadd.xlane.f32.xlu0 %v6282_v10  ;;  %444 = vadd.xlane.f32.xlu1 %v6284_v11 }
  0x20   : > { %724 = vmatpush1.bf16.msra.mxu0 %v5862_v63 }
  0x21   : > { %725 = vmatprep.subr.bf16.mxu0 %v5863_v0  ;;  %5361 = vmatpush3.bf16.msra.mxu1 %v5865_v1 }
  0x22   : > { %5362 = vmatprep.subr.bf16.mxu1 %v5867_v12 }
  0x24   : > { %726 = vmatpush1.bf16.msra.mxu0 %v5866_v4 }
  0x25   : > { %5363 = vmatpush3.bf16.msra.mxu1 %v5867_v12 }
  0xa0   : > { %v431_v16 = vpop.xlane.xlu0 %430  ;;  %v435_v17 = vpop.xlane.xlu1 %434 }
  0xa1   : > { %v447_v18 = vmul.f32 0.0078125, %v431_v16  ;;  %v449_v19 = vmul.f32 0.0078125, %v435_v17 }
  0xa3   : > { %v6301_v20 = vsub.f32 %v6264_v2, %v447_v18  ;;  %v6304_v21 = vsub.f32 %v6266_v3, %v449_v19 }
  0xa4   : > { %v433_v22 = vpop.xlane.xlu0 %432  ;;  %v437_v23 = vpop.xlane.xlu1 %436 }
  0xa5   : > { %v448_v24 = vmul.f32 0.0078125, %v433_v22  ;;  %v463_v25 = vmul.f32 %v6301_v20, %v6301_v20  ;;  %v450_v26 = vmul.f32 0.0078125, %v437_v23  ;;  %v465_v27 = vmul.f32 %v6304_v21, %v6304_v21 }
  0xa7   : > { %471 = vadd.xlane.f32.xlu0 %v463_v25  ;;  %v6311_v28 = vsub.f32 %v6270_v5, %v448_v24  ;;  %v6314_v29 = vsub.f32 %v6272_v6, %v450_v26 }
  0xa8   : > { %v439_v30 = vpop.xlane.xlu0 %438  ;;  %v441_v31 = vpop.xlane.xlu1 %440 }
  0xa9   : > { %v451_v32 = vmul.f32 0.0078125, %v439_v30  ;;  %v464_v33 = vmul.f32 %v6311_v28, %v6311_v28  ;;  %v452_v34 = vmul.f32 0.0078125, %v441_v31  ;;  %v466_v35 = vmul.f32 %v6314_v29, %v6314_v29 }
  0xab   : > { %475 = vadd.xlane.f32.xlu0 %v465_v27  ;;  %473 = vadd.xlane.f32.xlu1 %v464_v33  ;;  %v6321_v36 = vsub.f32 %v6276_v8, %v451_v32  ;;  %v6324_v37 = vsub.f32 %v6278_v9, %v452_v34 }
  0xac   : > { %v443_v38 = vpop.xlane.xlu0 %442  ;;  %v445_v39 = vpop.xlane.xlu1 %444 }
  0xad   : > { %v453_v40 = vmul.f32 0.0078125, %v443_v38  ;;  %v467_v41 = vmul.f32 %v6321_v36, %v6321_v36  ;;  %v454_v42 = vmul.f32 0.0078125, %v445_v39  ;;  %v468_v43 = vmul.f32 %v6324_v37, %v6324_v37 }
  0xaf   : > { %477 = vadd.xlane.f32.xlu1 %v466_v35  ;;  %479 = vadd.xlane.f32.xlu0 %v467_v41  ;;  %v6331_v44 = vsub.f32 %v6282_v10, %v453_v40  ;;  %v6334_v45 = vsub.f32 %v6284_v11, %v454_v42 }
  0xb1   : > { %v469_v46 = vmul.f32 %v6331_v44, %v6331_v44  ;;  %v470_v47 = vmul.f32 %v6334_v45, %v6334_v45 }
  0xb3   : > { %481 = vadd.xlane.f32.xlu1 %v468_v43  ;;  %483 = vadd.xlane.f32.xlu0 %v469_v46  ;;  %v4951_v46 = vld [vmem:[%s7401_s1] ss:$0 sm:$0xff] }
  0xb7   : > { %485 = vadd.xlane.f32.xlu1 %v470_v47 }
 0x134   : > { %v472_v13 = vpop.xlane.xlu0 %471 }
 0x135   : > { %v487_v14 = vmul.f32 0.0078125, %v472_v13 }
 0x137   : > { %v495_v15 = vadd.f32 1e-05, %v487_v14 }
 0x138   : > { %v474_v16 = vpop.xlane.xlu1 %473  ;;  %v476_v17 = vpop.xlane.xlu0 %475 }
 0x139   : > { %5884 = vrsqrt.f32 %v495_v15  ;;  %v488_v18 = vmul.f32 0.0078125, %v474_v16  ;;  %v489_v19 = vmul.f32 0.0078125, %v476_v17 }
 0x13b   : > { %v496_v22 = vadd.f32 1e-05, %v488_v18  ;;  %v497_v23 = vadd.f32 1e-05, %v489_v19 }
 0x13c   : > { %v478_v24 = vpop.xlane.xlu1 %477  ;;  %v480_v25 = vpop.xlane.xlu0 %479 }
 0x13d   : > { %5886 = vrsqrt.f32 %v496_v22  ;;  %v490_v26 = vmul.f32 0.0078125, %v478_v24  ;;  %v491_v27 = vmul.f32 0.0078125, %v480_v25 }
 0x13e   : > { %5888 = vrsqrt.f32 %v497_v23 }
 0x13f   : > { %v498_v30 = vadd.f32 1e-05, %v490_v26  ;;  %v499_v31 = vadd.f32 1e-05, %v491_v27 }
 0x140   : > { %v482_v32 = vpop.xlane.xlu1 %481  ;;  %v484_v33 = vpop.xlane.xlu0 %483 }
 0x141   : > { %5890 = vrsqrt.f32 %v498_v30  ;;  %v492_v34 = vmul.f32 0.0078125, %v482_v32  ;;  %v493_v35 = vmul.f32 0.0078125, %v484_v33 }
 0x142   : > { %5892 = vrsqrt.f32 %v499_v31 }
 0x143   : > { %v5885_v38 = vpop.eup %5884  ;;  %v500_v39 = vadd.f32 1e-05, %v492_v34  ;;  %v501_v40 = vadd.f32 1e-05, %v493_v35 }
 0x144   : > { %v486_v41 = vpop.xlane.xlu1 %485  ;;  %v511_v42 = vmul.f32 %v5885_v38, %v6301_v20 }
 0x145   : > { %5894 = vrsqrt.f32 %v500_v39  ;;  %v494_v43 = vmul.f32 0.0078125, %v486_v41 }
 0x146   : > { %5896 = vrsqrt.f32 %v501_v40  ;;  %v525_v51 = vmul.f32 %v4951_v46, %v511_v42 }
 0x147   : > { %v5887_v47 = vpop.eup %5886  ;;  %v502_v48 = vadd.f32 1e-05, %v494_v43 }
 0x148   : > { %v5889_v49 = vpop.eup %5888  ;;  %v512_v50 = vmul.f32 %v5887_v47, %v6311_v28  ;;  %v539_v57 = vadd.f32 %v4952_v52, %v525_v51 }
 0x149   : > { %5898 = vrsqrt.f32 %v502_v48  ;;  %v513_v20 = vmul.f32 %v5889_v49, %v6304_v21 }
 0x14a   : > { %v526_v53 = vmul.f32 %v4951_v46, %v512_v50 }
 0x14b   : > { %v5891_v54 = vpop.eup %5890  ;;  %v527_v55 = vmul.f32 %v4951_v46, %v513_v20 }
 0x14c   : > { %v5893_v56 = vpop.eup %5892  ;;  %v540_v58 = vadd.f32 %v4952_v52, %v526_v53  ;;  %v514_v59 = vmul.f32 %v5891_v54, %v6314_v29 }
 0x14d   : > { %v515_v60 = vmul.f32 %v5893_v56, %v6321_v36  ;;  %v541_v63 = vadd.f32 %v4952_v52, %v527_v55 }
 0x14e   : > { %v547_v61 = vpack.c.bf16 %v540_v58, %v539_v57  ;;  %v528_v28 = vmul.f32 %v4951_v46, %v514_v59 }
 0x14f   : > { %v5895_v62 = vpop.eup %5894  ;;  %v529_v4 = vmul.f32 %v4951_v46, %v515_v60 }
 0x150   : > { %v5897_v0 = vpop.eup %5896  ;;  %744 = vmatmul.mubr.bf16.vlgmr.msra.gmra.mrb[0].mxu0 %v547_v61  ;;  %5364 = vmatprep.mubr.bf16.mxu1 %v547_v61  ;;  %v542_v1 = vadd.f32 %v4952_v52, %v528_v28  ;;  %v516_v21 = vmul.f32 %v5895_v62, %v6324_v37 }
 0x151   : > { %753 = vmatprep.mubr.bf16.mxu0 %v6180_v7  ;;  %v517_v12 = vmul.f32 %v5897_v0, %v6331_v44  ;;  %v543_v36 = vadd.f32 %v4952_v52, %v529_v4 }
 0x152   : > { %v548_v13 = vpack.c.bf16 %v542_v1, %v541_v63  ;;  %v530_v14 = vmul.f32 %v4951_v46, %v516_v21 }
 0x153   : > { %v5899_v29 = vpop.eup %5898  ;;  %v531_v17 = vmul.f32 %v4951_v46, %v517_v12 }
 0x154   : > { %5365 = vmatmul.mubr.bf16.vlgmr.msra.gmra.mrb[0].mxu1 %v548_v13  ;;  %v544_v15 = vadd.f32 %v4952_v52, %v530_v14  ;;  %v518_v16 = vmul.f32 %v5899_v29, %v6334_v45 }
 0x155   : > { %v545_v22 = vadd.f32 %v4952_v52, %v531_v17 }
 0x156   : > { %v549_v18 = vpack.c.bf16 %v544_v15, %v543_v36  ;;  %v532_v19 = vmul.f32 %v4951_v46, %v518_v16 }
 0x158   : > { %754 = vmatmul.mubr.bf16.gmra.mrb[4].mxu0 %v548_v13  ;;  %5368 = vmatprep.mubr.bf16.mxu1 %v549_v18  ;;  %v546_v37 = vadd.f32 %v4952_v52, %v532_v19  ;;  %v869_v19 = vlaneseq }
 0x159   : > { %763 = vmatprep.mubr.bf16.mxu0 %v6180_v7 }
 0x15a   : > { %v550_v23 = vpack.c.bf16 %v546_v37, %v545_v22  ;;  %v870_v22 = vshrl.u32 %v869_v19, 7  ;;  %v875_v37 = vand.u32 127, %v869_v19 }
 0x15c   : > { %5369 = vmatmul.mubr.bf16.gmra.mrb[4].mxu1 %v550_v23  ;;  %vm6482_vm1 = vcmp.ge.s32.totalorder %v870_v22, %v875_v37 }
 0x160   : > { %764 = vmatmul.mubr.bf16.gmra.mrb[8].mxu0 %v549_v18 }
 0x161   : > { %773 = vmatprep.mubr.bf16.mxu0 %v6180_v7 }
 0x168   : > { %774 = vmatmul.mubr.bf16.gmra.mrb[12].mxu0 %v550_v23  ;;  %v872_v23 = vadd.s32 16, %v870_v22 }
 0x16a   : > { %vm6488_vm3 = vcmp.ge.s32.totalorder %v872_v23, %v875_v37 }
 0x223   : > { %v745_v44 = vpop.f32.mrb[0].mxu0 }
 0x224   : > { %v747_v24 = vpop.f32.mrb[1].mxu0  ;;  %v849_v26 = vmul.f32 0.088388346, %v745_v44  ;;  %v871_v44 = vadd.s32 8, %v870_v22 }
 0x225   : > { %v749_v25 = vpop.f32.mrb[2].mxu0 }
 0x226   : > { %v850_v45 = vmul.f32 0.088388346, %v749_v25  ;;  %v751_v27 = vpop.f32.mrb[3].mxu0  ;;  %vm6492_vm4 = vcmp.ge.s32.totalorder %v871_v44, %v875_v37 }
 0x227   : > { %v6418_v30 = vpack.c.bf16 %v751_v27, %v747_v24  ;;  %v5366_v31 = vpop.f32.mrb[0].mxu1 }
 0x228   : > { %v6420_v32 = vpack.c.bf16 %v850_v45, %v849_v26  ;;  %v818_v33 = vpop.f32.mrb[1].mxu1  ;;  %v873_v26 = vadd.s32 24, %v870_v22 }
 0x229   : > { %v5367_v34 = vpop.f32.mrb[2].mxu1  ;;  %5788 = vmatprep.subr.msk.bf16.mxu1 %vm880_vm0, %v6418_v30  ;;  %v888_v7 = vsel %vm880_vm0, %v6418_v30, 0 }
 0x22a   : > { %v6426_v35 = vpack.c.bf16 %v5367_v34, %v5366_v31  ;;  %v821_v38 = vpop.f32.mrb[3].mxu1  ;;  %5373 = vmatpush3.bf16.xpose.msra.mxu1 %v888_v7  ;;  %5376 = vmatprep.mubr.msk.bf16.mxu1 %vm880_vm0, %v6420_v32  ;;  %vm6501_vm5 = vcmp.ge.s32.totalorder %v873_v26, %v875_v37 }
 0x22b   : > { %v6430_v39 = vpack.c.bf16 %v821_v38, %v818_v33  ;;  %v755_v40 = vpop.f32.mrb[4].mxu0 }
 0x22c   : > { %v757_v41 = vpop.f32.mrb[5].mxu0  ;;  %v851_v43 = vmul.f32 0.088388346, %v755_v40 }
 0x22d   : > { %v759_v42 = vpop.f32.mrb[6].mxu0 }
 0x22e   : > { %v852_v46 = vmul.f32 0.088388346, %v759_v42  ;;  %v761_v47 = vpop.f32.mrb[7].mxu0 }
 0x22f   : > { %v6432_v48 = vpack.c.bf16 %v761_v47, %v757_v41  ;;  %v5370_v49 = vpop.f32.mrb[4].mxu1 }
 0x230   : > { %v6434_v50 = vpack.c.bf16 %v852_v46, %v851_v43  ;;  %v834_v51 = vpop.f32.mrb[5].mxu1 }
 0x231   : > { %v5371_v52 = vpop.f32.mrb[6].mxu1  ;;  %5789 = vmatprep.subr.msk.bf16.mxu1 %vm880_vm0, %v6432_v48  ;;  %v891_v20 = vsel %vm880_vm0, %v6432_v48, 0 }
 0x232   : > { %v6440_v53 = vpack.c.bf16 %v5371_v52, %v5370_v49  ;;  %v837_v54 = vpop.f32.mrb[7].mxu1  ;;  %5375 = vmatpush3.bf16.xpose.msra.mxu1 %v891_v20 }
 0x233   : > { %v6442_v55 = vpack.c.bf16 %v837_v54, %v834_v51  ;;  %v765_v56 = vpop.f32.mrb[8].mxu0 }
 0x234   : > { %v767_v57 = vpop.f32.mrb[9].mxu0  ;;  %v853_v59 = vmul.f32 0.088388346, %v765_v56 }
 0x235   : > { %v769_v58 = vpop.f32.mrb[10].mxu0  ;;  %5396 = vmatprep.subr.bf16.mxu1 %v6442_v55 }
 0x236   : > { %v854_v60 = vmul.f32 0.088388346, %v769_v58  ;;  %v771_v61 = vpop.f32.mrb[11].mxu0 }
 0x237   : > { %v6445_v28 = vpack.c.bf16 %v771_v61, %v767_v57 }
 0x238   : > { %v6447_v62 = vpack.c.bf16 %v854_v60, %v853_v59 }
 0x239   : > { %5377 = vmatmul.mubr.msk.bf16.vlgmr.msra.gmra.mrb[8].mxu1 %vm880_vm0, %v6434_v50  ;;  %5790 = vmatprep.subr.msk.bf16.mxu0 %vm880_vm0, %v6445_v28  ;;  %v949_v63 = vsel %vm880_vm0, %v6445_v28, 0 }
 0x23a   : > { %5381 = vmatpush3.bf16.xpose.msra.mxu0 %v949_v63  ;;  %5384 = vmatprep.mubr.msk.bf16.mxu0 %vm880_vm0, %v6447_v62 }
 0x23b   : > { %5397 = vmatpush3.bf16.msra.mxu1 %v6442_v55  ;;  %v775_v0 = vpop.f32.mrb[12].mxu0 }
 0x23c   : > { %5398 = vmatprep.subr.bf16.mxu1 %v6440_v53  ;;  %v777_v1 = vpop.f32.mrb[13].mxu0  ;;  %v855_v4 = vmul.f32 0.088388346, %v775_v0 }
 0x23d   : > { %v779_v21 = vpop.f32.mrb[14].mxu0 }
 0x23e   : > { %v856_v12 = vmul.f32 0.088388346, %v779_v21  ;;  %v781_v13 = vpop.f32.mrb[15].mxu0 }
 0x23f   : > { %v6459_v14 = vpack.c.bf16 %v781_v13, %v777_v1  ;;  %5399 = vmatpush3.bf16.msra.mxu1 %v6440_v53 }
 0x240   : > { %v6462_v29 = vpack.c.bf16 %v856_v12, %v855_v4 }
 0x241   : > { %5791 = vmatprep.subr.msk.bf16.mxu0 %vm880_vm0, %v6459_v14  ;;  %v952_v36 = vsel %vm880_vm0, %v6459_v14, 0 }
 0x242   : > { %5383 = vmatpush3.bf16.xpose.msra.mxu0 %v952_v36 }
 0x243   : > { %5388 = vmatprep.subr.bf16.mxu0 %v6430_v39 }
 0x249   : > { %5385 = vmatmul.mubr.msk.bf16.vlgmr.msra.gmra.mrb[16].mxu0 %vm880_vm0, %v6462_v29 }
 0x24a   : > { %5389 = vmatpush3.bf16.msra.mxu0 %v6430_v39 }
 0x24b   : > { %5390 = vmatprep.subr.bf16.mxu0 %v6426_v35 }
 0x24e   : > { %5391 = vmatpush3.bf16.msra.mxu0 %v6426_v35 }
 0x30c   : > { %v6474_v15 = vpop.f32.mrb[8].mxu1 }
 0x30d   : > { %v6476_v16 = vpop.f32.mrb[9].mxu1  ;;  %v1013_v44 = vsel %vm6488_vm3, %v6474_v15, -inf }
 0x30e   : > { %v6478_v17 = vpop.f32.mrb[10].mxu1  ;;  %v1011_v37 = vsel %vm6482_vm1, %v6476_v16, -inf  ;;  %v1026_v26 = vsel %vm1019_vm2, %v1013_v44, -inf }
 0x30f   : > { %v6480_v18 = vpop.f32.mrb[11].mxu1  ;;  %v1020_v23 = vsel %vm1019_vm2, %v1011_v37, -inf }
 0x31c   : > { %v5386_v24 = vpop.f32.mrb[16].mxu0 }
 0x31d   : > { %v988_v45 = vpop.f32.mrb[17].mxu0  ;;  %v1017_v40 = vsel %vm6488_vm3, %v5386_v24, -inf  ;;  %v1012_v24 = vsel %vm6492_vm4, %v6480_v18, -inf }
 0x31e   : > { %v1015_v27 = vsel %vm6482_vm1, %v988_v45, -inf  ;;  %v5387_v31 = vpop.f32.mrb[18].mxu0  ;;  %v1038_v47 = vsel %vm1019_vm2, %v1017_v40, -inf  ;;  %v1014_v45 = vsel %vm6501_vm5, %v6478_v17, -inf  ;;  %v1023_v16 = vsel %vm1019_vm2, %v1012_v24, -inf }
 0x31f   : > { %v991_v7 = vpop.f32.mrb[19].mxu0  ;;  %v1032_v38 = vsel %vm1019_vm2, %v1015_v27, -inf  ;;  %v1018_v46 = vsel %vm6501_vm5, %v5387_v31, -inf }
 0x320   : > { %v1016_v41 = vsel %vm6492_vm4, %v991_v7, -inf  ;;  %1033 = vmax.xlane.f32.xlu0 %v1032_v38  ;;  %v1041_v49 = vsel %vm1019_vm2, %v1018_v46, -inf }
 0x321   : > { %v1035_v43 = vsel %vm1019_vm2, %v1016_v41, -inf }
 0x322   : > { %1036 = vmax.xlane.f32.xlu1 %v1035_v43 }
 0x324   : > { %1039 = vmax.xlane.f32.xlu0 %v1038_v47 }
 0x326   : > { %1042 = vmax.xlane.f32.xlu1 %v1041_v49 }
 0x3ad   : > { %v1034_v51 = vpop.xlane.xlu0 %1033 }
 0x3ae   : > { %v1048_v52 = vsub.f32 %v1015_v27, %v1034_v51  ;;  %v1029_v27 = vsel %vm1019_vm2, %v1014_v45, -inf }
 0x3af   : > { %v1037_v20 = vpop.xlane.xlu1 %1036 }
 0x3b0   : > { %v1049_v54 = vsub.f32 %v1016_v41, %v1037_v20  ;;  %v1060_v59 = vmul.f32 1.442695, %v1048_v52 }
 0x3b1   : > { %v1040_v56 = vpop.xlane.xlu0 %1039 }
 0x3b2   : > { %v1062_v57 = vmul.f32 1.442695, %v1049_v54  ;;  %v1050_v58 = vsub.f32 %v1017_v40, %v1040_v56 }
 0x3b3   : > { %v1043_v60 = vpop.xlane.xlu1 %1042 }
 0x3b4   : > { %5900 = vpow2.f32 %v1062_v57  ;;  %v1064_v61 = vmul.f32 1.442695, %v1050_v58  ;;  %v1051_v63 = vsub.f32 %v1018_v46, %v1043_v60 }
 0x3b6   : > { %5902 = vpow2.f32 %v1064_v61  ;;  %v1066_v0 = vmul.f32 1.442695, %v1051_v63 }
 0x3b7   : > { %5904 = vpow2.f32 %v1060_v59 }
 0x3b8   : > { %5906 = vpow2.f32 %v1066_v0 }
 0x3be   : > { %v5901_v1 = vpop.eup %5900 }
 0x3bf   : > { %v1083_v21 = vsel %vm1019_vm2, %v5901_v1, 0.0 }
 0x3c0   : > { %v5903_v4 = vpop.eup %5902  ;;  %1084 = vadd.xlane.f32.xlu1 %v1083_v21 }
 0x3c1   : > { %v5905_v12 = vpop.eup %5904  ;;  %v1086_v13 = vsel %vm1019_vm2, %v5903_v4, 0.0 }
 0x3c2   : > { %v5907_v36 = vpop.eup %5906  ;;  %1087 = vadd.xlane.f32.xlu0 %v1086_v13  ;;  %v1080_v22 = vsel %vm1019_vm2, %v5905_v12, 0.0 }
 0x3c3   : > { %v1089_v19 = vsel %vm1019_vm2, %v5907_v36, 0.0 }
 0x3c4   : > { %1090 = vadd.xlane.f32.xlu1 %v1089_v19 }
 0x3c6   : > { %1081 = vadd.xlane.f32.xlu0 %v1080_v22 }
 0x3d5   : > { %1311 = vrot.lane.b32.xlu1 %v6459_v14, %s6181_s28 }
 0x3d9   : > { %1303 = vrot.lane.b32.xlu1 %v6447_v62, %s6181_s28 }
 0x3dc   : > { %1309 = vrot.lane.b32.xlu0 %v6445_v28, %s6181_s28 }
 0x3dd   : > { %1305 = vrot.lane.b32.xlu1 %v6462_v29, %s6181_s28 }
 0x3fb   : > { %1021 = vmax.xlane.f32.xlu0 %v1020_v23 }
 0x3ff   : > { %1027 = vmax.xlane.f32.xlu0 %v1026_v26 }
 0x401   : > { %1024 = vmax.xlane.f32.xlu1 %v1023_v16 }
 0x403   : > { %1030 = vmax.xlane.f32.xlu0 %v1029_v27 }
 0x44d   : > { %v1085_v31 = vpop.xlane.xlu1 %1084 }
 0x44e   : > { %5908 = vrcp.f32 %v1085_v31 }
 0x44f   : > { %v1088_v15 = vpop.xlane.xlu0 %1087 }
 0x451   : > { %v1091_v7 = vpop.xlane.xlu1 %1090 }
 0x452   : > { %5910 = vrcp.f32 %v1091_v7 }
 0x453   : > { %5912 = vrcp.f32 %v1088_v15  ;;  %v1082_v18 = vpop.xlane.xlu0 %1081 }
 0x454   : > { %5914 = vrcp.f32 %v1082_v18 }
 0x455   : > { %v1312_v47 = vpop.permute.xlu1 %1311 }
 0x456   : > { %v1323_v58 = vsel %vm880_vm0, %v1312_v47, 0 }
 0x457   : > { %v1310_v38 = vpop.permute.xlu0 %1309 }
 0x458   : > { %5794 = vmatprep.subr.msk.bf16.mxu1 %vm880_vm0, %v1310_v38  ;;  %v5909_v40 = vpop.eup %5908  ;;  %v1320_v57 = vsel %vm880_vm0, %v1310_v38, 0 }
 0x459   : > { %v1105_v51 = vmul.f32 %v5909_v40, %v5901_v1  ;;  %v1304_v56 = vpop.permute.xlu1 %1303 }
 0x45c   : > { %v5911_v17 = vpop.eup %5910 }
 0x45d   : > { %v5913_v41 = vpop.eup %5912  ;;  %v1107_v46 = vmul.f32 %v5911_v17, %v5907_v36  ;;  %v1306_v59 = vpop.permute.xlu1 %1305 }
 0x45e   : > { %v5915_v43 = vpop.eup %5914  ;;  %v1106_v52 = vmul.f32 %v5913_v41, %v5903_v4 }
 0x45f   : > { %v1104_v49 = vmul.f32 %v5915_v43, %v5905_v12 }
 0x460   : > { %v1111_v54 = vpack.c.bf16 %v1107_v46, %v1106_v52 }
 0x461   : > { %v1110_v20 = vpack.c.bf16 %v1105_v51, %v1104_v49 }
 0x463   : > { %5400 = vmatprep.mubr.msk.bf16.mxu1 %vm1019_vm2, %v1110_v20 }
 0x464   : > { %5401 = vmatmul.mubr.msk.bf16.vlgmr.msra.gmra.mrb[12].mxu1 %vm1019_vm2, %v1111_v54 }
 0x465   : > { %5413 = vmatpush3.bf16.xpose.msra.mxu1 %v1320_v57  ;;  %5416 = vmatprep.mubr.msk.bf16.mxu1 %vm880_vm0, %v1304_v56 }
 0x466   : > { %5795 = vmatprep.subr.msk.bf16.mxu1 %vm880_vm0, %v1312_v47 }
 0x46d   : > { %5415 = vmatpush3.bf16.xpose.msra.mxu1 %v1323_v58 }
 0x474   : > { %5417 = vmatmul.mubr.msk.bf16.vlgmr.msra.gmra.mrb[16].mxu1 %vm880_vm0, %v1306_v59 }
 0x488   : > { %v1022_v60 = vpop.xlane.xlu0 %1021 }
 0x489   : > { %v1044_v61 = vsub.f32 %v1011_v37, %v1022_v60 }
 0x48b   : > { %v1052_v63 = vmul.f32 1.442695, %v1044_v61 }
 0x48c   : > { %v1028_v0 = vpop.xlane.xlu0 %1027 }
 0x48d   : > { %5916 = vpow2.f32 %v1052_v63  ;;  %v1046_v1 = vsub.f32 %v1013_v44, %v1028_v0 }
 0x48e   : > { %v1025_v21 = vpop.xlane.xlu1 %1024 }
 0x48f   : > { %v1056_v4 = vmul.f32 1.442695, %v1046_v1  ;;  %v1045_v12 = vsub.f32 %v1012_v24, %v1025_v21 }
 0x490   : > { %v1031_v13 = vpop.xlane.xlu0 %1030 }
 0x491   : > { %5918 = vpow2.f32 %v1056_v4  ;;  %v1054_v36 = vmul.f32 1.442695, %v1045_v12  ;;  %v1047_v19 = vsub.f32 %v1014_v45, %v1031_v13 }
 0x493   : > { %5920 = vpow2.f32 %v1054_v36  ;;  %v1058_v22 = vmul.f32 1.442695, %v1047_v19 }
 0x495   : > { %5922 = vpow2.f32 %v1058_v22 }
 0x497   : > { %v5917_v23 = vpop.eup %5916 }
 0x498   : > { %v1068_v26 = vsel %vm1019_vm2, %v5917_v23, 0.0 }
 0x499   : > { %1069 = vadd.xlane.f32.xlu0 %v1068_v26 }
 0x49b   : > { %v5919_v16 = vpop.eup %5918 }
 0x49c   : > { %v1074_v37 = vsel %vm1019_vm2, %v5919_v16, 0.0 }
 0x49d   : > { %v5921_v27 = vpop.eup %5920  ;;  %1075 = vadd.xlane.f32.xlu0 %v1074_v37 }
 0x49e   : > { %v1071_v44 = vsel %vm1019_vm2, %v5921_v27, 0.0 }
 0x49f   : > { %v5923_v31 = vpop.eup %5922  ;;  %1072 = vadd.xlane.f32.xlu1 %v1071_v44 }
 0x4a0   : > { %v1077_v24 = vsel %vm1019_vm2, %v5923_v31, 0.0 }
 0x4a3   : > { %1078 = vadd.xlane.f32.xlu1 %v1077_v24 }
 0x4b3   : > { %1236 = vrot.lane.b32.xlu0 %v6418_v30, %s6181_s28 }
 0x4b4   : > { %1238 = vrot.lane.b32.xlu1 %v6432_v48, %s6181_s28 }
 0x4b8   : > { %1230 = vrot.lane.b32.xlu1 %v6420_v32, %s6181_s28 }
 0x4bc   : > { %1232 = vrot.lane.b32.xlu1 %v6434_v50, %s6181_s28 }
 0x526   : > { %v1070_v45 = vpop.xlane.xlu0 %1069 }
 0x527   : > { %5924 = vrcp.f32 %v1070_v45 }
 0x52a   : > { %v1076_v15 = vpop.xlane.xlu0 %1075 }
 0x52c   : > { %v1073_v7 = vpop.xlane.xlu1 %1072 }
 0x52d   : > { %5926 = vrcp.f32 %v1073_v7 }
 0x52e   : > { %v1237_v18 = vpop.permute.xlu0 %1236  ;;  %5928 = vrcp.f32 %v1076_v15 }
 0x52f   : > { %5792 = vmatprep.subr.msk.bf16.mxu0 %vm880_vm0, %v1237_v18  ;;  %v1247_v0 = vsel %vm880_vm0, %v1237_v18, 0 }
 0x530   : > { %v1079_v38 = vpop.xlane.xlu1 %1078 }
 0x531   : > { %5930 = vrcp.f32 %v1079_v38  ;;  %v5925_v40 = vpop.eup %5924 }
 0x532   : > { %v1100_v46 = vmul.f32 %v5925_v40, %v5917_v23 }
 0x534   : > { %v1239_v52 = vpop.permute.xlu1 %1238 }
 0x535   : > { %v1250_v4 = vsel %vm880_vm0, %v1239_v52, 0 }
 0x537   : > { %v5927_v17 = vpop.eup %5926  ;;  %v6559_v41 = vpop.f32.mrb[12].mxu1 }
 0x538   : > { %v6561_v43 = vpop.f32.mrb[13].mxu1  ;;  %v1101_v47 = vmul.f32 %v5927_v17, %v5921_v27  ;;  %v5929_v49 = vpop.eup %5928 }
 0x539   : > { %v6563_v51 = vpop.f32.mrb[14].mxu1  ;;  %v1102_v59 = vmul.f32 %v5929_v49, %v5919_v16  ;;  %v1231_v63 = vpop.permute.xlu1 %1230 }
 0x53a   : > { %v6567_v54 = vpop.f32.mrb[15].mxu1  ;;  %v1108_v56 = vpack.c.bf16 %v1101_v47, %v1100_v46 }
 0x53b   : > { %v5931_v57 = vpop.eup %5930 }
 0x53c   : > { %v1103_v60 = vmul.f32 %v5931_v57, %v5923_v31  ;;  %5392 = vmatprep.mubr.msk.bf16.mxu0 %vm1019_vm2, %v1108_v56 }
 0x53d   : > { %v1233_v37 = vpop.permute.xlu1 %1232 }
 0x53e   : > { %v1109_v61 = vpack.c.bf16 %v1103_v60, %v1102_v59 }
 0x540   : > { %5393 = vmatmul.mubr.msk.bf16.vlgmr.msra.gmra.mrb[20].mxu0 %vm1019_vm2, %v1109_v61 }
 0x541   : > { %5405 = vmatpush3.bf16.xpose.msra.mxu0 %v1247_v0  ;;  %5408 = vmatprep.mubr.msk.bf16.mxu0 %vm880_vm0, %v1231_v63 }
 0x542   : > { %5793 = vmatprep.subr.msk.bf16.mxu0 %vm880_vm0, %v1239_v52 }
 0x547   : > { %v5418_v1 = vpop.f32.mrb[16].mxu1 }
 0x548   : > { %v1359_v21 = vpop.f32.mrb[17].mxu1  ;;  %v1380_v22 = vsel %vm6488_vm3, %v5418_v1, -inf }
 0x549   : > { %v1378_v12 = vsel %vm6482_vm1, %v1359_v21, -inf  ;;  %5407 = vmatpush3.bf16.xpose.msra.mxu0 %v1250_v4  ;;  %v5419_v13 = vpop.f32.mrb[18].mxu1  ;;  %v1400_v16 = vsel %vm1019_vm2, %v1380_v22, -inf }
 0x54a   : > { %v1362_v36 = vpop.f32.mrb[19].mxu1  ;;  %v1394_v19 = vsel %vm1019_vm2, %v1378_v12, -inf  ;;  %v1381_v27 = vsel %vm6501_vm5, %v5419_v13, -inf }
 0x54b   : > { %v1379_v23 = vsel %vm6492_vm4, %v1362_v36, -inf  ;;  %1395 = vmax.xlane.f32.xlu0 %v1394_v19  ;;  %v1403_v44 = vsel %vm1019_vm2, %v1381_v27, -inf }
 0x54c   : > { %v1397_v26 = vsel %vm1019_vm2, %v1379_v23, -inf }
 0x54d   : > { %1398 = vmax.xlane.f32.xlu1 %v1397_v26 }
 0x54f   : > { %1401 = vmax.xlane.f32.xlu0 %v1400_v16 }
 0x550   : > { %5409 = vmatmul.mubr.msk.bf16.vlgmr.msra.gmra.mrb[24].mxu0 %vm880_vm0, %v1233_v37 }
 0x553   : > { %1404 = vmax.xlane.f32.xlu0 %v1403_v44 }
 0x55e   : > { %1541 = vrot.lane.b32.xlu1 %v6440_v53, %s6181_s28 }
 0x5d8   : > { %v1396_v31 = vpop.xlane.xlu0 %1395 }
 0x5d9   : > { %v1410_v24 = vsub.f32 %v1378_v12, %v1396_v31 }
 0x5da   : > { %v1399_v45 = vpop.xlane.xlu1 %1398 }
 0x5db   : > { %v1422_v18 = vmul.f32 1.442695, %v1410_v24  ;;  %v1411_v38 = vsub.f32 %v1379_v23, %v1399_v45 }
 0x5dc   : > { %v1402_v15 = vpop.xlane.xlu0 %1401 }
 0x5dd   : > { %v1412_v7 = vsub.f32 %v1380_v22, %v1402_v15  ;;  %v1424_v47 = vmul.f32 1.442695, %v1411_v38 }
 0x5df   : > { %v1426_v40 = vmul.f32 1.442695, %v1412_v7  ;;  %v1542_v7 = vpop.permute.xlu1 %1541 }
 0x5e0   : > { %v1405_v17 = vpop.xlane.xlu0 %1404 }
 0x5e1   : > { %5932 = vpow2.f32 %v1426_v40  ;;  %v1413_v46 = vsub.f32 %v1381_v27, %v1405_v17 }
 0x5e2   : > { %5934 = vpow2.f32 %v1422_v18 }
 0x5e3   : > { %v1428_v49 = vmul.f32 1.442695, %v1413_v46 }
 0x5e5   : > { %5936 = vpow2.f32 %v1428_v49 }
 0x5e6   : > { %5938 = vpow2.f32 %v1424_v47 }
 0x5eb   : > { %v6592_v52 = vpop.eup %5932 }
 0x5ec   : > { %v1448_v56 = vsel %vm1019_vm2, %v6592_v52, 0.0  ;;  %v6596_v57 = vpop.eup %5934 }
 0x5ed   : > { %1449 = vadd.xlane.f32.xlu0 %v1448_v56  ;;  %v1442_v60 = vsel %vm1019_vm2, %v6596_v57, 0.0 }
 0x5ef   : > { %v5937_v59 = vpop.eup %5936 }
 0x5f0   : > { %v1451_v61 = vsel %vm1019_vm2, %v5937_v59, 0.0  ;;  %v5939_v63 = vpop.eup %5938 }
 0x5f1   : > { %1443 = vadd.xlane.f32.xlu0 %v1442_v60  ;;  %1452 = vadd.xlane.f32.xlu1 %v1451_v61  ;;  %v1445_v0 = vsel %vm1019_vm2, %v5939_v63, 0.0 }
 0x5f5   : > { %1446 = vadd.xlane.f32.xlu1 %v1445_v0 }
 0x606   : > { %1776 = vrot.lane.b32.xlu1 %v6418_v30, %s6182_s29 }
 0x607   : > { %1539 = vrot.lane.b32.xlu0 %v6442_v55, %s6181_s28 }
 0x60a   : > { %1778 = vrot.lane.b32.xlu1 %v6432_v48, %s6182_s29 }
 0x60b   : > { %1772 = vrot.lane.b32.xlu0 %v6420_v32, %s6182_s29 }
 0x60e   : > { %1845 = vrot.lane.b32.xlu1 %v6445_v28, %s6182_s29 }
 0x60f   : > { %1774 = vrot.lane.b32.xlu0 %v6434_v50, %s6182_s29 }
 0x612   : > { %1847 = vrot.lane.b32.xlu1 %v6459_v14, %s6182_s29 }
 0x613   : > { %1841 = vrot.lane.b32.xlu0 %v6447_v62, %s6182_s29  ;;  %v6618_v1 = vpop.f32.mrb[20].mxu0 }
 0x614   : > { %v6620_v21 = vpop.f32.mrb[21].mxu0 }
 0x615   : > { %v6622_v4 = vpop.f32.mrb[22].mxu0 }
 0x616   : > { %1843 = vrot.lane.b32.xlu1 %v6462_v29, %s6182_s29  ;;  %v6628_v13 = vpop.f32.mrb[23].mxu0 }
 0x617   : > { %v1222_v36 = vpack.c.bf16 %v6628_v13, %v6620_v21 }
 0x623   : > { %v5410_v19 = vpop.f32.mrb[24].mxu0 }
 0x624   : > { %v1286_v22 = vpop.f32.mrb[25].mxu0  ;;  %v6640_v27 = vsel %vm6488_vm3, %v5410_v19, -inf }
 0x625   : > { %v5411_v23 = vpop.f32.mrb[26].mxu0  ;;  %v6634_v16 = vsel %vm6482_vm1, %v1286_v22, -inf  ;;  %v1388_v44 = vsel %vm1019_vm2, %v6640_v27, -inf }
 0x626   : > { %v1289_v26 = vpop.f32.mrb[27].mxu0  ;;  %v1382_v37 = vsel %vm1019_vm2, %v6634_v16, -inf  ;;  %v6646_v31 = vsel %vm6501_vm5, %v5411_v23, -inf }
 0x627   : > { %v6650_v24 = vsel %vm6492_vm4, %v1289_v26, -inf  ;;  %v1391_v45 = vsel %vm1019_vm2, %v6646_v31, -inf }
 0x628   : > { %v1385_v15 = vsel %vm1019_vm2, %v6650_v24, -inf }
 0x632   : > { %1383 = vmax.xlane.f32.xlu0 %v1382_v37 }
 0x636   : > { %1389 = vmax.xlane.f32.xlu0 %v1388_v44 }
 0x63a   : > { %1392 = vmax.xlane.f32.xlu0 %v1391_v45  ;;  %1386 = vmax.xlane.f32.xlu1 %v1385_v15 }
 0x67a   : > { %v1450_v18 = vpop.xlane.xlu0 %1449 }
 0x67e   : > { %v1444_v38 = vpop.xlane.xlu0 %1443  ;;  %v1453_v40 = vpop.xlane.xlu1 %1452 }
 0x67f   : > { %5940 = vrcp.f32 %v1453_v40 }
 0x680   : > { %5942 = vrcp.f32 %v1444_v38 }
 0x681   : > { %5944 = vrcp.f32 %v1450_v18 }
 0x682   : > { %v1540_v17 = vpop.permute.xlu0 %1539  ;;  %v1447_v46 = vpop.xlane.xlu1 %1446 }
 0x683   : > { %5946 = vrcp.f32 %v1447_v46  ;;  %5428 = vmatprep.subr.bf16.mxu1 %v1540_v17 }
 0x684   : > { %5429 = vmatpush3.bf16.msra.mxu1 %v1540_v17 }
 0x685   : > { %5430 = vmatprep.subr.bf16.mxu1 %v1542_v7 }
 0x686   : > { %v1777_v47 = vpop.permute.xlu1 %1776  ;;  %v1773_v44 = vpop.permute.xlu0 %1772 }
 0x687   : > { %v1787_v45 = vsel %vm880_vm0, %v1777_v47, 0 }
 0x688   : > { %5431 = vmatpush3.bf16.msra.mxu1 %v1542_v7 }
 0x689   : > { %5796 = vmatprep.subr.msk.bf16.mxu1 %vm880_vm0, %v1777_v47  ;;  %v5941_v49 = vpop.eup %5940 }
 0x68a   : > { %v5943_v56 = vpop.eup %5942  ;;  %v1469_v0 = vmul.f32 %v5941_v49, %v5937_v59  ;;  %v1779_v15 = vpop.permute.xlu1 %1778 }
 0x68b   : > { %v5945_v60 = vpop.eup %5944  ;;  %v1466_v19 = vmul.f32 %v5943_v56, %v6596_v57  ;;  %v1790_v57 = vsel %vm880_vm0, %v1779_v15, 0 }
 0x68c   : > { %v1468_v23 = vmul.f32 %v5945_v60, %v6592_v52  ;;  %v1775_v52 = vpop.permute.xlu0 %1774 }
 0x68d   : > { %v5947_v61 = vpop.eup %5946 }
 0x68e   : > { %v1467_v22 = vmul.f32 %v5947_v61, %v5939_v63  ;;  %v1473_v37 = vpack.c.bf16 %v1469_v0, %v1468_v23  ;;  %v1846_v59 = vpop.permute.xlu1 %1845 }
 0x68f   : > { %v1856_v7 = vsel %vm880_vm0, %v1846_v59, 0 }
 0x690   : > { %v1472_v26 = vpack.c.bf16 %v1467_v22, %v1466_v19  ;;  %v1842_v63 = vpop.permute.xlu0 %1841 }
 0x692   : > { %5432 = vmatprep.mubr.msk.bf16.mxu1 %vm1019_vm2, %v1472_v26  ;;  %v1848_v18 = vpop.permute.xlu1 %1847 }
 0x693   : > { %5433 = vmatmul.mubr.msk.bf16.vlgmr.msra.gmra.mrb[20].mxu1 %vm1019_vm2, %v1473_v37  ;;  %v1859_v38 = vsel %vm880_vm0, %v1848_v18, 0 }
 0x694   : > { %5457 = vmatpush3.bf16.xpose.msra.mxu1 %v1787_v45  ;;  %5460 = vmatprep.mubr.msk.bf16.mxu1 %vm880_vm0, %v1773_v44 }
 0x695   : > { %5797 = vmatprep.subr.msk.bf16.mxu1 %vm880_vm0, %v1779_v15 }
 0x696   : > { %v1844_v40 = vpop.permute.xlu1 %1843 }
 0x69c   : > { %5459 = vmatpush3.bf16.xpose.msra.mxu1 %v1790_v57 }
 0x69d   : > { %5798 = vmatprep.subr.msk.bf16.mxu1 %vm880_vm0, %v1846_v59 }
 0x6a3   : > { %5461 = vmatmul.mubr.msk.bf16.vlgmr.msra.gmra.mrb[24].mxu1 %vm880_vm0, %v1775_v52 }
 0x6a4   : > { %5465 = vmatpush3.bf16.xpose.msra.mxu1 %v1856_v7  ;;  %5468 = vmatprep.mubr.msk.bf16.mxu1 %vm880_vm0, %v1842_v63 }
 0x6a5   : > { %5799 = vmatprep.subr.msk.bf16.mxu1 %vm880_vm0, %v1848_v18 }
 0x6ac   : > { %5467 = vmatpush3.bf16.xpose.msra.mxu1 %v1859_v38 }
 0x6b3   : > { %5469 = vmatmul.mubr.msk.bf16.vlgmr.msra.gmra.mrb[28].mxu1 %vm880_vm0, %v1844_v40 }
 0x6bf   : > { %v1384_v17 = vpop.xlane.xlu0 %1383 }
 0x6c0   : > { %v1406_v46 = vsub.f32 %v6634_v16, %v1384_v17 }
 0x6c2   : > { %v1414_v47 = vmul.f32 1.442695, %v1406_v46 }
 0x6c3   : > { %v1390_v49 = vpop.xlane.xlu0 %1389 }
 0x6c4   : > { %5948 = vpow2.f32 %v1414_v47  ;;  %v1408_v56 = vsub.f32 %v6640_v27, %v1390_v49 }
 0x6c6   : > { %v1418_v60 = vmul.f32 1.442695, %v1408_v56 }
 0x6c7   : > { %v1393_v61 = vpop.xlane.xlu0 %1392  ;;  %v1387_v0 = vpop.xlane.xlu1 %1386 }
 0x6c8   : > { %5950 = vpow2.f32 %v1418_v60  ;;  %v1409_v19 = vsub.f32 %v6646_v31, %v1393_v61  ;;  %v1407_v22 = vsub.f32 %v6650_v24, %v1387_v0 }
 0x6ca   : > { %v1416_v23 = vmul.f32 1.442695, %v1407_v22  ;;  %v1420_v26 = vmul.f32 1.442695, %v1409_v19 }
 0x6cc   : > { %5952 = vpow2.f32 %v1416_v23 }
 0x6cd   : > { %5954 = vpow2.f32 %v1420_v26 }
 0x6ce   : > { %v5949_v37 = vpop.eup %5948 }
 0x6cf   : > { %v1430_v16 = vsel %vm1019_vm2, %v5949_v37, 0.0 }
 0x6d0   : > { %1431 = vadd.xlane.f32.xlu0 %v1430_v16 }
 0x6d2   : > { %v5951_v44 = vpop.eup %5950 }
 0x6d3   : > { %v1436_v45 = vsel %vm1019_vm2, %v5951_v44, 0.0 }
 0x6d4   : > { %1437 = vadd.xlane.f32.xlu0 %v1436_v45 }
 0x6d6   : > { %v5953_v27 = vpop.eup %5952 }
 0x6d7   : > { %v1433_v15 = vsel %vm1019_vm2, %v5953_v27, 0.0  ;;  %v5955_v57 = vpop.eup %5954 }
 0x6d8   : > { %1434 = vadd.xlane.f32.xlu1 %v1433_v15  ;;  %v1439_v31 = vsel %vm1019_vm2, %v5955_v57, 0.0 }
 0x6dc   : > { %1440 = vadd.xlane.f32.xlu1 %v1439_v31 }
 0x6ea   : > { %1476 = vrot.lane.b32.xlu0 %v6430_v39, %s6181_s28 }
 0x6ed   : > { %1478 = vrot.lane.b32.xlu1 %v6426_v35, %s6181_s28 }
 0x75d   : > { %v1432_v24 = vpop.xlane.xlu0 %1431 }
 0x75e   : > { %5956 = vrcp.f32 %v1432_v24 }
 0x761   : > { %v1438_v59 = vpop.xlane.xlu0 %1437 }
 0x765   : > { %v1477_v52 = vpop.permute.xlu0 %1476  ;;  %v1435_v63 = vpop.xlane.xlu1 %1434 }
 0x766   : > { %5420 = vmatprep.subr.bf16.mxu0 %v1477_v52  ;;  %v6684_v7 = vpop.f32.mrb[20].mxu1  ;;  %5958 = vrcp.f32 %v1435_v63 }
 0x767   : > { %5421 = vmatpush3.bf16.msra.mxu0 %v1477_v52  ;;  %v6686_v18 = vpop.f32.mrb[21].mxu1  ;;  %5960 = vrcp.f32 %v1438_v59 }
 0x768   : > { %v6688_v38 = vpop.f32.mrb[22].mxu1  ;;  %v5957_v56 = vpop.eup %5956 }
 0x769   : > { %v1603_v40 = vpack.c.bf16 %v6688_v38, %v6684_v7  ;;  %v6692_v17 = vpop.f32.mrb[23].mxu1  ;;  %v1441_v47 = vpop.xlane.xlu1 %1440  ;;  %v1462_v61 = vmul.f32 %v5957_v56, %v5949_v37  ;;  %v7422_v7 = vpack.c.bf16 %v6563_v51, %v6559_v41 }
 0x76a   : > { %v1602_v46 = vpack.c.bf16 %v6692_v17, %v6686_v18  ;;  %5962 = vrcp.f32 %v1441_v47  ;;  %v7420_v17 = vpack.c.bf16 %v6622_v4, %v6618_v1 }
 0x76d   : > { %v1479_v49 = vpop.permute.xlu1 %1478 }
 0x76e   : > { %5422 = vmatprep.subr.bf16.mxu0 %v1479_v49 }
 0x76f   : > { %5423 = vmatpush3.bf16.msra.mxu0 %v1479_v49 }
 0x770   : > { %v5959_v60 = vpop.eup %5958 }
 0x771   : > { %v1463_v0 = vmul.f32 %v5959_v60, %v5953_v27  ;;  %v5961_v19 = vpop.eup %5960 }
 0x772   : > { %v1464_v26 = vmul.f32 %v5961_v19, %v5951_v44 }
 0x773   : > { %v1470_v22 = vpack.c.bf16 %v1463_v0, %v1462_v61 }
 0x774   : > { %v5963_v23 = vpop.eup %5962 }
 0x775   : > { %v1465_v16 = vmul.f32 %v5963_v23, %v5955_v57  ;;  %5424 = vmatprep.mubr.msk.bf16.mxu0 %vm1019_vm2, %v1470_v22 }
 0x776   : > { %v5462_v45 = vpop.f32.mrb[24].mxu1 }
 0x777   : > { %v1826_v15 = vpop.f32.mrb[25].mxu1  ;;  %v1471_v59 = vpack.c.bf16 %v1465_v16, %v1464_v26  ;;  %v1912_v57 = vsel %vm6488_vm3, %v5462_v45, -inf }
 0x778   : > { %v1910_v31 = vsel %vm6482_vm1, %v1826_v15, -inf  ;;  %v5463_v24 = vpop.f32.mrb[26].mxu1  ;;  %v1924_v49 = vsel %vm1019_vm2, %v1912_v57, -inf }
 0x779   : > { %v1829_v52 = vpop.f32.mrb[27].mxu1  ;;  %v1918_v63 = vsel %vm1019_vm2, %v1910_v31, -inf  ;;  %v1913_v37 = vsel %vm6501_vm5, %v5463_v24, -inf  ;;  %5425 = vmatmul.mubr.msk.bf16.vlgmr.msra.gmra.mrb[28].mxu0 %vm1019_vm2, %v1471_v59  ;;  %v5868_v59 = vld [vmem:[%s7404_s4 + $0x8] sm:$0xff]  }
 0x77a   : > { %v1911_v27 = vsel %vm6492_vm4, %v1829_v52, -inf  ;;  %1919 = vmax.xlane.f32.xlu1 %v1918_v63  ;;  %v1927_v47 = vsel %vm1019_vm2, %v1913_v37, -inf  ;;  %5436 = vmatprep.subr.bf16.mxu0 %v5868_v59  ;;  %v6731_v52 = vld [vmem:[%s7404_s4] sm:$0xff]  }
 0x77b   : > { %v1921_v44 = vsel %vm1019_vm2, %v1911_v27, -inf  ;;  %5437 = vmatpush3.bf16.msra.mxu0 %v5868_v59 }
 0x77c   : > { %1922 = vmax.xlane.f32.xlu0 %v1921_v44  ;;  %5446 = vmatprep.subr.bf16.mxu0 %v6731_v52 }
 0x77e   : > { %1928 = vmax.xlane.f32.xlu1 %v1927_v47 }
 0x780   : > { %1925 = vmax.xlane.f32.xlu0 %v1924_v49 }
 0x786   : > { %v5470_v56 = vpop.f32.mrb[28].mxu1 }
 0x787   : > { %v1895_v60 = vpop.f32.mrb[29].mxu1  ;;  %v1916_v23 = vsel %vm6488_vm3, %v5470_v56, -inf }
 0x788   : > { %v1914_v61 = vsel %vm6482_vm1, %v1895_v60, -inf  ;;  %v5471_v0 = vpop.f32.mrb[30].mxu1  ;;  %v1936_v15 = vsel %vm1019_vm2, %v1916_v23, -inf }
 0x789   : > { %v1898_v19 = vpop.f32.mrb[31].mxu1  ;;  %v1930_v22 = vsel %vm1019_vm2, %v1914_v61, -inf  ;;  %v1917_v45 = vsel %vm6501_vm5, %v5471_v0, -inf }
 0x78a   : > { %v6717_v26 = vsel %vm6492_vm4, %v1898_v19, -inf  ;;  %1931 = vmax.xlane.f32.xlu0 %v1930_v22  ;;  %v1939_v24 = vsel %vm1019_vm2, %v1917_v45, -inf }
 0x78b   : > { %v1933_v16 = vsel %vm1019_vm2, %v6717_v26, -inf }
 0x78c   : > { %1934 = vmax.xlane.f32.xlu1 %v1933_v16 }
 0x78e   : > { %1937 = vmax.xlane.f32.xlu0 %v1936_v15 }
 0x790   : > { %1940 = vmax.xlane.f32.xlu1 %v1939_v24 }
 0x807   : > { %v1920_v63 = vpop.xlane.xlu1 %1919 }
 0x808   : > { %v1942_v56 = vsub.f32 %v1910_v31, %v1920_v63 }
 0x809   : > { %v1923_v44 = vpop.xlane.xlu0 %1922 }
 0x80a   : > { %v1943_v47 = vsub.f32 %v1911_v27, %v1923_v44  ;;  %v1950_v15 = vmul.f32 1.442695, %v1942_v56 }
 0x80b   : > { %v1929_v49 = vpop.xlane.xlu1 %1928 }
 0x80c   : > { %v1945_v60 = vsub.f32 %v1913_v37, %v1929_v49  ;;  %v1952_v0 = vmul.f32 1.442695, %v1943_v47 }
 0x80d   : > { %v1926_v19 = vpop.xlane.xlu0 %1925 }
 0x80e   : > { %v1956_v22 = vmul.f32 1.442695, %v1945_v60  ;;  %v1944_v16 = vsub.f32 %v1912_v57, %v1926_v19 }
 0x810   : > { %5964 = vpow2.f32 %v1956_v22  ;;  %v1954_v24 = vmul.f32 1.442695, %v1944_v16 }
 0x811   : > { %5966 = vpow2.f32 %v1952_v0 }
 0x812   : > { %5968 = vpow2.f32 %v1954_v24 }
 0x813   : > { %5970 = vpow2.f32 %v1950_v15 }
 0x817   : > { %v1932_v59 = vpop.xlane.xlu0 %1931 }
 0x818   : > { %v1946_v58 = vsub.f32 %v1914_v61, %v1932_v59 }
 0x819   : > { %v1935_v19 = vpop.xlane.xlu1 %1934 }
 0x81a   : > { %v6734_v20 = vpop.eup %5964  ;;  %v1958_v47 = vmul.f32 1.442695, %v1946_v58  ;;  %v1947_v15 = vsub.f32 %v6717_v26, %v1935_v19 }
 0x81b   : > { %v6736_v12 = vpop.eup %5966  ;;  %v1938_v27 = vpop.xlane.xlu0 %1937  ;;  %v1975_v31 = vsel %vm1019_vm2, %v6734_v20, 0.0 }
 0x81c   : > { %v6740_v37 = vpop.eup %5968  ;;  %v1948_v63 = vsub.f32 %v1916_v23, %v1938_v27  ;;  %1976 = vadd.xlane.f32.xlu1 %v1975_v31  ;;  %v1969_v61 = vsel %vm1019_vm2, %v6736_v12, 0.0  ;;  %v1960_v59 = vmul.f32 1.442695, %v1947_v15 }
 0x81d   : > { %v1972_v57 = vsel %vm1019_vm2, %v6740_v37, 0.0  ;;  %v6744_v44 = vpop.eup %5970  ;;  %v1941_v22 = vpop.xlane.xlu1 %1940 }
 0x81e   : > { %v1962_v49 = vmul.f32 1.442695, %v1948_v63  ;;  %1973 = vadd.xlane.f32.xlu0 %v1972_v57  ;;  %v1966_v56 = vsel %vm1019_vm2, %v6744_v44, 0.0  ;;  %v1949_v16 = vsub.f32 %v1917_v45, %v1941_v22 }
 0x820   : > { %5972 = vpow2.f32 %v1962_v49  ;;  %1970 = vadd.xlane.f32.xlu1 %v1969_v61  ;;  %v1964_v24 = vmul.f32 1.442695, %v1949_v16  ;;  %v5870_v16 = vld [vmem:[%s7404_s4 + $0x10] sm:$0xff]  }
 0x821   : > { %5974 = vpow2.f32 %v1958_v47 }
 0x822   : > { %1967 = vadd.xlane.f32.xlu0 %v1966_v56  ;;  %5976 = vpow2.f32 %v1964_v24 }
 0x823   : > { %5978 = vpow2.f32 %v1960_v59 }
 0x82a   : > { %v6750_v23 = vpop.eup %5972 }
 0x82b   : > { %v1984_v60 = vsel %vm1019_vm2, %v6750_v23, 0.0  ;;  %v6754_v0 = vpop.eup %5974 }
 0x82c   : > { %1985 = vadd.xlane.f32.xlu0 %v1984_v60  ;;  %v1978_v58 = vsel %vm1019_vm2, %v6754_v0, 0.0  ;;  %v6773_v26 = vpop.eup %5976 }
 0x82d   : > { %v1987_v49 = vsel %vm1019_vm2, %v6773_v26, 0.0  ;;  %v6784_v61 = vpop.eup %5978 }
 0x82e   : > { %v1981_v18 = vsel %vm1019_vm2, %v6784_v61, 0.0 }
 0x830   : > { %1979 = vadd.xlane.f32.xlu0 %v1978_v58 }
 0x831   : > { %2012 = vrot.lane.b32.xlu1 %v6426_v35, %s6182_s29 }
 0x835   : > { %2071 = vrot.lane.b32.xlu1 %v6442_v55, %s6182_s29 }
 0x846   : > { %2010 = vrot.lane.b32.xlu0 %v6430_v39, %s6182_s29 }
 0x84a   : > { %2233 = vrot.lane.b32.xlu0 %v6418_v30, %s6183_s15 }
 0x84c   : > { %v5426_v27 = vpop.f32.mrb[28].mxu0 }
 0x84d   : > { %v1522_v31 = vpop.f32.mrb[29].mxu0 }
 0x84e   : > { %2302 = vrot.lane.b32.xlu0 %v6445_v28, %s6183_s15  ;;  %v5427_v63 = vpop.f32.mrb[30].mxu0 }
 0x84f   : > { %v1601_v45 = vpack.c.bf16 %v5427_v63, %v5426_v27  ;;  %v1525_v57 = vpop.f32.mrb[31].mxu0 }
 0x850   : > { %v1600_v47 = vpack.c.bf16 %v1525_v57, %v1522_v31 }
 0x852   : > { %2231 = vrot.lane.b32.xlu0 %v6434_v50, %s6183_s15  ;;  %5438 = vmatprep.mubr.msk.bf16.mxu0 %vm880_vm0, %v1600_v47 }
 0x853   : > { %5439 = vmatmul.mubr.msk.bf16.vlgmr.msra.gmra.mrb[32].mxu0 %vm880_vm0, %v1601_v45 }
 0x854   : > { %5442 = vmatprep.mubr.msk.bf16.mxu0 %vm880_vm0, %v1602_v46  ;;  %5447 = vmatpush3.bf16.msra.mxu0 %v6731_v52  ;;  %v7421_v46 = vpack.c.bf16 %v6567_v54, %v6561_v43 }
 0x856   : > { %2298 = vrot.lane.b32.xlu0 %v6447_v62, %s6183_s15 }
 0x859   : > { %1988 = vadd.xlane.f32.xlu1 %v1987_v49 }
 0x85b   : > { %5443 = vmatmul.mubr.msk.bf16.gmra.mrb[36].mxu0 %vm880_vm0, %v1603_v40 }
 0x85c   : > { %5448 = vmatprep.mubr.msk.bf16.mxu0 %vm880_vm0, %v1222_v36 }
 0x85d   : > { %1982 = vadd.xlane.f32.xlu1 %v1981_v18 }
 0x863   : > { %5449 = vmatmul.mubr.msk.bf16.vlgmr.msra.gmra.mrb[32].mxu0 %vm880_vm0, %v7420_v17 }
 0x864   : > { %5452 = vmatprep.mubr.msk.bf16.mxu0 %vm880_vm0, %v7421_v46 }
 0x86b   : > { %5453 = vmatmul.mubr.msk.bf16.gmra.mrb[36].mxu0 %vm880_vm0, %v7422_v7 }
 0x86e   : > { %2073 = vrot.lane.b32.xlu1 %v6440_v53, %s6182_s29 }
 0x872   : > { %2235 = vrot.lane.b32.xlu1 %v6432_v48, %s6183_s15 }
 0x876   : > { %2229 = vrot.lane.b32.xlu1 %v6420_v32, %s6183_s15 }
 0x87a   : > { %2304 = vrot.lane.b32.xlu1 %v6459_v14, %s6183_s15 }
 0x87e   : > { %2300 = vrot.lane.b32.xlu1 %v6462_v29, %s6183_s15 }
 0x8a9   : > { %v1977_v43 = vpop.xlane.xlu1 %1976 }
 0x8ab   : > { %v1974_v54 = vpop.xlane.xlu0 %1973 }
 0x8ad   : > { %v1971_v41 = vpop.xlane.xlu1 %1970 }
 0x8ae   : > { %5980 = vrcp.f32 %v1971_v41 }
 0x8af   : > { %v1968_v51 = vpop.xlane.xlu0 %1967 }
 0x8b0   : > { %5982 = vrcp.f32 %v1968_v51 }
 0x8b1   : > { %v2013_v1 = vpop.permute.xlu1 %2012  ;;  %5984 = vrcp.f32 %v1974_v54 }
 0x8b2   : > { %5986 = vrcp.f32 %v1977_v43 }
 0x8b5   : > { %v2072_v21 = vpop.permute.xlu1 %2071 }
 0x8b6   : > { %5480 = vmatprep.subr.bf16.mxu1 %v2072_v21 }
 0x8b7   : > { %5481 = vmatpush3.bf16.msra.mxu1 %v2072_v21 }
 0x8b8   : > { %v5981_v4 = vpop.eup %5980 }
 0x8b9   : > { %v1986_v13 = vpop.xlane.xlu0 %1985  ;;  %v1999_v40 = vmul.f32 %v5981_v4, %v6736_v12 }
 0x8ba   : > { %v5983_v36 = vpop.eup %5982 }
 0x8bb   : > { %v1998_v38 = vmul.f32 %v5983_v36, %v6744_v44  ;;  %v5985_v60 = vpop.eup %5984 }
 0x8bc   : > { %v5987_v19 = vpop.eup %5986  ;;  %v2000_v22 = vmul.f32 %v5985_v60, %v6740_v37 }
 0x8bd   : > { %v1980_v52 = vpop.xlane.xlu0 %1979  ;;  %v2006_v56 = vpack.c.bf16 %v1999_v40, %v1998_v38  ;;  %v2001_v44 = vmul.f32 %v5987_v19, %v6734_v20 }
 0x8bf   : > { %5476 = vmatprep.mubr.msk.bf16.mxu0 %vm1019_vm2, %v2006_v56  ;;  %v2007_v12 = vpack.c.bf16 %v2001_v44, %v2000_v22 }
 0x8c1   : > { %v2011_v58 = vpop.permute.xlu0 %2010 }
 0x8c2   : > { %5472 = vmatprep.subr.bf16.mxu0 %v2011_v58 }
 0x8c3   : > { %5473 = vmatpush3.bf16.msra.mxu0 %v2011_v58 }
 0x8c4   : > { %5474 = vmatprep.subr.bf16.mxu0 %v2013_v1 }
 0x8c5   : > { %v2234_v15 = vpop.permute.xlu0 %2233 }
 0x8c6   : > { %v2244_v54 = vsel %vm880_vm0, %v2234_v15, 0 }
 0x8c7   : > { %5475 = vmatpush3.bf16.msra.mxu0 %v2013_v1 }
 0x8c8   : > { %5488 = vmatprep.subr.bf16.mxu0 %v5870_v16 }
 0x8c9   : > { %v2303_v24 = vpop.permute.xlu0 %2302 }
 0x8ca   : > { %5477 = vmatmul.mubr.msk.bf16.vlgmr.msra.gmra.mrb[40].mxu0 %vm1019_vm2, %v2007_v12  ;;  %v2313_v4 = vsel %vm880_vm0, %v2303_v24, 0 }
 0x8cb   : > { %5489 = vmatpush3.bf16.msra.mxu0 %v5870_v16 }
 0x8cc   : > { %5802 = vmatprep.subr.msk.bf16.mxu0 %vm880_vm0, %v2303_v24 }
 0x8e6   : > { %v1989_v59 = vpop.xlane.xlu1 %1988 }
 0x8e7   : > { %5988 = vrcp.f32 %v1989_v59 }
 0x8e8   : > { %5990 = vrcp.f32 %v1980_v52 }
 0x8e9   : > { %5992 = vrcp.f32 %v1986_v13 }
 0x8ea   : > { %v1983_v37 = vpop.xlane.xlu1 %1982 }
 0x8eb   : > { %5994 = vrcp.f32 %v1983_v37 }
 0x8ee   : > { %v2074_v27 = vpop.permute.xlu1 %2073 }
 0x8ef   : > { %5482 = vmatprep.subr.bf16.mxu1 %v2074_v27 }
 0x8f0   : > { %5483 = vmatpush3.bf16.msra.mxu1 %v2074_v27 }
 0x8f1   : > { %5800 = vmatprep.subr.msk.bf16.mxu1 %vm880_vm0, %v2234_v15  ;;  %v5989_v20 = vpop.eup %5988 }
 0x8f2   : > { %v5991_v31 = vpop.eup %5990  ;;  %v2005_v57 = vmul.f32 %v5989_v20, %v6773_v26  ;;  %v2236_v47 = vpop.permute.xlu1 %2235 }
 0x8f3   : > { %v5993_v63 = vpop.eup %5992  ;;  %v2002_v49 = vmul.f32 %v5991_v31, %v6754_v0  ;;  %v2247_v0 = vsel %vm880_vm0, %v2236_v47, 0  ;;  %v2232_v26 = vpop.permute.xlu0 %2231 }
 0x8f4   : > { %v2004_v17 = vmul.f32 %v5993_v63, %v6750_v23 }
 0x8f5   : > { %v5995_v45 = vpop.eup %5994 }
 0x8f6   : > { %v2003_v18 = vmul.f32 %v5995_v45, %v6784_v61  ;;  %v2009_v7 = vpack.c.bf16 %v2005_v57, %v2004_v17  ;;  %v2230_v43 = vpop.permute.xlu1 %2229 }
 0x8f7   : > { %v2299_v19 = vpop.permute.xlu0 %2298 }
 0x8f8   : > { %v2008_v46 = vpack.c.bf16 %v2003_v18, %v2002_v49 }
 0x8fa   : > { %5484 = vmatprep.mubr.msk.bf16.mxu1 %vm1019_vm2, %v2008_v46  ;;  %v2305_v13 = vpop.permute.xlu1 %2304 }
 0x8fb   : > { %5485 = vmatmul.mubr.msk.bf16.vlgmr.msra.gmra.mrb[32].mxu1 %vm1019_vm2, %v2009_v7  ;;  %v2316_v36 = vsel %vm880_vm0, %v2305_v13, 0 }
 0x8fc   : > { %5499 = vmatpush3.bf16.xpose.msra.mxu1 %v2244_v54  ;;  %5502 = vmatprep.mubr.msk.bf16.mxu1 %vm880_vm0, %v2230_v43 }
 0x8fd   : > { %5801 = vmatprep.subr.msk.bf16.mxu1 %vm880_vm0, %v2236_v47 }
 0x8fe   : > { %v2301_v22 = vpop.permute.xlu1 %2300 }
 0x904   : > { %5501 = vmatpush3.bf16.xpose.msra.mxu1 %v2247_v0 }
 0x90b   : > { %5503 = vmatmul.mubr.msk.bf16.vlgmr.msra.gmra.mrb[36].mxu1 %vm880_vm0, %v2232_v26 }
 0x99d   : > { %v5478_v23 = vpop.f32.mrb[40].mxu0 }
 0x99e   : > { %v2056_v61 = vpop.f32.mrb[41].mxu0 }
 0x99f   : > { %v5479_v41 = vpop.f32.mrb[42].mxu0 }
 0x9a0   : > { %v2133_v51 = vpack.c.bf16 %v5479_v41, %v5478_v23  ;;  %v2059_v1 = vpop.f32.mrb[43].mxu0 }
 0x9a1   : > { %v2132_v21 = vpack.c.bf16 %v2059_v1, %v2056_v61 }
 0x9a3   : > { %5490 = vmatprep.mubr.msk.bf16.mxu0 %vm880_vm0, %v2132_v21 }
 0x9a4   : > { %5491 = vmatmul.mubr.msk.bf16.vlgmr.msra.gmra.mrb[32].mxu0 %vm880_vm0, %v2133_v51 }
 0x9a5   : > { %5507 = vmatpush3.bf16.xpose.msra.mxu0 %v2313_v4 }
 0x9a6   : > { %5803 = vmatprep.subr.msk.bf16.mxu0 %vm880_vm0, %v2305_v13 }
 0x9ad   : > { %5509 = vmatpush3.bf16.xpose.msra.mxu0 %v2316_v36 }
 0x9ce   : > { %v5486_v38 = vpop.f32.mrb[32].mxu1 }
 0x9cf   : > { %v2117_v40 = vpop.f32.mrb[33].mxu1 }
 0x9d0   : > { %v5487_v52 = vpop.f32.mrb[34].mxu1 }
 0x9d1   : > { %v2135_v56 = vpack.c.bf16 %v5487_v52, %v5486_v38  ;;  %v2120_v60 = vpop.f32.mrb[35].mxu1 }
 0x9d2   : > { %v2134_v58 = vpack.c.bf16 %v2120_v60, %v2117_v40 }
 0x9d4   : > { %5494 = vmatprep.mubr.msk.bf16.mxu0 %vm880_vm0, %v2134_v58 }
 0x9d5   : > { %5495 = vmatmul.mubr.msk.bf16.gmra.mrb[36].mxu0 %vm880_vm0, %v2135_v56 }
 0x9d6   : > { %5510 = vmatprep.mubr.msk.bf16.mxu0 %vm880_vm0, %v2299_v19 }
 0x9dd   : > { %5511 = vmatmul.mubr.msk.bf16.vlgmr.msra.gmra.mrb[44].mxu0 %vm880_vm0, %v2301_v22 }
 0x9de   : > { %v5504_v16 = vpop.f32.mrb[36].mxu1 }
 0x9df   : > { %v2283_v15 = vpop.f32.mrb[37].mxu1  ;;  %v2369_v37 = vsel %vm6488_vm3, %v5504_v16, -inf }
 0x9e0   : > { %v2367_v44 = vsel %vm6482_vm1, %v2283_v15, -inf  ;;  %v5505_v12 = vpop.f32.mrb[38].mxu1  ;;  %v2381_v31 = vsel %vm1019_vm2, %v2369_v37, -inf }
 0x9e1   : > { %v2286_v24 = vpop.f32.mrb[39].mxu1  ;;  %v2375_v59 = vsel %vm1019_vm2, %v2367_v44, -inf  ;;  %v2370_v63 = vsel %vm6501_vm5, %v5505_v12, -inf }
 0x9e2   : > { %v2368_v27 = vsel %vm6492_vm4, %v2286_v24, -inf  ;;  %2376 = vmax.xlane.f32.xlu0 %v2375_v59  ;;  %v2384_v45 = vsel %vm1019_vm2, %v2370_v63, -inf }
 0x9e3   : > { %v2378_v20 = vsel %vm1019_vm2, %v2368_v27, -inf }
 0x9e4   : > { %2379 = vmax.xlane.f32.xlu1 %v2378_v20 }
 0x9e6   : > { %2382 = vmax.xlane.f32.xlu0 %v2381_v31 }
 0x9ea   : > { %2385 = vmax.xlane.f32.xlu0 %v2384_v45 }
 0xa6f   : > { %v2377_v57 = vpop.xlane.xlu0 %2376 }
 0xa70   : > { %v2399_v18 = vsub.f32 %v2367_v44, %v2377_v57 }
 0xa71   : > { %v2380_v49 = vpop.xlane.xlu1 %2379 }
 0xa72   : > { %v2400_v17 = vsub.f32 %v2368_v27, %v2380_v49  ;;  %v2407_v7 = vmul.f32 1.442695, %v2399_v18 }
 0xa73   : > { %v2383_v47 = vpop.xlane.xlu0 %2382 }
 0xa74   : > { %v2401_v43 = vsub.f32 %v2369_v37, %v2383_v47  ;;  %v2409_v54 = vmul.f32 1.442695, %v2400_v17  ;;  %5996 = vpow2.f32 %v2407_v7 }
 0xa76   : > { %v2411_v26 = vmul.f32 1.442695, %v2401_v43  ;;  %5998 = vpow2.f32 %v2409_v54 }
 0xa77   : > { %v2386_v46 = vpop.xlane.xlu0 %2385 }
 0xa78   : > { %v2402_v0 = vsub.f32 %v2370_v63, %v2386_v46  ;;  %6000 = vpow2.f32 %v2411_v26 }
 0xa7a   : > { %v2413_v23 = vmul.f32 1.442695, %v2402_v0 }
 0xa7c   : > { %6002 = vpow2.f32 %v2413_v23 }
 0xa7e   : > { %v5997_v56 = vpop.eup %5996 }
 0xa7f   : > { %v2423_v19 = vsel %vm1019_vm2, %v5997_v56, 0.0 }
 0xa80   : > { %v5999_v58 = vpop.eup %5998 }
 0xa81   : > { %v2426_v16 = vsel %vm1019_vm2, %v5999_v58, 0.0 }
 0xa82   : > { %v6874_v22 = vpop.eup %6000 }
 0xa83   : > { %v2429_v44 = vsel %vm1019_vm2, %v6874_v22, 0.0 }
 0xa86   : > { %v6877_v15 = vpop.eup %6002 }
 0xa87   : > { %v2432_v12 = vsel %vm1019_vm2, %v6877_v15, 0.0 }
 0xab0   : > { %v5512_v61 = vpop.f32.mrb[44].mxu0 }
 0xab1   : > { %v2352_v41 = vpop.f32.mrb[45].mxu0  ;;  %v2373_v13 = vsel %vm6488_vm3, %v5512_v61, -inf }
 0xab2   : > { %v2371_v51 = vsel %vm6482_vm1, %v2352_v41, -inf  ;;  %v5513_v1 = vpop.f32.mrb[46].mxu0  ;;  %v2393_v52 = vsel %vm1019_vm2, %v2373_v13, -inf }
 0xab3   : > { %v2387_v21 = vsel %vm1019_vm2, %v2371_v51, -inf  ;;  %v2355_v4 = vpop.f32.mrb[47].mxu0  ;;  %v2374_v40 = vsel %vm6501_vm5, %v5513_v1, -inf }
 0xab4   : > { %v2372_v36 = vsel %vm6492_vm4, %v2355_v4, -inf  ;;  %2388 = vmax.xlane.f32.xlu0 %v2387_v21  ;;  %v2396_v60 = vsel %vm1019_vm2, %v2374_v40, -inf }
 0xab5   : > { %v2390_v38 = vsel %vm1019_vm2, %v2372_v36, -inf }
 0xab6   : > { %2391 = vmax.xlane.f32.xlu1 %v2390_v38 }
 0xab8   : > { %2394 = vmax.xlane.f32.xlu0 %v2393_v52 }
 0xaba   : > { %2397 = vmax.xlane.f32.xlu1 %v2396_v60 }
 0xabc   : > { %2424 = vadd.xlane.f32.xlu0 %v2423_v19 }
 0xabe   : > { %2427 = vadd.xlane.f32.xlu1 %v2426_v16 }
 0xac0   : > { %2430 = vadd.xlane.f32.xlu0 %v2429_v44 }
 0xac2   : > { %2433 = vadd.xlane.f32.xlu1 %v2432_v12  ;;  %v5871_v12 = vld [vmem:[%s7404_s4 + $0x18] sm:$0xff]  }
 0xad3   : > { %2469 = vrot.lane.b32.xlu1 %v6426_v35, %s6183_s15 }
 0xad7   : > { %2528 = vrot.lane.b32.xlu1 %v6442_v55, %s6183_s15 }
 0xb41   : > { %v2389_v24 = vpop.xlane.xlu0 %2388 }
 0xb42   : > { %v2403_v59 = vsub.f32 %v2371_v51, %v2389_v24 }
 0xb43   : > { %v2392_v37 = vpop.xlane.xlu1 %2391 }
 0xb44   : > { %v2415_v27 = vmul.f32 1.442695, %v2403_v59  ;;  %v2404_v31 = vsub.f32 %v2372_v36, %v2392_v37 }
 0xb45   : > { %v2395_v20 = vpop.xlane.xlu0 %2394 }
 0xb46   : > { %v2405_v63 = vsub.f32 %v2373_v13, %v2395_v20  ;;  %6004 = vpow2.f32 %v2415_v27  ;;  %v2417_v18 = vmul.f32 1.442695, %v2404_v31 }
 0xb47   : > { %v2398_v45 = vpop.xlane.xlu1 %2397 }
 0xb48   : > { %v2419_v57 = vmul.f32 1.442695, %v2405_v63  ;;  %v2406_v47 = vsub.f32 %v2374_v40, %v2398_v45 }
 0xb49   : > { %v2425_v49 = vpop.xlane.xlu0 %2424 }
 0xb4a   : > { %6006 = vpow2.f32 %v2419_v57  ;;  %v2421_v17 = vmul.f32 1.442695, %v2406_v47 }
 0xb4b   : > { %6008 = vrcp.f32 %v2425_v49  ;;  %v2428_v46 = vpop.xlane.xlu1 %2427 }
 0xb4c   : > { %6010 = vpow2.f32 %v2421_v17 }
 0xb4d   : > { %6012 = vrcp.f32 %v2428_v46  ;;  %v2431_v52 = vpop.xlane.xlu0 %2430 }
 0xb4e   : > { %6014 = vpow2.f32 %v2417_v18 }
 0xb4f   : > { %v2434_v7 = vpop.xlane.xlu1 %2433 }
 0xb50   : > { %v6887_v43 = vpop.eup %6004  ;;  %6016 = vrcp.f32 %v2434_v7 }
 0xb51   : > { %v2435_v36 = vsel %vm1019_vm2, %v6887_v43, 0.0  ;;  %6018 = vrcp.f32 %v2431_v52 }
 0xb53   : > { %v2470_v54 = vpop.permute.xlu1 %2469 }
 0xb54   : > { %v6889_v0 = vpop.eup %6006 }
 0xb55   : > { %v6009_v26 = vpop.eup %6008  ;;  %v2441_v23 = vsel %vm1019_vm2, %v6889_v0, 0.0 }
 0xb56   : > { %v6011_v61 = vpop.eup %6010  ;;  %2442 = vadd.xlane.f32.xlu0 %v2441_v23  ;;  %v2455_v4 = vmul.f32 %v6009_v26, %v5997_v56 }
 0xb57   : > { %v6013_v41 = vpop.eup %6012  ;;  %v2529_v51 = vpop.permute.xlu1 %2528  ;;  %v2444_v1 = vsel %vm1019_vm2, %v6011_v61, 0.0 }
 0xb58   : > { %v6015_v21 = vpop.eup %6014  ;;  %2445 = vadd.xlane.f32.xlu1 %v2444_v1  ;;  %5522 = vmatprep.subr.bf16.mxu0 %v2529_v51  ;;  %v2456_v13 = vmul.f32 %v6013_v41, %v5999_v58 }
 0xb59   : > { %5523 = vmatpush3.bf16.msra.mxu0 %v2529_v51  ;;  %v2438_v40 = vsel %vm1019_vm2, %v6015_v21, 0.0 }
 0xb5a   : > { %2436 = vadd.xlane.f32.xlu0 %v2435_v36  ;;  %v2463_v38 = vpack.c.bf16 %v2456_v13, %v2455_v4  ;;  %v6017_v16 = vpop.eup %6016 }
 0xb5b   : > { %v6019_v24 = vpop.eup %6018  ;;  %v2458_v37 = vmul.f32 %v6017_v16, %v6877_v15 }
 0xb5c   : > { %5518 = vmatprep.mubr.msk.bf16.mxu1 %vm1019_vm2, %v2463_v38  ;;  %2439 = vadd.xlane.f32.xlu1 %v2438_v40  ;;  %v2457_v27 = vmul.f32 %v6019_v24, %v6874_v22 }
 0xb5e   : > { %v2464_v57 = vpack.c.bf16 %v2458_v37, %v2457_v27 }
 0xb6d   : > { %2530 = vrot.lane.b32.xlu1 %v6440_v53, %s6183_s15 }
 0xb70   : > { %2467 = vrot.lane.b32.xlu0 %v6430_v39, %s6183_s15 }
 0xb71   : > { %2692 = vrot.lane.b32.xlu1 %v6432_v48, %s6184_s21 }
 0xb74   : > { %2690 = vrot.lane.b32.xlu0 %v6418_v30, %s6184_s21 }
 0xb75   : > { %2686 = vrot.lane.b32.xlu1 %v6420_v32, %s6184_s21 }
 0xb78   : > { %2759 = vrot.lane.b32.xlu0 %v6445_v28, %s6184_s21 }
 0xb79   : > { %2761 = vrot.lane.b32.xlu1 %v6459_v14, %s6184_s21 }
 0xb7c   : > { %2688 = vrot.lane.b32.xlu0 %v6434_v50, %s6184_s21 }
 0xb7d   : > { %2757 = vrot.lane.b32.xlu1 %v6462_v29, %s6184_s21 }
 0xb80   : > { %2755 = vrot.lane.b32.xlu0 %v6447_v62, %s6184_s21 }
 0xbe3   : > { %v2443_v56 = vpop.xlane.xlu0 %2442 }
 0xbe5   : > { %v2446_v60 = vpop.xlane.xlu1 %2445 }
 0xbe6   : > { %6020 = vrcp.f32 %v2446_v60 }
 0xbe7   : > { %v2437_v58 = vpop.xlane.xlu0 %2436 }
 0xbe8   : > { %6022 = vrcp.f32 %v2437_v58 }
 0xbe9   : > { %6024 = vrcp.f32 %v2443_v56  ;;  %v2440_v19 = vpop.xlane.xlu1 %2439 }
 0xbea   : > { %6026 = vrcp.f32 %v2440_v19 }
 0xbeb   : > { %v2468_v44 = vpop.permute.xlu0 %2467 }
 0xbec   : > { %5514 = vmatprep.subr.bf16.mxu1 %v2468_v44 }
 0xbed   : > { %5515 = vmatpush3.bf16.msra.mxu1 %v2468_v44  ;;  %v2531_v59 = vpop.permute.xlu1 %2530 }
 0xbee   : > { %5516 = vmatprep.subr.bf16.mxu1 %v2470_v54  ;;  %5524 = vmatprep.subr.bf16.mxu0 %v2531_v59 }
 0xbef   : > { %5525 = vmatpush3.bf16.msra.mxu0 %v2531_v59  ;;  %v2691_v31 = vpop.permute.xlu0 %2690 }
 0xbf0   : > { %5530 = vmatprep.subr.bf16.mxu0 %v5871_v12  ;;  %v6021_v20 = vpop.eup %6020  ;;  %v2701_v26 = vsel %vm880_vm0, %v2691_v31, 0 }
 0xbf1   : > { %5517 = vmatpush3.bf16.msra.mxu1 %v2470_v54  ;;  %v2693_v63 = vpop.permute.xlu1 %2692  ;;  %v2462_v18 = vmul.f32 %v6021_v20, %v6011_v61 }
 0xbf2   : > { %v6023_v45 = vpop.eup %6022  ;;  %5804 = vmatprep.subr.msk.bf16.mxu1 %vm880_vm0, %v2691_v31 }
 0xbf3   : > { %v6025_v47 = vpop.eup %6024  ;;  %v2459_v17 = vmul.f32 %v6023_v45, %v6887_v43  ;;  %v2760_v23 = vpop.permute.xlu0 %2759  ;;  %v2704_v43 = vsel %vm880_vm0, %v2693_v63, 0 }
 0xbf4   : > { %v6027_v49 = vpop.eup %6026  ;;  %5519 = vmatmul.mubr.msk.bf16.vlgmr.msra.gmra.mrb[40].mxu1 %vm1019_vm2, %v2464_v57  ;;  %v2461_v22 = vmul.f32 %v6025_v47, %v6889_v0  ;;  %v2770_v38 = vsel %vm880_vm0, %v2760_v23, 0 }
 0xbf5   : > { %v2687_v15 = vpop.permute.xlu1 %2686  ;;  %v2460_v46 = vmul.f32 %v6027_v49, %v6015_v21 }
 0xbf6   : > { %5544 = vmatprep.mubr.msk.bf16.mxu1 %vm880_vm0, %v2687_v15  ;;  %v2466_v54 = vpack.c.bf16 %v2462_v18, %v2461_v22 }
 0xbf7   : > { %v2465_v7 = vpack.c.bf16 %v2460_v46, %v2459_v17  ;;  %v2689_v0 = vpop.permute.xlu0 %2688 }
 0xbf9   : > { %5526 = vmatprep.mubr.msk.bf16.mxu0 %vm1019_vm2, %v2465_v7  ;;  %v2762_v40 = vpop.permute.xlu1 %2761 }
 0xbfa   : > { %5527 = vmatmul.mubr.msk.bf16.vlgmr.msra.gmra.mrb[48].mxu0 %vm1019_vm2, %v2466_v54  ;;  %5541 = vmatpush3.bf16.xpose.msra.mxu1 %v2701_v26  ;;  %v2773_v16 = vsel %vm880_vm0, %v2762_v40, 0 }
 0xbfb   : > { %5531 = vmatpush3.bf16.msra.mxu0 %v5871_v12  ;;  %5805 = vmatprep.subr.msk.bf16.mxu1 %vm880_vm0, %v2693_v63  ;;  %v2756_v19 = vpop.permute.xlu0 %2755 }
 0xbfc   : > { %5806 = vmatprep.subr.msk.bf16.mxu0 %vm880_vm0, %v2760_v23 }
 0xbfd   : > { %v2758_v12 = vpop.permute.xlu1 %2757 }
 0xc02   : > { %5543 = vmatpush3.bf16.xpose.msra.mxu1 %v2704_v43 }
 0xc09   : > { %5545 = vmatmul.mubr.msk.bf16.vlgmr.msra.gmra.mrb[44].mxu1 %vm880_vm0, %v2689_v0 }
 0xcc7   : > { %v5520_v61 = vpop.f32.mrb[40].mxu1 }
 0xcc8   : > { %v2513_v41 = vpop.f32.mrb[41].mxu1 }
 0xcc9   : > { %v5521_v51 = vpop.f32.mrb[42].mxu1 }
 0xcca   : > { %v2590_v1 = vpack.c.bf16 %v5521_v51, %v5520_v61  ;;  %v2516_v21 = vpop.f32.mrb[43].mxu1 }
 0xccb   : > { %v2589_v4 = vpack.c.bf16 %v2516_v21, %v2513_v41 }
 0xccd   : > { %v5528_v13 = vpop.f32.mrb[48].mxu0  ;;  %5532 = vmatprep.mubr.msk.bf16.mxu0 %vm880_vm0, %v2589_v4 }
 0xcce   : > { %v2574_v36 = vpop.f32.mrb[49].mxu0  ;;  %5533 = vmatmul.mubr.msk.bf16.vlgmr.msra.gmra.mrb[32].mxu0 %vm880_vm0, %v2590_v1 }
 0xccf   : > { %5549 = vmatpush3.bf16.xpose.msra.mxu0 %v2770_v38  ;;  %v5529_v52 = vpop.f32.mrb[50].mxu0 }
 0xcd0   : > { %v2592_v56 = vpack.c.bf16 %v5529_v52, %v5528_v13  ;;  %5807 = vmatprep.subr.msk.bf16.mxu0 %vm880_vm0, %v2762_v40  ;;  %v2577_v60 = vpop.f32.mrb[51].mxu0 }
 0xcd1   : > { %v2591_v58 = vpack.c.bf16 %v2577_v60, %v2574_v36 }
 0xcd3   : > { %5536 = vmatprep.mubr.msk.bf16.mxu0 %vm880_vm0, %v2591_v58 }
 0xcd6   : > { %5537 = vmatmul.mubr.msk.bf16.gmra.mrb[36].mxu0 %vm880_vm0, %v2592_v56 }
 0xcd7   : > { %5551 = vmatpush3.bf16.xpose.msra.mxu0 %v2773_v16  ;;  %5552 = vmatprep.mubr.msk.bf16.mxu0 %vm880_vm0, %v2756_v19 }
 0xcdc   : > { %v5546_v44 = vpop.f32.mrb[44].mxu1 }
 0xcdd   : > { %v2740_v24 = vpop.f32.mrb[45].mxu1  ;;  %v2826_v31 = vsel %vm6488_vm3, %v5546_v44, -inf }
 0xcde   : > { %v2824_v59 = vsel %vm6482_vm1, %v2740_v24, -inf  ;;  %v5547_v37 = vpop.f32.mrb[46].mxu1  ;;  %5553 = vmatmul.mubr.msk.bf16.vlgmr.msra.gmra.mrb[52].mxu0 %vm880_vm0, %v2758_v12  ;;  %v2838_v57 = vsel %vm1019_vm2, %v2826_v31, -inf }
 0xcdf   : > { %v2832_v27 = vsel %vm1019_vm2, %v2824_v59, -inf  ;;  %v2743_v20 = vpop.f32.mrb[47].mxu1  ;;  %v2827_v47 = vsel %vm6501_vm5, %v5547_v37, -inf }
 0xce0   : > { %v2825_v63 = vsel %vm6492_vm4, %v2743_v20, -inf  ;;  %2833 = vmax.xlane.f32.xlu0 %v2832_v27  ;;  %v2841_v49 = vsel %vm1019_vm2, %v2827_v47, -inf }
 0xce1   : > { %v2835_v45 = vsel %vm1019_vm2, %v2825_v63, -inf }
 0xce2   : > { %2836 = vmax.xlane.f32.xlu1 %v2835_v45 }
 0xce4   : > { %2839 = vmax.xlane.f32.xlu0 %v2838_v57 }
 0xce8   : > { %2842 = vmax.xlane.f32.xlu0 %v2841_v49 }
 0xd6d   : > { %v2834_v18 = vpop.xlane.xlu0 %2833 }
 0xd6e   : > { %v2856_v46 = vsub.f32 %v2824_v59, %v2834_v18 }
 0xd6f   : > { %v2837_v17 = vpop.xlane.xlu1 %2836 }
 0xd70   : > { %v2857_v22 = vsub.f32 %v2825_v63, %v2837_v17  ;;  %v2864_v54 = vmul.f32 1.442695, %v2856_v46 }
 0xd71   : > { %v2840_v15 = vpop.xlane.xlu0 %2839 }
 0xd72   : > { %v2858_v26 = vsub.f32 %v2826_v31, %v2840_v15  ;;  %v2866_v23 = vmul.f32 1.442695, %v2857_v22  ;;  %6028 = vpow2.f32 %v2864_v54 }
 0xd74   : > { %v2868_v0 = vmul.f32 1.442695, %v2858_v26  ;;  %6030 = vpow2.f32 %v2866_v23 }
 0xd75   : > { %v2843_v7 = vpop.xlane.xlu0 %2842 }
 0xd76   : > { %v2859_v43 = vsub.f32 %v2827_v47, %v2843_v7  ;;  %6032 = vpow2.f32 %v2868_v0 }
 0xd78   : > { %v2870_v61 = vmul.f32 1.442695, %v2859_v43 }
 0xd7a   : > { %6034 = vpow2.f32 %v2870_v61 }
 0xd7c   : > { %v6029_v60 = vpop.eup %6028 }
 0xd7d   : > { %v2880_v16 = vsel %vm1019_vm2, %v6029_v60, 0.0 }
 0xd7e   : > { %v6031_v19 = vpop.eup %6030 }
 0xd7f   : > { %v2883_v12 = vsel %vm1019_vm2, %v6031_v19, 0.0 }
 0xd80   : > { %v6969_v44 = vpop.eup %6032 }
 0xd81   : > { %v2886_v59 = vsel %vm1019_vm2, %v6969_v44, 0.0 }
 0xd84   : > { %v6972_v24 = vpop.eup %6034 }
 0xd85   : > { %v2889_v37 = vsel %vm1019_vm2, %v6972_v24, 0.0 }
 0xdb1   : > { %v5554_v41 = vpop.f32.mrb[52].mxu0 }
 0xdb2   : > { %v2809_v51 = vpop.f32.mrb[53].mxu0  ;;  %v2830_v36 = vsel %vm6488_vm3, %v5554_v41, -inf }
 0xdb3   : > { %v2828_v1 = vsel %vm6482_vm1, %v2809_v51, -inf  ;;  %v5555_v21 = vpop.f32.mrb[54].mxu0  ;;  %v2850_v56 = vsel %vm1019_vm2, %v2830_v36, -inf }
 0xdb4   : > { %v2844_v4 = vsel %vm1019_vm2, %v2828_v1, -inf  ;;  %v2812_v13 = vpop.f32.mrb[55].mxu0  ;;  %v2831_v52 = vsel %vm6501_vm5, %v5555_v21, -inf }
 0xdb5   : > { %v2829_v38 = vsel %vm6492_vm4, %v2812_v13, -inf  ;;  %2845 = vmax.xlane.f32.xlu0 %v2844_v4  ;;  %v2853_v58 = vsel %vm1019_vm2, %v2831_v52, -inf }
 0xdb6   : > { %v2847_v40 = vsel %vm1019_vm2, %v2829_v38, -inf }
 0xdb7   : > { %2848 = vmax.xlane.f32.xlu1 %v2847_v40 }
 0xdb9   : > { %2851 = vmax.xlane.f32.xlu0 %v2850_v56 }
 0xdbb   : > { %2854 = vmax.xlane.f32.xlu1 %v2853_v58 }
 0xdbd   : > { %2881 = vadd.xlane.f32.xlu0 %v2880_v16 }
 0xdbf   : > { %2884 = vadd.xlane.f32.xlu1 %v2883_v12 }
 0xdc1   : > { %2887 = vadd.xlane.f32.xlu0 %v2886_v59 }
 0xdc3   : > { %2890 = vadd.xlane.f32.xlu1 %v2889_v37 }
 0xdd4   : > { %2926 = vrot.lane.b32.xlu1 %v6426_v35, %s6184_s21 }
 0xdd8   : > { %2985 = vrot.lane.b32.xlu1 %v6442_v55, %s6184_s21 }
 0xe42   : > { %v2846_v27 = vpop.xlane.xlu0 %2845 }
 0xe43   : > { %v2860_v20 = vsub.f32 %v2828_v1, %v2846_v27 }
 0xe44   : > { %v2849_v31 = vpop.xlane.xlu1 %2848 }
 0xe45   : > { %v2872_v63 = vmul.f32 1.442695, %v2860_v20  ;;  %v2861_v57 = vsub.f32 %v2829_v38, %v2849_v31  ;;  %v5872_v38 = vld [vmem:[%s7404_s4 + $0x20] sm:$0xff]  }
 0xe46   : > { %v2852_v45 = vpop.xlane.xlu0 %2851  ;;  %5572 = vmatprep.subr.bf16.mxu0 %v5872_v38 }
 0xe47   : > { %v2862_v47 = vsub.f32 %v2830_v36, %v2852_v45  ;;  %6036 = vpow2.f32 %v2872_v63  ;;  %v2874_v46 = vmul.f32 1.442695, %v2861_v57  ;;  %5573 = vmatpush3.bf16.msra.mxu0 %v5872_v38 }
 0xe48   : > { %v2855_v49 = vpop.xlane.xlu1 %2854 }
 0xe49   : > { %v2876_v18 = vmul.f32 1.442695, %v2862_v47  ;;  %v2863_v15 = vsub.f32 %v2831_v52, %v2855_v49 }
 0xe4a   : > { %v2882_v17 = vpop.xlane.xlu0 %2881 }
 0xe4b   : > { %6038 = vpow2.f32 %v2876_v18  ;;  %v2878_v22 = vmul.f32 1.442695, %v2863_v15 }
 0xe4c   : > { %6040 = vrcp.f32 %v2882_v17  ;;  %v2885_v7 = vpop.xlane.xlu1 %2884 }
 0xe4d   : > { %6042 = vpow2.f32 %v2878_v22 }
 0xe4e   : > { %6044 = vrcp.f32 %v2885_v7  ;;  %v2888_v56 = vpop.xlane.xlu0 %2887 }
 0xe4f   : > { %6046 = vpow2.f32 %v2874_v46 }
 0xe50   : > { %v2891_v40 = vpop.xlane.xlu1 %2890 }
 0xe51   : > { %v6982_v54 = vpop.eup %6036  ;;  %6048 = vrcp.f32 %v2891_v40 }
 0xe52   : > { %v2892_v4 = vsel %vm1019_vm2, %v6982_v54, 0.0  ;;  %6050 = vrcp.f32 %v2888_v56 }
 0xe54   : > { %v2927_v52 = vpop.permute.xlu1 %2926 }
 0xe55   : > { %v6984_v26 = vpop.eup %6038 }
 0xe56   : > { %v6041_v23 = vpop.eup %6040  ;;  %v2898_v43 = vsel %vm1019_vm2, %v6984_v26, 0.0 }
 0xe57   : > { %v6988_v0 = vpop.eup %6042  ;;  %2899 = vadd.xlane.f32.xlu0 %v2898_v43  ;;  %v2912_v1 = vmul.f32 %v6041_v23, %v6029_v60 }
 0xe58   : > { %v6045_v61 = vpop.eup %6044  ;;  %v2901_v41 = vsel %vm1019_vm2, %v6988_v0, 0.0  ;;  %v2986_v60 = vpop.permute.xlu1 %2985 }
 0xe59   : > { %v6047_v51 = vpop.eup %6046  ;;  %2902 = vadd.xlane.f32.xlu1 %v2901_v41  ;;  %v2913_v21 = vmul.f32 %v6045_v61, %v6031_v19 }
 0xe5a   : > { %v2895_v36 = vsel %vm1019_vm2, %v6047_v51, 0.0 }
 0xe5b   : > { %2893 = vadd.xlane.f32.xlu0 %v2892_v4  ;;  %v2920_v13 = vpack.c.bf16 %v2913_v21, %v2912_v1  ;;  %v6049_v59 = vpop.eup %6048 }
 0xe5c   : > { %v6051_v27 = vpop.eup %6050  ;;  %v2915_v20 = vmul.f32 %v6049_v59, %v6972_v24 }
 0xe5d   : > { %5560 = vmatprep.mubr.msk.bf16.mxu1 %vm1019_vm2, %v2920_v13  ;;  %2896 = vadd.xlane.f32.xlu1 %v2895_v36  ;;  %v2914_v63 = vmul.f32 %v6051_v27, %v6969_v44 }
 0xe5f   : > { %v2921_v47 = vpack.c.bf16 %v2915_v20, %v2914_v63 }
 0xe6e   : > { %2987 = vrot.lane.b32.xlu1 %v6440_v53, %s6184_s21 }
 0xe71   : > { %2924 = vrot.lane.b32.xlu0 %v6430_v39, %s6184_s21 }
 0xe72   : > { %3149 = vrot.lane.b32.xlu1 %v6432_v48, %s6185_s24 }
 0xe75   : > { %3147 = vrot.lane.b32.xlu0 %v6418_v30, %s6185_s24 }
 0xe76   : > { %3143 = vrot.lane.b32.xlu1 %v6420_v32, %s6185_s24 }
 0xe79   : > { %3216 = vrot.lane.b32.xlu0 %v6445_v28, %s6185_s24 }
 0xe7a   : > { %3218 = vrot.lane.b32.xlu1 %v6459_v14, %s6185_s24 }
 0xe7d   : > { %3145 = vrot.lane.b32.xlu0 %v6434_v50, %s6185_s24 }
 0xe7e   : > { %3214 = vrot.lane.b32.xlu1 %v6462_v29, %s6185_s24 }
 0xe81   : > { %3212 = vrot.lane.b32.xlu0 %v6447_v62, %s6185_s24 }
 0xee4   : > { %v2900_v58 = vpop.xlane.xlu0 %2899 }
 0xee6   : > { %v2903_v19 = vpop.xlane.xlu1 %2902 }
 0xee8   : > { %v2894_v16 = vpop.xlane.xlu0 %2893 }
 0xee9   : > { %6052 = vrcp.f32 %v2894_v16 }
 0xeea   : > { %6054 = vrcp.f32 %v2903_v19  ;;  %v2897_v12 = vpop.xlane.xlu1 %2896 }
 0xeeb   : > { %6056 = vrcp.f32 %v2897_v12 }
 0xeec   : > { %6058 = vrcp.f32 %v2900_v58  ;;  %v2925_v37 = vpop.permute.xlu0 %2924 }
 0xeed   : > { %5556 = vmatprep.subr.bf16.mxu1 %v2925_v37 }
 0xeee   : > { %5557 = vmatpush3.bf16.msra.mxu1 %v2925_v37  ;;  %v2988_v45 = vpop.permute.xlu1 %2987 }
 0xeef   : > { %5558 = vmatprep.subr.bf16.mxu1 %v2927_v52 }
 0xef0   : > { %v3148_v31 = vpop.permute.xlu0 %3147 }
 0xef2   : > { %5559 = vmatpush3.bf16.msra.mxu1 %v2927_v52  ;;  %v3150_v44 = vpop.permute.xlu1 %3149 }
 0xef3   : > { %v6053_v57 = vpop.eup %6052  ;;  %5564 = vmatprep.subr.bf16.mxu1 %v2986_v60 }
 0xef4   : > { %v6055_v49 = vpop.eup %6054  ;;  %v3217_v18 = vpop.permute.xlu0 %3216  ;;  %v2916_v24 = vmul.f32 %v6053_v57, %v6982_v54  ;;  %v3158_v54 = vsel %vm880_vm0, %v3148_v31, 0 }
 0xef5   : > { %v6057_v15 = vpop.eup %6056  ;;  %5561 = vmatmul.mubr.msk.bf16.vlgmr.msra.gmra.mrb[48].mxu1 %vm1019_vm2, %v2921_v47  ;;  %5810 = vmatprep.subr.msk.bf16.mxu0 %vm880_vm0, %v3217_v18  ;;  %v2919_v22 = vmul.f32 %v6055_v49, %v6988_v0  ;;  %v3161_v0 = vsel %vm880_vm0, %v3150_v44, 0  ;;  %v3227_v36 = vsel %vm880_vm0, %v3217_v18, 0 }
 0xef6   : > { %v6059_v17 = vpop.eup %6058  ;;  %5565 = vmatpush3.bf16.msra.mxu1 %v2986_v60  ;;  %v2917_v46 = vmul.f32 %v6057_v15, %v6047_v51  ;;  %v3144_v61 = vpop.permute.xlu1 %3143 }
 0xef7   : > { %5566 = vmatprep.subr.bf16.mxu1 %v2988_v45  ;;  %v2918_v23 = vmul.f32 %v6059_v17, %v6984_v26 }
 0xef8   : > { %v2922_v7 = vpack.c.bf16 %v2917_v46, %v2916_v24  ;;  %v3146_v26 = vpop.permute.xlu0 %3145 }
 0xef9   : > { %v2923_v43 = vpack.c.bf16 %v2919_v22, %v2918_v23 }
 0xefa   : > { %5567 = vmatpush3.bf16.msra.mxu1 %v2988_v45  ;;  %5568 = vmatprep.mubr.msk.bf16.mxu1 %vm1019_vm2, %v2922_v7  ;;  %v3219_v38 = vpop.permute.xlu1 %3218 }
 0xefb   : > { %5808 = vmatprep.subr.msk.bf16.mxu1 %vm880_vm0, %v3148_v31  ;;  %v3230_v16 = vsel %vm880_vm0, %v3219_v38, 0 }
 0xefc   : > { %v3213_v12 = vpop.permute.xlu0 %3212 }
 0xefd   : > { %5569 = vmatmul.mubr.msk.bf16.vlgmr.msra.gmra.mrb[52].mxu1 %vm1019_vm2, %v2923_v43 }
 0xefe   : > { %5586 = vmatprep.mubr.msk.bf16.mxu1 %vm880_vm0, %v3144_v61  ;;  %v3215_v59 = vpop.permute.xlu1 %3214 }
 0xf03   : > { %5583 = vmatpush3.bf16.xpose.msra.mxu1 %v3158_v54 }
 0xf04   : > { %5809 = vmatprep.subr.msk.bf16.mxu1 %vm880_vm0, %v3150_v44 }
 0xf0b   : > { %5585 = vmatpush3.bf16.xpose.msra.mxu1 %v3161_v0 }
 0xf12   : > { %5587 = vmatmul.mubr.msk.bf16.vlgmr.msra.gmra.mrb[56].mxu1 %vm880_vm0, %v3146_v26 }
 0xfc8   : > { %v5562_v41 = vpop.f32.mrb[48].mxu1 }
 0xfc9   : > { %v2970_v51 = vpop.f32.mrb[49].mxu1 }
 0xfca   : > { %v5563_v1 = vpop.f32.mrb[50].mxu1 }
 0xfcb   : > { %v3047_v21 = vpack.c.bf16 %v5563_v1, %v5562_v41  ;;  %v2973_v4 = vpop.f32.mrb[51].mxu1 }
 0xfcc   : > { %v3046_v13 = vpack.c.bf16 %v2973_v4, %v2970_v51 }
 0xfce   : > { %5574 = vmatprep.mubr.msk.bf16.mxu0 %vm880_vm0, %v3046_v13 }
 0xfcf   : > { %5575 = vmatmul.mubr.msk.bf16.vlgmr.msra.gmra.mrb[32].mxu0 %vm880_vm0, %v3047_v21 }
 0xfd0   : > { %5591 = vmatpush3.bf16.xpose.msra.mxu0 %v3227_v36  ;;  %v5570_v40 = vpop.f32.mrb[52].mxu1 }
 0xfd1   : > { %5811 = vmatprep.subr.msk.bf16.mxu0 %vm880_vm0, %v3219_v38  ;;  %v3031_v52 = vpop.f32.mrb[53].mxu1 }
 0xfd2   : > { %v5571_v56 = vpop.f32.mrb[54].mxu1 }
 0xfd3   : > { %v3049_v60 = vpack.c.bf16 %v5571_v56, %v5570_v40  ;;  %v3034_v58 = vpop.f32.mrb[55].mxu1 }
 0xfd4   : > { %v3048_v19 = vpack.c.bf16 %v3034_v58, %v3031_v52 }
 0xfd6   : > { %5578 = vmatprep.mubr.msk.bf16.mxu0 %vm880_vm0, %v3048_v19 }
 0xfd7   : > { %5579 = vmatmul.mubr.msk.bf16.gmra.mrb[36].mxu0 %vm880_vm0, %v3049_v60 }
 0xfd8   : > { %5593 = vmatpush3.bf16.xpose.msra.mxu0 %v3230_v16  ;;  %5594 = vmatprep.mubr.msk.bf16.mxu0 %vm880_vm0, %v3213_v12 }
 0xfdf   : > { %5595 = vmatmul.mubr.msk.bf16.vlgmr.msra.gmra.mrb[56].mxu0 %vm880_vm0, %v3215_v59 }
 0xfe5   : > { %v5588_v37 = vpop.f32.mrb[56].mxu1 }
 0xfe6   : > { %v3197_v27 = vpop.f32.mrb[57].mxu1  ;;  %v3283_v57 = vsel %vm6488_vm3, %v5588_v37, -inf }
 0xfe7   : > { %v3281_v20 = vsel %vm6482_vm1, %v3197_v27, -inf  ;;  %v5589_v31 = vpop.f32.mrb[58].mxu1  ;;  %v3295_v18 = vsel %vm1019_vm2, %v3283_v57, -inf }
 0xfe8   : > { %v3289_v63 = vsel %vm1019_vm2, %v3281_v20, -inf  ;;  %v3200_v45 = vpop.f32.mrb[59].mxu1  ;;  %v3284_v15 = vsel %vm6501_vm5, %v5589_v31, -inf }
 0xfe9   : > { %v3282_v47 = vsel %vm6492_vm4, %v3200_v45, -inf  ;;  %3290 = vmax.xlane.f32.xlu0 %v3289_v63  ;;  %v3298_v17 = vsel %vm1019_vm2, %v3284_v15, -inf }
 0xfea   : > { %v3292_v49 = vsel %vm1019_vm2, %v3282_v47, -inf }
 0xfeb   : > { %3293 = vmax.xlane.f32.xlu1 %v3292_v49 }
 0xfed   : > { %3296 = vmax.xlane.f32.xlu0 %v3295_v18 }
 0xff1   : > { %3299 = vmax.xlane.f32.xlu0 %v3298_v17 }
0x1076   : > { %v3291_v24 = vpop.xlane.xlu0 %3290 }
0x1077   : > { %v3313_v44 = vsub.f32 %v3281_v20, %v3291_v24 }
0x1078   : > { %v3294_v22 = vpop.xlane.xlu1 %3293 }
0x1079   : > { %v3314_v7 = vsub.f32 %v3282_v47, %v3294_v22  ;;  %v3321_v43 = vmul.f32 1.442695, %v3313_v44 }
0x107a   : > { %v3297_v46 = vpop.xlane.xlu0 %3296 }
0x107b   : > { %v3315_v61 = vsub.f32 %v3283_v57, %v3297_v46  ;;  %v3323_v54 = vmul.f32 1.442695, %v3314_v7  ;;  %6060 = vpow2.f32 %v3321_v43 }
0x107d   : > { %v3325_v26 = vmul.f32 1.442695, %v3315_v61  ;;  %6062 = vpow2.f32 %v3323_v54 }
0x107e   : > { %v3300_v23 = vpop.xlane.xlu0 %3299 }
0x107f   : > { %v3316_v0 = vsub.f32 %v3284_v15, %v3300_v23  ;;  %6064 = vpow2.f32 %v3325_v26 }
0x1081   : > { %v3327_v41 = vmul.f32 1.442695, %v3316_v0 }
0x1083   : > { %6066 = vpow2.f32 %v3327_v41 }
0x1085   : > { %v6061_v58 = vpop.eup %6060 }
0x1086   : > { %v3337_v12 = vsel %vm1019_vm2, %v6061_v58, 0.0 }
0x1087   : > { %v6063_v16 = vpop.eup %6062 }
0x1088   : > { %v3340_v37 = vsel %vm1019_vm2, %v6063_v16, 0.0 }
0x1089   : > { %v7068_v59 = vpop.eup %6064 }
0x108a   : > { %v3343_v20 = vsel %vm1019_vm2, %v7068_v59, 0.0 }
0x108d   : > { %v7071_v27 = vpop.eup %6066 }
0x108e   : > { %v3346_v31 = vsel %vm1019_vm2, %v7071_v27, 0.0 }
0x10b2   : > { %v5596_v51 = vpop.f32.mrb[56].mxu0 }
0x10b3   : > { %v3266_v1 = vpop.f32.mrb[57].mxu0  ;;  %v3287_v38 = vsel %vm6488_vm3, %v5596_v51, -inf }
0x10b4   : > { %v3285_v21 = vsel %vm6482_vm1, %v3266_v1, -inf  ;;  %v5597_v4 = vpop.f32.mrb[58].mxu0  ;;  %v3307_v60 = vsel %vm1019_vm2, %v3287_v38, -inf }
0x10b5   : > { %v3301_v13 = vsel %vm1019_vm2, %v3285_v21, -inf  ;;  %v3269_v36 = vpop.f32.mrb[59].mxu0  ;;  %v3288_v56 = vsel %vm6501_vm5, %v5597_v4, -inf }
0x10b6   : > { %v3286_v40 = vsel %vm6492_vm4, %v3269_v36, -inf  ;;  %3302 = vmax.xlane.f32.xlu0 %v3301_v13  ;;  %v3310_v19 = vsel %vm1019_vm2, %v3288_v56, -inf }
0x10b7   : > { %v3304_v52 = vsel %vm1019_vm2, %v3286_v40, -inf }
0x10b8   : > { %3305 = vmax.xlane.f32.xlu1 %v3304_v52 }
0x10ba   : > { %3308 = vmax.xlane.f32.xlu0 %v3307_v60 }
0x10bc   : > { %3311 = vmax.xlane.f32.xlu1 %v3310_v19 }
0x10be   : > { %3338 = vadd.xlane.f32.xlu0 %v3337_v12 }
0x10c0   : > { %3341 = vadd.xlane.f32.xlu1 %v3340_v37 }
0x10c2   : > { %3344 = vadd.xlane.f32.xlu0 %v3343_v20 }
0x10c4   : > { %3347 = vadd.xlane.f32.xlu1 %v3346_v31  ;;  %v5873_v31 = vld [vmem:[%s7404_s4 + $0x28] sm:$0xff]  }
0x10d5   : > { %3383 = vrot.lane.b32.xlu1 %v6426_v35, %s6185_s24 }
0x10d9   : > { %3442 = vrot.lane.b32.xlu1 %v6442_v55, %s6185_s24 }
0x1143   : > { %v3303_v63 = vpop.xlane.xlu0 %3302 }
0x1144   : > { %v3317_v45 = vsub.f32 %v3285_v21, %v3303_v63 }
0x1145   : > { %v3306_v57 = vpop.xlane.xlu1 %3305 }
0x1146   : > { %v3329_v47 = vmul.f32 1.442695, %v3317_v45  ;;  %v3318_v18 = vsub.f32 %v3286_v40, %v3306_v57 }
0x1147   : > { %v3309_v49 = vpop.xlane.xlu0 %3308 }
0x1148   : > { %v3319_v15 = vsub.f32 %v3287_v38, %v3309_v49  ;;  %6068 = vpow2.f32 %v3329_v47  ;;  %v3331_v44 = vmul.f32 1.442695, %v3318_v18 }
0x1149   : > { %v3312_v17 = vpop.xlane.xlu1 %3311 }
0x114a   : > { %v3333_v24 = vmul.f32 1.442695, %v3319_v15  ;;  %v3320_v46 = vsub.f32 %v3288_v56, %v3312_v17 }
0x114b   : > { %v3339_v22 = vpop.xlane.xlu0 %3338 }
0x114c   : > { %6070 = vpow2.f32 %v3333_v24  ;;  %v3335_v7 = vmul.f32 1.442695, %v3320_v46 }
0x114d   : > { %6072 = vrcp.f32 %v3339_v22  ;;  %v3342_v23 = vpop.xlane.xlu1 %3341 }
0x114e   : > { %6074 = vpow2.f32 %v3335_v7 }
0x114f   : > { %6076 = vrcp.f32 %v3342_v23  ;;  %v3345_v60 = vpop.xlane.xlu0 %3344 }
0x1150   : > { %6078 = vpow2.f32 %v3331_v44 }
0x1151   : > { %v3348_v43 = vpop.xlane.xlu1 %3347 }
0x1152   : > { %v7081_v61 = vpop.eup %6068  ;;  %6080 = vrcp.f32 %v3348_v43 }
0x1153   : > { %v3349_v40 = vsel %vm1019_vm2, %v7081_v61, 0.0  ;;  %6082 = vrcp.f32 %v3345_v60 }
0x1155   : > { %v3384_v54 = vpop.permute.xlu1 %3383 }
0x1156   : > { %v7083_v0 = vpop.eup %6070 }
0x1157   : > { %v6073_v26 = vpop.eup %6072  ;;  %v3355_v41 = vsel %vm1019_vm2, %v7083_v0, 0.0 }
0x1158   : > { %v6075_v51 = vpop.eup %6074  ;;  %3356 = vadd.xlane.f32.xlu0 %v3355_v41  ;;  %v3369_v36 = vmul.f32 %v6073_v26, %v6061_v58 }
0x1159   : > { %v6077_v1 = vpop.eup %6076  ;;  %v3443_v21 = vpop.permute.xlu1 %3442  ;;  %v3358_v4 = vsel %vm1019_vm2, %v6075_v51, 0.0 }
0x115a   : > { %v6079_v13 = vpop.eup %6078  ;;  %3359 = vadd.xlane.f32.xlu1 %v3358_v4  ;;  %5606 = vmatprep.subr.bf16.mxu0 %v3443_v21  ;;  %v3370_v38 = vmul.f32 %v6077_v1, %v6063_v16 }
0x115b   : > { %5607 = vmatpush3.bf16.msra.mxu0 %v3443_v21  ;;  %v3352_v56 = vsel %vm1019_vm2, %v6079_v13, 0.0 }
0x115c   : > { %3350 = vadd.xlane.f32.xlu0 %v3349_v40  ;;  %v3377_v52 = vpack.c.bf16 %v3370_v38, %v3369_v36  ;;  %v6081_v37 = vpop.eup %6080 }
0x115d   : > { %v6083_v63 = vpop.eup %6082  ;;  %v3372_v57 = vmul.f32 %v6081_v37, %v7071_v27 }
0x115e   : > { %5602 = vmatprep.mubr.msk.bf16.mxu1 %vm1019_vm2, %v3377_v52  ;;  %3353 = vadd.xlane.f32.xlu1 %v3352_v56  ;;  %v3371_v47 = vmul.f32 %v6083_v63, %v7068_v59 }
0x1160   : > { %v3378_v24 = vpack.c.bf16 %v3372_v57, %v3371_v47 }
0x116f   : > { %3444 = vrot.lane.b32.xlu1 %v6440_v53, %s6185_s24 }
0x1172   : > { %3381 = vrot.lane.b32.xlu0 %v6430_v39, %s6185_s24 }
0x1173   : > { %3606 = vrot.lane.b32.xlu1 %v6432_v48, %s6186_s27 }
0x1176   : > { %3604 = vrot.lane.b32.xlu0 %v6418_v30, %s6186_s27 }
0x1177   : > { %3600 = vrot.lane.b32.xlu1 %v6420_v32, %s6186_s27 }
0x117a   : > { %3673 = vrot.lane.b32.xlu0 %v6445_v28, %s6186_s27 }
0x117b   : > { %3675 = vrot.lane.b32.xlu1 %v6459_v14, %s6186_s27 }
0x117e   : > { %3602 = vrot.lane.b32.xlu0 %v6434_v50, %s6186_s27 }
0x117f   : > { %3671 = vrot.lane.b32.xlu1 %v6462_v29, %s6186_s27 }
0x1182   : > { %3669 = vrot.lane.b32.xlu0 %v6447_v62, %s6186_s27 }
0x11e5   : > { %v3357_v58 = vpop.xlane.xlu0 %3356 }
0x11e7   : > { %v3360_v19 = vpop.xlane.xlu1 %3359 }
0x11e8   : > { %6084 = vrcp.f32 %v3360_v19 }
0x11e9   : > { %v3351_v16 = vpop.xlane.xlu0 %3350 }
0x11ea   : > { %6086 = vrcp.f32 %v3351_v16 }
0x11eb   : > { %6088 = vrcp.f32 %v3357_v58  ;;  %v3354_v12 = vpop.xlane.xlu1 %3353 }
0x11ec   : > { %6090 = vrcp.f32 %v3354_v12 }
0x11ed   : > { %v3382_v20 = vpop.permute.xlu0 %3381 }
0x11ee   : > { %5598 = vmatprep.subr.bf16.mxu1 %v3382_v20 }
0x11ef   : > { %5599 = vmatpush3.bf16.msra.mxu1 %v3382_v20  ;;  %v3445_v45 = vpop.permute.xlu1 %3444 }
0x11f0   : > { %5600 = vmatprep.subr.bf16.mxu1 %v3384_v54  ;;  %5608 = vmatprep.subr.bf16.mxu0 %v3445_v45 }
0x11f1   : > { %5609 = vmatpush3.bf16.msra.mxu0 %v3445_v45  ;;  %v3605_v18 = vpop.permute.xlu0 %3604 }
0x11f2   : > { %5614 = vmatprep.subr.bf16.mxu0 %v5873_v31  ;;  %v6085_v49 = vpop.eup %6084  ;;  %v3615_v26 = vsel %vm880_vm0, %v3605_v18, 0 }
0x11f3   : > { %5601 = vmatpush3.bf16.msra.mxu1 %v3384_v54  ;;  %v3607_v15 = vpop.permute.xlu1 %3606  ;;  %v3376_v44 = vmul.f32 %v6085_v49, %v6075_v51 }
0x11f4   : > { %v6087_v17 = vpop.eup %6086  ;;  %5812 = vmatprep.subr.msk.bf16.mxu1 %vm880_vm0, %v3605_v18 }
0x11f5   : > { %v6089_v46 = vpop.eup %6088  ;;  %v3373_v7 = vmul.f32 %v6087_v17, %v7081_v61  ;;  %v3674_v41 = vpop.permute.xlu0 %3673  ;;  %v3618_v61 = vsel %vm880_vm0, %v3607_v15, 0 }
0x11f6   : > { %v6091_v22 = vpop.eup %6090  ;;  %5603 = vmatmul.mubr.msk.bf16.vlgmr.msra.gmra.mrb[60].mxu1 %vm1019_vm2, %v3378_v24  ;;  %v3375_v59 = vmul.f32 %v6089_v46, %v7083_v0  ;;  %v3684_v40 = vsel %vm880_vm0, %v3674_v41, 0 }
0x11f7   : > { %v3601_v27 = vpop.permute.xlu1 %3600  ;;  %v3374_v23 = vmul.f32 %v6091_v22, %v6079_v13 }
0x11f8   : > { %5628 = vmatprep.mubr.msk.bf16.mxu1 %vm880_vm0, %v3601_v27  ;;  %v3380_v54 = vpack.c.bf16 %v3376_v44, %v3375_v59 }
0x11f9   : > { %v3379_v43 = vpack.c.bf16 %v3374_v23, %v3373_v7  ;;  %v3603_v0 = vpop.permute.xlu0 %3602 }
0x11fb   : > { %5610 = vmatprep.mubr.msk.bf16.mxu0 %vm1019_vm2, %v3379_v43  ;;  %v3676_v56 = vpop.permute.xlu1 %3675 }
0x11fc   : > { %5611 = vmatmul.mubr.msk.bf16.vlgmr.msra.gmra.mrb[60].mxu0 %vm1019_vm2, %v3380_v54  ;;  %5625 = vmatpush3.bf16.xpose.msra.mxu1 %v3615_v26  ;;  %v3687_v12 = vsel %vm880_vm0, %v3676_v56, 0 }
0x11fd   : > { %5615 = vmatpush3.bf16.msra.mxu0 %v5873_v31  ;;  %5813 = vmatprep.subr.msk.bf16.mxu1 %vm880_vm0, %v3607_v15  ;;  %v3670_v37 = vpop.permute.xlu0 %3669 }
0x11fe   : > { %5814 = vmatprep.subr.msk.bf16.mxu0 %vm880_vm0, %v3674_v41 }
0x11ff   : > { %v3672_v31 = vpop.permute.xlu1 %3671 }
0x1204   : > { %5627 = vmatpush3.bf16.xpose.msra.mxu1 %v3618_v61 }
0x120b   : > { %5629 = vmatmul.mubr.msk.bf16.vlgmr.msra.gmra.mrb[64].mxu1 %vm880_vm0, %v3603_v0 }
0x12c9   : > { %v5604_v51 = vpop.f32.mrb[60].mxu1 }
0x12ca   : > { %v3427_v1 = vpop.f32.mrb[61].mxu1 }
0x12cb   : > { %v5605_v21 = vpop.f32.mrb[62].mxu1 }
0x12cc   : > { %v3504_v4 = vpack.c.bf16 %v5605_v21, %v5604_v51  ;;  %v3430_v13 = vpop.f32.mrb[63].mxu1 }
0x12cd   : > { %v3503_v36 = vpack.c.bf16 %v3430_v13, %v3427_v1 }
0x12cf   : > { %v5612_v38 = vpop.f32.mrb[60].mxu0  ;;  %5616 = vmatprep.mubr.msk.bf16.mxu0 %vm880_vm0, %v3503_v36 }
0x12d0   : > { %v3488_v52 = vpop.f32.mrb[61].mxu0  ;;  %5617 = vmatmul.mubr.msk.bf16.vlgmr.msra.gmra.mrb[32].mxu0 %vm880_vm0, %v3504_v4 }
0x12d1   : > { %5633 = vmatpush3.bf16.xpose.msra.mxu0 %v3684_v40  ;;  %v5613_v60 = vpop.f32.mrb[62].mxu0 }
0x12d2   : > { %v3506_v58 = vpack.c.bf16 %v5613_v60, %v5612_v38  ;;  %5815 = vmatprep.subr.msk.bf16.mxu0 %vm880_vm0, %v3676_v56  ;;  %v3491_v19 = vpop.f32.mrb[63].mxu0 }
0x12d3   : > { %v3505_v16 = vpack.c.bf16 %v3491_v19, %v3488_v52 }
0x12d5   : > { %5620 = vmatprep.mubr.msk.bf16.mxu0 %vm880_vm0, %v3505_v16 }
0x12d8   : > { %5621 = vmatmul.mubr.msk.bf16.gmra.mrb[36].mxu0 %vm880_vm0, %v3506_v58 }
0x12d9   : > { %5635 = vmatpush3.bf16.xpose.msra.mxu0 %v3687_v12  ;;  %5636 = vmatprep.mubr.msk.bf16.mxu0 %vm880_vm0, %v3670_v37 }
0x12de   : > { %v5630_v20 = vpop.f32.mrb[64].mxu1 }
0x12df   : > { %v3654_v63 = vpop.f32.mrb[65].mxu1  ;;  %v3740_v18 = vsel %vm6488_vm3, %v5630_v20, -inf }
0x12e0   : > { %v3738_v45 = vsel %vm6482_vm1, %v3654_v63, -inf  ;;  %v5631_v57 = vpop.f32.mrb[66].mxu1  ;;  %5637 = vmatmul.mubr.msk.bf16.vlgmr.msra.gmra.mrb[64].mxu0 %vm880_vm0, %v3672_v31  ;;  %v3752_v24 = vsel %vm1019_vm2, %v3740_v18, -inf }
0x12e1   : > { %v3746_v47 = vsel %vm1019_vm2, %v3738_v45, -inf  ;;  %v3657_v49 = vpop.f32.mrb[67].mxu1  ;;  %v3741_v46 = vsel %vm6501_vm5, %v5631_v57, -inf }
0x12e2   : > { %v3739_v15 = vsel %vm6492_vm4, %v3657_v49, -inf  ;;  %3747 = vmax.xlane.f32.xlu0 %v3746_v47  ;;  %v3755_v22 = vsel %vm1019_vm2, %v3741_v46, -inf }
0x12e3   : > { %v3749_v17 = vsel %vm1019_vm2, %v3739_v15, -inf }
0x12e4   : > { %3750 = vmax.xlane.f32.xlu1 %v3749_v17 }
0x12e6   : > { %3753 = vmax.xlane.f32.xlu0 %v3752_v24 }
0x12ea   : > { %3756 = vmax.xlane.f32.xlu0 %v3755_v22 }
0x136f   : > { %v3748_v44 = vpop.xlane.xlu0 %3747 }
0x1370   : > { %v3770_v23 = vsub.f32 %v3738_v45, %v3748_v44 }
0x1371   : > { %v3751_v7 = vpop.xlane.xlu1 %3750 }
0x1372   : > { %v3771_v59 = vsub.f32 %v3739_v15, %v3751_v7  ;;  %v3778_v54 = vmul.f32 1.442695, %v3770_v23 }
0x1373   : > { %v3754_v27 = vpop.xlane.xlu0 %3753 }
0x1374   : > { %v3772_v26 = vsub.f32 %v3740_v18, %v3754_v27  ;;  %v3780_v41 = vmul.f32 1.442695, %v3771_v59  ;;  %6092 = vpow2.f32 %v3778_v54 }
0x1376   : > { %v3782_v0 = vmul.f32 1.442695, %v3772_v26  ;;  %6094 = vpow2.f32 %v3780_v41 }
0x1377   : > { %v3757_v43 = vpop.xlane.xlu0 %3756 }
0x1378   : > { %v3773_v61 = vsub.f32 %v3741_v46, %v3757_v43  ;;  %6096 = vpow2.f32 %v3782_v0 }
0x137a   : > { %v3784_v51 = vmul.f32 1.442695, %v3773_v61 }
0x137c   : > { %6098 = vpow2.f32 %v3784_v51 }
0x137e   : > { %v6093_v19 = vpop.eup %6092 }
0x137f   : > { %v3794_v37 = vsel %vm1019_vm2, %v6093_v19, 0.0 }
0x1380   : > { %v6095_v12 = vpop.eup %6094 }
0x1381   : > { %v3797_v31 = vsel %vm1019_vm2, %v6095_v12, 0.0 }
0x1382   : > { %v7163_v20 = vpop.eup %6096 }
0x1383   : > { %v3800_v45 = vsel %vm1019_vm2, %v7163_v20, 0.0 }
0x1386   : > { %v7166_v63 = vpop.eup %6098 }
0x1387   : > { %v3803_v57 = vsel %vm1019_vm2, %v7166_v63, 0.0 }
0x13b3   : > { %v5638_v1 = vpop.f32.mrb[64].mxu0 }
0x13b4   : > { %v3723_v21 = vpop.f32.mrb[65].mxu0  ;;  %v3744_v40 = vsel %vm6488_vm3, %v5638_v1, -inf }
0x13b5   : > { %v3742_v4 = vsel %vm6482_vm1, %v3723_v21, -inf  ;;  %v5639_v13 = vpop.f32.mrb[66].mxu0  ;;  %v3764_v58 = vsel %vm1019_vm2, %v3744_v40, -inf }
0x13b6   : > { %v3758_v36 = vsel %vm1019_vm2, %v3742_v4, -inf  ;;  %v3726_v38 = vpop.f32.mrb[67].mxu0  ;;  %v3745_v60 = vsel %vm6501_vm5, %v5639_v13, -inf }
0x13b7   : > { %v3743_v52 = vsel %vm6492_vm4, %v3726_v38, -inf  ;;  %3759 = vmax.xlane.f32.xlu0 %v3758_v36  ;;  %v3767_v16 = vsel %vm1019_vm2, %v3745_v60, -inf }
0x13b8   : > { %v3761_v56 = vsel %vm1019_vm2, %v3743_v52, -inf }
0x13b9   : > { %3762 = vmax.xlane.f32.xlu1 %v3761_v56 }
0x13bb   : > { %3765 = vmax.xlane.f32.xlu0 %v3764_v58 }
0x13bd   : > { %3768 = vmax.xlane.f32.xlu1 %v3767_v16 }
0x13bf   : > { %3795 = vadd.xlane.f32.xlu0 %v3794_v37 }
0x13c1   : > { %3798 = vadd.xlane.f32.xlu1 %v3797_v31 }
0x13c3   : > { %3801 = vadd.xlane.f32.xlu0 %v3800_v45 }
0x13c5   : > { %3804 = vadd.xlane.f32.xlu1 %v3803_v57 }
0x13d6   : > { %3840 = vrot.lane.b32.xlu1 %v6426_v35, %s6186_s27 }
0x13da   : > { %3899 = vrot.lane.b32.xlu1 %v6442_v55, %s6186_s27 }
0x1444   : > { %v3760_v47 = vpop.xlane.xlu0 %3759 }
0x1445   : > { %v3774_v49 = vsub.f32 %v3742_v4, %v3760_v47 }
0x1446   : > { %v3763_v18 = vpop.xlane.xlu1 %3762 }
0x1447   : > { %v3786_v15 = vmul.f32 1.442695, %v3774_v49  ;;  %v3775_v24 = vsub.f32 %v3743_v52, %v3763_v18  ;;  %v5874_v52 = vld [vmem:[%s7404_s4 + $0x30] sm:$0xff]  }
0x1448   : > { %v3766_v17 = vpop.xlane.xlu0 %3765  ;;  %5656 = vmatprep.subr.bf16.mxu0 %v5874_v52 }
0x1449   : > { %v3776_v46 = vsub.f32 %v3744_v40, %v3766_v17  ;;  %6100 = vpow2.f32 %v3786_v15  ;;  %v3788_v23 = vmul.f32 1.442695, %v3775_v24  ;;  %5657 = vmatpush3.bf16.msra.mxu0 %v5874_v52 }
0x144a   : > { %v3769_v22 = vpop.xlane.xlu1 %3768 }
0x144b   : > { %v3790_v44 = vmul.f32 1.442695, %v3776_v46  ;;  %v3777_v27 = vsub.f32 %v3745_v60, %v3769_v22 }
0x144c   : > { %v3796_v7 = vpop.xlane.xlu0 %3795 }
0x144d   : > { %6102 = vpow2.f32 %v3790_v44  ;;  %v3792_v59 = vmul.f32 1.442695, %v3777_v27 }
0x144e   : > { %6104 = vrcp.f32 %v3796_v7  ;;  %v3799_v43 = vpop.xlane.xlu1 %3798 }
0x144f   : > { %6106 = vpow2.f32 %v3792_v59 }
0x1450   : > { %6108 = vrcp.f32 %v3799_v43  ;;  %v3802_v56 = vpop.xlane.xlu0 %3801 }
0x1451   : > { %6110 = vpow2.f32 %v3788_v23 }
0x1453   : > { %v7176_v54 = vpop.eup %6100 }
0x1454   : > { %v3806_v36 = vsel %vm1019_vm2, %v7176_v54, 0.0 }
0x1457   : > { %v7178_v26 = vpop.eup %6102 }
0x1458   : > { %v6105_v41 = vpop.eup %6104  ;;  %v3812_v61 = vsel %vm1019_vm2, %v7178_v26, 0.0 }
0x1459   : > { %v7182_v0 = vpop.eup %6106  ;;  %3813 = vadd.xlane.f32.xlu0 %v3812_v61  ;;  %v3826_v4 = vmul.f32 %v6105_v41, %v6093_v19 }
0x145a   : > { %v6109_v51 = vpop.eup %6108  ;;  %v3815_v1 = vsel %vm1019_vm2, %v7182_v0, 0.0 }
0x145b   : > { %v6111_v21 = vpop.eup %6110  ;;  %3816 = vadd.xlane.f32.xlu1 %v3815_v1  ;;  %v3827_v13 = vmul.f32 %v6109_v51, %v6095_v12 }
0x145c   : > { %v3809_v40 = vsel %vm1019_vm2, %v6111_v21, 0.0 }
0x145d   : > { %3807 = vadd.xlane.f32.xlu0 %v3806_v36  ;;  %v3834_v38 = vpack.c.bf16 %v3827_v13, %v3826_v4 }
0x145f   : > { %5644 = vmatprep.mubr.msk.bf16.mxu1 %vm1019_vm2, %v3834_v38  ;;  %3810 = vadd.xlane.f32.xlu1 %v3809_v40 }
0x1470   : > { %3901 = vrot.lane.b32.xlu1 %v6440_v53, %s6186_s27 }
0x1473   : > { %3838 = vrot.lane.b32.xlu0 %v6430_v39, %s6186_s27 }
0x1474   : > { %4063 = vrot.lane.b32.xlu1 %v6432_v48, %s6187_s30 }
0x1477   : > { %4061 = vrot.lane.b32.xlu0 %v6418_v30, %s6187_s30  ;;  %v3805_v30 = vpop.xlane.xlu1 %3804 }
0x1478   : > { %4057 = vrot.lane.b32.xlu1 %v6420_v32, %s6187_s30  ;;  %6112 = vrcp.f32 %v3805_v30 }
0x1479   : > { %6114 = vrcp.f32 %v3802_v56 }
0x147b   : > { %4130 = vrot.lane.b32.xlu0 %v6445_v28, %s6187_s30  ;;  %v3841_v48 = vpop.permute.xlu1 %3840 }
0x147c   : > { %4132 = vrot.lane.b32.xlu1 %v6459_v14, %s6187_s30 }
0x147f   : > { %4059 = vrot.lane.b32.xlu0 %v6434_v50, %s6187_s30  ;;  %v3900_v32 = vpop.permute.xlu1 %3899 }
0x1480   : > { %4128 = vrot.lane.b32.xlu1 %v6462_v29, %s6187_s30 }
0x1482   : > { %v6113_v50 = vpop.eup %6112 }
0x1483   : > { %4126 = vrot.lane.b32.xlu0 %v6447_v62, %s6187_s30  ;;  %v6115_v29 = vpop.eup %6114  ;;  %v3829_v62 = vmul.f32 %v6113_v50, %v7166_v63 }
0x1484   : > { %v3828_v12 = vmul.f32 %v6115_v29, %v7163_v20 }
0x1486   : > { %v3835_v45 = vpack.c.bf16 %v3829_v62, %v3828_v12 }
0x14e6   : > { %v3814_v60 = vpop.xlane.xlu0 %3813 }
0x14e8   : > { %v3817_v28 = vpop.xlane.xlu1 %3816 }
0x14ea   : > { %v3808_v58 = vpop.xlane.xlu0 %3807 }
0x14eb   : > { %6116 = vrcp.f32 %v3808_v58 }
0x14ec   : > { %6118 = vrcp.f32 %v3817_v28  ;;  %v3811_v14 = vpop.xlane.xlu1 %3810 }
0x14ed   : > { %6120 = vrcp.f32 %v3811_v14 }
0x14ee   : > { %6122 = vrcp.f32 %v3814_v60  ;;  %v3839_v19 = vpop.permute.xlu0 %3838 }
0x14ef   : > { %5640 = vmatprep.subr.bf16.mxu1 %v3839_v19 }
0x14f0   : > { %5641 = vmatpush3.bf16.msra.mxu1 %v3839_v19  ;;  %v3902_v37 = vpop.permute.xlu1 %3901 }
0x14f1   : > { %5642 = vmatprep.subr.bf16.mxu1 %v3841_v48 }
0x14f2   : > { %v4062_v16 = vpop.permute.xlu0 %4061 }
0x14f3   : > { %v4072_v27 = vsel %vm880_vm0, %v4062_v16, 0 }
0x14f4   : > { %5643 = vmatpush3.bf16.msra.mxu1 %v3841_v48  ;;  %v4064_v20 = vpop.permute.xlu1 %4063 }
0x14f5   : > { %v6117_v31 = vpop.eup %6116  ;;  %5648 = vmatprep.subr.bf16.mxu1 %v3900_v32  ;;  %v4075_v7 = vsel %vm880_vm0, %v4064_v20, 0 }
0x14f6   : > { %v6119_v57 = vpop.eup %6118  ;;  %v4131_v47 = vpop.permute.xlu0 %4130  ;;  %v3830_v63 = vmul.f32 %v6117_v31, %v7176_v54 }
0x14f7   : > { %v6121_v49 = vpop.eup %6120  ;;  %5645 = vmatmul.mubr.msk.bf16.vlgmr.msra.gmra.mrb[68].mxu1 %vm1019_vm2, %v3835_v45  ;;  %5818 = vmatprep.subr.msk.bf16.mxu0 %vm880_vm0, %v4131_v47  ;;  %v3833_v17 = vmul.f32 %v6119_v57, %v7182_v0  ;;  %v4141_v0 = vsel %vm880_vm0, %v4131_v47, 0 }
0x14f8   : > { %v6123_v18 = vpop.eup %6122  ;;  %5649 = vmatpush3.bf16.msra.mxu1 %v3900_v32  ;;  %v3831_v15 = vmul.f32 %v6121_v49, %v6111_v21  ;;  %v4058_v44 = vpop.permute.xlu1 %4057 }
0x14f9   : > { %5650 = vmatprep.subr.bf16.mxu1 %v3902_v37  ;;  %v3832_v46 = vmul.f32 %v6123_v18, %v7178_v26 }
0x14fa   : > { %v3836_v24 = vpack.c.bf16 %v3831_v15, %v3830_v63  ;;  %v4060_v23 = vpop.permute.xlu0 %4059 }
0x14fb   : > { %v3837_v22 = vpack.c.bf16 %v3833_v17, %v3832_v46 }
0x14fc   : > { %5651 = vmatpush3.bf16.msra.mxu1 %v3902_v37  ;;  %5652 = vmatprep.mubr.msk.bf16.mxu1 %vm1019_vm2, %v3836_v24  ;;  %v4133_v51 = vpop.permute.xlu1 %4132 }
0x14fd   : > { %5816 = vmatprep.subr.msk.bf16.mxu1 %vm880_vm0, %v4062_v16  ;;  %v4144_v40 = vsel %vm880_vm0, %v4133_v51, 0 }
0x14fe   : > { %v4127_v52 = vpop.permute.xlu0 %4126 }
0x14ff   : > { %5653 = vmatmul.mubr.msk.bf16.vlgmr.msra.gmra.mrb[72].mxu1 %vm1019_vm2, %v3837_v22 }
0x1500   : > { %5670 = vmatprep.mubr.msk.bf16.mxu1 %vm880_vm0, %v4058_v44  ;;  %v4129_v30 = vpop.permute.xlu1 %4128 }
0x1505   : > { %5667 = vmatpush3.bf16.xpose.msra.mxu1 %v4072_v27 }
0x1506   : > { %5817 = vmatprep.subr.msk.bf16.mxu1 %vm880_vm0, %v4064_v20 }
0x150d   : > { %5669 = vmatpush3.bf16.xpose.msra.mxu1 %v4075_v7 }
0x1514   : > { %5671 = vmatmul.mubr.msk.bf16.vlgmr.msra.gmra.mrb[76].mxu1 %vm880_vm0, %v4060_v23 }
0x15ca   : > { %v5646_v59 = vpop.f32.mrb[68].mxu1 }
0x15cb   : > { %v3884_v43 = vpop.f32.mrb[69].mxu1 }
0x15cc   : > { %v5647_v54 = vpop.f32.mrb[70].mxu1 }
0x15cd   : > { %v3961_v26 = vpack.c.bf16 %v5647_v54, %v5646_v59  ;;  %v3887_v41 = vpop.f32.mrb[71].mxu1 }
0x15ce   : > { %v3960_v61 = vpack.c.bf16 %v3887_v41, %v3884_v43 }
0x15d0   : > { %5658 = vmatprep.mubr.msk.bf16.mxu0 %vm880_vm0, %v3960_v61 }
0x15d1   : > { %5659 = vmatmul.mubr.msk.bf16.vlgmr.msra.gmra.mrb[32].mxu0 %vm880_vm0, %v3961_v26 }
0x15d2   : > { %5675 = vmatpush3.bf16.xpose.msra.mxu0 %v4141_v0  ;;  %v5654_v1 = vpop.f32.mrb[72].mxu1 }
0x15d3   : > { %5819 = vmatprep.subr.msk.bf16.mxu0 %vm880_vm0, %v4133_v51  ;;  %v3945_v21 = vpop.f32.mrb[73].mxu1 }
0x15d4   : > { %v5655_v4 = vpop.f32.mrb[74].mxu1 }
0x15d5   : > { %v3963_v13 = vpack.c.bf16 %v5655_v4, %v5654_v1  ;;  %v3948_v36 = vpop.f32.mrb[75].mxu1 }
0x15d6   : > { %v3962_v38 = vpack.c.bf16 %v3948_v36, %v3945_v21 }
0x15d8   : > { %5662 = vmatprep.mubr.msk.bf16.mxu0 %vm880_vm0, %v3962_v38 }
0x15d9   : > { %5663 = vmatmul.mubr.msk.bf16.gmra.mrb[36].mxu0 %vm880_vm0, %v3963_v13 }
0x15da   : > { %5677 = vmatpush3.bf16.xpose.msra.mxu0 %v4144_v40  ;;  %5678 = vmatprep.mubr.msk.bf16.mxu0 %vm880_vm0, %v4127_v52 }
0x15e1   : > { %5679 = vmatmul.mubr.msk.bf16.vlgmr.msra.gmra.mrb[68].mxu0 %vm880_vm0, %v4129_v30 }
0x15e7   : > { %v5672_v48 = vpop.f32.mrb[76].mxu1 }
0x15e8   : > { %v4111_v56 = vpop.f32.mrb[77].mxu1  ;;  %v4197_v14 = vsel %vm6488_vm3, %v5672_v48, -inf }
0x15e9   : > { %v4195_v32 = vsel %vm6482_vm1, %v4111_v56, -inf  ;;  %v5673_v60 = vpop.f32.mrb[78].mxu1  ;;  %v4209_v29 = vsel %vm1019_vm2, %v4197_v14, -inf }
0x15ea   : > { %v4203_v28 = vsel %vm1019_vm2, %v4195_v32, -inf  ;;  %v4114_v58 = vpop.f32.mrb[79].mxu1  ;;  %v4198_v62 = vsel %vm6501_vm5, %v5673_v60, -inf }
0x15eb   : > { %v4196_v50 = vsel %vm6492_vm4, %v4114_v58, -inf  ;;  %4204 = vmax.xlane.f32.xlu0 %v4203_v28  ;;  %v4212_v16 = vsel %vm1019_vm2, %v4198_v62, -inf }
0x15ec   : > { %v4206_v19 = vsel %vm1019_vm2, %v4196_v50, -inf }
0x15ed   : > { %4207 = vmax.xlane.f32.xlu1 %v4206_v19 }
0x15ef   : > { %4210 = vmax.xlane.f32.xlu0 %v4209_v29 }
0x15f3   : > { %4213 = vmax.xlane.f32.xlu0 %v4212_v16 }
0x1678   : > { %v4205_v12 = vpop.xlane.xlu0 %4204 }
0x1679   : > { %v4227_v45 = vsub.f32 %v4195_v32, %v4205_v12 }
0x167a   : > { %v4208_v31 = vpop.xlane.xlu1 %4207 }
0x167b   : > { %v4228_v57 = vsub.f32 %v4196_v50, %v4208_v31  ;;  %v4235_v49 = vmul.f32 1.442695, %v4227_v45 }
0x167c   : > { %v4211_v37 = vpop.xlane.xlu0 %4210 }
0x167d   : > { %v4229_v18 = vsub.f32 %v4197_v14, %v4211_v37  ;;  %v4237_v63 = vmul.f32 1.442695, %v4228_v57  ;;  %6124 = vpow2.f32 %v4235_v49 }
0x167f   : > { %v4239_v17 = vmul.f32 1.442695, %v4229_v18  ;;  %6126 = vpow2.f32 %v4237_v63 }
0x1680   : > { %v4214_v47 = vpop.xlane.xlu0 %4213 }
0x1681   : > { %v4230_v15 = vsub.f32 %v4198_v62, %v4214_v47  ;;  %6128 = vpow2.f32 %v4239_v17 }
0x1683   : > { %v4241_v20 = vmul.f32 1.442695, %v4230_v15 }
0x1685   : > { %6130 = vpow2.f32 %v4241_v20 }
0x1687   : > { %v6125_v26 = vpop.eup %6124 }
0x1688   : > { %v4251_v33 = vsel %vm1019_vm2, %v6125_v26, 0.0 }
0x1689   : > { %v6127_v61 = vpop.eup %6126 }
0x168a   : > { %v4254_v34 = vsel %vm1019_vm2, %v6127_v61, 0.0 }
0x168b   : > { %v7262_v0 = vpop.eup %6128 }
0x168c   : > { %v4257_v42 = vsel %vm1019_vm2, %v7262_v0, 0.0 }
0x168f   : > { %v7265_v51 = vpop.eup %6130 }
0x1690   : > { %v4260_v1 = vsel %vm1019_vm2, %v7265_v51, 0.0 }
0x16b4   : > { %v5680_v24 = vpop.f32.mrb[68].mxu0 }
0x16b5   : > { %v4180_v46 = vpop.f32.mrb[69].mxu0  ;;  %v4201_v23 = vsel %vm6488_vm3, %v5680_v24, -inf }
0x16b6   : > { %v4199_v22 = vsel %vm6482_vm1, %v4180_v46, -inf  ;;  %v5681_v44 = vpop.f32.mrb[70].mxu0  ;;  %v4221_v25 = vsel %vm1019_vm2, %v4201_v23, -inf }
0x16b7   : > { %v4215_v27 = vsel %vm1019_vm2, %v4199_v22, -inf  ;;  %v4183_v7 = vpop.f32.mrb[71].mxu0  ;;  %v4202_v54 = vsel %vm6501_vm5, %v5681_v44, -inf }
0x16b8   : > { %v4200_v59 = vsel %vm6492_vm4, %v4183_v7, -inf  ;;  %4216 = vmax.xlane.f32.xlu0 %v4215_v27  ;;  %v4224_v41 = vsel %vm1019_vm2, %v4202_v54, -inf }
0x16b9   : > { %v4218_v43 = vsel %vm1019_vm2, %v4200_v59, -inf }
0x16ba   : > { %4219 = vmax.xlane.f32.xlu1 %v4218_v43 }
0x16bc   : > { %4222 = vmax.xlane.f32.xlu0 %v4221_v25 }
0x16be   : > { %4225 = vmax.xlane.f32.xlu1 %v4224_v41 }
0x16c0   : > { %4252 = vadd.xlane.f32.xlu0 %v4251_v33 }
0x16c2   : > { %4255 = vadd.xlane.f32.xlu1 %v4254_v34 }
0x16c4   : > { %4258 = vadd.xlane.f32.xlu0 %v4257_v42 }
0x16c6   : > { %4261 = vadd.xlane.f32.xlu1 %v4260_v1 }
0x16d7   : > { %4297 = vrot.lane.b32.xlu1 %v6426_v35, %s6187_s30 }
0x16db   : > { %4356 = vrot.lane.b32.xlu1 %v6442_v55, %s6187_s30 }
0x1745   : > { %v4217_v21 = vpop.xlane.xlu0 %4216 }
0x1746   : > { %v4231_v4 = vsub.f32 %v4199_v22, %v4217_v21 }
0x1747   : > { %v4220_v13 = vpop.xlane.xlu1 %4219 }
0x1748   : > { %v4243_v36 = vmul.f32 1.442695, %v4231_v4  ;;  %v4232_v40 = vsub.f32 %v4200_v59, %v4220_v13 }
0x1749   : > { %v4223_v38 = vpop.xlane.xlu0 %4222 }
0x174a   : > { %v4233_v52 = vsub.f32 %v4201_v23, %v4223_v38  ;;  %6132 = vpow2.f32 %v4243_v36  ;;  %v4245_v60 = vmul.f32 1.442695, %v4232_v40 }
0x174b   : > { %v4226_v30 = vpop.xlane.xlu1 %4225 }
0x174c   : > { %v4247_v48 = vmul.f32 1.442695, %v4233_v52  ;;  %v4234_v56 = vsub.f32 %v4202_v54, %v4226_v30 }
0x174d   : > { %v4253_v32 = vpop.xlane.xlu0 %4252 }
0x174e   : > { %6134 = vpow2.f32 %v4247_v48  ;;  %v4249_v28 = vmul.f32 1.442695, %v4234_v56 }
0x174f   : > { %6136 = vrcp.f32 %v4253_v32  ;;  %v4256_v35 = vpop.xlane.xlu1 %4255 }
0x1750   : > { %6138 = vpow2.f32 %v4249_v28 }
0x1751   : > { %6140 = vrcp.f32 %v4256_v35  ;;  %v4259_v63 = vpop.xlane.xlu0 %4258 }
0x1752   : > { %6142 = vpow2.f32 %v4245_v60  ;;  %v5081_v60 = vld [vmem:[%s7405_s5] ss:$0 sm:$0xff] }
0x1753   : > { %v4262_v55 = vpop.xlane.xlu1 %4261 }
0x1754   : > { %v6133_v58 = vpop.eup %6132  ;;  %6144 = vrcp.f32 %v4262_v55 }
0x1755   : > { %v4263_v47 = vsel %vm1019_vm2, %v6133_v58, 0.0  ;;  %6146 = vrcp.f32 %v4259_v63 }
0x1757   : > { %v4298_v14 = vpop.permute.xlu1 %4297 }
0x1758   : > { %v6135_v50 = vpop.eup %6134 }
0x1759   : > { %v6137_v19 = vpop.eup %6136  ;;  %v4269_v29 = vsel %vm1019_vm2, %v6135_v50, 0.0 }
0x175a   : > { %v6139_v62 = vpop.eup %6138  ;;  %4270 = vadd.xlane.f32.xlu0 %v4269_v29  ;;  %v4283_v45 = vmul.f32 %v6137_v19, %v6125_v26 }
0x175b   : > { %v6141_v16 = vpop.eup %6140  ;;  %v4357_v12 = vpop.permute.xlu1 %4356  ;;  %v4272_v37 = vsel %vm1019_vm2, %v6139_v62, 0.0 }
0x175c   : > { %v6143_v31 = vpop.eup %6142  ;;  %4273 = vadd.xlane.f32.xlu1 %v4272_v37  ;;  %5690 = vmatprep.subr.bf16.mxu0 %v4357_v12  ;;  %v4284_v57 = vmul.f32 %v6141_v16, %v6127_v61 }
0x175d   : > { %5691 = vmatpush3.bf16.msra.mxu0 %v4357_v12  ;;  %v4266_v18 = vsel %vm1019_vm2, %v6143_v31, 0.0 }
0x175e   : > { %4264 = vadd.xlane.f32.xlu0 %v4263_v47  ;;  %v4291_v49 = vpack.c.bf16 %v4284_v57, %v4283_v45  ;;  %v6145_v46 = vpop.eup %6144 }
0x175f   : > { %v6147_v44 = vpop.eup %6146  ;;  %v4286_v27 = vmul.f32 %v6145_v46, %v7265_v51 }
0x1760   : > { %5686 = vmatprep.mubr.msk.bf16.mxu1 %vm1019_vm2, %v4291_v49  ;;  %4267 = vadd.xlane.f32.xlu1 %v4266_v18 }
0x1771   : > { %4358 = vrot.lane.b32.xlu1 %v6440_v53, %s6187_s30 }
0x1774   : > { %4295 = vrot.lane.b32.xlu0 %v6430_v39, %s6187_s30  ;;  %v4285_v39 = vmul.f32 %v6147_v44, %v7262_v0  ;;  %v5875_v0 = vld [vmem:[%s7404_s4 + $0x38] sm:$0xff]  }
0x1776   : > { %v4292_v59 = vpack.c.bf16 %v4286_v27, %v4285_v39 }
0x17e7   : > { %v4271_v15 = vpop.xlane.xlu0 %4270 }
0x17e9   : > { %v4274_v17 = vpop.xlane.xlu1 %4273 }
0x17ea   : > { %6148 = vrcp.f32 %v4274_v17 }
0x17eb   : > { %v4265_v20 = vpop.xlane.xlu0 %4264 }
0x17ec   : > { %6150 = vrcp.f32 %v4265_v20 }
0x17ed   : > { %6152 = vrcp.f32 %v4271_v15  ;;  %v4268_v24 = vpop.xlane.xlu1 %4267 }
0x17ee   : > { %6154 = vrcp.f32 %v4268_v24 }
0x17ef   : > { %v4296_v22 = vpop.permute.xlu0 %4295 }
0x17f0   : > { %5682 = vmatprep.subr.bf16.mxu1 %v4296_v22 }
0x17f1   : > { %5683 = vmatpush3.bf16.msra.mxu1 %v4296_v22  ;;  %v4359_v53 = vpop.permute.xlu1 %4358 }
0x17f2   : > { %5684 = vmatprep.subr.bf16.mxu1 %v4298_v14  ;;  %5692 = vmatprep.subr.bf16.mxu0 %v4359_v53 }
0x17f3   : > { %5693 = vmatpush3.bf16.msra.mxu0 %v4359_v53 }
0x17f4   : > { %v6149_v7 = vpop.eup %6148  ;;  %5698 = vmatprep.subr.bf16.mxu0 %v5875_v0 }
0x17f5   : > { %5685 = vmatpush3.bf16.msra.mxu1 %v4298_v14  ;;  %v4290_v25 = vmul.f32 %v6149_v7, %v6139_v62 }
0x17f6   : > { %v6151_v23 = vpop.eup %6150 }
0x17f7   : > { %v6153_v43 = vpop.eup %6152  ;;  %v4287_v26 = vmul.f32 %v6151_v23, %v6133_v58 }
0x17f8   : > { %v6155_v54 = vpop.eup %6154  ;;  %5687 = vmatmul.mubr.msk.bf16.vlgmr.msra.gmra.mrb[80].mxu1 %vm1019_vm2, %v4292_v59  ;;  %v4289_v61 = vmul.f32 %v6153_v43, %v6135_v50 }
0x17f9   : > { %v4288_v41 = vmul.f32 %v6155_v54, %v6143_v31 }
0x17fa   : > { %v4294_v34 = vpack.c.bf16 %v4290_v25, %v4289_v61 }
0x17fb   : > { %v4293_v33 = vpack.c.bf16 %v4288_v41, %v4287_v26 }
0x17fd   : > { %5694 = vmatprep.mubr.msk.bf16.mxu0 %vm1019_vm2, %v4293_v33 }
0x17fe   : > { %5695 = vmatmul.mubr.msk.bf16.vlgmr.msra.gmra.mrb[72].mxu0 %vm1019_vm2, %v4294_v34 }
0x17ff   : > { %5699 = vmatpush3.bf16.msra.mxu0 %v5875_v0 }
0x18cb   : > { %v5688_v51 = vpop.f32.mrb[80].mxu1 }
0x18cc   : > { %v4341_v42 = vpop.f32.mrb[81].mxu1 }
0x18cd   : > { %v5689_v1 = vpop.f32.mrb[82].mxu1 }
0x18ce   : > { %v4418_v21 = vpack.c.bf16 %v5689_v1, %v5688_v51  ;;  %v4344_v4 = vpop.f32.mrb[83].mxu1 }
0x18cf   : > { %v4417_v13 = vpack.c.bf16 %v4344_v4, %v4341_v42 }
0x18d1   : > { %v5696_v36 = vpop.f32.mrb[72].mxu0  ;;  %5700 = vmatprep.mubr.msk.bf16.mxu0 %vm880_vm0, %v4417_v13 }
0x18d2   : > { %v4402_v38 = vpop.f32.mrb[73].mxu0  ;;  %5701 = vmatmul.mubr.msk.bf16.vlgmr.msra.gmra.mrb[32].mxu0 %vm880_vm0, %v4418_v21 }
0x18d3   : > { %v5697_v40 = vpop.f32.mrb[74].mxu0 }
0x18d4   : > { %v4420_v52 = vpack.c.bf16 %v5697_v40, %v5696_v36  ;;  %v4405_v30 = vpop.f32.mrb[75].mxu0 }
0x18d5   : > { %v4419_v48 = vpack.c.bf16 %v4405_v30, %v4402_v38  ;;  %v5877_v30 = vld [vmem:[%s7408_s8 + $0x8] sm:$0xff]  }
0x18d7   : > { %5704 = vmatprep.mubr.msk.bf16.mxu0 %vm880_vm0, %v4419_v48  ;;  %v5878_v48 = vld [vmem:[%s7408_s8 + $0x10] sm:$0xff]  }
0x18da   : > { %5705 = vmatmul.mubr.msk.bf16.gmra.mrb[36].mxu0 %vm880_vm0, %v4420_v52 }
0x19a5   : > { %v5702_v56 = vpop.f32.mrb[32].mxu0 }
0x19a6   : > { %v4516_v32 = vadd.f32 %v5702_v56, %v6266_v3  ;;  %v4475_v28 = vpop.f32.mrb[33].mxu0  ;;  %v5879_v56 = vld [vmem:[%s7408_s8 + $0x18] sm:$0xff]  }
0x19a7   : > { %v4514_v35 = vadd.f32 %v6264_v2, %v4475_v28  ;;  %v5703_v55 = vpop.f32.mrb[34].mxu0  ;;  %v5882_v28 = vld [vmem:[%s7408_s8 + $0x30] sm:$0xff]  }
0x19a8   : > { %v4517_v58 = vadd.f32 %v5703_v55, %v6272_v6  ;;  %v4478_v14 = vpop.f32.mrb[35].mxu0  ;;  %v4531_v29 = vadd.f32 %v5081_v60, %v4516_v32  ;;  %v5880_v32 = vld [vmem:[%s7408_s8 + $0x20] sm:$0xff]  }
0x19a9   : > { %v4529_v50 = vadd.f32 %v5081_v60, %v4514_v35  ;;  %v4515_v19 = vadd.f32 %v6270_v5, %v4478_v14  ;;  %v5883_v35 = vld [vmem:[%s7408_s8 + $0x38] sm:$0xff]  }
0x19aa   : > { %v4532_v62 = vadd.f32 %v5081_v60, %v4517_v58 }
0x19ab   : > { %v4530_v3 = vadd.f32 %v5081_v60, %v4515_v19  ;;  %4579 = vadd.xlane.f32.xlu0 %v4529_v50 }
0x19ac   : > { %v5138_v16 = vpack.c.bf16 %v4532_v62, %v4531_v29 }
0x19ad   : > { %v5133_v12 = vpack.c.bf16 %v4530_v3, %v4529_v50  ;;  %4581 = vadd.xlane.f32.xlu1 %v4530_v3  ;;  %v5706_v2 = vpop.f32.mrb[36].mxu0 }
0x19ae   : > { %5153 = vst [vmem:[%s402_s23 + $0x8] sm:$0xff] %v5138_v16   ;;  %v4520_v6 = vadd.f32 %v5706_v2, %v6282_v10  ;;  %v4491_v37 = vpop.f32.mrb[37].mxu0 }
0x19af   : > { %5134 = vst [vmem:[%s402_s23] sm:$0xff] %v5133_v12   ;;  %v4518_v5 = vadd.f32 %v6276_v8, %v4491_v37  ;;  %4583 = vadd.xlane.f32.xlu0 %v4531_v29  ;;  %v5707_v31 = vpop.f32.mrb[38].mxu0  ;;  %v5876_v8 = vld [vmem:[%s7408_s8] sm:$0xff]  }
0x19b0   : > { %v4521_v45 = vadd.f32 %v5707_v31, %v6284_v11  ;;  %v4494_v57 = vpop.f32.mrb[39].mxu0  ;;  %v4535_v49 = vadd.f32 %v5081_v60, %v4520_v6  ;;  %5708 = vmatprep.subr.bf16.mxu1 %v5876_v8 }
0x19b1   : > { %v4519_v47 = vadd.f32 %v6278_v9, %v4494_v57  ;;  %v4533_v63 = vadd.f32 %v5081_v60, %v4518_v5  ;;  %5709 = vmatpush3.bf16.msra.mxu1 %v5876_v8 }
0x19b2   : > { %v4536_v18 = vadd.f32 %v5081_v60, %v4521_v45  ;;  %5710 = vmatprep.subr.bf16.mxu1 %v5877_v30 }
0x19b3   : > { %v4534_v15 = vadd.f32 %v5081_v60, %v4519_v47  ;;  %4585 = vadd.xlane.f32.xlu0 %v4532_v62  ;;  %v5881_v60 = vld [vmem:[%s7408_s8 + $0x28] sm:$0xff]  }
0x19b4   : > { %v5148_v17 = vpack.c.bf16 %v4536_v18, %v4535_v49 }
0x19b5   : > { %v5143_v20 = vpack.c.bf16 %v4534_v15, %v4533_v63  ;;  %4589 = vadd.xlane.f32.xlu1 %v4534_v15  ;;  %5711 = vmatpush3.bf16.msra.mxu1 %v5877_v30 }
0x19b6   : > { %5155 = vst [vmem:[%s402_s23 + $0x18] sm:$0xff] %v5148_v17   ;;  %5712 = vmatprep.subr.bf16.mxu1 %v5878_v48 }
0x19b7   : > { %5154 = vst [vmem:[%s402_s23 + $0x10] sm:$0xff] %v5143_v20   ;;  %4587 = vadd.xlane.f32.xlu0 %v4533_v63 }
0x19b9   : > { %4593 = vadd.xlane.f32.xlu1 %v4536_v18  ;;  %5713 = vmatpush3.bf16.msra.mxu1 %v5878_v48 }
0x19ba   : > { %5714 = vmatprep.subr.bf16.mxu1 %v5879_v56 }
0x19bb   : > { %4591 = vadd.xlane.f32.xlu0 %v4535_v49 }
0x19bd   : > { %5715 = vmatpush3.bf16.msra.mxu1 %v5879_v56 }
0x19be   : > { %5716 = vmatprep.subr.bf16.mxu1 %v5880_v32 }
0x19c1   : > { %5717 = vmatpush3.bf16.msra.mxu1 %v5880_v32 }
0x19c2   : > { %5718 = vmatprep.subr.bf16.mxu1 %v5881_v60 }
0x19c5   : > { %5719 = vmatpush3.bf16.msra.mxu1 %v5881_v60 }
0x19c6   : > { %5720 = vmatprep.subr.bf16.mxu1 %v5882_v28 }
0x19c9   : > { %5721 = vmatpush3.bf16.msra.mxu1 %v5882_v28 }
0x19ca   : > { %5722 = vmatprep.subr.bf16.mxu1 %v5883_v35 }
0x19cd   : > { %5723 = vmatpush3.bf16.msra.mxu1 %v5883_v35 }
0x1a38   : > { %v4580_v9 = vpop.xlane.xlu0 %4579 }
0x1a39   : > { %v4595_v10 = vmul.f32 0.0078125, %v4580_v9 }
0x1a3a   : > { %v4582_v11 = vpop.xlane.xlu1 %4581 }
0x1a3b   : > { %v7315_v24 = vsub.f32 %v4529_v50, %v4595_v10  ;;  %v4596_v46 = vmul.f32 0.0078125, %v4582_v11 }
0x1a3c   : > { %v4584_v22 = vpop.xlane.xlu0 %4583 }
0x1a3d   : > { %v7317_v44 = vsub.f32 %v4530_v3, %v4596_v46  ;;  %v4597_v53 = vmul.f32 0.0078125, %v4584_v22  ;;  %v4611_v27 = vmul.f32 %v7315_v24, %v7315_v24 }
0x1a3f   : > { %v7321_v39 = vsub.f32 %v4531_v29, %v4597_v53  ;;  %4619 = vadd.xlane.f32.xlu0 %v4611_v27  ;;  %v4612_v7 = vmul.f32 %v7317_v44, %v7317_v44  ;;  %v5091_v27 = vld [vmem:[%s7407_s7] ss:$0 sm:$0xff] }
0x1a40   : > { %v4586_v23 = vpop.xlane.xlu0 %4585 }
0x1a41   : > { %v4598_v59 = vmul.f32 0.0078125, %v4586_v23  ;;  %4621 = vadd.xlane.f32.xlu1 %v4612_v7  ;;  %v4613_v43 = vmul.f32 %v7321_v39, %v7321_v39 }
0x1a42   : > { %v4590_v54 = vpop.xlane.xlu1 %4589 }
0x1a43   : > { %v7327_v25 = vsub.f32 %v4532_v62, %v4598_v59  ;;  %v4600_v26 = vmul.f32 0.0078125, %v4590_v54  ;;  %4623 = vadd.xlane.f32.xlu0 %v4613_v43 }
0x1a44   : > { %v4588_v41 = vpop.xlane.xlu0 %4587 }
0x1a45   : > { %v7329_v61 = vsub.f32 %v4534_v15, %v4600_v26  ;;  %v4599_v33 = vmul.f32 0.0078125, %v4588_v41  ;;  %v4614_v34 = vmul.f32 %v7327_v25, %v7327_v25 }
0x1a46   : > { %v4594_v0 = vpop.xlane.xlu1 %4593 }
0x1a47   : > { %v7333_v51 = vsub.f32 %v4533_v63, %v4599_v33  ;;  %v4602_v42 = vmul.f32 0.0078125, %v4594_v0  ;;  %4625 = vadd.xlane.f32.xlu1 %v4614_v34  ;;  %v4616_v36 = vmul.f32 %v7329_v61, %v7329_v61 }
0x1a48   : > { %v4592_v1 = vpop.xlane.xlu0 %4591 }
0x1a49   : > { %v7335_v21 = vsub.f32 %v4536_v18, %v4602_v42  ;;  %v4601_v4 = vmul.f32 0.0078125, %v4592_v1  ;;  %v4615_v13 = vmul.f32 %v7333_v51, %v7333_v51  ;;  %v5090_v18 = vld [vmem:[%s7406_s6] ss:$0 sm:$0xff] }
0x1a4b   : > { %v7341_v38 = vsub.f32 %v4535_v49, %v4601_v4  ;;  %4627 = vadd.xlane.f32.xlu0 %v4615_v13  ;;  %4629 = vadd.xlane.f32.xlu1 %v4616_v36  ;;  %v4618_v52 = vmul.f32 %v7335_v21, %v7335_v21 }
0x1a4d   : > { %v4617_v40 = vmul.f32 %v7341_v38, %v7341_v38 }
0x1a4f   : > { %4631 = vadd.xlane.f32.xlu0 %v4617_v40  ;;  %4633 = vadd.xlane.f32.xlu1 %v4618_v52 }
0x1acc   : > { %v4620_v55 = vpop.xlane.xlu0 %4619 }
0x1acd   : > { %v4635_v58 = vmul.f32 0.0078125, %v4620_v55  ;;  %v5092_v55 = vld [vmem:[%s7409_s9] ss:$0 sm:$0xff] }
0x1ace   : > { %v4622_v14 = vpop.xlane.xlu1 %4621 }
0x1acf   : > { %v4643_v50 = vadd.f32 1e-05, %v4635_v58  ;;  %v4636_v19 = vmul.f32 0.0078125, %v4622_v14 }
0x1ad0   : > { %v4624_v29 = vpop.xlane.xlu0 %4623 }
0x1ad1   : > { %6156 = vrsqrt.f32 %v4643_v50  ;;  %v4644_v62 = vadd.f32 1e-05, %v4636_v19  ;;  %v4637_v3 = vmul.f32 0.0078125, %v4624_v29 }
0x1ad3   : > { %6158 = vrsqrt.f32 %v4644_v62  ;;  %v4645_v16 = vadd.f32 1e-05, %v4637_v3 }
0x1ad4   : > { %v4626_v12 = vpop.xlane.xlu1 %4625 }
0x1ad5   : > { %6160 = vrsqrt.f32 %v4645_v16  ;;  %v4638_v2 = vmul.f32 0.0078125, %v4626_v12 }
0x1ad7   : > { %v4646_v6 = vadd.f32 1e-05, %v4638_v2 }
0x1ad8   : > { %v4628_v37 = vpop.xlane.xlu0 %4627  ;;  %v4630_v5 = vpop.xlane.xlu1 %4629 }
0x1ad9   : > { %6162 = vrsqrt.f32 %v4646_v6  ;;  %v4639_v31 = vmul.f32 0.0078125, %v4628_v37  ;;  %v4640_v45 = vmul.f32 0.0078125, %v4630_v5 }
0x1adb   : > { %v6157_v57 = vpop.eup %6156  ;;  %v4647_v47 = vadd.f32 1e-05, %v4639_v31  ;;  %v4648_v49 = vadd.f32 1e-05, %v4640_v45 }
0x1adc   : > { %v4632_v63 = vpop.xlane.xlu0 %4631  ;;  %v4634_v15 = vpop.xlane.xlu1 %4633  ;;  %v4659_v17 = vmul.f32 %v6157_v57, %v7315_v24 }
0x1add   : > { %v6159_v20 = vpop.eup %6158  ;;  %6164 = vrsqrt.f32 %v4647_v47  ;;  %v4641_v8 = vmul.f32 0.0078125, %v4632_v63  ;;  %v4642_v9 = vmul.f32 0.0078125, %v4634_v15 }
0x1ade   : > { %6166 = vrsqrt.f32 %v4648_v49  ;;  %v4660_v10 = vmul.f32 %v6159_v20, %v7317_v44  ;;  %v4673_v11 = vmul.f32 %v5090_v18, %v4659_v17 }
0x1adf   : > { %v6161_v46 = vpop.eup %6160  ;;  %v4649_v22 = vadd.f32 1e-05, %v4641_v8  ;;  %v4650_v53 = vadd.f32 1e-05, %v4642_v9 }
0x1ae0   : > { %v4661_v7 = vmul.f32 %v6161_v46, %v7321_v39  ;;  %v4674_v23 = vmul.f32 %v5090_v18, %v4660_v10  ;;  %v4687_v24 = vadd.f32 %v5091_v27, %v4673_v11 }
0x1ae1   : > { %6168 = vrsqrt.f32 %v4649_v22 }
0x1ae2   : > { %6170 = vrsqrt.f32 %v4650_v53  ;;  %v4688_v59 = vadd.f32 %v5091_v27, %v4674_v23  ;;  %v4675_v44 = vmul.f32 %v5090_v18, %v4661_v7 }
0x1ae3   : > { %v6163_v43 = vpop.eup %6162 }
0x1ae4   : > { %v4662_v54 = vmul.f32 %v6163_v43, %v7327_v25  ;;  %v4695_v26 = vpack.c.bf16 %v4688_v59, %v4687_v24  ;;  %v4689_v0 = vadd.f32 %v5091_v27, %v4675_v44 }
0x1ae6   : > { %5724 = vmatprep.mubr.bf16.mxu1 %v4695_v26  ;;  %v4676_v41 = vmul.f32 %v5090_v18, %v4662_v54 }
0x1ae7   : > { %v6165_v33 = vpop.eup %6164 }
0x1ae8   : > { %v6167_v34 = vpop.eup %6166  ;;  %v4690_v42 = vadd.f32 %v5091_v27, %v4676_v41  ;;  %v4663_v1 = vmul.f32 %v6165_v33, %v7333_v51 }
0x1ae9   : > { %v4664_v39 = vmul.f32 %v6167_v34, %v7329_v61 }
0x1aea   : > { %v4696_v4 = vpack.c.bf16 %v4690_v42, %v4689_v0  ;;  %v4677_v13 = vmul.f32 %v5090_v18, %v4663_v1 }
0x1aeb   : > { %v6169_v36 = vpop.eup %6168  ;;  %v4678_v40 = vmul.f32 %v5090_v18, %v4664_v39 }
0x1aec   : > { %v6171_v52 = vpop.eup %6170  ;;  %5725 = vmatmul.mubr.bf16.vlgmr.msra.gmra.mrb[84].mxu1 %v4696_v4  ;;  %v4691_v25 = vadd.f32 %v5091_v27, %v4677_v13  ;;  %v4665_v30 = vmul.f32 %v6169_v36, %v7341_v38 }
0x1aed   : > { %v4692_v48 = vadd.f32 %v5091_v27, %v4678_v40  ;;  %v4666_v56 = vmul.f32 %v6171_v52, %v7335_v21 }
0x1aee   : > { %v4679_v32 = vmul.f32 %v5090_v18, %v4665_v30 }
0x1aef   : > { %v4697_v60 = vpack.c.bf16 %v4692_v48, %v4691_v25  ;;  %v4680_v28 = vmul.f32 %v5090_v18, %v4666_v56 }
0x1af0   : > { %v4693_v35 = vadd.f32 %v5091_v27, %v4679_v32 }
0x1af1   : > { %5728 = vmatprep.mubr.bf16.mxu1 %v4697_v60  ;;  %v4694_v51 = vadd.f32 %v5091_v27, %v4680_v28 }
0x1af3   : > { %v4698_v61 = vpack.c.bf16 %v4694_v51, %v4693_v35 }
0x1af5   : > { %5729 = vmatmul.mubr.bf16.gmra.mrb[88].mxu1 %v4698_v61 }
0x1bbf   : > { %v5726_v38 = vpop.f32.mrb[84].mxu1 }
0x1bc0   : > { %v4813_v58 = vadd.f32 %v5726_v38, %v5092_v55  ;;  %v4804_v21 = vpop.f32.mrb[85].mxu1 }
0x1bc1   : > { %v4805_v14 = vadd.f32 %v5092_v55, %v4804_v21  ;;  %v5727_v50 = vpop.f32.mrb[86].mxu1 }
0x1bc2   : > { %4837 = vst.msk [vmem:[%s409_s12 + $0x10] sm:$0xff] %vm880_vm0, %v4813_v58  ;;  %v4816_v19 = vadd.f32 %v5727_v50, %v5092_v55  ;;  %v4807_v29 = vpop.f32.mrb[87].mxu1 }
0x1bc3   : > { %4835 = vst.msk [vmem:[%s409_s12] sm:$0xff] %vm880_vm0, %v4805_v14  ;;  %v4808_v62 = vadd.f32 %v5092_v55, %v4807_v29 }
0x1bc4   : > { %4838 = vst.msk [vmem:[%s409_s12 + $0x18] sm:$0xff] %vm880_vm0, %v4816_v19 }
0x1bc5   : > { %4836 = vst.msk [vmem:[%s409_s12 + $0x8] sm:$0xff] %vm880_vm0, %v4808_v62 }
0x1bc8   : > { %v5730_v3 = vpop.f32.mrb[88].mxu1 }
0x1bc9   : > { %v4829_v16 = vadd.f32 %v5730_v3, %v5092_v55  ;;  %v4820_v12 = vpop.f32.mrb[89].mxu1 }
0x1bca   : > { %v4821_v2 = vadd.f32 %v5092_v55, %v4820_v12  ;;  %v5731_v6 = vpop.f32.mrb[90].mxu1 }
0x1bcb   : > { %4841 = vst.msk [vmem:[%s409_s12 + $0x30] sm:$0xff] %vm880_vm0, %v4829_v16  ;;  %v4832_v37 = vadd.f32 %v5731_v6, %v5092_v55  ;;  %v4823_v5 = vpop.f32.mrb[91].mxu1 }
0x1bcc   : > { %4839 = vst.msk [vmem:[%s409_s12 + $0x20] sm:$0xff] %vm880_vm0, %v4821_v2  ;;  %v4824_v31 = vadd.f32 %v5092_v55, %v4823_v5 }
0x1bcd   : > { %4842 = vst.msk [vmem:[%s409_s12 + $0x38] sm:$0xff] %vm880_vm0, %v4832_v37 }
0x1bce   : > { %4840 = vst.msk [vmem:[%s409_s12 + $0x28] sm:$0xff] %vm880_vm0, %v4824_v31 }
0x1bcf PF: > { %s22_s17 = sadd.s32 1, %s6178_s17  }
0x1bd0   : > { %p19_p4 = scmp.ge.s32.totalorder %s22_s17, 4  }
0x1bd2   :  { %21 = sbr.rel (!%p19_p4) target bundleno = 1 (0x1), region = 102 }

// kernel: model_forward.6
= control target key start
LH: loop header
LB: loop body
LE: loop exit
PB: predicated region body
PF: predicated region fallthrough
CT: control target
= control target key end

     0   :  { %s10107_s27 = smov 0   ;;  %s12751_s0 = inlined_call_operand.vmem [shape: bf16[128,128], index: 0, kind: input, shape index: {}]   ;;  %s12752_s1 = inlined_call_operand.vmem [shape: f32[1,128], index: 1, kind: input, shape index: {}]   ;;  %s12753_s2 = inlined_call_operand.vmem [shape: f32[1,128], index: 2, kind: input, shape index: {}]   ;;  %s12754_s3 = inlined_call_operand.vmem [shape: f32[128,8], index: 3, kind: input, shape index: {}]   ;;  %s12755_s4 = inlined_call_operand.vmem [shape: bf16[8,128,512], index: 4, kind: input, shape index: {}]   ;;  %s12756_s5 = inlined_call_operand.vmem [shape: f32[8,1,512], index: 5, kind: input, shape index: {}]   ;;  %s12757_s6 = inlined_call_operand.vmem [shape: bf16[8,512,128], index: 6, kind: input, shape index: {}]   ;;  %s12758_s7 = inlined_call_operand.vmem [shape: f32[8,1,128], index: 7, kind: input, shape index: {}]   ;;  %s12759_s8 = inlined_call_operand.vmem [shape: bf16[128,128], index: 8, kind: output, shape index: {}]  }
   0x1 LB: > { %s7415_s28 = sadd.s32 4294967295, %s10052_s27   ;;  %p7419_p0 = scmp.ge.s32.totalorder %s10052_s27, 1  ;;  %s10052_s27 = sphi %s10107_s27, %s18_s27  }
   0x2   : > { %p274_p1 = scmp.lt.s32.totalorder %s10052_s27, 3 }
   0x4   : > { %p275_p2 = pnand %p7419_p0, %p274_p1 }
   0x5   : > { %s7420_s29 = sshll.u32 (!%p275_p2), %s7415_s28, 3  ;;  %v9366_v12 = vld [vmem:[%s12755_s4 + $0x4] ss:$16 sps:$4 sm:$0xff] (!%p275_p2)   ;;  %v9368_v13 = vld [vmem:[%s12755_s4 + $0xc] ss:$16 sps:$4 sm:$0xff] (!%p275_p2)  }
   0x6   : > { %278 = sbr.rel (%p275_p2) target bundleno = 2588 (0xa1c), region = 52  ;;  %p314_p3 = scmp.lt.s32.totalorder (!%p275_p2), %s7420_s29, 15  ;;  %v9370_v14 = vld [vmem:[%s12755_s4] ss:$16 sps:$4 sm:$0xff] (!%p275_p2)   ;;  %v9371_v15 = vld [vmem:[%s12755_s4 + $0x8] ss:$16 sps:$4 sm:$0xff] (!%p275_p2)   ;;  %693 = vmatprep.subr.bf16.mxu0 (!%p275_p2), %v9366_v12  ;;  %766 = vmatprep.subr.bf16.mxu1 (!%p275_p2), %v9368_v13 }
   0x7   : > { %v9372_v16 = vld [vmem:[%s12755_s4 + $0x24] ss:$16 sps:$4 sm:$0xff] (!%p275_p2)   ;;  %v9374_v17 = vld [vmem:[%s12755_s4 + $0x2c] ss:$16 sps:$4 sm:$0xff] (!%p275_p2)   ;;  %694 = vmatpush1.bf16.msra.mxu0 (!%p275_p2), %v9370_v14  ;;  %767 = vmatpush1.bf16.msra.mxu1 (!%p275_p2), %v9371_v15  ;;  %v9376_v50 = vld [vmem:[%s12755_s4 + $0x20] ss:$16 sps:$4 sm:$0xff] (!%p275_p2)  }
   0x8   : > { %695 = vmatprep.subr.bf16.mxu0 (!%p275_p2), %v9372_v16  ;;  %768 = vmatprep.subr.bf16.mxu1 (!%p275_p2), %v9374_v17  ;;  %v9377_v51 = vld [vmem:[%s12755_s4 + $0x28] ss:$16 sps:$4 sm:$0xff] (!%p275_p2)   ;;  %v9378_v52 = vld [vmem:[%s12755_s4 + $0x44] ss:$16 sps:$4 sm:$0xff] (!%p275_p2)   ;;  %v9380_v53 = vld [vmem:[%s12755_s4 + $0x4c] ss:$16 sps:$4 sm:$0xff] (!%p275_p2)  }
   0x9   : > { %v9382_v54 = vld [vmem:[%s12755_s4 + $0x40] ss:$16 sps:$4 sm:$0xff] (!%p275_p2)   ;;  %v9383_v55 = vld [vmem:[%s12755_s4 + $0x48] ss:$16 sps:$4 sm:$0xff] (!%p275_p2)   ;;  %v9384_v56 = vld [vmem:[%s12755_s4 + $0x64] ss:$16 sps:$4 sm:$0xff] (!%p275_p2)  }
   0xa   : > { %v9386_v57 = vld [vmem:[%s12755_s4 + $0x6c] ss:$16 sps:$4 sm:$0xff] (!%p275_p2)   ;;  %v9388_v58 = vld [vmem:[%s12755_s4 + $0x60] ss:$16 sps:$4 sm:$0xff] (!%p275_p2)   ;;  %v9389_v59 = vld [vmem:[%s12755_s4 + $0x68] ss:$16 sps:$4 sm:$0xff] (!%p275_p2)  }
   0xb   : > { %696 = vmatpush1.bf16.msra.mxu0 (!%p275_p2), %v9376_v50  ;;  %769 = vmatpush1.bf16.msra.mxu1 (!%p275_p2), %v9377_v51  ;;  %v9390_v60 = vld [vmem:[%s12755_s4 + $0x84] ss:$16 sps:$4 sm:$0xff] (!%p275_p2)   ;;  %v9392_v61 = vld [vmem:[%s12755_s4 + $0x8c] ss:$16 sps:$4 sm:$0xff] (!%p275_p2)   ;;  %v9394_v62 = vld [vmem:[%s12755_s4 + $0x80] ss:$16 sps:$4 sm:$0xff] (!%p275_p2)  }
   0xc   : > { %697 = vmatprep.subr.bf16.mxu0 (!%p275_p2), %v9378_v52  ;;  %770 = vmatprep.subr.bf16.mxu1 (!%p275_p2), %v9380_v53  ;;  %v9395_v63 = vld [vmem:[%s12755_s4 + $0x88] ss:$16 sps:$4 sm:$0xff] (!%p275_p2)   ;;  %v9402_v12 = vld [vmem:[%s12755_s4 + $0xc4] ss:$16 sps:$4 sm:$0xff] (!%p275_p2)   ;;  %v9404_v13 = vld [vmem:[%s12755_s4 + $0xcc] ss:$16 sps:$4 sm:$0xff] (!%p275_p2)  }
   0xd   : > { %s12761_s29 = smov (!%p314_p3, %s7420_s29), 15  ;;  %v9406_v14 = vld [vmem:[%s12755_s4 + $0xc0] ss:$16 sps:$4 sm:$0xff]   ;;  %v9407_v15 = vld [vmem:[%s12755_s4 + $0xc8] ss:$16 sps:$4 sm:$0xff]  }
   0xe   : > { %s7421_s30 = sshll.u32 %s12761_s29, 2  ;;  %v9408_v16 = vld [vmem:[%s12755_s4 + $0xe4] ss:$16 sps:$4 sm:$0xff]   ;;  %v9410_v17 = vld [vmem:[%s12755_s4 + $0xec] ss:$16 sps:$4 sm:$0xff]   ;;  %s7423_s15 = sshll.u32 %s12761_s29, 3 }
   0xf   : > { %s317_s11 = scalar_lea.vmem %s12751_s0, %s7421_s30  ;;  %698 = vmatpush1.bf16.msra.mxu0 %v9382_v54  ;;  %771 = vmatpush1.bf16.msra.mxu1 %v9383_v55  ;;  %v10297_v53 = vld [vmem:[%s12752_s1] ss:$0 sm:$0xff]  ;;  %s10449_s18 = scalar_lea.vmem %s12754_s3, %s7423_s15 }
  0x10   : > { %v8653_v0 = vld [vmem:[%s317_s11] sm:$0xff]   ;;  %v8688_v1 = vld [vmem:[%s317_s11 + $0x8] sm:$0xff]   ;;  %v8689_v4 = vld [vmem:[%s317_s11 + $0x10] sm:$0xff]   ;;  %699 = vmatprep.subr.bf16.mxu0 %v9384_v56  ;;  %772 = vmatprep.subr.bf16.mxu1 %v9386_v57  ;;  %s12731_s19 = scalar_lea.vmem %s12759_s8, %s7421_s30 }
  0x11   : > { %v10123_v2 = vunpack.c.l.bf16 %v8653_v0  ;;  %v10125_v3 = vunpack.c.l.bf16 %v8688_v1  ;;  %v10129_v5 = vunpack.c.h.bf16 %v8653_v0  ;;  %v10131_v6 = vunpack.c.h.bf16 %v8688_v1  ;;  %v8690_v7 = vld [vmem:[%s317_s11 + $0x18] sm:$0xff]   ;;  %v9396_v0 = vld [vmem:[%s12755_s4 + $0xa4] ss:$16 sps:$4 sm:$0xff]  }
  0x12   : > { %v10135_v8 = vunpack.c.l.bf16 %v8689_v4  ;;  %v10137_v9 = vunpack.c.h.bf16 %v8689_v4  ;;  %v10141_v10 = vunpack.c.l.bf16 %v8690_v7  ;;  %v10143_v11 = vunpack.c.h.bf16 %v8690_v7  ;;  %v9398_v1 = vld [vmem:[%s12755_s4 + $0xac] ss:$16 sps:$4 sm:$0xff]   ;;  %v9400_v4 = vld [vmem:[%s12755_s4 + $0xa0] ss:$16 sps:$4 sm:$0xff]   ;;  %v9401_v7 = vld [vmem:[%s12755_s4 + $0xa8] ss:$16 sps:$4 sm:$0xff]  }
  0x13   : > { %350 = vadd.xlane.f32.xlu0 %v10123_v2  ;;  %354 = vadd.xlane.f32.xlu1 %v10125_v3 }
  0x14   : > { %700 = vmatpush1.bf16.msra.mxu0 %v9388_v58  ;;  %773 = vmatpush1.bf16.msra.mxu1 %v9389_v59 }
  0x15   : > { %701 = vmatprep.subr.bf16.mxu0 %v9390_v60  ;;  %774 = vmatprep.subr.bf16.mxu1 %v9392_v61 }
  0x17   : > { %352 = vadd.xlane.f32.xlu0 %v10129_v5  ;;  %356 = vadd.xlane.f32.xlu1 %v10131_v6 }
  0x18   : > { %702 = vmatpush1.bf16.msra.mxu0 %v9394_v62  ;;  %775 = vmatpush1.bf16.msra.mxu1 %v9395_v63 }
  0x19   : > { %703 = vmatprep.subr.bf16.mxu0 %v9396_v0  ;;  %776 = vmatprep.subr.bf16.mxu1 %v9398_v1 }
  0x1b   : > { %358 = vadd.xlane.f32.xlu0 %v10135_v8  ;;  %360 = vadd.xlane.f32.xlu1 %v10137_v9 }
  0x1c   : > { %704 = vmatpush1.bf16.msra.mxu0 %v9400_v4  ;;  %777 = vmatpush1.bf16.msra.mxu1 %v9401_v7 }
  0x1d   : > { %705 = vmatprep.subr.bf16.mxu0 %v9402_v12  ;;  %778 = vmatprep.subr.bf16.mxu1 %v9404_v13  ;;  %v9415_v13 = vld [vmem:[%s12757_s6] sm:$0xff]  }
  0x1f   : > { %362 = vadd.xlane.f32.xlu0 %v10141_v10  ;;  %364 = vadd.xlane.f32.xlu1 %v10143_v11 }
  0x20   : > { %706 = vmatpush1.bf16.msra.mxu0 %v9406_v14  ;;  %779 = vmatpush1.bf16.msra.mxu1 %v9407_v15  ;;  %v9417_v14 = vld [vmem:[%s12757_s6 + $0x80] sm:$0xff]  }
  0x21   : > { %707 = vmatprep.subr.bf16.mxu0 %v9408_v16  ;;  %780 = vmatprep.subr.bf16.mxu1 %v9410_v17 }
  0xa0   : > { %v351_v18 = vpop.xlane.xlu0 %350  ;;  %v355_v19 = vpop.xlane.xlu1 %354 }
  0xa1   : > { %v367_v20 = vmul.f32 0.0078125, %v351_v18  ;;  %v369_v21 = vmul.f32 0.0078125, %v355_v19  ;;  %v9412_v18 = vld [vmem:[%s12755_s4 + $0xe0] ss:$16 sps:$4 sm:$0xff]   ;;  %v9413_v19 = vld [vmem:[%s12755_s4 + $0xe8] ss:$16 sps:$4 sm:$0xff]  }
  0xa2   : > { %708 = vmatpush1.bf16.msra.mxu0 %v9412_v18  ;;  %781 = vmatpush1.bf16.msra.mxu1 %v9413_v19 }
  0xa3   : > { %v10166_v22 = vsub.f32 %v10123_v2, %v367_v20  ;;  %v10169_v23 = vsub.f32 %v10125_v3, %v369_v21  ;;  %v10054_v20 = vmov 0   ;;  %v9414_v21 = vld [vmem:[%s12757_s6 + $0x40] sm:$0xff]  }
  0xa4   : > { %v353_v24 = vpop.xlane.xlu0 %352  ;;  %v357_v25 = vpop.xlane.xlu1 %356  ;;  %725 = vmatprep.mubr.bf16.mxu0 %v10054_v20  ;;  %798 = vmatprep.mubr.bf16.mxu1 %v10054_v20 }
  0xa5   : > { %v368_v26 = vmul.f32 0.0078125, %v353_v24  ;;  %v383_v27 = vmul.f32 %v10166_v22, %v10166_v22  ;;  %v370_v28 = vmul.f32 0.0078125, %v357_v25  ;;  %v385_v31 = vmul.f32 %v10169_v23, %v10169_v23  ;;  %9350 = vset.pattern.permute.xlu0 %v10054_v20  ;;  %9351 = vset.pattern.permute.xlu1 %v10054_v20  ;;  %v9416_v24 = vld [vmem:[%s12757_s6 + $0xc0] sm:$0xff]  }
  0xa6   : > { %8694 = vmatprep.subr.bf16.mxu0 %v9414_v21  ;;  %8734 = vmatprep.subr.bf16.mxu1 %v9416_v24  ;;  %v9419_v21 = vld [vmem:[%s12757_s6 + $0x8] sm:$0xff]  }
  0xa7   : > { %v10174_v29 = vsub.f32 %v10129_v5, %v368_v26  ;;  %391 = vadd.xlane.f32.xlu0 %v383_v27  ;;  %v10177_v30 = vsub.f32 %v10131_v6, %v370_v28  ;;  %v9421_v24 = vld [vmem:[%s12757_s6 + $0x88] sm:$0xff]  }
  0xa8   : > { %v359_v32 = vpop.xlane.xlu0 %358  ;;  %v361_v33 = vpop.xlane.xlu1 %360 }
  0xa9   : > { %v371_v34 = vmul.f32 0.0078125, %v359_v32  ;;  %v384_v35 = vmul.f32 %v10174_v29, %v10174_v29  ;;  %v372_v36 = vmul.f32 0.0078125, %v361_v33  ;;  %v386_v39 = vmul.f32 %v10177_v30, %v10177_v30 }
  0xab   : > { %v10184_v37 = vsub.f32 %v10135_v8, %v371_v34  ;;  %395 = vadd.xlane.f32.xlu0 %v385_v31  ;;  %393 = vadd.xlane.f32.xlu1 %v384_v35  ;;  %v10187_v38 = vsub.f32 %v10137_v9, %v372_v36 }
  0xac   : > { %v363_v40 = vpop.xlane.xlu0 %362  ;;  %v365_v41 = vpop.xlane.xlu1 %364 }
  0xad   : > { %v373_v42 = vmul.f32 0.0078125, %v363_v40  ;;  %v387_v43 = vmul.f32 %v10184_v37, %v10184_v37  ;;  %v374_v44 = vmul.f32 0.0078125, %v365_v41  ;;  %v388_v47 = vmul.f32 %v10187_v38, %v10187_v38 }
  0xaf   : > { %v10194_v45 = vsub.f32 %v10141_v10, %v373_v42  ;;  %397 = vadd.xlane.f32.xlu1 %v386_v39  ;;  %399 = vadd.xlane.f32.xlu0 %v387_v43  ;;  %v10197_v46 = vsub.f32 %v10143_v11, %v374_v44 }
  0xb1   : > { %v389_v48 = vmul.f32 %v10194_v45, %v10194_v45  ;;  %v390_v49 = vmul.f32 %v10197_v46, %v10197_v46 }
  0xb3   : > { %401 = vadd.xlane.f32.xlu1 %v388_v47  ;;  %403 = vadd.xlane.f32.xlu0 %v389_v48 }
  0xb7   : > { %405 = vadd.xlane.f32.xlu1 %v390_v49 }
 0x134   : > { %v392_v25 = vpop.xlane.xlu0 %391 }
 0x135   : > { %v407_v26 = vmul.f32 0.0078125, %v392_v25  ;;  %v9422_v25 = vld [vmem:[%s12757_s6 + $0x50] sm:$0xff]  }
 0x137   : > { %v415_v27 = vadd.f32 1e-05, %v407_v26 }
 0x138   : > { %v394_v28 = vpop.xlane.xlu1 %393  ;;  %v396_v31 = vpop.xlane.xlu0 %395 }
 0x139   : > { %10006 = vrsqrt.f32 %v415_v27  ;;  %v408_v32 = vmul.f32 0.0078125, %v394_v28  ;;  %v409_v33 = vmul.f32 0.0078125, %v396_v31 }
 0x13b   : > { %v416_v34 = vadd.f32 1e-05, %v408_v32  ;;  %v417_v35 = vadd.f32 1e-05, %v409_v33  ;;  %v9423_v32 = vld [vmem:[%s12757_s6 + $0x10] sm:$0xff]  }
 0x13c   : > { %v398_v36 = vpop.xlane.xlu1 %397  ;;  %v400_v39 = vpop.xlane.xlu0 %399  ;;  %v9425_v33 = vld [vmem:[%s12757_s6 + $0x90] sm:$0xff]  }
 0x13d   : > { %10008 = vrsqrt.f32 %v416_v34  ;;  %v410_v40 = vmul.f32 0.0078125, %v398_v36  ;;  %v411_v42 = vmul.f32 0.0078125, %v400_v39 }
 0x13e   : > { %10010 = vrsqrt.f32 %v417_v35  ;;  %v9428_v35 = vld [vmem:[%s12757_s6 + $0xd8] sm:$0xff]  }
 0x13f   : > { %v418_v41 = vadd.f32 1e-05, %v410_v40  ;;  %v419_v48 = vadd.f32 1e-05, %v411_v42  ;;  %v9427_v42 = vld [vmem:[%s12757_s6 + $0x18] sm:$0xff]  }
 0x140   : > { %v402_v43 = vpop.xlane.xlu1 %401  ;;  %v404_v51 = vpop.xlane.xlu0 %403 }
 0x141   : > { %10012 = vrsqrt.f32 %v418_v41  ;;  %v412_v44 = vmul.f32 0.0078125, %v402_v43  ;;  %v413_v56 = vmul.f32 0.0078125, %v404_v51  ;;  %v9429_v43 = vld [vmem:[%s12757_s6 + $0x98] sm:$0xff]   ;;  %v9431_v51 = vld [vmem:[%s12757_s6 + $0x20] sm:$0xff]  }
 0x143   : > { %v10007_v47 = vpop.eup %10006  ;;  %v420_v49 = vadd.f32 1e-05, %v412_v44  ;;  %v421_v63 = vadd.f32 1e-05, %v413_v56  ;;  %v9430_v44 = vld [vmem:[%s12757_s6 + $0x60] sm:$0xff]  }
 0x144   : > { %v431_v50 = vmul.f32 %v10007_v47, %v10166_v22  ;;  %v406_v52 = vpop.xlane.xlu1 %405  ;;  %v10304_v22 = vld [vmem:[%s12753_s2] ss:$0 sm:$0xff] }
 0x145   : > { %10014 = vrsqrt.f32 %v420_v49  ;;  %v414_v54 = vmul.f32 0.0078125, %v406_v52  ;;  %v9433_v52 = vld [vmem:[%s12757_s6 + $0xa0] sm:$0xff]  }
 0x146   : > { %10016 = vrsqrt.f32 %v419_v48  ;;  %v445_v57 = vmul.f32 %v10297_v53, %v431_v50 }
 0x147   : > { %v10009_v55 = vpop.eup %10008  ;;  %v422_v60 = vadd.f32 1e-05, %v414_v54  ;;  %v9436_v54 = vld [vmem:[%s12757_s6 + $0xe8] sm:$0xff]  }
 0x148   : > { %v432_v58 = vmul.f32 %v10009_v55, %v10174_v29  ;;  %v10011_v59 = vpop.eup %10010  ;;  %v459_v0 = vadd.f32 %v10304_v22, %v445_v57  ;;  %v9435_v57 = vld [vmem:[%s12757_s6 + $0x28] sm:$0xff]  }
 0x149   : > { %v433_v4 = vmul.f32 %v10011_v59, %v10169_v23  ;;  %10018 = vrsqrt.f32 %v422_v60  ;;  %v9418_v23 = vld [vmem:[%s12757_s6 + $0x48] sm:$0xff]   ;;  %v9438_v60 = vld [vmem:[%s12757_s6 + $0x70] sm:$0xff]  }
 0x14a   : > { %v446_v61 = vmul.f32 %v10297_v53, %v432_v58  ;;  %10020 = vrsqrt.f32 %v421_v63  ;;  %v9437_v59 = vld [vmem:[%s12757_s6 + $0xa8] sm:$0xff]   ;;  %v9442_v63 = vld [vmem:[%s12757_s6 + $0x78] sm:$0xff]  }
 0x14b   : > { %v10013_v62 = vpop.eup %10012  ;;  %v447_v16 = vmul.f32 %v10297_v53, %v433_v4  ;;  %v9445_v4 = vld [vmem:[%s12757_s6 + $0xb8] sm:$0xff]  }
 0x14c   : > { %v460_v1 = vadd.f32 %v10304_v22, %v446_v61  ;;  %v434_v7 = vmul.f32 %v10013_v62, %v10177_v30  ;;  %v9420_v30 = vld [vmem:[%s12757_s6 + $0xc8] sm:$0xff]   ;;  %v9439_v61 = vld [vmem:[%s12757_s6 + $0x30] sm:$0xff]  }
 0x14d   : > { %v461_v26 = vadd.f32 %v10304_v22, %v447_v16  ;;  %v9441_v62 = vld [vmem:[%s12757_s6 + $0xb0] sm:$0xff]   ;;  %v10472_v16 = vld [vmem:[%s10449_s18 + $0x28] sm:$0xff] }
 0x14e   : > { %v10311_v29 = vpack.c.bf16 %v460_v1, %v459_v0  ;;  %v448_v12 = vmul.f32 %v10297_v53, %v434_v7  ;;  %v9444_v0 = vld [vmem:[%s12757_s6 + $0xf8] sm:$0xff]   ;;  %v9448_v7 = vld [vmem:[%s12755_s4 + $0x104] ss:$16 sps:$4 sm:$0xff]  }
 0x14f   : > { %v10015_v15 = vpop.eup %10014  ;;  %v9443_v1 = vld [vmem:[%s12757_s6 + $0x38] sm:$0xff]  }
 0x150   : > { %726 = vmatmul.mubr.bf16.vlgmr.msra.gmra.mrb[0].mxu0 %v10311_v29  ;;  %799 = vmatmul.mubr.bf16.vlgmr.msra.gmra.mrb[0].mxu1 %v10311_v29  ;;  %v10017_v17 = vpop.eup %10016  ;;  %v462_v18 = vadd.f32 %v10304_v22, %v448_v12  ;;  %v436_v19 = vmul.f32 %v10015_v15, %v10187_v38  ;;  %v9424_v38 = vld [vmem:[%s12757_s6 + $0xd0] sm:$0xff]   ;;  %v9451_v12 = vld [vmem:[%s12755_s4 + $0x10c] ss:$16 sps:$4 sm:$0xff]  }
 0x151   : > { %735 = vmatprep.mubr.bf16.mxu0 %v10054_v20  ;;  %808 = vmatprep.mubr.bf16.mxu1 %v10054_v20  ;;  %v435_v27 = vmul.f32 %v10017_v17, %v10184_v37  ;;  %v9426_v37 = vld [vmem:[%s12757_s6 + $0x58] sm:$0xff]   ;;  %v10460_v15 = vld [vmem:[%s10449_s18 + $0x10] sm:$0xff] }
 0x152   : > { %8695 = vmatpush3.bf16.msra.mxu0 %v9415_v13  ;;  %8735 = vmatpush3.bf16.msra.mxu1 %v9417_v14  ;;  %v10347_v28 = vpack.c.bf16 %v462_v18, %v461_v26  ;;  %v450_v31 = vmul.f32 %v10297_v53, %v436_v19  ;;  %v10452_v13 = vld [vmem:[%s10449_s18] sm:$0xff]  ;;  %v10455_v14 = vld [vmem:[%s10449_s18 + $0x8] sm:$0xff]  ;;  %v10476_v17 = vld [vmem:[%s10449_s18 + $0x30] sm:$0xff]  ;;  %v513_v19 = vlaneseq }
 0x153   : > { %8696 = vmatprep.subr.bf16.mxu0 %v9418_v23  ;;  %8736 = vmatprep.subr.bf16.mxu1 %v9420_v30  ;;  %v10019_v34 = vpop.eup %10018  ;;  %v449_v36 = vmul.f32 %v10297_v53, %v435_v27  ;;  %v10464_v23 = vld [vmem:[%s10449_s18 + $0x18] sm:$0xff]  ;;  %v10468_v30 = vld [vmem:[%s10449_s18 + $0x20] sm:$0xff] }
 0x154   : > { %v10021_v39 = vpop.eup %10020  ;;  %v464_v40 = vadd.f32 %v10304_v22, %v450_v31  ;;  %v438_v41 = vmul.f32 %v10019_v34, %v10197_v46  ;;  %v9432_v46 = vld [vmem:[%s12757_s6 + $0xe0] sm:$0xff]   ;;  %1282 = vperm.xlu0 %9350, %v10452_v13   ;;  %1287 = vperm.xlu1 %9351, %v10455_v14   ;;  %v10480_v18 = vld [vmem:[%s10449_s18 + $0x38] sm:$0xff] }
 0x155   : > { %v463_v47 = vadd.f32 %v10304_v22, %v449_v36  ;;  %v437_v48 = vmul.f32 %v10021_v39, %v10194_v45  ;;  %v9434_v45 = vld [vmem:[%s12757_s6 + $0x68] sm:$0xff]  }
 0x156   : > { %8697 = vmatpush3.bf16.msra.mxu0 %v9419_v21  ;;  %8737 = vmatpush3.bf16.msra.mxu1 %v9421_v24  ;;  %v452_v50 = vmul.f32 %v10297_v53, %v438_v41  ;;  %v514_v21 = vshrl.u32 %v513_v19, 7 }
 0x157   : > { %8698 = vmatprep.subr.bf16.mxu0 %v9422_v25  ;;  %8738 = vmatprep.subr.bf16.mxu1 %v9424_v38  ;;  %v10383_v49 = vpack.c.bf16 %v464_v40, %v463_v47  ;;  %v451_v55 = vmul.f32 %v10297_v53, %v437_v48  ;;  %v511_v38 = vld [vmem:[%s12756_s5] sm:$0xf] }
 0x158   : > { %736 = vmatmul.mubr.bf16.gmra.mrb[4].mxu0 %v10347_v28  ;;  %809 = vmatmul.mubr.bf16.gmra.mrb[4].mxu1 %v10347_v28  ;;  %v466_v56 = vadd.f32 %v10304_v22, %v452_v50  ;;  %v10483_v24 = vsub.s32 0, %v514_v21  ;;  %v10485_v25 = vsub.s32 2, %v514_v21  ;;  %v10490_v26 = vsub.s32 1, %v514_v21 }
 0x159   : > { %745 = vmatprep.mubr.bf16.mxu0 %v10054_v20  ;;  %818 = vmatprep.mubr.bf16.mxu1 %v10054_v20  ;;  %v465_v53 = vadd.f32 %v10304_v22, %v451_v55  ;;  %v9440_v22 = vld [vmem:[%s12757_s6 + $0xf0] sm:$0xff]   ;;  %v10492_v27 = vsub.s32 3, %v514_v21 }
 0x15a   : > { %8699 = vmatpush3.bf16.msra.mxu0 %v9423_v32  ;;  %8739 = vmatpush3.bf16.msra.mxu1 %v9425_v33  ;;  %v10495_v31 = vrot.slane %v511_v38, %v10483_v24  ;;  %v10498_v32 = vrot.slane %v511_v38, %v10485_v25  ;;  %v10501_v33 = vrot.slane %v511_v38, %v10490_v26 }
 0x15b   : > { %8700 = vmatprep.subr.bf16.mxu0 %v9426_v37  ;;  %8740 = vmatprep.subr.bf16.mxu1 %v9428_v35  ;;  %v10408_v58 = vpack.c.bf16 %v466_v56, %v465_v53  ;;  %v10504_v34 = vrot.slane %v511_v38, %v10492_v27 }
 0x15c   : > { %1292 = vperm.xlu1 %9351, %v10460_v15  }
 0x15e   : > { %8701 = vmatpush3.bf16.msra.mxu0 %v9427_v42  ;;  %8741 = vmatpush3.bf16.msra.mxu1 %v9429_v43 }
 0x15f   : > { %8702 = vmatprep.subr.bf16.mxu0 %v9430_v44  ;;  %8742 = vmatprep.subr.bf16.mxu1 %v9432_v46 }
 0x160   : > { %746 = vmatmul.mubr.bf16.gmra.mrb[8].mxu0 %v10383_v49  ;;  %819 = vmatmul.mubr.bf16.gmra.mrb[8].mxu1 %v10383_v49 }
 0x161   : > { %755 = vmatprep.mubr.bf16.mxu0 %v10054_v20  ;;  %828 = vmatprep.mubr.bf16.mxu1 %v10054_v20 }
 0x162   : > { %8703 = vmatpush3.bf16.msra.mxu0 %v9431_v51  ;;  %8743 = vmatpush3.bf16.msra.mxu1 %v9433_v52 }
 0x163   : > { %8704 = vmatprep.subr.bf16.mxu0 %v9434_v45  ;;  %8744 = vmatprep.subr.bf16.mxu1 %v9436_v54 }
 0x164   : > { %1297 = vperm.xlu1 %9351, %v10464_v23  }
 0x166   : > { %8705 = vmatpush3.bf16.msra.mxu0 %v9435_v57  ;;  %8745 = vmatpush3.bf16.msra.mxu1 %v9437_v59 }
 0x167   : > { %8706 = vmatprep.subr.bf16.mxu0 %v9438_v60  ;;  %8746 = vmatprep.subr.bf16.mxu1 %v9440_v22 }
 0x168   : > { %756 = vmatmul.mubr.bf16.gmra.mrb[12].mxu0 %v10408_v58  ;;  %829 = vmatmul.mubr.bf16.gmra.mrb[12].mxu1 %v10408_v58 }
 0x169   : > { %1302 = vperm.xlu1 %9351, %v10468_v30  }
 0x16a   : > { %8707 = vmatpush3.bf16.msra.mxu0 %v9439_v61  ;;  %8747 = vmatpush3.bf16.msra.mxu1 %v9441_v62 }
 0x16b   : > { %8708 = vmatprep.subr.bf16.mxu0 %v9442_v63  ;;  %8748 = vmatprep.subr.bf16.mxu1 %v9444_v0 }
 0x16d   : > { %1307 = vperm.xlu1 %9351, %v10472_v16  }
 0x16e   : > { %8709 = vmatpush3.bf16.msra.mxu0 %v9443_v1  ;;  %8749 = vmatpush3.bf16.msra.mxu1 %v9445_v4 }
 0x16f   : > { %1552 = vmatprep.subr.bf16.mxu0 %v9448_v7  ;;  %1625 = vmatprep.subr.bf16.mxu1 %v9451_v12  ;;  %v9446_v7 = vld [vmem:[%s12755_s4 + $0x100] ss:$16 sps:$4 sm:$0xff]   ;;  %v9449_v12 = vld [vmem:[%s12755_s4 + $0x108] ss:$16 sps:$4 sm:$0xff]  }
 0x171   : > { %1312 = vperm.xlu1 %9351, %v10476_v17  }
 0x175   : > { %1317 = vperm.xlu1 %9351, %v10480_v18  }
 0x223   : > { %v727_v37 = vpop.f32.mrb[0].mxu0  ;;  %v800_v35 = vpop.f32.mrb[0].mxu1 }
 0x224   : > { %v728_v36 = vadd.f32 %v727_v37, %v10495_v31  ;;  %v801_v39 = vadd.f32 %v800_v35, %v10498_v32  ;;  %v729_v40 = vpop.f32.mrb[1].mxu0  ;;  %v802_v41 = vpop.f32.mrb[1].mxu1  ;;  %v9454_v35 = vld [vmem:[%s12755_s4 + $0x124] ss:$16 sps:$4 sm:$0xff]  }
 0x225   : > { %v730_v42 = vadd.f32 %v729_v40, %v10501_v33  ;;  %v803_v43 = vadd.f32 %v802_v41, %v10504_v34  ;;  %v731_v44 = vpop.f32.mrb[2].mxu0  ;;  %v804_v46 = vpop.f32.mrb[2].mxu1 }
 0x226   : > { %v732_v47 = vadd.f32 %v731_v44, %v10495_v31  ;;  %v805_v48 = vadd.f32 %v804_v46, %v10498_v32  ;;  %v733_v50 = vpop.f32.mrb[3].mxu0  ;;  %v806_v51 = vpop.f32.mrb[3].mxu1  ;;  %v839_v54 = vmax.f32 %v728_v36, 0.0  ;;  %v841_v55 = vmax.f32 %v801_v39, 0.0  ;;  %v9457_v36 = vld [vmem:[%s12755_s4 + $0x12c] ss:$16 sps:$4 sm:$0xff]  }
 0x227   : > { %v734_v52 = vadd.f32 %v733_v50, %v10501_v33  ;;  %v807_v45 = vadd.f32 %v806_v51, %v10504_v34  ;;  %v840_v53 = vmax.f32 %v730_v42, 0.0  ;;  %v842_v59 = vmax.f32 %v803_v43, 0.0  ;;  %v9452_v51 = vld [vmem:[%s12755_s4 + $0x120] ss:$16 sps:$4 sm:$0xff]  }
 0x228   : > { %v843_v56 = vmax.f32 %v732_v47, 0.0  ;;  %v845_v57 = vmax.f32 %v805_v48, 0.0 }
 0x229   : > { %v844_v60 = vmax.f32 %v734_v52, 0.0  ;;  %v846_v22 = vmax.f32 %v807_v45, 0.0  ;;  %v9455_v52 = vld [vmem:[%s12755_s4 + $0x128] ss:$16 sps:$4 sm:$0xff]   ;;  %v9460_v45 = vld [vmem:[%s12755_s4 + $0x144] ss:$16 sps:$4 sm:$0xff]  }
 0x22a   : > { %v871_v61 = vpack.c.bf16 %v843_v56, %v839_v54  ;;  %v873_v62 = vpack.c.bf16 %v845_v57, %v841_v55 }
 0x22b   : > { %v872_v63 = vpack.c.bf16 %v844_v60, %v840_v53  ;;  %v874_v0 = vpack.c.bf16 %v846_v22, %v842_v59  ;;  %v737_v1 = vpop.f32.mrb[4].mxu0  ;;  %v810_v4 = vpop.f32.mrb[4].mxu1  ;;  %v9463_v53 = vld [vmem:[%s12755_s4 + $0x14c] ss:$16 sps:$4 sm:$0xff]  }
 0x22c   : > { %v738_v19 = vadd.f32 %v737_v1, %v10495_v31  ;;  %v811_v21 = vadd.f32 %v810_v4, %v10498_v32  ;;  %v739_v38 = vpop.f32.mrb[5].mxu0  ;;  %v812_v37 = vpop.f32.mrb[5].mxu1 }
 0x22d   : > { %v740_v39 = vadd.f32 %v739_v38, %v10501_v33  ;;  %v813_v40 = vadd.f32 %v812_v37, %v10504_v34  ;;  %v741_v41 = vpop.f32.mrb[6].mxu0  ;;  %v814_v42 = vpop.f32.mrb[6].mxu1  ;;  %1182 = vmatprep.mubr.bf16.mxu0 %v872_v63  ;;  %1247 = vmatprep.mubr.bf16.mxu1 %v874_v0 }
 0x22e   : > { %v742_v43 = vadd.f32 %v741_v41, %v10495_v31  ;;  %v815_v44 = vadd.f32 %v814_v42, %v10498_v32  ;;  %v743_v46 = vpop.f32.mrb[7].mxu0  ;;  %v816_v47 = vpop.f32.mrb[7].mxu1  ;;  %1183 = vmatmul.mubr.bf16.vlgmr.msra.gmra.mrb[16].mxu0 %v871_v61  ;;  %1248 = vmatmul.mubr.bf16.vlgmr.msra.gmra.mrb[16].mxu1 %v873_v62  ;;  %v847_v54 = vmax.f32 %v738_v19, 0.0  ;;  %v849_v55 = vmax.f32 %v811_v21, 0.0  ;;  %v9461_v19 = vld [vmem:[%s12755_s4 + $0x148] ss:$16 sps:$4 sm:$0xff]  }
 0x22f   : > { %v744_v48 = vadd.f32 %v743_v46, %v10501_v33  ;;  %v817_v50 = vadd.f32 %v816_v47, %v10504_v34  ;;  %1553 = vmatpush1.bf16.msra.mxu0 %v9446_v7  ;;  %1626 = vmatpush1.bf16.msra.mxu1 %v9449_v12  ;;  %v848_v59 = vmax.f32 %v740_v39, 0.0  ;;  %v850_v60 = vmax.f32 %v813_v40, 0.0  ;;  %v9458_v12 = vld [vmem:[%s12755_s4 + $0x140] ss:$16 sps:$4 sm:$0xff]   ;;  %v9469_v39 = vld [vmem:[%s12755_s4 + $0x16c] ss:$16 sps:$4 sm:$0xff]  }
 0x230   : > { %v851_v56 = vmax.f32 %v742_v43, 0.0  ;;  %v853_v57 = vmax.f32 %v815_v44, 0.0  ;;  %1554 = vmatprep.subr.bf16.mxu0 %v9454_v35  ;;  %1627 = vmatprep.subr.bf16.mxu1 %v9457_v36  ;;  %v9466_v36 = vld [vmem:[%s12755_s4 + $0x164] ss:$16 sps:$4 sm:$0xff]  }
 0x231   : > { %v852_v22 = vmax.f32 %v744_v48, 0.0  ;;  %v854_v61 = vmax.f32 %v817_v50, 0.0 }
 0x232   : > { %v875_v62 = vpack.c.bf16 %v851_v56, %v847_v54  ;;  %v877_v63 = vpack.c.bf16 %v853_v57, %v849_v55  ;;  %v9472_v54 = vld [vmem:[%s12755_s4 + $0x184] ss:$16 sps:$4 sm:$0xff]  }
 0x233   : > { %v876_v0 = vpack.c.bf16 %v852_v22, %v848_v59  ;;  %v878_v1 = vpack.c.bf16 %v854_v61, %v850_v60  ;;  %1555 = vmatpush1.bf16.msra.mxu0 %v9452_v51  ;;  %v747_v4 = vpop.f32.mrb[8].mxu0  ;;  %v820_v7 = vpop.f32.mrb[8].mxu1  ;;  %1628 = vmatpush1.bf16.msra.mxu1 %v9455_v52  ;;  %v9464_v52 = vld [vmem:[%s12755_s4 + $0x160] ss:$16 sps:$4 sm:$0xff]   ;;  %v9475_v59 = vld [vmem:[%s12755_s4 + $0x18c] ss:$16 sps:$4 sm:$0xff]  }
 0x234   : > { %v748_v21 = vadd.f32 %v747_v4, %v10495_v31  ;;  %v821_v38 = vadd.f32 %v820_v7, %v10498_v32  ;;  %v749_v37 = vpop.f32.mrb[9].mxu0  ;;  %v822_v35 = vpop.f32.mrb[9].mxu1  ;;  %1556 = vmatprep.subr.bf16.mxu0 %v9460_v45  ;;  %1629 = vmatprep.subr.bf16.mxu1 %v9463_v53  ;;  %v9467_v45 = vld [vmem:[%s12755_s4 + $0x168] ss:$16 sps:$4 sm:$0xff]  }
 0x235   : > { %v750_v40 = vadd.f32 %v749_v37, %v10501_v33  ;;  %v823_v41 = vadd.f32 %v822_v35, %v10504_v34  ;;  %v751_v42 = vpop.f32.mrb[10].mxu0  ;;  %v824_v43 = vpop.f32.mrb[10].mxu1  ;;  %1190 = vmatprep.mubr.bf16.mxu0 %v876_v0  ;;  %1255 = vmatprep.mubr.bf16.mxu1 %v878_v1 }
 0x236   : > { %v752_v44 = vadd.f32 %v751_v42, %v10495_v31  ;;  %v825_v46 = vadd.f32 %v824_v43, %v10498_v32  ;;  %v753_v47 = vpop.f32.mrb[11].mxu0  ;;  %v826_v48 = vpop.f32.mrb[11].mxu1  ;;  %1191 = vmatmul.mubr.bf16.gmra.mrb[20].mxu0 %v875_v62  ;;  %1256 = vmatmul.mubr.bf16.gmra.mrb[20].mxu1 %v877_v63  ;;  %v855_v55 = vmax.f32 %v748_v21, 0.0  ;;  %v857_v56 = vmax.f32 %v821_v38, 0.0  ;;  %v9473_v21 = vld [vmem:[%s12755_s4 + $0x188] ss:$16 sps:$4 sm:$0xff]  }
 0x237   : > { %v754_v50 = vadd.f32 %v753_v47, %v10501_v33  ;;  %v827_v51 = vadd.f32 %v826_v48, %v10504_v34  ;;  %1557 = vmatpush1.bf16.msra.mxu0 %v9458_v12  ;;  %1630 = vmatpush1.bf16.msra.mxu1 %v9461_v19  ;;  %v856_v60 = vmax.f32 %v750_v40, 0.0  ;;  %v858_v22 = vmax.f32 %v823_v41, 0.0  ;;  %v9470_v19 = vld [vmem:[%s12755_s4 + $0x180] ss:$16 sps:$4 sm:$0xff]   ;;  %v9481_v40 = vld [vmem:[%s12755_s4 + $0x1ac] ss:$16 sps:$4 sm:$0xff]  }
 0x238   : > { %v859_v57 = vmax.f32 %v752_v44, 0.0  ;;  %v861_v53 = vmax.f32 %v825_v46, 0.0  ;;  %1558 = vmatprep.subr.bf16.mxu0 %v9466_v36  ;;  %1631 = vmatprep.subr.bf16.mxu1 %v9469_v39  ;;  %v9478_v39 = vld [vmem:[%s12755_s4 + $0x1a4] ss:$16 sps:$4 sm:$0xff]  }
 0x239   : > { %v860_v61 = vmax.f32 %v754_v50, 0.0  ;;  %v862_v62 = vmax.f32 %v827_v51, 0.0 }
 0x23a   : > { %v879_v63 = vpack.c.bf16 %v859_v57, %v855_v55  ;;  %v881_v0 = vpack.c.bf16 %v861_v53, %v857_v56 }
 0x23b   : > { %v880_v1 = vpack.c.bf16 %v860_v61, %v856_v60  ;;  %v882_v4 = vpack.c.bf16 %v862_v62, %v858_v22  ;;  %1559 = vmatpush1.bf16.msra.mxu0 %v9464_v52  ;;  %v757_v7 = vpop.f32.mrb[12].mxu0  ;;  %v830_v12 = vpop.f32.mrb[12].mxu1  ;;  %1632 = vmatpush1.bf16.msra.mxu1 %v9467_v45  ;;  %v9476_v45 = vld [vmem:[%s12755_s4 + $0x1a0] ss:$16 sps:$4 sm:$0xff]  }
 0x23c   : > { %v758_v38 = vadd.f32 %v757_v7, %v10495_v31  ;;  %v831_v37 = vadd.f32 %v830_v12, %v10498_v32  ;;  %v759_v35 = vpop.f32.mrb[13].mxu0  ;;  %v832_v36 = vpop.f32.mrb[13].mxu1  ;;  %1560 = vmatprep.subr.bf16.mxu0 %v9472_v54  ;;  %1633 = vmatprep.subr.bf16.mxu1 %v9475_v59  ;;  %v9493_v7 = vld [vmem:[%s12755_s4 + $0x1ec] ss:$16 sps:$4 sm:$0xff]   ;;  %v9488_v12 = vld [vmem:[%s12755_s4 + $0x1e0] ss:$16 sps:$4 sm:$0xff]  }
 0x23d   : > { %v760_v41 = vadd.f32 %v759_v35, %v10501_v33  ;;  %v833_v42 = vadd.f32 %v832_v36, %v10504_v34  ;;  %v761_v43 = vpop.f32.mrb[14].mxu0  ;;  %v834_v44 = vpop.f32.mrb[14].mxu1  ;;  %1198 = vmatprep.mubr.bf16.mxu0 %v880_v1  ;;  %1263 = vmatprep.mubr.bf16.mxu1 %v882_v4  ;;  %v9485_v1 = vld [vmem:[%s12755_s4 + $0x1c8] ss:$16 sps:$4 sm:$0xff]   ;;  %v9490_v4 = vld [vmem:[%s12755_s4 + $0x1e4] ss:$16 sps:$4 sm:$0xff]  }
 0x23e   : > { %v762_v46 = vadd.f32 %v761_v43, %v10495_v31  ;;  %v835_v47 = vadd.f32 %v834_v44, %v10498_v32  ;;  %v763_v48 = vpop.f32.mrb[15].mxu0  ;;  %v836_v50 = vpop.f32.mrb[15].mxu1  ;;  %1199 = vmatmul.mubr.bf16.gmra.mrb[24].mxu0 %v879_v63  ;;  %1264 = vmatmul.mubr.bf16.gmra.mrb[24].mxu1 %v881_v0  ;;  %v9479_v31 = vld [vmem:[%s12755_s4 + $0x1a8] ss:$16 sps:$4 sm:$0xff]   ;;  %v9484_v32 = vld [vmem:[%s12755_s4 + $0x1c4] ss:$16 sps:$4 sm:$0xff]  }
 0x23f   : > { %v764_v51 = vadd.f32 %v763_v48, %v10501_v33  ;;  %v837_v52 = vadd.f32 %v836_v50, %v10504_v34  ;;  %1561 = vmatpush1.bf16.msra.mxu0 %v9470_v19  ;;  %1634 = vmatpush1.bf16.msra.mxu1 %v9473_v21  ;;  %v863_v54 = vmax.f32 %v758_v38, 0.0  ;;  %v865_v55 = vmax.f32 %v831_v37, 0.0  ;;  %v9487_v34 = vld [vmem:[%s12755_s4 + $0x1cc] ss:$16 sps:$4 sm:$0xff]   ;;  %v9482_v0 = vld [vmem:[%s12755_s4 + $0x1c0] ss:$16 sps:$4 sm:$0xff]  }
 0x240   : > { %v867_v56 = vmax.f32 %v762_v46, 0.0  ;;  %v869_v33 = vmax.f32 %v835_v47, 0.0  ;;  %1562 = vmatprep.subr.bf16.mxu0 %v9478_v39  ;;  %1635 = vmatprep.subr.bf16.mxu1 %v9481_v40  ;;  %v864_v57 = vmax.f32 %v760_v41, 0.0  ;;  %v866_v53 = vmax.f32 %v833_v42, 0.0  ;;  %v9491_v19 = vld [vmem:[%s12755_s4 + $0x1e8] ss:$16 sps:$4 sm:$0xff]  }
 0x241   : > { %v868_v59 = vmax.f32 %v764_v51, 0.0  ;;  %v870_v60 = vmax.f32 %v837_v52, 0.0  ;;  %v9494_v21 = vld [vmem:[%s12757_s6 + $0x140] sm:$0xff]   ;;  %v9498_v36 = vld [vmem:[%s12757_s6 + $0x148] sm:$0xff]   ;;  %v9502_v42 = vld [vmem:[%s12757_s6 + $0x150] sm:$0xff]  }
 0x242   : > { %v883_v22 = vpack.c.bf16 %v867_v56, %v863_v54  ;;  %v885_v61 = vpack.c.bf16 %v869_v33, %v865_v55  ;;  %v9496_v38 = vld [vmem:[%s12757_s6 + $0x1c0] sm:$0xff]   ;;  %v9500_v39 = vld [vmem:[%s12757_s6 + $0x1c8] sm:$0xff]   ;;  %v9504_v43 = vld [vmem:[%s12757_s6 + $0x1d0] sm:$0xff]  }
 0x243   : > { %v884_v62 = vpack.c.bf16 %v868_v59, %v864_v57  ;;  %v886_v63 = vpack.c.bf16 %v870_v60, %v866_v53  ;;  %1563 = vmatpush1.bf16.msra.mxu0 %v9476_v45  ;;  %1636 = vmatpush1.bf16.msra.mxu1 %v9479_v31  ;;  %v9495_v37 = vld [vmem:[%s12757_s6 + $0x100] sm:$0xff]   ;;  %v9499_v40 = vld [vmem:[%s12757_s6 + $0x108] sm:$0xff]   ;;  %v9503_v44 = vld [vmem:[%s12757_s6 + $0x110] sm:$0xff]  }
 0x244   : > { %1564 = vmatprep.subr.bf16.mxu0 %v9484_v32  ;;  %1637 = vmatprep.subr.bf16.mxu1 %v9487_v34  ;;  %v9497_v35 = vld [vmem:[%s12757_s6 + $0x180] sm:$0xff]   ;;  %v9501_v41 = vld [vmem:[%s12757_s6 + $0x188] sm:$0xff]   ;;  %v9505_v46 = vld [vmem:[%s12757_s6 + $0x190] sm:$0xff]  }
 0x245   : > { %1206 = vmatprep.mubr.bf16.mxu0 %v884_v62  ;;  %1271 = vmatprep.mubr.bf16.mxu1 %v886_v63  ;;  %v9506_v47 = vld [vmem:[%s12757_s6 + $0x158] sm:$0xff]   ;;  %v9510_v52 = vld [vmem:[%s12757_s6 + $0x160] sm:$0xff]   ;;  %v9514_v54 = vld [vmem:[%s12757_s6 + $0x168] sm:$0xff]  }
 0x246   : > { %1207 = vmatmul.mubr.bf16.gmra.mrb[28].mxu0 %v883_v22  ;;  %1272 = vmatmul.mubr.bf16.gmra.mrb[28].mxu1 %v885_v61  ;;  %v9508_v48 = vld [vmem:[%s12757_s6 + $0x1d8] sm:$0xff]   ;;  %v9512_v45 = vld [vmem:[%s12757_s6 + $0x1e0] sm:$0xff]   ;;  %v9516_v55 = vld [vmem:[%s12757_s6 + $0x1e8] sm:$0xff]  }
 0x247   : > { %1565 = vmatpush1.bf16.msra.mxu0 %v9482_v0  ;;  %1638 = vmatpush1.bf16.msra.mxu1 %v9485_v1  ;;  %v9507_v50 = vld [vmem:[%s12757_s6 + $0x118] sm:$0xff]   ;;  %v9511_v31 = vld [vmem:[%s12757_s6 + $0x120] sm:$0xff]   ;;  %v9515_v56 = vld [vmem:[%s12757_s6 + $0x128] sm:$0xff]   ;;  %v10055_v1 = vmov 1  }
 0x248   : > { %1566 = vmatprep.subr.bf16.mxu0 %v9490_v4  ;;  %1639 = vmatprep.subr.bf16.mxu1 %v9493_v7  ;;  %v9509_v51 = vld [vmem:[%s12757_s6 + $0x198] sm:$0xff]   ;;  %v9513_v32 = vld [vmem:[%s12757_s6 + $0x1a0] sm:$0xff]   ;;  %v9517_v33 = vld [vmem:[%s12757_s6 + $0x1a8] sm:$0xff]  }
 0x249   : > { %1584 = vmatprep.mubr.bf16.mxu0 %v10054_v20  ;;  %1657 = vmatprep.mubr.bf16.mxu1 %v10054_v20  ;;  %v9518_v34 = vld [vmem:[%s12757_s6 + $0x170] sm:$0xff]   ;;  %v9522_v60 = vld [vmem:[%s12757_s6 + $0x178] sm:$0xff]  }
 0x24a   : > { %v9520_v57 = vld [vmem:[%s12757_s6 + $0x1f0] sm:$0xff]   ;;  %v9524_v22 = vld [vmem:[%s12757_s6 + $0x1f8] sm:$0xff]   ;;  %9352 = vset.pattern.permute.xlu1 %v10055_v1  ;;  %9353 = vset.pattern.permute.xlu0 %v10055_v1 }
 0x24b   : > { %1567 = vmatpush1.bf16.msra.mxu0 %v9488_v12  ;;  %1640 = vmatpush1.bf16.msra.mxu1 %v9491_v19  ;;  %v9519_v53 = vld [vmem:[%s12757_s6 + $0x130] sm:$0xff]   ;;  %v9523_v61 = vld [vmem:[%s12757_s6 + $0x138] sm:$0xff]  }
 0x24c   : > { %8774 = vmatprep.subr.bf16.mxu0 %v9494_v21  ;;  %8814 = vmatprep.subr.bf16.mxu1 %v9496_v38  ;;  %v9521_v59 = vld [vmem:[%s12757_s6 + $0x1b0] sm:$0xff]   ;;  %v9525_v62 = vld [vmem:[%s12757_s6 + $0x1b8] sm:$0xff]  }
 0x24d   : > { %v9528_v63 = vld [vmem:[%s12755_s4 + $0x204] ss:$16 sps:$4 sm:$0xff]   ;;  %v9531_v0 = vld [vmem:[%s12755_s4 + $0x20c] ss:$16 sps:$4 sm:$0xff]   ;;  %2142 = vperm.xlu1 %9352, %v10452_v13   ;;  %2146 = vperm.xlu0 %9353, %v10455_v14   ;;  %v10757_v13 = vld [vmem:[%s12758_s7] ss:$0 sm:$0xff] }
 0x24e   : > { %1585 = vmatmul.mubr.bf16.vlgmr.msra.gmra.mrb[32].mxu0 %v10311_v29  ;;  %1658 = vmatmul.mubr.bf16.vlgmr.msra.gmra.mrb[32].mxu1 %v10311_v29 }
 0x24f   : > { %1594 = vmatprep.mubr.bf16.mxu0 %v10054_v20  ;;  %1667 = vmatprep.mubr.bf16.mxu1 %v10054_v20 }
 0x250   : > { %8775 = vmatpush3.bf16.msra.mxu0 %v9495_v37  ;;  %8815 = vmatpush3.bf16.msra.mxu1 %v9497_v35 }
 0x251   : > { %8776 = vmatprep.subr.bf16.mxu0 %v9498_v36  ;;  %8816 = vmatprep.subr.bf16.mxu1 %v9500_v39 }
 0x252   : > { %2150 = vperm.xlu1 %9352, %v10460_v15   ;;  %2158 = vperm.xlu0 %9353, %v10468_v30  }
 0x254   : > { %8777 = vmatpush3.bf16.msra.mxu0 %v9499_v40  ;;  %8817 = vmatpush3.bf16.msra.mxu1 %v9501_v41 }
 0x255   : > { %8778 = vmatprep.subr.bf16.mxu0 %v9502_v42  ;;  %8818 = vmatprep.subr.bf16.mxu1 %v9504_v43 }
 0x256   : > { %1595 = vmatmul.mubr.bf16.gmra.mrb[36].mxu0 %v10347_v28  ;;  %1668 = vmatmul.mubr.bf16.gmra.mrb[36].mxu1 %v10347_v28 }
 0x257   : > { %1604 = vmatprep.mubr.bf16.mxu0 %v10054_v20  ;;  %1677 = vmatprep.mubr.bf16.mxu1 %v10054_v20 }
 0x258   : > { %8779 = vmatpush3.bf16.msra.mxu0 %v9503_v44  ;;  %8819 = vmatpush3.bf16.msra.mxu1 %v9505_v46 }
 0x259   : > { %8780 = vmatprep.subr.bf16.mxu0 %v9506_v47  ;;  %8820 = vmatprep.subr.bf16.mxu1 %v9508_v48 }
 0x25a   : > { %2154 = vperm.xlu1 %9352, %v10464_v23   ;;  %2166 = vperm.xlu0 %9353, %v10476_v17  }
 0x25c   : > { %8781 = vmatpush3.bf16.msra.mxu0 %v9507_v50  ;;  %8821 = vmatpush3.bf16.msra.mxu1 %v9509_v51 }
 0x25d   : > { %8782 = vmatprep.subr.bf16.mxu0 %v9510_v52  ;;  %8822 = vmatprep.subr.bf16.mxu1 %v9512_v45 }
 0x25e   : > { %1605 = vmatmul.mubr.bf16.gmra.mrb[40].mxu0 %v10383_v49  ;;  %1678 = vmatmul.mubr.bf16.gmra.mrb[40].mxu1 %v10383_v49 }
 0x25f   : > { %1614 = vmatprep.mubr.bf16.mxu0 %v10054_v20  ;;  %1687 = vmatprep.mubr.bf16.mxu1 %v10054_v20 }
 0x260   : > { %8783 = vmatpush3.bf16.msra.mxu0 %v9511_v31  ;;  %8823 = vmatpush3.bf16.msra.mxu1 %v9513_v32 }
 0x261   : > { %8784 = vmatprep.subr.bf16.mxu0 %v9514_v54  ;;  %8824 = vmatprep.subr.bf16.mxu1 %v9516_v55 }
 0x262   : > { %2162 = vperm.xlu1 %9352, %v10472_v16  }
 0x264   : > { %8785 = vmatpush3.bf16.msra.mxu0 %v9515_v56  ;;  %8825 = vmatpush3.bf16.msra.mxu1 %v9517_v33 }
 0x265   : > { %8786 = vmatprep.subr.bf16.mxu0 %v9518_v34  ;;  %8826 = vmatprep.subr.bf16.mxu1 %v9520_v57 }
 0x266   : > { %1615 = vmatmul.mubr.bf16.gmra.mrb[44].mxu0 %v10408_v58  ;;  %1688 = vmatmul.mubr.bf16.gmra.mrb[44].mxu1 %v10408_v58 }
 0x267   : > { %2170 = vperm.xlu1 %9352, %v10480_v18  }
 0x268   : > { %8787 = vmatpush3.bf16.msra.mxu0 %v9519_v53  ;;  %8827 = vmatpush3.bf16.msra.mxu1 %v9521_v59 }
 0x269   : > { %8788 = vmatprep.subr.bf16.mxu0 %v9522_v60  ;;  %8828 = vmatprep.subr.bf16.mxu1 %v9524_v22 }
 0x26c   : > { %8789 = vmatpush3.bf16.msra.mxu0 %v9523_v61  ;;  %8829 = vmatpush3.bf16.msra.mxu1 %v9525_v62 }
 0x26d   : > { %2405 = vmatprep.subr.bf16.mxu0 %v9528_v63  ;;  %2478 = vmatprep.subr.bf16.mxu1 %v9531_v0 }
 0x301   : > { %v8710_v4 = vpop.f32.mrb[16].mxu0  ;;  %v8750_v7 = vpop.f32.mrb[16].mxu1 }
 0x302   : > { %v8711_v14 = vpop.f32.mrb[17].mxu0  ;;  %v8751_v12 = vpop.f32.mrb[17].mxu1 }
 0x303   : > { %v8712_v15 = vadd.f32 %v8711_v14, %v8710_v4  ;;  %v8752_v19 = vadd.f32 %v8751_v12, %v8750_v7  ;;  %v8713_v30 = vpop.f32.mrb[18].mxu0  ;;  %v8753_v21 = vpop.f32.mrb[18].mxu1 }
 0x304   : > { %v8714_v23 = vpop.f32.mrb[19].mxu0  ;;  %v8754_v38 = vpop.f32.mrb[19].mxu1 }
 0x305   : > { %v1185_v17 = vadd.f32 %v8712_v15, %v10757_v13  ;;  %v8715_v16 = vadd.f32 %v8714_v23, %v8713_v30  ;;  %v8755_v37 = vadd.f32 %v8754_v38, %v8753_v21 }
 0x307   : > { %v1188_v18 = vadd.f32 %v8715_v16, %v10757_v13  ;;  %v10761_v35 = vadd.f32 %v8752_v19, %v1185_v17  ;;  %v7525_v17 = vld [vmem:[%s12756_s5 + $0x4] sm:$0xf] }
 0x309   : > { %v8716_v36 = vpop.f32.mrb[20].mxu0  ;;  %v8756_v39 = vpop.f32.mrb[20].mxu1  ;;  %v10763_v40 = vadd.f32 %v8755_v37, %v1188_v18 }
 0x30a   : > { %v8717_v41 = vpop.f32.mrb[21].mxu0  ;;  %v8757_v42 = vpop.f32.mrb[21].mxu1 }
 0x30b   : > { %v8718_v43 = vadd.f32 %v8717_v41, %v8716_v36  ;;  %v8758_v44 = vadd.f32 %v8757_v42, %v8756_v39  ;;  %v8719_v46 = vpop.f32.mrb[22].mxu0  ;;  %v8759_v47 = vpop.f32.mrb[22].mxu1  ;;  %v10782_v41 = vrot.slane %v7525_v17, %v10483_v24  ;;  %v10785_v42 = vrot.slane %v7525_v17, %v10485_v25 }
 0x30c   : > { %v8720_v48 = vpop.f32.mrb[23].mxu0  ;;  %v8760_v50 = vpop.f32.mrb[23].mxu1 }
 0x30d   : > { %v1193_v51 = vadd.f32 %v8718_v43, %v10757_v13  ;;  %v8721_v52 = vadd.f32 %v8720_v48, %v8719_v46  ;;  %v8761_v45 = vadd.f32 %v8760_v50, %v8759_v47  ;;  %v10791_v46 = vrot.slane %v7525_v17, %v10490_v26 }
 0x30e   : > { %v10794_v47 = vrot.slane %v7525_v17, %v10492_v27 }
 0x30f   : > { %v1196_v31 = vadd.f32 %v8721_v52, %v10757_v13  ;;  %v10767_v32 = vadd.f32 %v8758_v44, %v1193_v51 }
 0x311   : > { %v8722_v54 = vpop.f32.mrb[24].mxu0  ;;  %v8762_v55 = vpop.f32.mrb[24].mxu1  ;;  %v10769_v56 = vadd.f32 %v8761_v45, %v1196_v31 }
 0x312   : > { %v8723_v33 = vpop.f32.mrb[25].mxu0  ;;  %v8763_v34 = vpop.f32.mrb[25].mxu1 }
 0x313   : > { %v8724_v57 = vadd.f32 %v8723_v33, %v8722_v54  ;;  %v8764_v53 = vadd.f32 %v8763_v34, %v8762_v55  ;;  %v8725_v59 = vpop.f32.mrb[26].mxu0  ;;  %v8765_v60 = vpop.f32.mrb[26].mxu1 }
 0x314   : > { %v8726_v22 = vpop.f32.mrb[27].mxu0  ;;  %v8766_v61 = vpop.f32.mrb[27].mxu1 }
 0x315   : > { %v1201_v62 = vadd.f32 %v8724_v57, %v10757_v13  ;;  %v8727_v63 = vadd.f32 %v8726_v22, %v8725_v59  ;;  %v8767_v0 = vadd.f32 %v8766_v61, %v8765_v60 }
 0x317   : > { %v1204_v1 = vadd.f32 %v8727_v63, %v10757_v13  ;;  %v10773_v4 = vadd.f32 %v8764_v53, %v1201_v62 }
 0x319   : > { %v8728_v7 = vpop.f32.mrb[28].mxu0  ;;  %v8768_v14 = vpop.f32.mrb[28].mxu1  ;;  %v10775_v12 = vadd.f32 %v8767_v0, %v1204_v1 }
 0x31a   : > { %v8729_v15 = vpop.f32.mrb[29].mxu0  ;;  %v8769_v19 = vpop.f32.mrb[29].mxu1 }
 0x31b   : > { %v8730_v30 = vadd.f32 %v8729_v15, %v8728_v7  ;;  %v8770_v21 = vadd.f32 %v8769_v19, %v8768_v14  ;;  %v8731_v23 = vpop.f32.mrb[30].mxu0  ;;  %v8771_v38 = vpop.f32.mrb[30].mxu1 }
 0x31c   : > { %v8732_v16 = vpop.f32.mrb[31].mxu0  ;;  %v8772_v37 = vpop.f32.mrb[31].mxu1 }
 0x31d   : > { %v1209_v18 = vadd.f32 %v8730_v30, %v10757_v13  ;;  %v8733_v36 = vadd.f32 %v8732_v16, %v8731_v23  ;;  %v8773_v39 = vadd.f32 %v8772_v37, %v8771_v38  ;;  %v9526_v16 = vld [vmem:[%s12755_s4 + $0x200] ss:$16 sps:$4 sm:$0xff]  }
 0x31f   : > { %v1212_v43 = vadd.f32 %v8733_v36, %v10757_v13  ;;  %v10788_v44 = vadd.f32 %v8770_v21, %v1209_v18 }
 0x321   : > { %v1586_v48 = vpop.f32.mrb[32].mxu0  ;;  %v1659_v50 = vpop.f32.mrb[32].mxu1  ;;  %v10796_v51 = vadd.f32 %v8773_v39, %v1212_v43 }
 0x322   : > { %v1587_v52 = vadd.f32 %v1586_v48, %v10782_v41  ;;  %v1660_v45 = vadd.f32 %v1659_v50, %v10785_v42  ;;  %v1588_v31 = vpop.f32.mrb[33].mxu0  ;;  %v1661_v54 = vpop.f32.mrb[33].mxu1  ;;  %v9529_v48 = vld [vmem:[%s12755_s4 + $0x208] ss:$16 sps:$4 sm:$0xff]   ;;  %v9534_v50 = vld [vmem:[%s12755_s4 + $0x224] ss:$16 sps:$4 sm:$0xff]  }
 0x323   : > { %v1589_v13 = vadd.f32 %v1588_v31, %v10791_v46  ;;  %v1590_v55 = vpop.f32.mrb[34].mxu0  ;;  %v1663_v33 = vpop.f32.mrb[34].mxu1  ;;  %v1662_v34 = vadd.f32 %v1661_v54, %v10794_v47 }
 0x324   : > { %v1591_v57 = vadd.f32 %v1590_v55, %v10782_v41  ;;  %v1664_v53 = vadd.f32 %v1663_v33, %v10785_v42  ;;  %v1592_v59 = vpop.f32.mrb[35].mxu0  ;;  %v1665_v60 = vpop.f32.mrb[35].mxu1  ;;  %v1698_v22 = vmax.f32 %v1587_v52, 0.0  ;;  %v1700_v62 = vmax.f32 %v1660_v45, 0.0 }
 0x325   : > { %v1593_v61 = vadd.f32 %v1592_v59, %v10791_v46  ;;  %v1666_v1 = vadd.f32 %v1665_v60, %v10794_v47  ;;  %v1699_v7 = vmax.f32 %v1589_v13, 0.0  ;;  %v1701_v15 = vmax.f32 %v1662_v34, 0.0  ;;  %v9537_v13 = vld [vmem:[%s12755_s4 + $0x22c] ss:$16 sps:$4 sm:$0xff]   ;;  %v9532_v60 = vld [vmem:[%s12755_s4 + $0x220] ss:$16 sps:$4 sm:$0xff]  }
 0x326   : > { %v1702_v63 = vmax.f32 %v1591_v57, 0.0  ;;  %v1704_v0 = vmax.f32 %v1664_v53, 0.0 }
 0x327   : > { %v1703_v14 = vmax.f32 %v1593_v61, 0.0  ;;  %v1705_v21 = vmax.f32 %v1666_v1, 0.0  ;;  %v9540_v1 = vld [vmem:[%s12755_s4 + $0x244] ss:$16 sps:$4 sm:$0xff]  }
 0x328   : > { %v1730_v19 = vpack.c.bf16 %v1702_v63, %v1698_v22  ;;  %v1732_v30 = vpack.c.bf16 %v1704_v0, %v1700_v62  ;;  %v9535_v22 = vld [vmem:[%s12755_s4 + $0x228] ss:$16 sps:$4 sm:$0xff]  }
 0x329   : > { %v1731_v23 = vpack.c.bf16 %v1703_v14, %v1699_v7  ;;  %v1596_v38 = vpop.f32.mrb[36].mxu0  ;;  %v1669_v17 = vpop.f32.mrb[36].mxu1  ;;  %v1733_v37 = vpack.c.bf16 %v1705_v21, %v1701_v15 }
 0x32a   : > { %v1597_v18 = vadd.f32 %v1596_v38, %v10782_v41  ;;  %v1670_v36 = vadd.f32 %v1669_v17, %v10785_v42  ;;  %v1598_v39 = vpop.f32.mrb[37].mxu0  ;;  %v1671_v43 = vpop.f32.mrb[37].mxu1 }
 0x32b   : > { %v1599_v52 = vadd.f32 %v1598_v39, %v10791_v46  ;;  %v1672_v45 = vadd.f32 %v1671_v43, %v10794_v47  ;;  %v1600_v31 = vpop.f32.mrb[38].mxu0  ;;  %v1673_v54 = vpop.f32.mrb[38].mxu1  ;;  %2043 = vmatprep.mubr.bf16.mxu0 %v1731_v23  ;;  %2108 = vmatprep.mubr.bf16.mxu1 %v1733_v37  ;;  %v9543_v23 = vld [vmem:[%s12755_s4 + $0x24c] ss:$16 sps:$4 sm:$0xff]  }
 0x32c   : > { %v1601_v55 = vadd.f32 %v1600_v31, %v10782_v41  ;;  %v1674_v33 = vadd.f32 %v1673_v54, %v10785_v42  ;;  %v1602_v34 = vpop.f32.mrb[39].mxu0  ;;  %v1675_v57 = vpop.f32.mrb[39].mxu1  ;;  %2044 = vmatmul.mubr.bf16.vlgmr.msra.gmra.mrb[48].mxu0 %v1730_v19  ;;  %2109 = vmatmul.mubr.bf16.vlgmr.msra.gmra.mrb[48].mxu1 %v1732_v30  ;;  %v1706_v61 = vmax.f32 %v1597_v18, 0.0  ;;  %v1708_v62 = vmax.f32 %v1670_v36, 0.0  ;;  %v9538_v18 = vld [vmem:[%s12755_s4 + $0x240] ss:$16 sps:$4 sm:$0xff]  }
 0x32d   : > { %v1603_v53 = vadd.f32 %v1602_v34, %v10791_v46  ;;  %v1676_v59 = vadd.f32 %v1675_v57, %v10794_v47  ;;  %2406 = vmatpush1.bf16.msra.mxu0 %v9526_v16  ;;  %2479 = vmatpush1.bf16.msra.mxu1 %v9529_v48  ;;  %v1707_v7 = vmax.f32 %v1599_v52, 0.0  ;;  %v1709_v14 = vmax.f32 %v1672_v45, 0.0  ;;  %v9546_v52 = vld [vmem:[%s12755_s4 + $0x264] ss:$16 sps:$4 sm:$0xff]  }
 0x32e   : > { %v1710_v63 = vmax.f32 %v1601_v55, 0.0  ;;  %v1712_v0 = vmax.f32 %v1674_v33, 0.0  ;;  %2407 = vmatprep.subr.bf16.mxu0 %v9534_v50  ;;  %2480 = vmatprep.subr.bf16.mxu1 %v9537_v13  ;;  %v9541_v50 = vld [vmem:[%s12755_s4 + $0x248] ss:$16 sps:$4 sm:$0xff]   ;;  %v9549_v55 = vld [vmem:[%s12755_s4 + $0x26c] ss:$16 sps:$4 sm:$0xff]  }
 0x32f   : > { %v1711_v15 = vmax.f32 %v1603_v53, 0.0  ;;  %v1713_v19 = vmax.f32 %v1676_v59, 0.0 }
 0x330   : > { %v1734_v30 = vpack.c.bf16 %v1710_v63, %v1706_v61  ;;  %v1736_v21 = vpack.c.bf16 %v1712_v0, %v1708_v62  ;;  %v9547_v61 = vld [vmem:[%s12755_s4 + $0x268] ss:$16 sps:$4 sm:$0xff]  }
 0x331   : > { %v1735_v38 = vpack.c.bf16 %v1711_v15, %v1707_v7  ;;  %v1737_v17 = vpack.c.bf16 %v1713_v19, %v1709_v14  ;;  %2408 = vmatpush1.bf16.msra.mxu0 %v9532_v60  ;;  %v1606_v16 = vpop.f32.mrb[40].mxu0  ;;  %v1679_v37 = vpop.f32.mrb[40].mxu1  ;;  %2481 = vmatpush1.bf16.msra.mxu1 %v9535_v22  ;;  %v9544_v22 = vld [vmem:[%s12755_s4 + $0x260] ss:$16 sps:$4 sm:$0xff]   ;;  %v9552_v7 = vld [vmem:[%s12755_s4 + $0x284] ss:$16 sps:$4 sm:$0xff]  }
 0x332   : > { %v1607_v36 = vadd.f32 %v1606_v16, %v10782_v41  ;;  %v1680_v39 = vadd.f32 %v1679_v37, %v10785_v42  ;;  %v1608_v43 = vpop.f32.mrb[41].mxu0  ;;  %v1681_v48 = vpop.f32.mrb[41].mxu1  ;;  %2409 = vmatprep.subr.bf16.mxu0 %v9540_v1  ;;  %2482 = vmatprep.subr.bf16.mxu1 %v9543_v23 }
 0x333   : > { %v1609_v45 = vadd.f32 %v1608_v43, %v10791_v46  ;;  %v1682_v31 = vadd.f32 %v1681_v48, %v10794_v47  ;;  %v1610_v54 = vpop.f32.mrb[42].mxu0  ;;  %v1683_v13 = vpop.f32.mrb[42].mxu1  ;;  %2051 = vmatprep.mubr.bf16.mxu0 %v1735_v38  ;;  %2116 = vmatprep.mubr.bf16.mxu1 %v1737_v17  ;;  %v9555_v38 = vld [vmem:[%s12755_s4 + $0x28c] ss:$16 sps:$4 sm:$0xff]  }
 0x334   : > { %v1611_v33 = vadd.f32 %v1610_v54, %v10782_v41  ;;  %v1684_v34 = vadd.f32 %v1683_v13, %v10785_v42  ;;  %v1612_v57 = vpop.f32.mrb[43].mxu0  ;;  %v1685_v53 = vpop.f32.mrb[43].mxu1  ;;  %2052 = vmatmul.mubr.bf16.gmra.mrb[52].mxu0 %v1734_v30  ;;  %2117 = vmatmul.mubr.bf16.gmra.mrb[52].mxu1 %v1736_v21  ;;  %v1714_v62 = vmax.f32 %v1607_v36, 0.0  ;;  %v1716_v63 = vmax.f32 %v1680_v39, 0.0  ;;  %v9550_v36 = vld [vmem:[%s12755_s4 + $0x280] ss:$16 sps:$4 sm:$0xff]  }
 0x335   : > { %v1613_v59 = vadd.f32 %v1612_v57, %v10791_v46  ;;  %v1686_v60 = vadd.f32 %v1685_v53, %v10794_v47  ;;  %2410 = vmatpush1.bf16.msra.mxu0 %v9538_v18  ;;  %2483 = vmatpush1.bf16.msra.mxu1 %v9541_v50  ;;  %v1715_v14 = vmax.f32 %v1609_v45, 0.0  ;;  %v1717_v15 = vmax.f32 %v1682_v31, 0.0  ;;  %v9558_v45 = vld [vmem:[%s12755_s4 + $0x2a4] ss:$16 sps:$4 sm:$0xff]  }
 0x336   : > { %v1718_v0 = vmax.f32 %v1611_v33, 0.0  ;;  %v1720_v1 = vmax.f32 %v1684_v34, 0.0  ;;  %2411 = vmatprep.subr.bf16.mxu0 %v9546_v52  ;;  %2484 = vmatprep.subr.bf16.mxu1 %v9549_v55  ;;  %v9553_v52 = vld [vmem:[%s12755_s4 + $0x288] ss:$16 sps:$4 sm:$0xff]   ;;  %v9561_v33 = vld [vmem:[%s12755_s4 + $0x2ac] ss:$16 sps:$4 sm:$0xff]  }
 0x337   : > { %v1719_v19 = vmax.f32 %v1613_v59, 0.0  ;;  %v1721_v30 = vmax.f32 %v1686_v60, 0.0 }
 0x338   : > { %v1738_v21 = vpack.c.bf16 %v1718_v0, %v1714_v62  ;;  %v1740_v23 = vpack.c.bf16 %v1720_v1, %v1716_v63 }
 0x339   : > { %v1739_v17 = vpack.c.bf16 %v1719_v19, %v1715_v14  ;;  %v1741_v16 = vpack.c.bf16 %v1721_v30, %v1717_v15  ;;  %2412 = vmatpush1.bf16.msra.mxu0 %v9544_v22  ;;  %v1616_v37 = vpop.f32.mrb[44].mxu0  ;;  %v1689_v18 = vpop.f32.mrb[44].mxu1  ;;  %2485 = vmatpush1.bf16.msra.mxu1 %v9547_v61  ;;  %v9556_v61 = vld [vmem:[%s12755_s4 + $0x2a0] ss:$16 sps:$4 sm:$0xff]   ;;  %v9567_v30 = vld [vmem:[%s12755_s4 + $0x2cc] ss:$16 sps:$4 sm:$0xff]  }
 0x33a   : > { %v1617_v39 = vadd.f32 %v1616_v37, %v10782_v41  ;;  %v1690_v43 = vadd.f32 %v1689_v18, %v10785_v42  ;;  %v1618_v48 = vpop.f32.mrb[45].mxu0  ;;  %v1691_v50 = vpop.f32.mrb[45].mxu1  ;;  %2413 = vmatprep.subr.bf16.mxu0 %v9552_v7  ;;  %2486 = vmatprep.subr.bf16.mxu1 %v9555_v38  ;;  %v9562_v38 = vld [vmem:[%s12755_s4 + $0x2c0] ss:$16 sps:$4 sm:$0xff]   ;;  %v9573_v37 = vld [vmem:[%s12755_s4 + $0x2ec] ss:$16 sps:$4 sm:$0xff]  }
 0x33b   : > { %v1619_v31 = vadd.f32 %v1618_v48, %v10791_v46  ;;  %v1692_v54 = vadd.f32 %v1691_v50, %v10794_v47  ;;  %v1620_v13 = vpop.f32.mrb[46].mxu0  ;;  %v1693_v55 = vpop.f32.mrb[46].mxu1  ;;  %2059 = vmatprep.mubr.bf16.mxu0 %v1739_v17  ;;  %2124 = vmatprep.mubr.bf16.mxu1 %v1741_v16  ;;  %v9565_v17 = vld [vmem:[%s12755_s4 + $0x2c8] ss:$16 sps:$4 sm:$0xff]   ;;  %v9570_v16 = vld [vmem:[%s12755_s4 + $0x2e4] ss:$16 sps:$4 sm:$0xff]  }
 0x33c   : > { %v1621_v34 = vadd.f32 %v1620_v13, %v10782_v41  ;;  %v1694_v57 = vadd.f32 %v1693_v55, %v10785_v42  ;;  %v1622_v53 = vpop.f32.mrb[47].mxu0  ;;  %v1695_v59 = vpop.f32.mrb[47].mxu1  ;;  %2060 = vmatmul.mubr.bf16.gmra.mrb[56].mxu0 %v1738_v21  ;;  %2125 = vmatmul.mubr.bf16.gmra.mrb[56].mxu1 %v1740_v23  ;;  %v9559_v41 = vld [vmem:[%s12755_s4 + $0x2a8] ss:$16 sps:$4 sm:$0xff]   ;;  %v1722_v62 = vmax.f32 %v1617_v39, 0.0  ;;  %v1724_v42 = vmax.f32 %v1690_v43, 0.0 }
 0x33d   : > { %v1623_v60 = vadd.f32 %v1622_v53, %v10791_v46  ;;  %v1696_v22 = vadd.f32 %v1695_v59, %v10794_v47  ;;  %2414 = vmatpush1.bf16.msra.mxu0 %v9550_v36  ;;  %2487 = vmatpush1.bf16.msra.mxu1 %v9553_v52  ;;  %v9564_v46 = vld [vmem:[%s12755_s4 + $0x2c4] ss:$16 sps:$4 sm:$0xff]   ;;  %v1723_v47 = vmax.f32 %v1619_v31, 0.0  ;;  %v1725_v1 = vmax.f32 %v1692_v54, 0.0  ;;  %v9568_v18 = vld [vmem:[%s12755_s4 + $0x2e0] ss:$16 sps:$4 sm:$0xff]  }
 0x33e   : > { %v1726_v63 = vmax.f32 %v1621_v34, 0.0  ;;  %v1728_v0 = vmax.f32 %v1694_v57, 0.0  ;;  %2415 = vmatprep.subr.bf16.mxu0 %v9558_v45  ;;  %2488 = vmatprep.subr.bf16.mxu1 %v9561_v33  ;;  %v9571_v36 = vld [vmem:[%s12755_s4 + $0x2e8] ss:$16 sps:$4 sm:$0xff]   ;;  %v9574_v39 = vld [vmem:[%s12757_s6 + $0x240] sm:$0xff]   ;;  %v9582_v13 = vld [vmem:[%s12757_s6 + $0x250] sm:$0xff]  }
 0x33f   : > { %v1727_v7 = vmax.f32 %v1623_v60, 0.0  ;;  %v1729_v14 = vmax.f32 %v1696_v22, 0.0  ;;  %v9576_v43 = vld [vmem:[%s12757_s6 + $0x2c0] sm:$0xff]   ;;  %v9578_v52 = vld [vmem:[%s12757_s6 + $0x248] sm:$0xff]   ;;  %v9584_v55 = vld [vmem:[%s12757_s6 + $0x2d0] sm:$0xff]  }
 0x340   : > { %v1742_v15 = vpack.c.bf16 %v1726_v63, %v1722_v62  ;;  %v1744_v19 = vpack.c.bf16 %v1728_v0, %v1724_v42  ;;  %v9575_v48 = vld [vmem:[%s12757_s6 + $0x200] sm:$0xff]   ;;  %v9580_v45 = vld [vmem:[%s12757_s6 + $0x2c8] sm:$0xff]   ;;  %v9583_v33 = vld [vmem:[%s12757_s6 + $0x210] sm:$0xff]  }
 0x341   : > { %v1743_v21 = vpack.c.bf16 %v1727_v7, %v1723_v47  ;;  %v1745_v23 = vpack.c.bf16 %v1729_v14, %v1725_v1  ;;  %2416 = vmatpush1.bf16.msra.mxu0 %v9556_v61  ;;  %2489 = vmatpush1.bf16.msra.mxu1 %v9559_v41  ;;  %v9577_v50 = vld [vmem:[%s12757_s6 + $0x280] sm:$0xff]   ;;  %v9579_v31 = vld [vmem:[%s12757_s6 + $0x208] sm:$0xff]   ;;  %v9585_v34 = vld [vmem:[%s12757_s6 + $0x290] sm:$0xff]  }
 0x342   : > { %2417 = vmatprep.subr.bf16.mxu0 %v9564_v46  ;;  %2490 = vmatprep.subr.bf16.mxu1 %v9567_v30  ;;  %v9581_v54 = vld [vmem:[%s12757_s6 + $0x288] sm:$0xff]   ;;  %v9586_v57 = vld [vmem:[%s12757_s6 + $0x258] sm:$0xff]   ;;  %v9590_v22 = vld [vmem:[%s12757_s6 + $0x260] sm:$0xff]  }
 0x343   : > { %2067 = vmatprep.mubr.bf16.mxu0 %v1743_v21  ;;  %2132 = vmatprep.mubr.bf16.mxu1 %v1745_v23  ;;  %v9587_v53 = vld [vmem:[%s12757_s6 + $0x218] sm:$0xff]   ;;  %v9592_v61 = vld [vmem:[%s12757_s6 + $0x2e0] sm:$0xff]   ;;  %v9594_v42 = vld [vmem:[%s12757_s6 + $0x268] sm:$0xff]  }
 0x344   : > { %2068 = vmatmul.mubr.bf16.gmra.mrb[60].mxu0 %v1742_v15  ;;  %2133 = vmatmul.mubr.bf16.gmra.mrb[60].mxu1 %v1744_v19  ;;  %v9588_v59 = vld [vmem:[%s12757_s6 + $0x2d8] sm:$0xff]   ;;  %v9591_v41 = vld [vmem:[%s12757_s6 + $0x220] sm:$0xff]   ;;  %v9595_v63 = vld [vmem:[%s12757_s6 + $0x228] sm:$0xff]  }
 0x345   : > { %2418 = vmatpush1.bf16.msra.mxu0 %v9562_v38  ;;  %2491 = vmatpush1.bf16.msra.mxu1 %v9565_v17  ;;  %v9589_v60 = vld [vmem:[%s12757_s6 + $0x298] sm:$0xff]   ;;  %v9593_v62 = vld [vmem:[%s12757_s6 + $0x2a0] sm:$0xff]   ;;  %v9596_v0 = vld [vmem:[%s12757_s6 + $0x2e8] sm:$0xff]   ;;  %v1288_v17 = vpop.permute.xlu1 %1287 }
 0x346   : > { %2419 = vmatprep.subr.bf16.mxu0 %v9570_v16  ;;  %2492 = vmatprep.subr.bf16.mxu1 %v9573_v37  ;;  %v9597_v46 = vld [vmem:[%s12757_s6 + $0x2a8] sm:$0xff]   ;;  %v9598_v47 = vld [vmem:[%s12757_s6 + $0x270] sm:$0xff]   ;;  %v9602_v15 = vld [vmem:[%s12757_s6 + $0x278] sm:$0xff]   ;;  %v10056_v37 = vmov 2  }
 0x347   : > { %2437 = vmatprep.mubr.bf16.mxu0 %v10054_v20  ;;  %2510 = vmatprep.mubr.bf16.mxu1 %v10054_v20  ;;  %v9600_v1 = vld [vmem:[%s12757_s6 + $0x2f0] sm:$0xff]   ;;  %v9604_v19 = vld [vmem:[%s12757_s6 + $0x2f8] sm:$0xff]  }
 0x348   : > { %v9599_v7 = vld [vmem:[%s12757_s6 + $0x230] sm:$0xff]   ;;  %v9603_v30 = vld [vmem:[%s12757_s6 + $0x238] sm:$0xff]   ;;  %9354 = vset.pattern.permute.xlu0 %v10056_v37  ;;  %9355 = vset.pattern.permute.xlu1 %v10056_v37 }
 0x349   : > { %2420 = vmatpush1.bf16.msra.mxu0 %v9568_v18  ;;  %2493 = vmatpush1.bf16.msra.mxu1 %v9571_v36  ;;  %v9601_v14 = vld [vmem:[%s12757_s6 + $0x2b0] sm:$0xff]   ;;  %v9605_v21 = vld [vmem:[%s12757_s6 + $0x2b8] sm:$0xff]   ;;  %v1293_v16 = vpop.permute.xlu1 %1292  ;;  %v11039_v18 = vld [vmem:[%s10449_s18] sm:$0xff] }
 0x34a   : > { %8854 = vmatprep.subr.bf16.mxu0 %v9574_v39  ;;  %8894 = vmatprep.subr.bf16.mxu1 %v9576_v43  ;;  %v9608_v23 = vld [vmem:[%s12755_s4 + $0x304] ss:$16 sps:$4 sm:$0xff]   ;;  %v9611_v38 = vld [vmem:[%s12755_s4 + $0x30c] ss:$16 sps:$4 sm:$0xff]  }
 0x34b   : > { %2995 = vperm.xlu0 %9354, %v11039_v18   ;;  %v11043_v36 = vld [vmem:[%s10449_s18 + $0x8] sm:$0xff]  ;;  %v11047_v43 = vld [vmem:[%s10449_s18 + $0x10] sm:$0xff] }
 0x34c   : > { %2438 = vmatmul.mubr.bf16.vlgmr.msra.gmra.mrb[64].mxu0 %v10311_v29  ;;  %2511 = vmatmul.mubr.bf16.vlgmr.msra.gmra.mrb[64].mxu1 %v10311_v29 }
 0x34d   : > { %2447 = vmatprep.mubr.bf16.mxu0 %v10054_v20  ;;  %2520 = vmatprep.mubr.bf16.mxu1 %v10054_v20  ;;  %v1298_v39 = vpop.permute.xlu1 %1297 }
 0x34e   : > { %8855 = vmatpush3.bf16.msra.mxu0 %v9575_v48  ;;  %8895 = vmatpush3.bf16.msra.mxu1 %v9577_v50  ;;  %v11051_v48 = vld [vmem:[%s10449_s18 + $0x18] sm:$0xff] }
 0x34f   : > { %8856 = vmatprep.subr.bf16.mxu0 %v9578_v52  ;;  %8896 = vmatprep.subr.bf16.mxu1 %v9580_v45  ;;  %v11057_v52 = vld [vmem:[%s10449_s18 + $0x20] sm:$0xff]  ;;  %v11061_v45 = vld [vmem:[%s10449_s18 + $0x28] sm:$0xff] }
 0x350   : > { %2999 = vperm.xlu1 %9355, %v11043_v36   ;;  %3007 = vperm.xlu0 %9354, %v11051_v48  }
 0x351   : > { %v11054_v50 = vpop.permute.xlu1 %1302 }
 0x352   : > { %8857 = vmatpush3.bf16.msra.mxu0 %v9579_v31  ;;  %8897 = vmatpush3.bf16.msra.mxu1 %v9581_v54  ;;  %v11065_v31 = vld [vmem:[%s10449_s18 + $0x30] sm:$0xff]  ;;  %v11069_v54 = vld [vmem:[%s10449_s18 + $0x38] sm:$0xff] }
 0x353   : > { %8858 = vmatprep.subr.bf16.mxu0 %v9582_v13  ;;  %8898 = vmatprep.subr.bf16.mxu1 %v9584_v55 }
 0x354   : > { %2448 = vmatmul.mubr.bf16.gmra.mrb[68].mxu0 %v10347_v28  ;;  %2521 = vmatmul.mubr.bf16.gmra.mrb[68].mxu1 %v10347_v28 }
 0x355   : > { %2457 = vmatprep.mubr.bf16.mxu0 %v10054_v20  ;;  %2530 = vmatprep.mubr.bf16.mxu1 %v10054_v20  ;;  %v11072_v13 = vpop.permute.xlu1 %1307 }
 0x356   : > { %8859 = vmatpush3.bf16.msra.mxu0 %v9583_v33  ;;  %8899 = vmatpush3.bf16.msra.mxu1 %v9585_v34  ;;  %v1283_v33 = vpop.permute.xlu0 %1282 }
 0x357   : > { %8860 = vmatprep.subr.bf16.mxu0 %v9586_v57  ;;  %8900 = vmatprep.subr.bf16.mxu1 %v9588_v59  ;;  %v11081_v59 = vld [vmem:[%s12758_s7 + $0x1] ss:$0 sm:$0xff] }
 0x358   : > { %3003 = vperm.xlu1 %9355, %v11047_v43   ;;  %3015 = vperm.xlu0 %9354, %v11061_v45  }
 0x359   : > { %v11074_v55 = vpop.permute.xlu1 %1312 }
 0x35a   : > { %8861 = vmatpush3.bf16.msra.mxu0 %v9587_v53  ;;  %8901 = vmatpush3.bf16.msra.mxu1 %v9589_v60 }
 0x35b   : > { %8862 = vmatprep.subr.bf16.mxu0 %v9590_v22  ;;  %8902 = vmatprep.subr.bf16.mxu1 %v9592_v61 }
 0x35c   : > { %2458 = vmatmul.mubr.bf16.gmra.mrb[72].mxu0 %v10383_v49  ;;  %2531 = vmatmul.mubr.bf16.gmra.mrb[72].mxu1 %v10383_v49 }
 0x35d   : > { %2467 = vmatprep.mubr.bf16.mxu0 %v10054_v20  ;;  %2540 = vmatprep.mubr.bf16.mxu1 %v10054_v20  ;;  %v11076_v34 = vpop.permute.xlu1 %1317 }
 0x35e   : > { %8863 = vmatpush3.bf16.msra.mxu0 %v9591_v41  ;;  %8903 = vmatpush3.bf16.msra.mxu1 %v9593_v62 }
 0x35f   : > { %8864 = vmatprep.subr.bf16.mxu0 %v9594_v42  ;;  %8904 = vmatprep.subr.bf16.mxu1 %v9596_v0  ;;  %v1320_v0 = vmul.f32 %v1283_v33, %v10761_v35 }
 0x360   : > { %3011 = vperm.xlu1 %9355, %v11057_v52   ;;  %3023 = vperm.xlu0 %9354, %v11069_v54  }
 0x362   : > { %8865 = vmatpush3.bf16.msra.mxu0 %v9595_v63  ;;  %8905 = vmatpush3.bf16.msra.mxu1 %v9597_v46 }
 0x363   : > { %8866 = vmatprep.subr.bf16.mxu0 %v9598_v47  ;;  %8906 = vmatprep.subr.bf16.mxu1 %v9600_v1 }
 0x364   : > { %2468 = vmatmul.mubr.bf16.gmra.mrb[76].mxu0 %v10408_v58  ;;  %2541 = vmatmul.mubr.bf16.gmra.mrb[76].mxu1 %v10408_v58 }
 0x365   : > { %3019 = vperm.xlu1 %9355, %v11065_v31  }
 0x366   : > { %8867 = vmatpush3.bf16.msra.mxu0 %v9599_v7  ;;  %8907 = vmatpush3.bf16.msra.mxu1 %v9601_v14  ;;  %v2143_v7 = vpop.permute.xlu1 %2142 }
 0x367   : > { %8868 = vmatprep.subr.bf16.mxu0 %v9602_v15  ;;  %8908 = vmatprep.subr.bf16.mxu1 %v9604_v19  ;;  %v1321_v15 = vmul.f32 %v1288_v17, %v10763_v40 }
 0x369   : > { %v1329_v33 = vadd.f32 %v10129_v5, %v1321_v15  ;;  %v1323_v5 = vmul.f32 %v1298_v39, %v10769_v56 }
 0x36a   : > { %8869 = vmatpush3.bf16.msra.mxu0 %v9603_v30  ;;  %8909 = vmatpush3.bf16.msra.mxu1 %v9605_v21  ;;  %v2147_v21 = vpop.permute.xlu0 %2146 }
 0x36b   : > { %3258 = vmatprep.subr.bf16.mxu0 %v9608_v23  ;;  %3331 = vmatprep.subr.bf16.mxu1 %v9611_v38  ;;  %v1328_v23 = vadd.f32 %v10123_v2, %v1320_v0 }
 0x3ff   : > { %v8790_v57 = vpop.f32.mrb[48].mxu0  ;;  %v8830_v53 = vpop.f32.mrb[48].mxu1 }
 0x400   : > { %v8791_v60 = vpop.f32.mrb[49].mxu0  ;;  %v8831_v61 = vpop.f32.mrb[49].mxu1 }
 0x401   : > { %v8792_v22 = vadd.f32 %v8791_v60, %v8790_v57  ;;  %v8793_v41 = vpop.f32.mrb[50].mxu0  ;;  %v8832_v62 = vadd.f32 %v8831_v61, %v8830_v53  ;;  %v8833_v42 = vpop.f32.mrb[50].mxu1 }
 0x402   : > { %v8794_v63 = vpop.f32.mrb[51].mxu0  ;;  %v8834_v1 = vpop.f32.mrb[51].mxu1 }
 0x403   : > { %v2046_v46 = vadd.f32 %v8792_v22, %v11081_v59  ;;  %v8795_v47 = vadd.f32 %v8794_v63, %v8793_v41  ;;  %v8835_v14 = vadd.f32 %v8834_v1, %v8833_v42  ;;  %v2151_v53 = vpop.permute.xlu1 %2150 }
 0x405   : > { %v2049_v19 = vadd.f32 %v8795_v47, %v11081_v59  ;;  %v2111_v30 = vadd.f32 %v8832_v62, %v2046_v46  ;;  %v1322_v46 = vmul.f32 %v1293_v16, %v10767_v32  ;;  %v1331_v16 = vadd.f32 %v10131_v6, %v1323_v5  ;;  %v2159_v6 = vpop.permute.xlu0 %2158 }
 0x407   : > { %v2173_v38 = vmul.f32 %v2143_v7, %v2111_v30  ;;  %v8796_v37 = vpop.f32.mrb[52].mxu0  ;;  %v2114_v57 = vadd.f32 %v8835_v14, %v2049_v19  ;;  %v8836_v60 = vpop.f32.mrb[52].mxu1  ;;  %v1330_v30 = vadd.f32 %v10125_v3, %v1322_v46 }
 0x408   : > { %v8797_v35 = vpop.f32.mrb[53].mxu0  ;;  %v8837_v41 = vpop.f32.mrb[53].mxu1 }
 0x409   : > { %v11089_v22 = vadd.f32 %v2173_v38, %v1328_v23  ;;  %v8798_v61 = vadd.f32 %v8797_v35, %v8796_v37  ;;  %v2174_v42 = vmul.f32 %v2147_v21, %v2114_v57  ;;  %v8799_v40 = vpop.f32.mrb[54].mxu0  ;;  %v8838_v17 = vadd.f32 %v8837_v41, %v8836_v60  ;;  %v8839_v63 = vpop.f32.mrb[54].mxu1 }
 0x40a   : > { %v8800_v62 = vpop.f32.mrb[55].mxu0  ;;  %v8840_v1 = vpop.f32.mrb[55].mxu1 }
 0x40b   : > { %v2054_v2 = vadd.f32 %v8798_v61, %v11081_v59  ;;  %v11093_v0 = vadd.f32 %v2174_v42, %v1329_v33  ;;  %v8801_v47 = vadd.f32 %v8800_v62, %v8799_v40  ;;  %v8841_v7 = vadd.f32 %v8840_v1, %v8839_v63  ;;  %v2155_v19 = vpop.permute.xlu1 %2154 }
 0x40c   : > { %v1324_v42 = vmul.f32 %v11054_v50, %v10773_v4  ;;  %v1325_v62 = vmul.f32 %v11072_v13, %v10775_v12  ;;  %v7688_v12 = vld [vmem:[%s12756_s5 + $0x8] sm:$0xf] }
 0x40d   : > { %v2057_v14 = vadd.f32 %v8801_v47, %v11081_v59  ;;  %v2119_v15 = vadd.f32 %v8838_v17, %v2054_v2 }
 0x40e   : > { %v1332_v1 = vadd.f32 %v10135_v8, %v1324_v42 }
 0x40f   : > { %v2175_v21 = vmul.f32 %v2151_v53, %v2119_v15  ;;  %v8802_v23 = vpop.f32.mrb[56].mxu0  ;;  %v2122_v38 = vadd.f32 %v8841_v7, %v2057_v14  ;;  %v8842_v37 = vpop.f32.mrb[56].mxu1  ;;  %v1333_v15 = vadd.f32 %v10137_v9, %v1325_v62 }
 0x410   : > { %v8803_v32 = vpop.f32.mrb[57].mxu0  ;;  %v8843_v33 = vpop.f32.mrb[57].mxu1 }
 0x411   : > { %v11099_v57 = vadd.f32 %v2175_v21, %v1330_v30  ;;  %v2176_v60 = vmul.f32 %v2155_v19, %v2122_v38  ;;  %v8804_v35 = vadd.f32 %v8803_v32, %v8802_v23  ;;  %v8805_v61 = vpop.f32.mrb[58].mxu0  ;;  %v8844_v56 = vadd.f32 %v8843_v33, %v8842_v37  ;;  %v8845_v39 = vpop.f32.mrb[58].mxu1 }
 0x412   : > { %v8806_v41 = vpop.f32.mrb[59].mxu0  ;;  %v8846_v17 = vpop.f32.mrb[59].mxu1  ;;  %v1326_v32 = vmul.f32 %v11074_v55, %v10788_v44  ;;  %v1327_v33 = vmul.f32 %v11076_v34, %v10796_v51  ;;  %v11131_v44 = vrot.slane %v7688_v12, %v10490_v26 }
 0x413   : > { %v11103_v3 = vadd.f32 %v2176_v60, %v1331_v16  ;;  %v2062_v53 = vadd.f32 %v8804_v35, %v11081_v59  ;;  %v8807_v40 = vadd.f32 %v8806_v41, %v8805_v61  ;;  %v8847_v63 = vadd.f32 %v8846_v17, %v8845_v39  ;;  %v2163_v47 = vpop.permute.xlu1 %2162 }
 0x414   : > { %v11124_v39 = vrot.slane %v7688_v12, %v10483_v24  ;;  %v1334_v51 = vadd.f32 %v10141_v10, %v1326_v32 }
 0x415   : > { %v2065_v46 = vadd.f32 %v8807_v40, %v11081_v59  ;;  %v2127_v2 = vadd.f32 %v8844_v56, %v2062_v53  ;;  %v2167_v56 = vpop.permute.xlu0 %2166  ;;  %v11128_v53 = vrot.slane %v7688_v12, %v10485_v25  ;;  %v11134_v40 = vrot.slane %v7688_v12, %v10492_v27 }
 0x417   : > { %v2177_v7 = vmul.f32 %v2159_v6, %v2127_v2  ;;  %v8808_v5 = vpop.f32.mrb[60].mxu0  ;;  %v2130_v4 = vadd.f32 %v8847_v63, %v2065_v46  ;;  %v8848_v50 = vpop.f32.mrb[60].mxu1  ;;  %v1335_v6 = vadd.f32 %v10143_v11, %v1327_v33 }
 0x418   : > { %v8809_v14 = vpop.f32.mrb[61].mxu0  ;;  %v8849_v23 = vpop.f32.mrb[61].mxu1 }
 0x419   : > { %v11111_v19 = vadd.f32 %v2177_v7, %v1332_v1  ;;  %v2178_v30 = vmul.f32 %v2163_v47, %v2130_v4  ;;  %v8810_v21 = vadd.f32 %v8809_v14, %v8808_v5  ;;  %v8811_v38 = vpop.f32.mrb[62].mxu0  ;;  %v8850_v13 = vadd.f32 %v8849_v23, %v8848_v50  ;;  %v8851_v37 = vpop.f32.mrb[62].mxu1 }
 0x41a   : > { %v8812_v8 = vpop.f32.mrb[63].mxu0  ;;  %v8852_v35 = vpop.f32.mrb[63].mxu1 }
 0x41b   : > { %v11118_v16 = vadd.f32 %v2178_v30, %v1333_v15  ;;  %v2070_v9 = vadd.f32 %v8810_v21, %v11081_v59  ;;  %v8813_v60 = vadd.f32 %v8812_v8, %v8811_v38  ;;  %v8853_v61 = vadd.f32 %v8852_v35, %v8851_v37  ;;  %v2171_v55 = vpop.permute.xlu1 %2170 }
 0x41d   : > { %v2073_v41 = vadd.f32 %v8813_v60, %v11081_v59  ;;  %v2135_v42 = vadd.f32 %v8850_v13, %v2070_v9 }
 0x41f   : > { %v2179_v34 = vmul.f32 %v2167_v56, %v2135_v42  ;;  %v2439_v17 = vpop.f32.mrb[64].mxu0  ;;  %v2138_v63 = vadd.f32 %v8853_v61, %v2073_v41  ;;  %v2512_v62 = vpop.f32.mrb[64].mxu1 }
 0x420   : > { %v2440_v59 = vadd.f32 %v2439_v17, %v11124_v39  ;;  %v2441_v46 = vpop.f32.mrb[65].mxu0  ;;  %v2513_v47 = vadd.f32 %v2512_v62, %v11128_v53  ;;  %v2514_v5 = vpop.f32.mrb[65].mxu1  ;;  %v9606_v17 = vld [vmem:[%s12755_s4 + $0x300] ss:$16 sps:$4 sm:$0xff]  }
 0x421   : > { %v11139_v2 = vadd.f32 %v2179_v34, %v1334_v51  ;;  %v2180_v1 = vmul.f32 %v2171_v55, %v2138_v63  ;;  %v2442_v7 = vadd.f32 %v2441_v46, %v11131_v44  ;;  %v2443_v4 = vpop.f32.mrb[66].mxu0  ;;  %v2515_v10 = vadd.f32 %v2514_v5, %v11134_v40  ;;  %v2516_v14 = vpop.f32.mrb[66].mxu1  ;;  %v9609_v63 = vld [vmem:[%s12755_s4 + $0x308] ss:$16 sps:$4 sm:$0xff]  }
 0x422   : > { %v2444_v50 = vadd.f32 %v2443_v4, %v11124_v39  ;;  %v2445_v15 = vpop.f32.mrb[67].mxu0  ;;  %v2517_v30 = vadd.f32 %v2516_v14, %v11128_v53  ;;  %v2518_v21 = vpop.f32.mrb[67].mxu1  ;;  %v2551_v23 = vmax.f32 %v2440_v59, 0.0  ;;  %v2553_v37 = vmax.f32 %v2513_v47, 0.0  ;;  %v9614_v47 = vld [vmem:[%s12755_s4 + $0x324] ss:$16 sps:$4 sm:$0xff]  }
 0x423   : > { %v11145_v11 = vadd.f32 %v2180_v1, %v1335_v6  ;;  %v2446_v12 = vadd.f32 %v2445_v15, %v11131_v44  ;;  %v2519_v13 = vadd.f32 %v2518_v21, %v11134_v40  ;;  %v2552_v8 = vmax.f32 %v2442_v7, 0.0  ;;  %v9617_v1 = vld [vmem:[%s12755_s4 + $0x32c] ss:$16 sps:$4 sm:$0xff]  }
 0x424   : > { %v2555_v38 = vmax.f32 %v2444_v50, 0.0  ;;  %v2557_v32 = vmax.f32 %v2517_v30, 0.0  ;;  %v2554_v9 = vmax.f32 %v2515_v10, 0.0 }
 0x425   : > { %v2556_v35 = vmax.f32 %v2446_v12, 0.0  ;;  %v2558_v33 = vmax.f32 %v2519_v13, 0.0  ;;  %v9615_v12 = vld [vmem:[%s12755_s4 + $0x328] ss:$16 sps:$4 sm:$0xff]  }
 0x426   : > { %v2583_v60 = vpack.c.bf16 %v2555_v38, %v2551_v23  ;;  %v2585_v61 = vpack.c.bf16 %v2557_v32, %v2553_v37  ;;  %v9612_v38 = vld [vmem:[%s12755_s4 + $0x320] ss:$16 sps:$4 sm:$0xff]  }
 0x427   : > { %v2449_v56 = vpop.f32.mrb[68].mxu0  ;;  %v2584_v41 = vpack.c.bf16 %v2556_v35, %v2552_v8  ;;  %v2586_v42 = vpack.c.bf16 %v2558_v33, %v2554_v9  ;;  %v2522_v51 = vpop.f32.mrb[68].mxu1  ;;  %v9620_v9 = vld [vmem:[%s12755_s4 + $0x344] ss:$16 sps:$4 sm:$0xff]  }
 0x428   : > { %v2450_v55 = vadd.f32 %v2449_v56, %v11124_v39  ;;  %v2451_v34 = vpop.f32.mrb[69].mxu0  ;;  %v2523_v6 = vadd.f32 %v2522_v51, %v11128_v53  ;;  %v2524_v62 = vpop.f32.mrb[69].mxu1 }
 0x429   : > { %v2452_v59 = vadd.f32 %v2451_v34, %v11131_v44  ;;  %v2453_v46 = vpop.f32.mrb[70].mxu0  ;;  %v2525_v7 = vadd.f32 %v2524_v62, %v11134_v40  ;;  %v2526_v4 = vpop.f32.mrb[70].mxu1  ;;  %2896 = vmatprep.mubr.bf16.mxu0 %v2584_v41  ;;  %2961 = vmatprep.mubr.bf16.mxu1 %v2586_v42 }
 0x42a   : > { %v2454_v5 = vadd.f32 %v2453_v46, %v11124_v39  ;;  %v2455_v10 = vpop.f32.mrb[71].mxu0  ;;  %v2527_v50 = vadd.f32 %v2526_v4, %v11128_v53  ;;  %v2528_v15 = vpop.f32.mrb[71].mxu1  ;;  %2897 = vmatmul.mubr.bf16.vlgmr.msra.gmra.mrb[80].mxu0 %v2583_v60  ;;  %2962 = vmatmul.mubr.bf16.vlgmr.msra.gmra.mrb[80].mxu1 %v2585_v61  ;;  %v2559_v30 = vmax.f32 %v2450_v55, 0.0  ;;  %v2561_v13 = vmax.f32 %v2523_v6, 0.0  ;;  %v9623_v61 = vld [vmem:[%s12755_s4 + $0x34c] ss:$16 sps:$4 sm:$0xff]  }
 0x42b   : > { %v2456_v14 = vadd.f32 %v2455_v10, %v11131_v44  ;;  %v2529_v23 = vadd.f32 %v2528_v15, %v11134_v40  ;;  %3259 = vmatpush1.bf16.msra.mxu0 %v9606_v17  ;;  %3332 = vmatpush1.bf16.msra.mxu1 %v9609_v63  ;;  %v2560_v37 = vmax.f32 %v2452_v59, 0.0  ;;  %v2562_v60 = vmax.f32 %v2525_v7, 0.0  ;;  %v9618_v63 = vld [vmem:[%s12755_s4 + $0x340] ss:$16 sps:$4 sm:$0xff]   ;;  %v9621_v6 = vld [vmem:[%s12755_s4 + $0x348] ss:$16 sps:$4 sm:$0xff]  }
 0x42c   : > { %v2563_v21 = vmax.f32 %v2454_v5, 0.0  ;;  %v2565_v8 = vmax.f32 %v2527_v50, 0.0  ;;  %3260 = vmatprep.subr.bf16.mxu0 %v9614_v47  ;;  %3333 = vmatprep.subr.bf16.mxu1 %v9617_v1  ;;  %v9626_v1 = vld [vmem:[%s12755_s4 + $0x364] ss:$16 sps:$4 sm:$0xff]   ;;  %v9629_v7 = vld [vmem:[%s12755_s4 + $0x36c] ss:$16 sps:$4 sm:$0xff]  }
 0x42d   : > { %v2564_v32 = vmax.f32 %v2456_v14, 0.0  ;;  %v2566_v33 = vmax.f32 %v2529_v23, 0.0 }
 0x42e   : > { %v2587_v35 = vpack.c.bf16 %v2563_v21, %v2559_v30  ;;  %v2589_v56 = vpack.c.bf16 %v2565_v8, %v2561_v13  ;;  %v9627_v13 = vld [vmem:[%s12755_s4 + $0x368] ss:$16 sps:$4 sm:$0xff]  }
 0x42f   : > { %v2588_v41 = vpack.c.bf16 %v2564_v32, %v2560_v37  ;;  %v2459_v42 = vpop.f32.mrb[72].mxu0  ;;  %v2590_v55 = vpack.c.bf16 %v2566_v33, %v2562_v60  ;;  %3261 = vmatpush1.bf16.msra.mxu0 %v9612_v38  ;;  %v2532_v34 = vpop.f32.mrb[72].mxu1  ;;  %3334 = vmatpush1.bf16.msra.mxu1 %v9615_v12  ;;  %v9624_v12 = vld [vmem:[%s12755_s4 + $0x360] ss:$16 sps:$4 sm:$0xff]   ;;  %v9632_v60 = vld [vmem:[%s12755_s4 + $0x384] ss:$16 sps:$4 sm:$0xff]  }
 0x430   : > { %v2460_v51 = vadd.f32 %v2459_v42, %v11124_v39  ;;  %v2461_v17 = vpop.f32.mrb[73].mxu0  ;;  %v2533_v59 = vadd.f32 %v2532_v34, %v11128_v53  ;;  %v2534_v46 = vpop.f32.mrb[73].mxu1  ;;  %3262 = vmatprep.subr.bf16.mxu0 %v9620_v9  ;;  %3335 = vmatprep.subr.bf16.mxu1 %v9623_v61 }
 0x431   : > { %v2462_v62 = vadd.f32 %v2461_v17, %v11131_v44  ;;  %v2463_v47 = vpop.f32.mrb[74].mxu0  ;;  %2904 = vmatprep.mubr.bf16.mxu0 %v2588_v41  ;;  %v2535_v5 = vadd.f32 %v2534_v46, %v11134_v40  ;;  %v2536_v10 = vpop.f32.mrb[74].mxu1  ;;  %2969 = vmatprep.mubr.bf16.mxu1 %v2590_v55 }
 0x432   : > { %v2464_v4 = vadd.f32 %v2463_v47, %v11124_v39  ;;  %v2465_v50 = vpop.f32.mrb[75].mxu0  ;;  %v2537_v14 = vadd.f32 %v2536_v10, %v11128_v53  ;;  %v2538_v30 = vpop.f32.mrb[75].mxu1  ;;  %2905 = vmatmul.mubr.bf16.gmra.mrb[84].mxu0 %v2587_v35  ;;  %2970 = vmatmul.mubr.bf16.gmra.mrb[84].mxu1 %v2589_v56  ;;  %v2567_v21 = vmax.f32 %v2460_v51, 0.0  ;;  %v2569_v37 = vmax.f32 %v2533_v59, 0.0  ;;  %v9635_v56 = vld [vmem:[%s12755_s4 + $0x38c] ss:$16 sps:$4 sm:$0xff]  }
 0x433   : > { %v2466_v15 = vadd.f32 %v2465_v50, %v11131_v44  ;;  %v2539_v38 = vadd.f32 %v2538_v30, %v11134_v40  ;;  %3263 = vmatpush1.bf16.msra.mxu0 %v9618_v63  ;;  %3336 = vmatpush1.bf16.msra.mxu1 %v9621_v6  ;;  %v2568_v8 = vmax.f32 %v2462_v62, 0.0  ;;  %v2570_v35 = vmax.f32 %v2535_v5, 0.0  ;;  %v9630_v6 = vld [vmem:[%s12755_s4 + $0x380] ss:$16 sps:$4 sm:$0xff]   ;;  %v9633_v59 = vld [vmem:[%s12755_s4 + $0x388] ss:$16 sps:$4 sm:$0xff]  }
 0x434   : > { %v2571_v23 = vmax.f32 %v2464_v4, 0.0  ;;  %v2573_v32 = vmax.f32 %v2537_v14, 0.0  ;;  %3264 = vmatprep.subr.bf16.mxu0 %v9626_v1  ;;  %3337 = vmatprep.subr.bf16.mxu1 %v9629_v7  ;;  %v9638_v7 = vld [vmem:[%s12755_s4 + $0x3a4] ss:$16 sps:$4 sm:$0xff]   ;;  %v9641_v5 = vld [vmem:[%s12755_s4 + $0x3ac] ss:$16 sps:$4 sm:$0xff]  }
 0x435   : > { %v2572_v9 = vmax.f32 %v2466_v15, 0.0  ;;  %v2574_v61 = vmax.f32 %v2539_v38, 0.0 }
 0x436   : > { %v2591_v33 = vpack.c.bf16 %v2571_v23, %v2567_v21  ;;  %v2593_v41 = vpack.c.bf16 %v2573_v32, %v2569_v37 }
 0x437   : > { %v2592_v42 = vpack.c.bf16 %v2572_v9, %v2568_v8  ;;  %v2469_v55 = vpop.f32.mrb[76].mxu0  ;;  %v2594_v51 = vpack.c.bf16 %v2574_v61, %v2570_v35  ;;  %3265 = vmatpush1.bf16.msra.mxu0 %v9624_v12  ;;  %v2542_v17 = vpop.f32.mrb[76].mxu1  ;;  %3338 = vmatpush1.bf16.msra.mxu1 %v9627_v13  ;;  %v9639_v13 = vld [vmem:[%s12755_s4 + $0x3a8] ss:$16 sps:$4 sm:$0xff]   ;;  %v9647_v35 = vld [vmem:[%s12755_s4 + $0x3cc] ss:$16 sps:$4 sm:$0xff]  }
 0x438   : > { %v2470_v34 = vadd.f32 %v2469_v55, %v11124_v39  ;;  %v2471_v63 = vpop.f32.mrb[77].mxu0  ;;  %v2543_v62 = vadd.f32 %v2542_v17, %v11128_v53  ;;  %v2544_v47 = vpop.f32.mrb[77].mxu1  ;;  %3266 = vmatprep.subr.bf16.mxu0 %v9632_v60  ;;  %3339 = vmatprep.subr.bf16.mxu1 %v9635_v56  ;;  %v9650_v55 = vld [vmem:[%s12755_s4 + $0x3e4] ss:$16 sps:$4 sm:$0xff]   ;;  %v9651_v17 = vld [vmem:[%s12755_s4 + $0x3e8] ss:$16 sps:$4 sm:$0xff]  }
 0x439   : > { %v2472_v46 = vadd.f32 %v2471_v63, %v11131_v44  ;;  %v2473_v1 = vpop.f32.mrb[78].mxu0  ;;  %2912 = vmatprep.mubr.bf16.mxu0 %v2592_v42  ;;  %v2545_v4 = vadd.f32 %v2544_v47, %v11134_v40  ;;  %v2546_v50 = vpop.f32.mrb[78].mxu1  ;;  %2977 = vmatprep.mubr.bf16.mxu1 %v2594_v51  ;;  %v9645_v42 = vld [vmem:[%s12755_s4 + $0x3c8] ss:$16 sps:$4 sm:$0xff]   ;;  %v9653_v51 = vld [vmem:[%s12755_s4 + $0x3ec] ss:$16 sps:$4 sm:$0xff]  }
 0x43a   : > { %v2474_v10 = vadd.f32 %v2473_v1, %v11124_v39  ;;  %v2475_v14 = vpop.f32.mrb[79].mxu0  ;;  %v2547_v15 = vadd.f32 %v2546_v50, %v11128_v53  ;;  %v2548_v21 = vpop.f32.mrb[79].mxu1  ;;  %2913 = vmatmul.mubr.bf16.gmra.mrb[88].mxu0 %v2591_v33  ;;  %2978 = vmatmul.mubr.bf16.gmra.mrb[88].mxu1 %v2593_v41  ;;  %v2575_v23 = vmax.f32 %v2470_v34, 0.0  ;;  %v9636_v39 = vld [vmem:[%s12755_s4 + $0x3a0] ss:$16 sps:$4 sm:$0xff]   ;;  %v2577_v53 = vmax.f32 %v2543_v62, 0.0 }
 0x43b   : > { %v2476_v30 = vadd.f32 %v2475_v14, %v11131_v44  ;;  %v2549_v12 = vadd.f32 %v2548_v21, %v11134_v40  ;;  %3267 = vmatpush1.bf16.msra.mxu0 %v9630_v6  ;;  %3340 = vmatpush1.bf16.msra.mxu1 %v9633_v59  ;;  %v2576_v37 = vmax.f32 %v2472_v46, 0.0  ;;  %v9644_v40 = vld [vmem:[%s12755_s4 + $0x3c4] ss:$16 sps:$4 sm:$0xff]   ;;  %v2578_v32 = vmax.f32 %v2545_v4, 0.0  ;;  %v9642_v41 = vld [vmem:[%s12755_s4 + $0x3c0] ss:$16 sps:$4 sm:$0xff]  }
 0x43c   : > { %v2579_v38 = vmax.f32 %v2474_v10, 0.0  ;;  %v2581_v44 = vmax.f32 %v2547_v15, 0.0  ;;  %3268 = vmatprep.subr.bf16.mxu0 %v9638_v7  ;;  %3341 = vmatprep.subr.bf16.mxu1 %v9641_v5  ;;  %v9648_v34 = vld [vmem:[%s12755_s4 + $0x3e0] ss:$16 sps:$4 sm:$0xff]   ;;  %v9658_v46 = vld [vmem:[%s12757_s6 + $0x348] sm:$0xff]   ;;  %v9666_v14 = vld [vmem:[%s12757_s6 + $0x358] sm:$0xff]  }
 0x43d   : > { %v2580_v8 = vmax.f32 %v2476_v30, 0.0  ;;  %v2582_v60 = vmax.f32 %v2549_v12, 0.0  ;;  %v9654_v63 = vld [vmem:[%s12757_s6 + $0x340] sm:$0xff]   ;;  %v9660_v47 = vld [vmem:[%s12757_s6 + $0x3c8] sm:$0xff]   ;;  %v9662_v5 = vld [vmem:[%s12757_s6 + $0x350] sm:$0xff]  }
 0x43e   : > { %v2595_v9 = vpack.c.bf16 %v2579_v38, %v2575_v23  ;;  %v2597_v33 = vpack.c.bf16 %v2581_v44, %v2577_v53  ;;  %v9656_v6 = vld [vmem:[%s12757_s6 + $0x3c0] sm:$0xff]   ;;  %v9659_v1 = vld [vmem:[%s12757_s6 + $0x308] sm:$0xff]   ;;  %v9664_v4 = vld [vmem:[%s12757_s6 + $0x3d0] sm:$0xff]  }
 0x43f   : > { %v2596_v61 = vpack.c.bf16 %v2580_v8, %v2576_v37  ;;  %v2598_v56 = vpack.c.bf16 %v2582_v60, %v2578_v32  ;;  %3269 = vmatpush1.bf16.msra.mxu0 %v9636_v39  ;;  %3342 = vmatpush1.bf16.msra.mxu1 %v9639_v13  ;;  %v9655_v59 = vld [vmem:[%s12757_s6 + $0x300] sm:$0xff]   ;;  %v9661_v7 = vld [vmem:[%s12757_s6 + $0x388] sm:$0xff]   ;;  %v9663_v10 = vld [vmem:[%s12757_s6 + $0x310] sm:$0xff]  }
 0x440   : > { %3270 = vmatprep.subr.bf16.mxu0 %v9644_v40  ;;  %3343 = vmatprep.subr.bf16.mxu1 %v9647_v35  ;;  %v9657_v62 = vld [vmem:[%s12757_s6 + $0x380] sm:$0xff]   ;;  %v9665_v50 = vld [vmem:[%s12757_s6 + $0x390] sm:$0xff]   ;;  %v9668_v15 = vld [vmem:[%s12757_s6 + $0x3d8] sm:$0xff]  }
 0x441   : > { %2920 = vmatprep.mubr.bf16.mxu0 %v2596_v61  ;;  %2985 = vmatprep.mubr.bf16.mxu1 %v2598_v56  ;;  %v9667_v30 = vld [vmem:[%s12757_s6 + $0x318] sm:$0xff]   ;;  %v9670_v23 = vld [vmem:[%s12757_s6 + $0x360] sm:$0xff]   ;;  %v9674_v13 = vld [vmem:[%s12757_s6 + $0x368] sm:$0xff]  }
 0x442   : > { %2921 = vmatmul.mubr.bf16.gmra.mrb[92].mxu0 %v2595_v9  ;;  %2986 = vmatmul.mubr.bf16.gmra.mrb[92].mxu1 %v2597_v33  ;;  %v9669_v21 = vld [vmem:[%s12757_s6 + $0x398] sm:$0xff]   ;;  %v9672_v38 = vld [vmem:[%s12757_s6 + $0x3e0] sm:$0xff]   ;;  %v9676_v53 = vld [vmem:[%s12757_s6 + $0x3e8] sm:$0xff]  }
 0x443   : > { %3271 = vmatpush1.bf16.msra.mxu0 %v9642_v41  ;;  %3344 = vmatpush1.bf16.msra.mxu1 %v9645_v42  ;;  %v9671_v12 = vld [vmem:[%s12757_s6 + $0x320] sm:$0xff]   ;;  %v9675_v37 = vld [vmem:[%s12757_s6 + $0x328] sm:$0xff]   ;;  %v9678_v8 = vld [vmem:[%s12757_s6 + $0x370] sm:$0xff]   ;;  %v10057_v42 = vmov 3  }
 0x444   : > { %3272 = vmatprep.subr.bf16.mxu0 %v9650_v55  ;;  %3345 = vmatprep.subr.bf16.mxu1 %v9653_v51  ;;  %v9673_v39 = vld [vmem:[%s12757_s6 + $0x3a0] sm:$0xff]   ;;  %v9677_v44 = vld [vmem:[%s12757_s6 + $0x3a8] sm:$0xff]   ;;  %v9680_v40 = vld [vmem:[%s12757_s6 + $0x3f0] sm:$0xff]  }
 0x445   : > { %3290 = vmatprep.mubr.bf16.mxu0 %v10054_v20  ;;  %3363 = vmatprep.mubr.bf16.mxu1 %v10054_v20  ;;  %v9679_v32 = vld [vmem:[%s12757_s6 + $0x330] sm:$0xff]   ;;  %v9682_v60 = vld [vmem:[%s12757_s6 + $0x378] sm:$0xff]  }
 0x446   : > { %v9681_v9 = vld [vmem:[%s12757_s6 + $0x3b0] sm:$0xff]   ;;  %v9684_v35 = vld [vmem:[%s12757_s6 + $0x3f8] sm:$0xff]   ;;  %9356 = vset.pattern.permute.xlu1 %v10057_v42  ;;  %9357 = vset.pattern.permute.xlu0 %v10057_v42 }
 0x447   : > { %3273 = vmatpush1.bf16.msra.mxu0 %v9648_v34  ;;  %3346 = vmatpush1.bf16.msra.mxu1 %v9651_v17  ;;  %v9683_v33 = vld [vmem:[%s12757_s6 + $0x338] sm:$0xff]   ;;  %v9688_v56 = vld [vmem:[%s12755_s4 + $0x404] ss:$16 sps:$4 sm:$0xff]  }
 0x448   : > { %8934 = vmatprep.subr.bf16.mxu0 %v9654_v63  ;;  %8974 = vmatprep.subr.bf16.mxu1 %v9656_v6  ;;  %v9685_v61 = vld [vmem:[%s12757_s6 + $0x3b8] sm:$0xff]  }
 0x449   : > { %v9691_v41 = vld [vmem:[%s12755_s4 + $0x40c] ss:$16 sps:$4 sm:$0xff]   ;;  %3848 = vperm.xlu1 %9356, %v11039_v18   ;;  %3852 = vperm.xlu0 %9357, %v11043_v36   ;;  %v11393_v18 = vld [vmem:[%s12758_s7 + $0x2] ss:$0 sm:$0xff] }
 0x44a   : > { %3291 = vmatmul.mubr.bf16.vlgmr.msra.gmra.mrb[96].mxu0 %v10311_v29  ;;  %3364 = vmatmul.mubr.bf16.vlgmr.msra.gmra.mrb[96].mxu1 %v10311_v29 }
 0x44b   : > { %3300 = vmatprep.mubr.bf16.mxu0 %v10054_v20  ;;  %3373 = vmatprep.mubr.bf16.mxu1 %v10054_v20 }
 0x44c   : > { %8935 = vmatpush3.bf16.msra.mxu0 %v9655_v59  ;;  %8975 = vmatpush3.bf16.msra.mxu1 %v9657_v62 }
 0x44d   : > { %8936 = vmatprep.subr.bf16.mxu0 %v9658_v46  ;;  %8976 = vmatprep.subr.bf16.mxu1 %v9660_v47  ;;  %v3000_v47 = vpop.permute.xlu1 %2999 }
 0x44e   : > { %3856 = vperm.xlu1 %9356, %v11047_v43   ;;  %3864 = vperm.xlu0 %9357, %v11057_v52  }
 0x450   : > { %8937 = vmatpush3.bf16.msra.mxu0 %v9659_v1  ;;  %8977 = vmatpush3.bf16.msra.mxu1 %v9661_v7 }
 0x451   : > { %8938 = vmatprep.subr.bf16.mxu0 %v9662_v5  ;;  %8978 = vmatprep.subr.bf16.mxu1 %v9664_v4 }
 0x452   : > { %3301 = vmatmul.mubr.bf16.gmra.mrb[100].mxu0 %v10347_v28  ;;  %3374 = vmatmul.mubr.bf16.gmra.mrb[100].mxu1 %v10347_v28 }
 0x453   : > { %3310 = vmatprep.mubr.bf16.mxu0 %v10054_v20  ;;  %3383 = vmatprep.mubr.bf16.mxu1 %v10054_v20 }
 0x454   : > { %8939 = vmatpush3.bf16.msra.mxu0 %v9663_v10  ;;  %8979 = vmatpush3.bf16.msra.mxu1 %v9665_v50 }
 0x455   : > { %8940 = vmatprep.subr.bf16.mxu0 %v9666_v14  ;;  %8980 = vmatprep.subr.bf16.mxu1 %v9668_v15 }
 0x456   : > { %3860 = vperm.xlu1 %9356, %v11051_v48   ;;  %3872 = vperm.xlu0 %9357, %v11065_v31  }
 0x458   : > { %8941 = vmatpush3.bf16.msra.mxu0 %v9667_v30  ;;  %8981 = vmatpush3.bf16.msra.mxu1 %v9669_v21 }
 0x459   : > { %8942 = vmatprep.subr.bf16.mxu0 %v9670_v23  ;;  %8982 = vmatprep.subr.bf16.mxu1 %v9672_v38 }
 0x45a   : > { %3311 = vmatmul.mubr.bf16.gmra.mrb[104].mxu0 %v10383_v49  ;;  %3384 = vmatmul.mubr.bf16.gmra.mrb[104].mxu1 %v10383_v49 }
 0x45b   : > { %3320 = vmatprep.mubr.bf16.mxu0 %v10054_v20  ;;  %3393 = vmatprep.mubr.bf16.mxu1 %v10054_v20 }
 0x45c   : > { %8943 = vmatpush3.bf16.msra.mxu0 %v9671_v12  ;;  %8983 = vmatpush3.bf16.msra.mxu1 %v9673_v39 }
 0x45d   : > { %8944 = vmatprep.subr.bf16.mxu0 %v9674_v13  ;;  %8984 = vmatprep.subr.bf16.mxu1 %v9676_v53 }
 0x45e   : > { %3868 = vperm.xlu1 %9356, %v11061_v45  }
 0x460   : > { %8945 = vmatpush3.bf16.msra.mxu0 %v9675_v37  ;;  %8985 = vmatpush3.bf16.msra.mxu1 %v9677_v44 }
 0x461   : > { %8946 = vmatprep.subr.bf16.mxu0 %v9678_v8  ;;  %8986 = vmatprep.subr.bf16.mxu1 %v9680_v40  ;;  %v3004_v8 = vpop.permute.xlu1 %3003 }
 0x462   : > { %3321 = vmatmul.mubr.bf16.gmra.mrb[108].mxu0 %v10408_v58  ;;  %3394 = vmatmul.mubr.bf16.gmra.mrb[108].mxu1 %v10408_v58 }
 0x463   : > { %3876 = vperm.xlu1 %9356, %v11069_v54   ;;  %v2996_v54 = vpop.permute.xlu0 %2995 }
 0x464   : > { %8947 = vmatpush3.bf16.msra.mxu0 %v9679_v32  ;;  %8987 = vmatpush3.bf16.msra.mxu1 %v9681_v9 }
 0x465   : > { %8948 = vmatprep.subr.bf16.mxu0 %v9682_v60  ;;  %8988 = vmatprep.subr.bf16.mxu1 %v9684_v35 }
 0x468   : > { %8949 = vmatpush3.bf16.msra.mxu0 %v9683_v33  ;;  %8989 = vmatpush3.bf16.msra.mxu1 %v9685_v61 }
 0x469   : > { %4111 = vmatprep.subr.bf16.mxu0 %v9688_v56  ;;  %4184 = vmatprep.subr.bf16.mxu1 %v9691_v41 }
 0x4fd   : > { %v8870_v55 = vpop.f32.mrb[80].mxu0  ;;  %v8910_v51 = vpop.f32.mrb[80].mxu1 }
 0x4fe   : > { %v8871_v36 = vpop.f32.mrb[81].mxu0  ;;  %v8911_v34 = vpop.f32.mrb[81].mxu1 }
 0x4ff   : > { %v8872_v43 = vadd.f32 %v8871_v36, %v8870_v55  ;;  %v8912_v17 = vadd.f32 %v8911_v34, %v8910_v51  ;;  %v8873_v52 = vpop.f32.mrb[82].mxu0  ;;  %v8913_v63 = vpop.f32.mrb[82].mxu1 }
 0x500   : > { %v8874_v48 = vpop.f32.mrb[83].mxu0  ;;  %v8914_v6 = vpop.f32.mrb[83].mxu1 }
 0x501   : > { %v2899_v31 = vadd.f32 %v8872_v43, %v11393_v18  ;;  %v8875_v45 = vadd.f32 %v8874_v48, %v8873_v52  ;;  %v8915_v59 = vadd.f32 %v8914_v6, %v8913_v63  ;;  %v3012_v6 = vpop.permute.xlu1 %3011 }
 0x503   : > { %v2902_v62 = vadd.f32 %v8875_v45, %v11393_v18  ;;  %v2964_v46 = vadd.f32 %v8912_v17, %v2899_v31 }
 0x505   : > { %v3026_v1 = vmul.f32 %v2996_v54, %v2964_v46  ;;  %v8876_v7 = vpop.f32.mrb[84].mxu0  ;;  %v8916_v5 = vpop.f32.mrb[84].mxu1  ;;  %v2967_v4 = vadd.f32 %v8915_v59, %v2902_v62 }
 0x506   : > { %v8877_v10 = vpop.f32.mrb[85].mxu0  ;;  %v8917_v50 = vpop.f32.mrb[85].mxu1 }
 0x507   : > { %v11398_v14 = vadd.f32 %v3026_v1, %v11089_v22  ;;  %v3027_v15 = vmul.f32 %v3000_v47, %v2967_v4  ;;  %v8878_v30 = vadd.f32 %v8877_v10, %v8876_v7  ;;  %v8918_v21 = vadd.f32 %v8917_v50, %v8916_v5  ;;  %v8879_v23 = vpop.f32.mrb[86].mxu0  ;;  %v8919_v38 = vpop.f32.mrb[86].mxu1 }
 0x508   : > { %v8880_v12 = vpop.f32.mrb[87].mxu0  ;;  %v8920_v39 = vpop.f32.mrb[87].mxu1 }
 0x509   : > { %v11401_v13 = vadd.f32 %v3027_v15, %v11093_v0  ;;  %v2907_v53 = vadd.f32 %v8878_v30, %v11393_v18  ;;  %v8881_v37 = vadd.f32 %v8880_v12, %v8879_v23  ;;  %v8921_v44 = vadd.f32 %v8920_v39, %v8919_v38  ;;  %v3008_v22 = vpop.permute.xlu0 %3007  ;;  %v7851_v15 = vld [vmem:[%s12756_s5 + $0xc] sm:$0xf] }
 0x50b   : > { %v2910_v40 = vadd.f32 %v8881_v37, %v11393_v18  ;;  %v2972_v32 = vadd.f32 %v8918_v21, %v2907_v53  ;;  %v11424_v53 = vrot.slane %v7851_v15, %v10483_v24  ;;  %v11427_v37 = vrot.slane %v7851_v15, %v10485_v25 }
 0x50d   : > { %v3028_v9 = vmul.f32 %v3004_v8, %v2972_v32  ;;  %v8882_v60 = vpop.f32.mrb[88].mxu0  ;;  %v8922_v35 = vpop.f32.mrb[88].mxu1  ;;  %v2975_v33 = vadd.f32 %v8921_v44, %v2910_v40  ;;  %v11431_v40 = vrot.slane %v7851_v15, %v10490_v26  ;;  %v11434_v32 = vrot.slane %v7851_v15, %v10492_v27 }
 0x50e   : > { %v8883_v61 = vpop.f32.mrb[89].mxu0  ;;  %v8923_v56 = vpop.f32.mrb[89].mxu1 }
 0x50f   : > { %v11406_v41 = vadd.f32 %v3028_v9, %v11099_v57  ;;  %v8884_v0 = vadd.f32 %v8883_v61, %v8882_v60  ;;  %v8924_v42 = vadd.f32 %v8923_v56, %v8922_v35  ;;  %v3029_v55 = vmul.f32 %v3008_v22, %v2975_v33  ;;  %v8885_v51 = vpop.f32.mrb[90].mxu0  ;;  %v8925_v36 = vpop.f32.mrb[90].mxu1 }
 0x510   : > { %v8886_v34 = vpop.f32.mrb[91].mxu0  ;;  %v8926_v43 = vpop.f32.mrb[91].mxu1 }
 0x511   : > { %v2915_v17 = vadd.f32 %v8884_v0, %v11393_v18  ;;  %v11410_v52 = vadd.f32 %v3029_v55, %v11103_v3  ;;  %v8887_v63 = vadd.f32 %v8886_v34, %v8885_v51  ;;  %v8927_v48 = vadd.f32 %v8926_v43, %v8925_v36  ;;  %v3016_v57 = vpop.permute.xlu0 %3015 }
 0x513   : > { %v2918_v31 = vadd.f32 %v8887_v63, %v11393_v18  ;;  %v2980_v45 = vadd.f32 %v8924_v42, %v2915_v17 }
 0x515   : > { %v3030_v59 = vmul.f32 %v3012_v6, %v2980_v45  ;;  %v8888_v54 = vpop.f32.mrb[92].mxu0  ;;  %v8928_v62 = vpop.f32.mrb[92].mxu1  ;;  %v2983_v46 = vadd.f32 %v8927_v48, %v2918_v31 }
 0x516   : > { %v8889_v47 = vpop.f32.mrb[93].mxu0  ;;  %v8929_v1 = vpop.f32.mrb[93].mxu1 }
 0x517   : > { %v11414_v7 = vadd.f32 %v3030_v59, %v11111_v19  ;;  %v8890_v5 = vadd.f32 %v8889_v47, %v8888_v54  ;;  %v8930_v4 = vadd.f32 %v8929_v1, %v8928_v62  ;;  %v3031_v3 = vmul.f32 %v3016_v57, %v2983_v46  ;;  %v8891_v10 = vpop.f32.mrb[94].mxu0  ;;  %v8931_v50 = vpop.f32.mrb[94].mxu1 }
 0x518   : > { %v8892_v30 = vpop.f32.mrb[95].mxu0  ;;  %v8932_v21 = vpop.f32.mrb[95].mxu1 }
 0x519   : > { %v2923_v23 = vadd.f32 %v8890_v5, %v11393_v18  ;;  %v11421_v38 = vadd.f32 %v3031_v3, %v11118_v16  ;;  %v8893_v12 = vadd.f32 %v8892_v30, %v8891_v10  ;;  %v8933_v39 = vadd.f32 %v8932_v21, %v8931_v50  ;;  %v3020_v19 = vpop.permute.xlu1 %3019  ;;  %v3024_v16 = vpop.permute.xlu0 %3023 }
 0x51b   : > { %v2926_v44 = vadd.f32 %v8893_v12, %v11393_v18  ;;  %v2988_v8 = vadd.f32 %v8930_v4, %v2923_v23 }
 0x51d   : > { %v3032_v22 = vmul.f32 %v3020_v19, %v2988_v8  ;;  %v3292_v9 = vpop.f32.mrb[96].mxu0  ;;  %v3365_v60 = vpop.f32.mrb[96].mxu1  ;;  %v2991_v35 = vadd.f32 %v8933_v39, %v2926_v44  ;;  %v9689_v39 = vld [vmem:[%s12755_s4 + $0x408] ss:$16 sps:$4 sm:$0xff]   ;;  %v9694_v19 = vld [vmem:[%s12755_s4 + $0x424] ss:$16 sps:$4 sm:$0xff]  }
 0x51e   : > { %v3293_v33 = vadd.f32 %v3292_v9, %v11424_v53  ;;  %v3366_v61 = vadd.f32 %v3365_v60, %v11427_v37  ;;  %v3294_v56 = vpop.f32.mrb[97].mxu0  ;;  %v3367_v0 = vpop.f32.mrb[97].mxu1  ;;  %v9697_v9 = vld [vmem:[%s12755_s4 + $0x42c] ss:$16 sps:$4 sm:$0xff]  }
 0x51f   : > { %v11439_v18 = vadd.f32 %v3032_v22, %v11139_v2  ;;  %v3295_v42 = vadd.f32 %v3294_v56, %v11431_v40  ;;  %v3033_v55 = vmul.f32 %v3024_v16, %v2991_v35  ;;  %v3296_v51 = vpop.f32.mrb[98].mxu0  ;;  %v3369_v36 = vpop.f32.mrb[98].mxu1  ;;  %v3368_v34 = vadd.f32 %v3367_v0, %v11434_v32 }
 0x520   : > { %v3297_v43 = vadd.f32 %v3296_v51, %v11424_v53  ;;  %v3370_v17 = vadd.f32 %v3369_v36, %v11427_v37  ;;  %v3298_v63 = vpop.f32.mrb[99].mxu0  ;;  %v3371_v48 = vpop.f32.mrb[99].mxu1  ;;  %v3404_v6 = vmax.f32 %v3293_v33, 0.0  ;;  %v3406_v45 = vmax.f32 %v3366_v61, 0.0 }
 0x521   : > { %v11446_v31 = vadd.f32 %v3033_v55, %v11145_v11  ;;  %v3299_v2 = vadd.f32 %v3298_v63, %v11431_v40  ;;  %v3372_v54 = vadd.f32 %v3371_v48, %v11434_v32  ;;  %v3405_v62 = vmax.f32 %v3295_v42, 0.0  ;;  %v9686_v11 = vld [vmem:[%s12755_s4 + $0x400] ss:$16 sps:$4 sm:$0xff]   ;;  %v9695_v55 = vld [vmem:[%s12755_s4 + $0x428] ss:$16 sps:$4 sm:$0xff]  }
 0x522   : > { %v3408_v57 = vmax.f32 %v3297_v43, 0.0  ;;  %v3410_v59 = vmax.f32 %v3370_v17, 0.0  ;;  %v3407_v47 = vmax.f32 %v3368_v34, 0.0  ;;  %v9692_v42 = vld [vmem:[%s12755_s4 + $0x420] ss:$16 sps:$4 sm:$0xff]  }
 0x523   : > { %v3409_v46 = vmax.f32 %v3299_v2, 0.0  ;;  %v3411_v4 = vmax.f32 %v3372_v54, 0.0  ;;  %v9700_v17 = vld [vmem:[%s12755_s4 + $0x444] ss:$16 sps:$4 sm:$0xff]  }
 0x524   : > { %v3436_v1 = vpack.c.bf16 %v3408_v57, %v3404_v6  ;;  %v3438_v5 = vpack.c.bf16 %v3410_v59, %v3406_v45  ;;  %v9703_v59 = vld [vmem:[%s12755_s4 + $0x44c] ss:$16 sps:$4 sm:$0xff]  }
 0x525   : > { %v3437_v3 = vpack.c.bf16 %v3409_v46, %v3405_v62  ;;  %v3302_v10 = vpop.f32.mrb[100].mxu0  ;;  %v3375_v50 = vpop.f32.mrb[100].mxu1  ;;  %v3439_v15 = vpack.c.bf16 %v3411_v4, %v3407_v47 }
 0x526   : > { %v3303_v30 = vadd.f32 %v3302_v10, %v11424_v53  ;;  %v3376_v21 = vadd.f32 %v3375_v50, %v11427_v37  ;;  %v3304_v23 = vpop.f32.mrb[101].mxu0  ;;  %v3377_v12 = vpop.f32.mrb[101].mxu1  ;;  %v9701_v50 = vld [vmem:[%s12755_s4 + $0x448] ss:$16 sps:$4 sm:$0xff]  }
 0x527   : > { %v3305_v44 = vadd.f32 %v3304_v23, %v11431_v40  ;;  %v3378_v8 = vadd.f32 %v3377_v12, %v11434_v32  ;;  %v3306_v16 = vpop.f32.mrb[102].mxu0  ;;  %v3379_v22 = vpop.f32.mrb[102].mxu1  ;;  %3749 = vmatprep.mubr.bf16.mxu0 %v3437_v3  ;;  %3814 = vmatprep.mubr.bf16.mxu1 %v3439_v15  ;;  %v9709_v12 = vld [vmem:[%s12755_s4 + $0x46c] ss:$16 sps:$4 sm:$0xff]  }
 0x528   : > { %v3307_v60 = vadd.f32 %v3306_v16, %v11424_v53  ;;  %v3380_v35 = vadd.f32 %v3379_v22, %v11427_v37  ;;  %v3308_v33 = vpop.f32.mrb[103].mxu0  ;;  %v3381_v61 = vpop.f32.mrb[103].mxu1  ;;  %3750 = vmatmul.mubr.bf16.vlgmr.msra.gmra.mrb[112].mxu0 %v3436_v1  ;;  %3815 = vmatmul.mubr.bf16.vlgmr.msra.gmra.mrb[112].mxu1 %v3438_v5  ;;  %v3412_v51 = vmax.f32 %v3303_v30, 0.0  ;;  %v3414_v36 = vmax.f32 %v3376_v21, 0.0  ;;  %v9698_v1 = vld [vmem:[%s12755_s4 + $0x440] ss:$16 sps:$4 sm:$0xff]  }
 0x529   : > { %v3309_v56 = vadd.f32 %v3308_v33, %v11431_v40  ;;  %v3382_v0 = vadd.f32 %v3381_v61, %v11434_v32  ;;  %4112 = vmatpush1.bf16.msra.mxu0 %v9686_v11  ;;  %4185 = vmatpush1.bf16.msra.mxu1 %v9689_v39  ;;  %v3413_v63 = vmax.f32 %v3305_v44, 0.0  ;;  %v3415_v48 = vmax.f32 %v3378_v8, 0.0  ;;  %v9706_v11 = vld [vmem:[%s12755_s4 + $0x464] ss:$16 sps:$4 sm:$0xff]  }
 0x52a   : > { %v3416_v34 = vmax.f32 %v3307_v60, 0.0  ;;  %v3418_v43 = vmax.f32 %v3380_v35, 0.0  ;;  %4113 = vmatprep.subr.bf16.mxu0 %v9694_v19  ;;  %4186 = vmatprep.subr.bf16.mxu1 %v9697_v9  ;;  %v9704_v9 = vld [vmem:[%s12755_s4 + $0x460] ss:$16 sps:$4 sm:$0xff]   ;;  %v9707_v60 = vld [vmem:[%s12755_s4 + $0x468] ss:$16 sps:$4 sm:$0xff]  }
 0x52b   : > { %v3417_v6 = vmax.f32 %v3309_v56, 0.0  ;;  %v3419_v2 = vmax.f32 %v3382_v0, 0.0  ;;  %v9712_v0 = vld [vmem:[%s12755_s4 + $0x484] ss:$16 sps:$4 sm:$0xff]  }
 0x52c   : > { %v3440_v45 = vpack.c.bf16 %v3416_v34, %v3412_v51  ;;  %v3442_v57 = vpack.c.bf16 %v3418_v43, %v3414_v36 }
 0x52d   : > { %v3441_v54 = vpack.c.bf16 %v3417_v6, %v3413_v63  ;;  %v3443_v62 = vpack.c.bf16 %v3419_v2, %v3415_v48  ;;  %4114 = vmatpush1.bf16.msra.mxu0 %v9692_v42  ;;  %v3312_v46 = vpop.f32.mrb[104].mxu0  ;;  %v3385_v47 = vpop.f32.mrb[104].mxu1  ;;  %4187 = vmatpush1.bf16.msra.mxu1 %v9695_v55 }
 0x52e   : > { %v3313_v5 = vadd.f32 %v3312_v46, %v11424_v53  ;;  %v3386_v4 = vadd.f32 %v3385_v47, %v11427_v37  ;;  %v3314_v3 = vpop.f32.mrb[105].mxu0  ;;  %v3387_v10 = vpop.f32.mrb[105].mxu1  ;;  %4115 = vmatprep.subr.bf16.mxu0 %v9700_v17  ;;  %4188 = vmatprep.subr.bf16.mxu1 %v9703_v59  ;;  %v9715_v17 = vld [vmem:[%s12755_s4 + $0x48c] ss:$16 sps:$4 sm:$0xff]   ;;  %v9713_v46 = vld [vmem:[%s12755_s4 + $0x488] ss:$16 sps:$4 sm:$0xff]  }
 0x52f   : > { %v3315_v15 = vadd.f32 %v3314_v3, %v11431_v40  ;;  %v3388_v30 = vadd.f32 %v3387_v10, %v11434_v32  ;;  %v3316_v21 = vpop.f32.mrb[106].mxu0  ;;  %v3389_v23 = vpop.f32.mrb[106].mxu1  ;;  %3757 = vmatprep.mubr.bf16.mxu0 %v3441_v54  ;;  %3822 = vmatprep.mubr.bf16.mxu1 %v3443_v62  ;;  %v9718_v47 = vld [vmem:[%s12755_s4 + $0x4a4] ss:$16 sps:$4 sm:$0xff]   ;;  %v9721_v10 = vld [vmem:[%s12755_s4 + $0x4ac] ss:$16 sps:$4 sm:$0xff]  }
 0x530   : > { %v3317_v39 = vadd.f32 %v3316_v21, %v11424_v53  ;;  %v3390_v19 = vadd.f32 %v3389_v23, %v11427_v37  ;;  %v3318_v44 = vpop.f32.mrb[107].mxu0  ;;  %v3391_v8 = vpop.f32.mrb[107].mxu1  ;;  %3758 = vmatmul.mubr.bf16.gmra.mrb[116].mxu0 %v3440_v45  ;;  %3823 = vmatmul.mubr.bf16.gmra.mrb[116].mxu1 %v3442_v57  ;;  %v3420_v35 = vmax.f32 %v3313_v5, 0.0  ;;  %v3422_v33 = vmax.f32 %v3386_v4, 0.0  ;;  %v9710_v45 = vld [vmem:[%s12755_s4 + $0x480] ss:$16 sps:$4 sm:$0xff]  }
 0x531   : > { %v3319_v16 = vadd.f32 %v3318_v44, %v11431_v40  ;;  %v3392_v22 = vadd.f32 %v3391_v8, %v11434_v32  ;;  %4116 = vmatpush1.bf16.msra.mxu0 %v9698_v1  ;;  %4189 = vmatpush1.bf16.msra.mxu1 %v9701_v50  ;;  %v3421_v42 = vmax.f32 %v3315_v15, 0.0  ;;  %v3423_v55 = vmax.f32 %v3388_v30, 0.0 }
 0x532   : > { %v3424_v61 = vmax.f32 %v3317_v39, 0.0  ;;  %v3426_v56 = vmax.f32 %v3390_v19, 0.0  ;;  %4117 = vmatprep.subr.bf16.mxu0 %v9706_v11  ;;  %4190 = vmatprep.subr.bf16.mxu1 %v9709_v12  ;;  %v9716_v12 = vld [vmem:[%s12755_s4 + $0x4a0] ss:$16 sps:$4 sm:$0xff]  }
 0x533   : > { %v3425_v51 = vmax.f32 %v3319_v16, 0.0  ;;  %v3427_v36 = vmax.f32 %v3392_v22, 0.0 }
 0x534   : > { %v3444_v34 = vpack.c.bf16 %v3424_v61, %v3420_v35  ;;  %v3446_v43 = vpack.c.bf16 %v3426_v56, %v3422_v33  ;;  %v9727_v35 = vld [vmem:[%s12755_s4 + $0x4cc] ss:$16 sps:$4 sm:$0xff]   ;;  %v9722_v56 = vld [vmem:[%s12755_s4 + $0x4c0] ss:$16 sps:$4 sm:$0xff]  }
 0x535   : > { %v3445_v63 = vpack.c.bf16 %v3425_v51, %v3421_v42  ;;  %v3447_v48 = vpack.c.bf16 %v3427_v36, %v3423_v55  ;;  %4118 = vmatpush1.bf16.msra.mxu0 %v9704_v9  ;;  %v3322_v6 = vpop.f32.mrb[108].mxu0  ;;  %v3395_v2 = vpop.f32.mrb[108].mxu1  ;;  %4191 = vmatpush1.bf16.msra.mxu1 %v9707_v60  ;;  %v9730_v42 = vld [vmem:[%s12755_s4 + $0x4e4] ss:$16 sps:$4 sm:$0xff]   ;;  %v9733_v55 = vld [vmem:[%s12755_s4 + $0x4ec] ss:$16 sps:$4 sm:$0xff]  }
 0x536   : > { %v3323_v57 = vadd.f32 %v3322_v6, %v11424_v53  ;;  %v3396_v59 = vadd.f32 %v3395_v2, %v11427_v37  ;;  %v3324_v54 = vpop.f32.mrb[109].mxu0  ;;  %v3397_v62 = vpop.f32.mrb[109].mxu1  ;;  %4119 = vmatprep.subr.bf16.mxu0 %v9712_v0  ;;  %4192 = vmatprep.subr.bf16.mxu1 %v9715_v17  ;;  %v9725_v0 = vld [vmem:[%s12755_s4 + $0x4c8] ss:$16 sps:$4 sm:$0xff]   ;;  %v9728_v51 = vld [vmem:[%s12755_s4 + $0x4e0] ss:$16 sps:$4 sm:$0xff]  }
 0x537   : > { %v3325_v1 = vadd.f32 %v3324_v54, %v11431_v40  ;;  %v3398_v5 = vadd.f32 %v3397_v62, %v11434_v32  ;;  %v3326_v4 = vpop.f32.mrb[110].mxu0  ;;  %v3399_v3 = vpop.f32.mrb[110].mxu1  ;;  %3765 = vmatprep.mubr.bf16.mxu0 %v3445_v63  ;;  %3830 = vmatprep.mubr.bf16.mxu1 %v3447_v48  ;;  %v9731_v36 = vld [vmem:[%s12755_s4 + $0x4e8] ss:$16 sps:$4 sm:$0xff]   ;;  %v9735_v17 = vld [vmem:[%s12757_s6 + $0x400] sm:$0xff]   ;;  %v9743_v54 = vld [vmem:[%s12757_s6 + $0x410] sm:$0xff]  }
 0x538   : > { %v3327_v50 = vadd.f32 %v3326_v4, %v11424_v53  ;;  %v3400_v11 = vadd.f32 %v3399_v3, %v11427_v37  ;;  %v3328_v15 = vpop.f32.mrb[111].mxu0  ;;  %v3401_v30 = vpop.f32.mrb[111].mxu1  ;;  %3766 = vmatmul.mubr.bf16.gmra.mrb[120].mxu0 %v3444_v34  ;;  %3831 = vmatmul.mubr.bf16.gmra.mrb[120].mxu1 %v3446_v43  ;;  %v9719_v53 = vld [vmem:[%s12755_s4 + $0x4a8] ss:$16 sps:$4 sm:$0xff]   ;;  %v3428_v39 = vmax.f32 %v3323_v57, 0.0  ;;  %v3430_v37 = vmax.f32 %v3396_v59, 0.0 }
 0x539   : > { %v3329_v21 = vadd.f32 %v3328_v15, %v11431_v40  ;;  %v3402_v23 = vadd.f32 %v3401_v30, %v11434_v32  ;;  %4120 = vmatpush1.bf16.msra.mxu0 %v9710_v45  ;;  %4193 = vmatpush1.bf16.msra.mxu1 %v9713_v46  ;;  %v9724_v40 = vld [vmem:[%s12755_s4 + $0x4c4] ss:$16 sps:$4 sm:$0xff]   ;;  %v3429_v32 = vmax.f32 %v3325_v1, 0.0  ;;  %v3431_v8 = vmax.f32 %v3398_v5, 0.0  ;;  %v9738_v48 = vld [vmem:[%s12757_s6 + $0x448] sm:$0xff]   ;;  %v9746_v46 = vld [vmem:[%s12757_s6 + $0x458] sm:$0xff]  }
 0x53a   : > { %v3432_v19 = vmax.f32 %v3327_v50, 0.0  ;;  %v3434_v44 = vmax.f32 %v3400_v11, 0.0  ;;  %4121 = vmatprep.subr.bf16.mxu0 %v9718_v47  ;;  %4194 = vmatprep.subr.bf16.mxu1 %v9721_v10  ;;  %v9734_v34 = vld [vmem:[%s12757_s6 + $0x440] sm:$0xff]   ;;  %v9740_v6 = vld [vmem:[%s12757_s6 + $0x4c8] sm:$0xff]   ;;  %v9742_v57 = vld [vmem:[%s12757_s6 + $0x450] sm:$0xff]  }
 0x53b   : > { %v3433_v16 = vmax.f32 %v3329_v21, 0.0  ;;  %v3435_v22 = vmax.f32 %v3402_v23, 0.0  ;;  %v9736_v43 = vld [vmem:[%s12757_s6 + $0x4c0] sm:$0xff]   ;;  %v9739_v2 = vld [vmem:[%s12757_s6 + $0x408] sm:$0xff]   ;;  %v9744_v59 = vld [vmem:[%s12757_s6 + $0x4d0] sm:$0xff]  }
 0x53c   : > { %v3448_v9 = vpack.c.bf16 %v3432_v19, %v3428_v39  ;;  %v3450_v60 = vpack.c.bf16 %v3434_v44, %v3430_v37  ;;  %v9737_v63 = vld [vmem:[%s12757_s6 + $0x480] sm:$0xff]   ;;  %v9741_v45 = vld [vmem:[%s12757_s6 + $0x488] sm:$0xff]   ;;  %v9745_v62 = vld [vmem:[%s12757_s6 + $0x490] sm:$0xff]  }
 0x53d   : > { %v3449_v33 = vpack.c.bf16 %v3433_v16, %v3429_v32  ;;  %v3451_v61 = vpack.c.bf16 %v3435_v22, %v3431_v8  ;;  %4122 = vmatpush1.bf16.msra.mxu0 %v9716_v12  ;;  %4195 = vmatpush1.bf16.msra.mxu1 %v9719_v53  ;;  %v9747_v47 = vld [vmem:[%s12757_s6 + $0x418] sm:$0xff]   ;;  %v9750_v4 = vld [vmem:[%s12757_s6 + $0x460] sm:$0xff]   ;;  %v9754_v11 = vld [vmem:[%s12757_s6 + $0x468] sm:$0xff]   ;;  %v10058_v16 = vmov 4  }
 0x53e   : > { %4123 = vmatprep.subr.bf16.mxu0 %v9724_v40  ;;  %4196 = vmatprep.subr.bf16.mxu1 %v9727_v35  ;;  %v9748_v1 = vld [vmem:[%s12757_s6 + $0x4d8] sm:$0xff]   ;;  %v9752_v3 = vld [vmem:[%s12757_s6 + $0x4e0] sm:$0xff]   ;;  %v9755_v15 = vld [vmem:[%s12757_s6 + $0x428] sm:$0xff]  }
 0x53f   : > { %3773 = vmatprep.mubr.bf16.mxu0 %v3449_v33  ;;  %3838 = vmatprep.mubr.bf16.mxu1 %v3451_v61  ;;  %v9749_v5 = vld [vmem:[%s12757_s6 + $0x498] sm:$0xff]   ;;  %v9751_v10 = vld [vmem:[%s12757_s6 + $0x420] sm:$0xff]   ;;  %v9756_v30 = vld [vmem:[%s12757_s6 + $0x4e8] sm:$0xff]  }
 0x540   : > { %3774 = vmatmul.mubr.bf16.gmra.mrb[124].mxu0 %v3448_v9  ;;  %3839 = vmatmul.mubr.bf16.gmra.mrb[124].mxu1 %v3450_v60  ;;  %v9753_v50 = vld [vmem:[%s12757_s6 + $0x4a0] sm:$0xff]   ;;  %v9757_v21 = vld [vmem:[%s12757_s6 + $0x4a8] sm:$0xff]   ;;  %v9758_v23 = vld [vmem:[%s12757_s6 + $0x470] sm:$0xff]  }
 0x541   : > { %4124 = vmatpush1.bf16.msra.mxu0 %v9722_v56  ;;  %4197 = vmatpush1.bf16.msra.mxu1 %v9725_v0  ;;  %v9760_v12 = vld [vmem:[%s12757_s6 + $0x4f0] sm:$0xff]   ;;  %v9762_v37 = vld [vmem:[%s12757_s6 + $0x478] sm:$0xff]   ;;  %v11683_v22 = vld [vmem:[%s10449_s18] sm:$0xff] }
 0x542   : > { %4125 = vmatprep.subr.bf16.mxu0 %v9730_v42  ;;  %4198 = vmatprep.subr.bf16.mxu1 %v9733_v55  ;;  %v9759_v53 = vld [vmem:[%s12757_s6 + $0x430] sm:$0xff]   ;;  %v9764_v19 = vld [vmem:[%s12757_s6 + $0x4f8] sm:$0xff]   ;;  %v11687_v9 = vld [vmem:[%s10449_s18 + $0x8] sm:$0xff] }
 0x543   : > { %4143 = vmatprep.mubr.bf16.mxu0 %v10054_v20  ;;  %4216 = vmatprep.mubr.bf16.mxu1 %v10054_v20  ;;  %v9761_v39 = vld [vmem:[%s12757_s6 + $0x4b0] sm:$0xff]   ;;  %v9763_v44 = vld [vmem:[%s12757_s6 + $0x438] sm:$0xff]   ;;  %v11699_v33 = vld [vmem:[%s10449_s18 + $0x20] sm:$0xff] }
 0x544   : > { %v9765_v40 = vld [vmem:[%s12757_s6 + $0x4b8] sm:$0xff]   ;;  %v9768_v32 = vld [vmem:[%s12755_s4 + $0x504] ss:$16 sps:$4 sm:$0xff]   ;;  %9358 = vset.pattern.permute.xlu0 %v10058_v16  ;;  %9359 = vset.pattern.permute.xlu1 %v10058_v16  ;;  %v11703_v61 = vld [vmem:[%s10449_s18 + $0x28] sm:$0xff] }
 0x545   : > { %4126 = vmatpush1.bf16.msra.mxu0 %v9728_v51  ;;  %4199 = vmatpush1.bf16.msra.mxu1 %v9731_v36  ;;  %v9771_v8 = vld [vmem:[%s12755_s4 + $0x50c] ss:$16 sps:$4 sm:$0xff]   ;;  %v11691_v60 = vld [vmem:[%s10449_s18 + $0x10] sm:$0xff]  ;;  %v11717_v51 = vld [vmem:[%s12758_s7 + $0x3] ss:$0 sm:$0xff] }
 0x546   : > { %9014 = vmatprep.subr.bf16.mxu0 %v9734_v34  ;;  %9054 = vmatprep.subr.bf16.mxu1 %v9736_v43  ;;  %v11695_v35 = vld [vmem:[%s10449_s18 + $0x18] sm:$0xff]  ;;  %v11707_v56 = vld [vmem:[%s10449_s18 + $0x30] sm:$0xff] }
 0x547   : > { %4701 = vperm.xlu0 %9358, %v11683_v22   ;;  %4705 = vperm.xlu1 %9359, %v11687_v9   ;;  %v11711_v0 = vld [vmem:[%s10449_s18 + $0x38] sm:$0xff] }
 0x548   : > { %4144 = vmatmul.mubr.bf16.vlgmr.msra.gmra.mrb[128].mxu0 %v10311_v29  ;;  %4217 = vmatmul.mubr.bf16.vlgmr.msra.gmra.mrb[128].mxu1 %v10311_v29 }
 0x549   : > { %4153 = vmatprep.mubr.bf16.mxu0 %v10054_v20  ;;  %4226 = vmatprep.mubr.bf16.mxu1 %v10054_v20 }
 0x54a   : > { %9015 = vmatpush3.bf16.msra.mxu0 %v9735_v17  ;;  %9055 = vmatpush3.bf16.msra.mxu1 %v9737_v63 }
 0x54b   : > { %9016 = vmatprep.subr.bf16.mxu0 %v9738_v48  ;;  %9056 = vmatprep.subr.bf16.mxu1 %v9740_v6 }
 0x54c   : > { %4709 = vperm.xlu1 %9359, %v11691_v60   ;;  %4713 = vperm.xlu0 %9358, %v11695_v35  }
 0x54e   : > { %9017 = vmatpush3.bf16.msra.mxu0 %v9739_v2  ;;  %9057 = vmatpush3.bf16.msra.mxu1 %v9741_v45 }
 0x54f   : > { %9018 = vmatprep.subr.bf16.mxu0 %v9742_v57  ;;  %9058 = vmatprep.subr.bf16.mxu1 %v9744_v59  ;;  %v3849_v59 = vpop.permute.xlu1 %3848 }
 0x550   : > { %4154 = vmatmul.mubr.bf16.gmra.mrb[132].mxu0 %v10347_v28  ;;  %4227 = vmatmul.mubr.bf16.gmra.mrb[132].mxu1 %v10347_v28 }
 0x551   : > { %4163 = vmatprep.mubr.bf16.mxu0 %v10054_v20  ;;  %4236 = vmatprep.mubr.bf16.mxu1 %v10054_v20 }
 0x552   : > { %9019 = vmatpush3.bf16.msra.mxu0 %v9743_v54  ;;  %9059 = vmatpush3.bf16.msra.mxu1 %v9745_v62 }
 0x553   : > { %9020 = vmatprep.subr.bf16.mxu0 %v9746_v46  ;;  %9060 = vmatprep.subr.bf16.mxu1 %v9748_v1 }
 0x554   : > { %4717 = vperm.xlu1 %9359, %v11699_v33   ;;  %4721 = vperm.xlu0 %9358, %v11703_v61  }
 0x556   : > { %9021 = vmatpush3.bf16.msra.mxu0 %v9747_v47  ;;  %9061 = vmatpush3.bf16.msra.mxu1 %v9749_v5  ;;  %v3853_v47 = vpop.permute.xlu0 %3852 }
 0x557   : > { %9022 = vmatprep.subr.bf16.mxu0 %v9750_v4  ;;  %9062 = vmatprep.subr.bf16.mxu1 %v9752_v3  ;;  %v3857_v3 = vpop.permute.xlu1 %3856 }
 0x558   : > { %4164 = vmatmul.mubr.bf16.gmra.mrb[136].mxu0 %v10383_v49  ;;  %4237 = vmatmul.mubr.bf16.gmra.mrb[136].mxu1 %v10383_v49 }
 0x559   : > { %4173 = vmatprep.mubr.bf16.mxu0 %v10054_v20  ;;  %4246 = vmatprep.mubr.bf16.mxu1 %v10054_v20 }
 0x55a   : > { %9023 = vmatpush3.bf16.msra.mxu0 %v9751_v10  ;;  %9063 = vmatpush3.bf16.msra.mxu1 %v9753_v50 }
 0x55b   : > { %9024 = vmatprep.subr.bf16.mxu0 %v9754_v11  ;;  %9064 = vmatprep.subr.bf16.mxu1 %v9756_v30 }
 0x55c   : > { %4725 = vperm.xlu1 %9359, %v11707_v56   ;;  %4729 = vperm.xlu0 %9358, %v11711_v0  }
 0x55e   : > { %9025 = vmatpush3.bf16.msra.mxu0 %v9755_v15  ;;  %9065 = vmatpush3.bf16.msra.mxu1 %v9757_v21 }
 0x55f   : > { %9026 = vmatprep.subr.bf16.mxu0 %v9758_v23  ;;  %9066 = vmatprep.subr.bf16.mxu1 %v9760_v12 }
 0x560   : > { %4174 = vmatmul.mubr.bf16.gmra.mrb[140].mxu0 %v10408_v58  ;;  %4247 = vmatmul.mubr.bf16.gmra.mrb[140].mxu1 %v10408_v58 }
 0x562   : > { %9027 = vmatpush3.bf16.msra.mxu0 %v9759_v53  ;;  %9067 = vmatpush3.bf16.msra.mxu1 %v9761_v39 }
 0x563   : > { %9028 = vmatprep.subr.bf16.mxu0 %v9762_v37  ;;  %9068 = vmatprep.subr.bf16.mxu1 %v9764_v19 }
 0x566   : > { %9029 = vmatpush3.bf16.msra.mxu0 %v9763_v44  ;;  %9069 = vmatpush3.bf16.msra.mxu1 %v9765_v40 }
 0x567   : > { %4964 = vmatprep.subr.bf16.mxu0 %v9768_v32  ;;  %5037 = vmatprep.subr.bf16.mxu1 %v9771_v8 }
 0x5fb   : > { %v8950_v42 = vpop.f32.mrb[112].mxu0  ;;  %v8990_v55 = vpop.f32.mrb[112].mxu1 }
 0x5fc   : > { %v8951_v36 = vpop.f32.mrb[113].mxu0  ;;  %v8991_v43 = vpop.f32.mrb[113].mxu1 }
 0x5fd   : > { %v8952_v34 = vadd.f32 %v8951_v36, %v8950_v42  ;;  %v8953_v17 = vpop.f32.mrb[114].mxu0  ;;  %v8992_v63 = vadd.f32 %v8991_v43, %v8990_v55  ;;  %v8993_v48 = vpop.f32.mrb[114].mxu1 }
 0x5fe   : > { %v8954_v6 = vpop.f32.mrb[115].mxu0  ;;  %v8994_v57 = vpop.f32.mrb[115].mxu1 }
 0x5ff   : > { %v3752_v2 = vadd.f32 %v8952_v34, %v11717_v51  ;;  %v8955_v45 = vadd.f32 %v8954_v6, %v8953_v17  ;;  %v8995_v54 = vadd.f32 %v8994_v57, %v8993_v48 }
 0x601   : > { %v3755_v62 = vadd.f32 %v8955_v45, %v11717_v51  ;;  %v3817_v46 = vadd.f32 %v8992_v63, %v3752_v2 }
 0x603   : > { %v3879_v1 = vmul.f32 %v3849_v59, %v3817_v46  ;;  %v8956_v5 = vpop.f32.mrb[116].mxu0  ;;  %v3820_v4 = vadd.f32 %v8995_v54, %v3755_v62  ;;  %v8996_v10 = vpop.f32.mrb[116].mxu1 }
 0x604   : > { %v8957_v50 = vpop.f32.mrb[117].mxu0  ;;  %v8997_v30 = vpop.f32.mrb[117].mxu1 }
 0x605   : > { %v11722_v11 = vadd.f32 %v3879_v1, %v11398_v14  ;;  %v8958_v15 = vadd.f32 %v8957_v50, %v8956_v5  ;;  %v3880_v21 = vmul.f32 %v3853_v47, %v3820_v4  ;;  %v8959_v23 = vpop.f32.mrb[118].mxu0  ;;  %v8998_v12 = vadd.f32 %v8997_v30, %v8996_v10  ;;  %v8999_v53 = vpop.f32.mrb[118].mxu1 }
 0x606   : > { %v8960_v39 = vpop.f32.mrb[119].mxu0  ;;  %v9000_v40 = vpop.f32.mrb[119].mxu1 }
 0x607   : > { %v3760_v37 = vadd.f32 %v8958_v15, %v11717_v51  ;;  %v11726_v19 = vadd.f32 %v3880_v21, %v11401_v13  ;;  %v8961_v44 = vadd.f32 %v8960_v39, %v8959_v23  ;;  %v9001_v32 = vadd.f32 %v9000_v40, %v8999_v53  ;;  %v3861_v14 = vpop.permute.xlu1 %3860  ;;  %v3865_v1 = vpop.permute.xlu0 %3864  ;;  %v8014_v39 = vld [vmem:[%s12756_s5 + $0x10] sm:$0xf] }
 0x609   : > { %v3763_v8 = vadd.f32 %v8961_v44, %v11717_v51  ;;  %v3825_v16 = vadd.f32 %v8998_v12, %v3760_v37 }
 0x60b   : > { %v3881_v42 = vmul.f32 %v3857_v3, %v3825_v16  ;;  %v8962_v55 = vpop.f32.mrb[120].mxu0  ;;  %v3828_v36 = vadd.f32 %v9001_v32, %v3763_v8  ;;  %v9002_v34 = vpop.f32.mrb[120].mxu1 }
 0x60c   : > { %v8963_v43 = vpop.f32.mrb[121].mxu0  ;;  %v9003_v6 = vpop.f32.mrb[121].mxu1 }
 0x60d   : > { %v11730_v17 = vadd.f32 %v3881_v42, %v11406_v41  ;;  %v3882_v63 = vmul.f32 %v3861_v14, %v3828_v36  ;;  %v8964_v48 = vadd.f32 %v8963_v43, %v8962_v55  ;;  %v8965_v13 = vpop.f32.mrb[122].mxu0  ;;  %v9004_v2 = vadd.f32 %v9003_v6, %v9002_v34  ;;  %v9005_v45 = vpop.f32.mrb[122].mxu1 }
 0x60e   : > { %v8966_v57 = vpop.f32.mrb[123].mxu0  ;;  %v9006_v46 = vpop.f32.mrb[123].mxu1  ;;  %v11748_v55 = vrot.slane %v8014_v39, %v10483_v24  ;;  %v11752_v43 = vrot.slane %v8014_v39, %v10485_v25 }
 0x60f   : > { %v11733_v59 = vadd.f32 %v3882_v63, %v11410_v52  ;;  %v3768_v54 = vadd.f32 %v8964_v48, %v11717_v51  ;;  %v8967_v62 = vadd.f32 %v8966_v57, %v8965_v13  ;;  %v9007_v47 = vadd.f32 %v9006_v46, %v9005_v45  ;;  %v3869_v4 = vpop.permute.xlu1 %3868  ;;  %v3873_v42 = vpop.permute.xlu0 %3872 }
 0x610   : > { %v11755_v63 = vrot.slane %v8014_v39, %v10490_v26  ;;  %v11758_v48 = vrot.slane %v8014_v39, %v10492_v27 }
 0x611   : > { %v3771_v5 = vadd.f32 %v8967_v62, %v11717_v51  ;;  %v3833_v41 = vadd.f32 %v9004_v2, %v3768_v54 }
 0x613   : > { %v3883_v3 = vmul.f32 %v3865_v1, %v3833_v41  ;;  %v8968_v10 = vpop.f32.mrb[124].mxu0  ;;  %v3836_v50 = vadd.f32 %v9007_v47, %v3771_v5  ;;  %v9008_v15 = vpop.f32.mrb[124].mxu1 }
 0x614   : > { %v8969_v30 = vpop.f32.mrb[125].mxu0  ;;  %v9009_v12 = vpop.f32.mrb[125].mxu1 }
 0x615   : > { %v11738_v21 = vadd.f32 %v3883_v3, %v11414_v7  ;;  %v3884_v52 = vmul.f32 %v3869_v4, %v3836_v50  ;;  %v8970_v23 = vadd.f32 %v8969_v30, %v8968_v10  ;;  %v8971_v53 = vpop.f32.mrb[126].mxu0  ;;  %v9010_v37 = vadd.f32 %v9009_v12, %v9008_v15  ;;  %v9011_v44 = vpop.f32.mrb[126].mxu1 }
 0x616   : > { %v8972_v40 = vpop.f32.mrb[127].mxu0  ;;  %v9012_v14 = vpop.f32.mrb[127].mxu1 }
 0x617   : > { %v11744_v32 = vadd.f32 %v3884_v52, %v11421_v38  ;;  %v3776_v8 = vadd.f32 %v8970_v23, %v11717_v51  ;;  %v8973_v16 = vadd.f32 %v8972_v40, %v8971_v53  ;;  %v9013_v7 = vadd.f32 %v9012_v14, %v9011_v44  ;;  %v3877_v38 = vpop.permute.xlu1 %3876 }
 0x619   : > { %v3779_v36 = vadd.f32 %v8973_v16, %v11717_v51  ;;  %v3841_v34 = vadd.f32 %v9010_v37, %v3776_v8 }
 0x61b   : > { %v3885_v6 = vmul.f32 %v3873_v42, %v3841_v34  ;;  %v4145_v13 = vpop.f32.mrb[128].mxu0  ;;  %v3844_v2 = vadd.f32 %v9013_v7, %v3779_v36  ;;  %v4218_v57 = vpop.f32.mrb[128].mxu1 }
 0x61c   : > { %v4146_v45 = vadd.f32 %v4145_v13, %v11748_v55  ;;  %v4147_v54 = vpop.f32.mrb[129].mxu0  ;;  %v4219_v62 = vadd.f32 %v4218_v57, %v11752_v43  ;;  %v4220_v1 = vpop.f32.mrb[129].mxu1  ;;  %v9769_v13 = vld [vmem:[%s12755_s4 + $0x508] ss:$16 sps:$4 sm:$0xff]  }
 0x61d   : > { %v11762_v51 = vadd.f32 %v3885_v6, %v11439_v18  ;;  %v3886_v46 = vmul.f32 %v3877_v38, %v3844_v2  ;;  %v4148_v47 = vadd.f32 %v4147_v54, %v11755_v63  ;;  %v4149_v5 = vpop.f32.mrb[130].mxu0  ;;  %v4221_v41 = vadd.f32 %v4220_v1, %v11758_v48  ;;  %v4222_v3 = vpop.f32.mrb[130].mxu1  ;;  %v9766_v6 = vld [vmem:[%s12755_s4 + $0x500] ss:$16 sps:$4 sm:$0xff]  }
 0x61e   : > { %v4150_v4 = vadd.f32 %v4149_v5, %v11748_v55  ;;  %v4151_v10 = vpop.f32.mrb[131].mxu0  ;;  %v4223_v15 = vadd.f32 %v4222_v3, %v11752_v43  ;;  %v4224_v18 = vpop.f32.mrb[131].mxu1  ;;  %v4257_v30 = vmax.f32 %v4146_v45, 0.0  ;;  %v4259_v53 = vmax.f32 %v4219_v62, 0.0  ;;  %v9774_v62 = vld [vmem:[%s12755_s4 + $0x524] ss:$16 sps:$4 sm:$0xff]  }
 0x61f   : > { %v11769_v50 = vadd.f32 %v3886_v46, %v11446_v31  ;;  %v4152_v23 = vadd.f32 %v4151_v10, %v11755_v63  ;;  %v4225_v12 = vadd.f32 %v4224_v18, %v11758_v48  ;;  %v4258_v39 = vmax.f32 %v4148_v47, 0.0  ;;  %v9777_v46 = vld [vmem:[%s12755_s4 + $0x52c] ss:$16 sps:$4 sm:$0xff]  }
 0x620   : > { %v4261_v52 = vmax.f32 %v4150_v4, 0.0  ;;  %v4263_v37 = vmax.f32 %v4223_v15, 0.0  ;;  %v4260_v44 = vmax.f32 %v4221_v41, 0.0 }
 0x621   : > { %v4262_v8 = vmax.f32 %v4152_v23, 0.0  ;;  %v4264_v16 = vmax.f32 %v4225_v12, 0.0  ;;  %v9775_v23 = vld [vmem:[%s12755_s4 + $0x528] ss:$16 sps:$4 sm:$0xff]  }
 0x622   : > { %v4289_v40 = vpack.c.bf16 %v4261_v52, %v4257_v30  ;;  %v4291_v14 = vpack.c.bf16 %v4263_v37, %v4259_v53  ;;  %v9772_v52 = vld [vmem:[%s12755_s4 + $0x520] ss:$16 sps:$4 sm:$0xff]  }
 0x623   : > { %v4155_v7 = vpop.f32.mrb[132].mxu0  ;;  %v4290_v31 = vpack.c.bf16 %v4262_v8, %v4258_v39  ;;  %v4292_v42 = vpack.c.bf16 %v4264_v16, %v4260_v44  ;;  %v4228_v34 = vpop.f32.mrb[132].mxu1  ;;  %v9780_v44 = vld [vmem:[%s12755_s4 + $0x544] ss:$16 sps:$4 sm:$0xff]  }
 0x624   : > { %v4156_v36 = vadd.f32 %v4155_v7, %v11748_v55  ;;  %v4157_v38 = vpop.f32.mrb[133].mxu0  ;;  %v4229_v2 = vadd.f32 %v4228_v34, %v11752_v43  ;;  %v4230_v57 = vpop.f32.mrb[133].mxu1 }
 0x625   : > { %v4158_v45 = vadd.f32 %v4157_v38, %v11755_v63  ;;  %v4159_v54 = vpop.f32.mrb[134].mxu0  ;;  %v4231_v47 = vadd.f32 %v4230_v57, %v11758_v48  ;;  %v4232_v5 = vpop.f32.mrb[134].mxu1  ;;  %4602 = vmatprep.mubr.bf16.mxu0 %v4290_v31  ;;  %4667 = vmatprep.mubr.bf16.mxu1 %v4292_v42 }
 0x626   : > { %v4160_v1 = vadd.f32 %v4159_v54, %v11748_v55  ;;  %v4161_v41 = vpop.f32.mrb[135].mxu0  ;;  %v4233_v4 = vadd.f32 %v4232_v5, %v11752_v43  ;;  %v4234_v10 = vpop.f32.mrb[135].mxu1  ;;  %4603 = vmatmul.mubr.bf16.vlgmr.msra.gmra.mrb[144].mxu0 %v4289_v40  ;;  %4668 = vmatmul.mubr.bf16.vlgmr.msra.gmra.mrb[144].mxu1 %v4291_v14  ;;  %v4265_v15 = vmax.f32 %v4156_v36, 0.0  ;;  %v4267_v12 = vmax.f32 %v4229_v2, 0.0  ;;  %v9783_v14 = vld [vmem:[%s12755_s4 + $0x54c] ss:$16 sps:$4 sm:$0xff]  }
 0x627   : > { %v4162_v3 = vadd.f32 %v4161_v41, %v11755_v63  ;;  %v4235_v30 = vadd.f32 %v4234_v10, %v11758_v48  ;;  %4965 = vmatpush1.bf16.msra.mxu0 %v9766_v6  ;;  %5038 = vmatpush1.bf16.msra.mxu1 %v9769_v13  ;;  %v4266_v53 = vmax.f32 %v4158_v45, 0.0  ;;  %v4268_v40 = vmax.f32 %v4231_v47, 0.0  ;;  %v9778_v13 = vld [vmem:[%s12755_s4 + $0x540] ss:$16 sps:$4 sm:$0xff]   ;;  %v9781_v2 = vld [vmem:[%s12755_s4 + $0x548] ss:$16 sps:$4 sm:$0xff]  }
 0x628   : > { %v4269_v18 = vmax.f32 %v4160_v1, 0.0  ;;  %v4271_v39 = vmax.f32 %v4233_v4, 0.0  ;;  %4966 = vmatprep.subr.bf16.mxu0 %v9774_v62  ;;  %5039 = vmatprep.subr.bf16.mxu1 %v9777_v46  ;;  %v9786_v46 = vld [vmem:[%s12755_s4 + $0x564] ss:$16 sps:$4 sm:$0xff]   ;;  %v9789_v47 = vld [vmem:[%s12755_s4 + $0x56c] ss:$16 sps:$4 sm:$0xff]  }
 0x629   : > { %v4270_v37 = vmax.f32 %v4162_v3, 0.0  ;;  %v4272_v16 = vmax.f32 %v4235_v30, 0.0 }
 0x62a   : > { %v4293_v8 = vpack.c.bf16 %v4269_v18, %v4265_v15  ;;  %v4295_v7 = vpack.c.bf16 %v4271_v39, %v4267_v12  ;;  %v9787_v12 = vld [vmem:[%s12755_s4 + $0x568] ss:$16 sps:$4 sm:$0xff]  }
 0x62b   : > { %v4294_v31 = vpack.c.bf16 %v4270_v37, %v4266_v53  ;;  %v4165_v42 = vpop.f32.mrb[136].mxu0  ;;  %v4296_v36 = vpack.c.bf16 %v4272_v16, %v4268_v40  ;;  %4967 = vmatpush1.bf16.msra.mxu0 %v9772_v52  ;;  %v4238_v38 = vpop.f32.mrb[136].mxu1  ;;  %5040 = vmatpush1.bf16.msra.mxu1 %v9775_v23  ;;  %v9784_v23 = vld [vmem:[%s12755_s4 + $0x560] ss:$16 sps:$4 sm:$0xff]   ;;  %v9792_v40 = vld [vmem:[%s12755_s4 + $0x584] ss:$16 sps:$4 sm:$0xff]  }
 0x62c   : > { %v4166_v34 = vadd.f32 %v4165_v42, %v11748_v55  ;;  %v4167_v6 = vpop.f32.mrb[137].mxu0  ;;  %v4239_v45 = vadd.f32 %v4238_v38, %v11752_v43  ;;  %v4240_v54 = vpop.f32.mrb[137].mxu1  ;;  %4968 = vmatprep.subr.bf16.mxu0 %v9780_v44  ;;  %5041 = vmatprep.subr.bf16.mxu1 %v9783_v14 }
 0x62d   : > { %v4168_v57 = vadd.f32 %v4167_v6, %v11755_v63  ;;  %v4169_v62 = vpop.f32.mrb[138].mxu0  ;;  %4610 = vmatprep.mubr.bf16.mxu0 %v4294_v31  ;;  %v4241_v1 = vadd.f32 %v4240_v54, %v11758_v48  ;;  %v4242_v41 = vpop.f32.mrb[138].mxu1  ;;  %4675 = vmatprep.mubr.bf16.mxu1 %v4296_v36 }
 0x62e   : > { %v4170_v5 = vadd.f32 %v4169_v62, %v11748_v55  ;;  %v4171_v4 = vpop.f32.mrb[139].mxu0  ;;  %v4243_v3 = vadd.f32 %v4242_v41, %v11752_v43  ;;  %v4244_v15 = vpop.f32.mrb[139].mxu1  ;;  %4611 = vmatmul.mubr.bf16.gmra.mrb[148].mxu0 %v4293_v8  ;;  %4676 = vmatmul.mubr.bf16.gmra.mrb[148].mxu1 %v4295_v7  ;;  %v4273_v18 = vmax.f32 %v4166_v34, 0.0  ;;  %v4275_v53 = vmax.f32 %v4239_v45, 0.0  ;;  %v9795_v7 = vld [vmem:[%s12755_s4 + $0x58c] ss:$16 sps:$4 sm:$0xff]  }
 0x62f   : > { %v4172_v10 = vadd.f32 %v4171_v4, %v11755_v63  ;;  %v4245_v52 = vadd.f32 %v4244_v15, %v11758_v48  ;;  %4969 = vmatpush1.bf16.msra.mxu0 %v9778_v13  ;;  %5042 = vmatpush1.bf16.msra.mxu1 %v9781_v2  ;;  %v4274_v39 = vmax.f32 %v4168_v57, 0.0  ;;  %v4276_v8 = vmax.f32 %v4241_v1, 0.0  ;;  %v9790_v2 = vld [vmem:[%s12755_s4 + $0x580] ss:$16 sps:$4 sm:$0xff]   ;;  %v9793_v45 = vld [vmem:[%s12755_s4 + $0x588] ss:$16 sps:$4 sm:$0xff]  }
 0x630   : > { %v4277_v30 = vmax.f32 %v4170_v5, 0.0  ;;  %v4279_v37 = vmax.f32 %v4243_v3, 0.0  ;;  %4970 = vmatprep.subr.bf16.mxu0 %v9786_v46  ;;  %5043 = vmatprep.subr.bf16.mxu1 %v9789_v47  ;;  %v9798_v47 = vld [vmem:[%s12755_s4 + $0x5a4] ss:$16 sps:$4 sm:$0xff]   ;;  %v9801_v1 = vld [vmem:[%s12755_s4 + $0x5ac] ss:$16 sps:$4 sm:$0xff]  }
 0x631   : > { %v4278_v44 = vmax.f32 %v4172_v10, 0.0  ;;  %v4280_v14 = vmax.f32 %v4245_v52, 0.0 }
 0x632   : > { %v4297_v16 = vpack.c.bf16 %v4277_v30, %v4273_v18  ;;  %v4299_v31 = vpack.c.bf16 %v4279_v37, %v4275_v53 }
 0x633   : > { %v4298_v42 = vpack.c.bf16 %v4278_v44, %v4274_v39  ;;  %v4175_v36 = vpop.f32.mrb[140].mxu0  ;;  %v4300_v34 = vpack.c.bf16 %v4280_v14, %v4276_v8  ;;  %4971 = vmatpush1.bf16.msra.mxu0 %v9784_v23  ;;  %v4248_v6 = vpop.f32.mrb[140].mxu1  ;;  %5044 = vmatpush1.bf16.msra.mxu1 %v9787_v12  ;;  %v9799_v12 = vld [vmem:[%s12755_s4 + $0x5a8] ss:$16 sps:$4 sm:$0xff]   ;;  %v9807_v8 = vld [vmem:[%s12755_s4 + $0x5cc] ss:$16 sps:$4 sm:$0xff]  }
 0x634   : > { %v4176_v38 = vadd.f32 %v4175_v36, %v11748_v55  ;;  %v4177_v13 = vpop.f32.mrb[141].mxu0  ;;  %v4249_v57 = vadd.f32 %v4248_v6, %v11752_v43  ;;  %v4250_v62 = vpop.f32.mrb[141].mxu1  ;;  %4972 = vmatprep.subr.bf16.mxu0 %v9792_v40  ;;  %5045 = vmatprep.subr.bf16.mxu1 %v9795_v7  ;;  %v9810_v36 = vld [vmem:[%s12755_s4 + $0x5e4] ss:$16 sps:$4 sm:$0xff]   ;;  %v9811_v6 = vld [vmem:[%s12755_s4 + $0x5e8] ss:$16 sps:$4 sm:$0xff]  }
 0x635   : > { %v4178_v54 = vadd.f32 %v4177_v13, %v11755_v63  ;;  %v4179_v46 = vpop.f32.mrb[142].mxu0  ;;  %4618 = vmatprep.mubr.bf16.mxu0 %v4298_v42  ;;  %v4251_v5 = vadd.f32 %v4250_v62, %v11758_v48  ;;  %v4252_v4 = vpop.f32.mrb[142].mxu1  ;;  %4683 = vmatprep.mubr.bf16.mxu1 %v4300_v34  ;;  %v9805_v42 = vld [vmem:[%s12755_s4 + $0x5c8] ss:$16 sps:$4 sm:$0xff]   ;;  %v9813_v34 = vld [vmem:[%s12755_s4 + $0x5ec] ss:$16 sps:$4 sm:$0xff]  }
 0x636   : > { %v4180_v41 = vadd.f32 %v4179_v46, %v11748_v55  ;;  %v4181_v3 = vpop.f32.mrb[143].mxu0  ;;  %v4253_v10 = vadd.f32 %v4252_v4, %v11752_v43  ;;  %v4254_v18 = vpop.f32.mrb[143].mxu1  ;;  %4619 = vmatmul.mubr.bf16.gmra.mrb[152].mxu0 %v4297_v16  ;;  %4684 = vmatmul.mubr.bf16.gmra.mrb[152].mxu1 %v4299_v31  ;;  %v4281_v30 = vmax.f32 %v4176_v38, 0.0  ;;  %v9796_v55 = vld [vmem:[%s12755_s4 + $0x5a0] ss:$16 sps:$4 sm:$0xff]   ;;  %v4283_v43 = vmax.f32 %v4249_v57, 0.0 }
 0x637   : > { %v4182_v15 = vadd.f32 %v4181_v3, %v11755_v63  ;;  %v4255_v23 = vadd.f32 %v4254_v18, %v11758_v48  ;;  %4973 = vmatpush1.bf16.msra.mxu0 %v9790_v2  ;;  %5046 = vmatpush1.bf16.msra.mxu1 %v9793_v45  ;;  %v4282_v53 = vmax.f32 %v4178_v54, 0.0  ;;  %v9804_v48 = vld [vmem:[%s12755_s4 + $0x5c4] ss:$16 sps:$4 sm:$0xff]   ;;  %v4284_v37 = vmax.f32 %v4251_v5, 0.0  ;;  %v9802_v31 = vld [vmem:[%s12755_s4 + $0x5c0] ss:$16 sps:$4 sm:$0xff]  }
 0x638   : > { %v4285_v52 = vmax.f32 %v4180_v41, 0.0  ;;  %v4287_v63 = vmax.f32 %v4253_v10, 0.0  ;;  %4974 = vmatprep.subr.bf16.mxu0 %v9798_v47  ;;  %5047 = vmatprep.subr.bf16.mxu1 %v9801_v1  ;;  %v9808_v38 = vld [vmem:[%s12755_s4 + $0x5e0] ss:$16 sps:$4 sm:$0xff]   ;;  %v9818_v54 = vld [vmem:[%s12757_s6 + $0x548] sm:$0xff]   ;;  %v9826_v3 = vld [vmem:[%s12757_s6 + $0x558] sm:$0xff]  }
 0x639   : > { %v4286_v39 = vmax.f32 %v4182_v15, 0.0  ;;  %v4288_v40 = vmax.f32 %v4255_v23, 0.0  ;;  %v9814_v13 = vld [vmem:[%s12757_s6 + $0x540] sm:$0xff]   ;;  %v9820_v62 = vld [vmem:[%s12757_s6 + $0x5c8] sm:$0xff]   ;;  %v9822_v1 = vld [vmem:[%s12757_s6 + $0x550] sm:$0xff]  }
 0x63a   : > { %v4301_v44 = vpack.c.bf16 %v4285_v52, %v4281_v30  ;;  %v4303_v16 = vpack.c.bf16 %v4287_v63, %v4283_v43  ;;  %v9816_v2 = vld [vmem:[%s12757_s6 + $0x5c0] sm:$0xff]   ;;  %v9819_v46 = vld [vmem:[%s12757_s6 + $0x508] sm:$0xff]   ;;  %v9824_v5 = vld [vmem:[%s12757_s6 + $0x5d0] sm:$0xff]  }
 0x63b   : > { %v4302_v14 = vpack.c.bf16 %v4286_v39, %v4282_v53  ;;  %v4304_v7 = vpack.c.bf16 %v4288_v40, %v4284_v37  ;;  %4975 = vmatpush1.bf16.msra.mxu0 %v9796_v55  ;;  %5048 = vmatpush1.bf16.msra.mxu1 %v9799_v12  ;;  %v9815_v45 = vld [vmem:[%s12757_s6 + $0x500] sm:$0xff]   ;;  %v9821_v47 = vld [vmem:[%s12757_s6 + $0x588] sm:$0xff]   ;;  %v9823_v41 = vld [vmem:[%s12757_s6 + $0x510] sm:$0xff]  }
 0x63c   : > { %4976 = vmatprep.subr.bf16.mxu0 %v9804_v48  ;;  %5049 = vmatprep.subr.bf16.mxu1 %v9807_v8  ;;  %v9817_v57 = vld [vmem:[%s12757_s6 + $0x580] sm:$0xff]   ;;  %v9825_v4 = vld [vmem:[%s12757_s6 + $0x590] sm:$0xff]   ;;  %v9828_v10 = vld [vmem:[%s12757_s6 + $0x5d8] sm:$0xff]  }
 0x63d   : > { %4626 = vmatprep.mubr.bf16.mxu0 %v4302_v14  ;;  %4691 = vmatprep.mubr.bf16.mxu1 %v4304_v7  ;;  %v9827_v15 = vld [vmem:[%s12757_s6 + $0x518] sm:$0xff]   ;;  %v9830_v30 = vld [vmem:[%s12757_s6 + $0x560] sm:$0xff]   ;;  %v9834_v12 = vld [vmem:[%s12757_s6 + $0x568] sm:$0xff]  }
 0x63e   : > { %4627 = vmatmul.mubr.bf16.gmra.mrb[156].mxu0 %v4301_v44  ;;  %4692 = vmatmul.mubr.bf16.gmra.mrb[156].mxu1 %v4303_v16  ;;  %v9829_v18 = vld [vmem:[%s12757_s6 + $0x598] sm:$0xff]   ;;  %v9832_v52 = vld [vmem:[%s12757_s6 + $0x5e0] sm:$0xff]   ;;  %v9836_v43 = vld [vmem:[%s12757_s6 + $0x5e8] sm:$0xff]  }
 0x63f   : > { %4977 = vmatpush1.bf16.msra.mxu0 %v9802_v31  ;;  %5050 = vmatpush1.bf16.msra.mxu1 %v9805_v42  ;;  %v9831_v23 = vld [vmem:[%s12757_s6 + $0x520] sm:$0xff]   ;;  %v9835_v53 = vld [vmem:[%s12757_s6 + $0x528] sm:$0xff]   ;;  %v9838_v39 = vld [vmem:[%s12757_s6 + $0x570] sm:$0xff]   ;;  %v10059_v42 = vmov 5  }
 0x640   : > { %4978 = vmatprep.subr.bf16.mxu0 %v9810_v36  ;;  %5051 = vmatprep.subr.bf16.mxu1 %v9813_v34  ;;  %v9833_v55 = vld [vmem:[%s12757_s6 + $0x5a0] sm:$0xff]   ;;  %v9837_v63 = vld [vmem:[%s12757_s6 + $0x5a8] sm:$0xff]   ;;  %v9840_v48 = vld [vmem:[%s12757_s6 + $0x5f0] sm:$0xff]  }
 0x641   : > { %4996 = vmatprep.mubr.bf16.mxu0 %v10054_v20  ;;  %5069 = vmatprep.mubr.bf16.mxu1 %v10054_v20  ;;  %v9839_v37 = vld [vmem:[%s12757_s6 + $0x530] sm:$0xff]   ;;  %v9842_v40 = vld [vmem:[%s12757_s6 + $0x578] sm:$0xff]  }
 0x642   : > { %v9841_v44 = vld [vmem:[%s12757_s6 + $0x5b0] sm:$0xff]   ;;  %v9844_v8 = vld [vmem:[%s12757_s6 + $0x5f8] sm:$0xff]   ;;  %9360 = vset.pattern.permute.xlu1 %v10059_v42  ;;  %9361 = vset.pattern.permute.xlu0 %v10059_v42 }
 0x643   : > { %4979 = vmatpush1.bf16.msra.mxu0 %v9808_v38  ;;  %5052 = vmatpush1.bf16.msra.mxu1 %v9811_v6  ;;  %v9843_v16 = vld [vmem:[%s12757_s6 + $0x538] sm:$0xff]   ;;  %v9848_v7 = vld [vmem:[%s12755_s4 + $0x604] ss:$16 sps:$4 sm:$0xff]  }
 0x644   : > { %9094 = vmatprep.subr.bf16.mxu0 %v9814_v13  ;;  %9134 = vmatprep.subr.bf16.mxu1 %v9816_v2  ;;  %v9845_v14 = vld [vmem:[%s12757_s6 + $0x5b8] sm:$0xff]  }
 0x645   : > { %v9851_v31 = vld [vmem:[%s12755_s4 + $0x60c] ss:$16 sps:$4 sm:$0xff]   ;;  %5554 = vperm.xlu1 %9360, %v11683_v22   ;;  %5558 = vperm.xlu0 %9361, %v11687_v9   ;;  %v12017_v22 = vld [vmem:[%s12758_s7 + $0x4] ss:$0 sm:$0xff] }
 0x646   : > { %4997 = vmatmul.mubr.bf16.vlgmr.msra.gmra.mrb[160].mxu0 %v10311_v29  ;;  %5070 = vmatmul.mubr.bf16.vlgmr.msra.gmra.mrb[160].mxu1 %v10311_v29 }
 0x647   : > { %5006 = vmatprep.mubr.bf16.mxu0 %v10054_v20  ;;  %5079 = vmatprep.mubr.bf16.mxu1 %v10054_v20 }
 0x648   : > { %9095 = vmatpush3.bf16.msra.mxu0 %v9815_v45  ;;  %9135 = vmatpush3.bf16.msra.mxu1 %v9817_v57 }
 0x649   : > { %9096 = vmatprep.subr.bf16.mxu0 %v9818_v54  ;;  %9136 = vmatprep.subr.bf16.mxu1 %v9820_v62  ;;  %v4706_v62 = vpop.permute.xlu1 %4705 }
 0x64a   : > { %5562 = vperm.xlu1 %9360, %v11691_v60   ;;  %5570 = vperm.xlu0 %9361, %v11699_v33  }
 0x64c   : > { %9097 = vmatpush3.bf16.msra.mxu0 %v9819_v46  ;;  %9137 = vmatpush3.bf16.msra.mxu1 %v9821_v47 }
 0x64d   : > { %9098 = vmatprep.subr.bf16.mxu0 %v9822_v1  ;;  %9138 = vmatprep.subr.bf16.mxu1 %v9824_v5 }
 0x64e   : > { %5007 = vmatmul.mubr.bf16.gmra.mrb[164].mxu0 %v10347_v28  ;;  %5080 = vmatmul.mubr.bf16.gmra.mrb[164].mxu1 %v10347_v28 }
 0x64f   : > { %5016 = vmatprep.mubr.bf16.mxu0 %v10054_v20  ;;  %5089 = vmatprep.mubr.bf16.mxu1 %v10054_v20 }
 0x650   : > { %9099 = vmatpush3.bf16.msra.mxu0 %v9823_v41  ;;  %9139 = vmatpush3.bf16.msra.mxu1 %v9825_v4 }
 0x651   : > { %9100 = vmatprep.subr.bf16.mxu0 %v9826_v3  ;;  %9140 = vmatprep.subr.bf16.mxu1 %v9828_v10 }
 0x652   : > { %5566 = vperm.xlu1 %9360, %v11695_v35   ;;  %5578 = vperm.xlu0 %9361, %v11707_v56  }
 0x654   : > { %9101 = vmatpush3.bf16.msra.mxu0 %v9827_v15  ;;  %9141 = vmatpush3.bf16.msra.mxu1 %v9829_v18 }
 0x655   : > { %9102 = vmatprep.subr.bf16.mxu0 %v9830_v30  ;;  %9142 = vmatprep.subr.bf16.mxu1 %v9832_v52 }
 0x656   : > { %5017 = vmatmul.mubr.bf16.gmra.mrb[168].mxu0 %v10383_v49  ;;  %5090 = vmatmul.mubr.bf16.gmra.mrb[168].mxu1 %v10383_v49 }
 0x657   : > { %5026 = vmatprep.mubr.bf16.mxu0 %v10054_v20  ;;  %5099 = vmatprep.mubr.bf16.mxu1 %v10054_v20 }
 0x658   : > { %9103 = vmatpush3.bf16.msra.mxu0 %v9831_v23  ;;  %9143 = vmatpush3.bf16.msra.mxu1 %v9833_v55 }
 0x659   : > { %9104 = vmatprep.subr.bf16.mxu0 %v9834_v12  ;;  %9144 = vmatprep.subr.bf16.mxu1 %v9836_v43 }
 0x65a   : > { %5574 = vperm.xlu1 %9360, %v11703_v61  }
 0x65c   : > { %9105 = vmatpush3.bf16.msra.mxu0 %v9835_v53  ;;  %9145 = vmatpush3.bf16.msra.mxu1 %v9837_v63 }
 0x65d   : > { %9106 = vmatprep.subr.bf16.mxu0 %v9838_v39  ;;  %9146 = vmatprep.subr.bf16.mxu1 %v9840_v48  ;;  %v4710_v39 = vpop.permute.xlu1 %4709 }
 0x65e   : > { %5027 = vmatmul.mubr.bf16.gmra.mrb[172].mxu0 %v10408_v58  ;;  %5100 = vmatmul.mubr.bf16.gmra.mrb[172].mxu1 %v10408_v58 }
 0x65f   : > { %5582 = vperm.xlu1 %9360, %v11711_v0   ;;  %v4702_v0 = vpop.permute.xlu0 %4701 }
 0x660   : > { %9107 = vmatpush3.bf16.msra.mxu0 %v9839_v37  ;;  %9147 = vmatpush3.bf16.msra.mxu1 %v9841_v44 }
 0x661   : > { %9108 = vmatprep.subr.bf16.mxu0 %v9842_v40  ;;  %9148 = vmatprep.subr.bf16.mxu1 %v9844_v8 }
 0x664   : > { %9109 = vmatpush3.bf16.msra.mxu0 %v9843_v16  ;;  %9149 = vmatpush3.bf16.msra.mxu1 %v9845_v14 }
 0x665   : > { %5817 = vmatprep.subr.bf16.mxu0 %v9848_v7  ;;  %5890 = vmatprep.subr.bf16.mxu1 %v9851_v31 }
 0x6f9   : > { %v9030_v36 = vpop.f32.mrb[144].mxu0  ;;  %v9070_v34 = vpop.f32.mrb[144].mxu1 }
 0x6fa   : > { %v9031_v9 = vpop.f32.mrb[145].mxu0  ;;  %v9071_v38 = vpop.f32.mrb[145].mxu1 }
 0x6fb   : > { %v9032_v60 = vadd.f32 %v9031_v9, %v9030_v36  ;;  %v9072_v6 = vadd.f32 %v9071_v38, %v9070_v34  ;;  %v9033_v33 = vpop.f32.mrb[146].mxu0  ;;  %v9073_v13 = vpop.f32.mrb[146].mxu1 }
 0x6fc   : > { %v9034_v35 = vpop.f32.mrb[147].mxu0  ;;  %v9074_v2 = vpop.f32.mrb[147].mxu1 }
 0x6fd   : > { %v4605_v56 = vadd.f32 %v9032_v60, %v12017_v22  ;;  %v9035_v61 = vadd.f32 %v9034_v35, %v9033_v33  ;;  %v9075_v45 = vadd.f32 %v9074_v2, %v9073_v13  ;;  %v4718_v2 = vpop.permute.xlu1 %4717 }
 0x6ff   : > { %v4608_v57 = vadd.f32 %v9035_v61, %v12017_v22  ;;  %v4670_v54 = vadd.f32 %v9072_v6, %v4605_v56 }
 0x701   : > { %v4732_v46 = vmul.f32 %v4702_v0, %v4670_v54  ;;  %v9036_v47 = vpop.f32.mrb[148].mxu0  ;;  %v9076_v1 = vpop.f32.mrb[148].mxu1  ;;  %v4673_v5 = vadd.f32 %v9075_v45, %v4608_v57 }
 0x702   : > { %v9037_v41 = vpop.f32.mrb[149].mxu0  ;;  %v9077_v4 = vpop.f32.mrb[149].mxu1 }
 0x703   : > { %v12022_v3 = vadd.f32 %v4732_v46, %v11722_v11  ;;  %v4733_v10 = vmul.f32 %v4706_v62, %v4673_v5  ;;  %v9038_v15 = vadd.f32 %v9037_v41, %v9036_v47  ;;  %v9078_v18 = vadd.f32 %v9077_v4, %v9076_v1  ;;  %v9039_v30 = vpop.f32.mrb[150].mxu0  ;;  %v9079_v52 = vpop.f32.mrb[150].mxu1 }
 0x704   : > { %v9040_v23 = vpop.f32.mrb[151].mxu0  ;;  %v9080_v55 = vpop.f32.mrb[151].mxu1 }
 0x705   : > { %v12025_v12 = vadd.f32 %v4733_v10, %v11726_v19  ;;  %v4613_v43 = vadd.f32 %v9038_v15, %v12017_v22  ;;  %v9041_v53 = vadd.f32 %v9040_v23, %v9039_v30  ;;  %v9081_v63 = vadd.f32 %v9080_v55, %v9079_v52  ;;  %v4714_v11 = vpop.permute.xlu0 %4713  ;;  %v8177_v10 = vld [vmem:[%s12756_s5 + $0x14] sm:$0xf] }
 0x707   : > { %v4616_v48 = vadd.f32 %v9041_v53, %v12017_v22  ;;  %v4678_v37 = vadd.f32 %v9078_v18, %v4613_v43  ;;  %v12048_v43 = vrot.slane %v8177_v10, %v10483_v24  ;;  %v12051_v53 = vrot.slane %v8177_v10, %v10485_v25 }
 0x709   : > { %v4734_v44 = vmul.f32 %v4710_v39, %v4678_v37  ;;  %v9042_v40 = vpop.f32.mrb[152].mxu0  ;;  %v9082_v8 = vpop.f32.mrb[152].mxu1  ;;  %v4681_v16 = vadd.f32 %v9081_v63, %v4616_v48  ;;  %v12055_v48 = vrot.slane %v8177_v10, %v10490_v26  ;;  %v12058_v37 = vrot.slane %v8177_v10, %v10492_v27 }
 0x70a   : > { %v9043_v14 = vpop.f32.mrb[153].mxu0  ;;  %v9083_v7 = vpop.f32.mrb[153].mxu1 }
 0x70b   : > { %v12030_v31 = vadd.f32 %v4734_v44, %v11730_v17  ;;  %v9044_v19 = vadd.f32 %v9043_v14, %v9042_v40  ;;  %v9084_v42 = vadd.f32 %v9083_v7, %v9082_v8  ;;  %v4735_v36 = vmul.f32 %v4714_v11, %v4681_v16  ;;  %v9045_v34 = vpop.f32.mrb[154].mxu0  ;;  %v9085_v9 = vpop.f32.mrb[154].mxu1 }
 0x70c   : > { %v9046_v38 = vpop.f32.mrb[155].mxu0  ;;  %v9086_v60 = vpop.f32.mrb[155].mxu1 }
 0x70d   : > { %v4621_v6 = vadd.f32 %v9044_v19, %v12017_v22  ;;  %v12034_v33 = vadd.f32 %v4735_v36, %v11733_v59  ;;  %v9047_v13 = vadd.f32 %v9046_v38, %v9045_v34  ;;  %v9087_v35 = vadd.f32 %v9086_v60, %v9085_v9  ;;  %v4722_v17 = vpop.permute.xlu0 %4721 }
 0x70f   : > { %v4624_v56 = vadd.f32 %v9047_v13, %v12017_v22  ;;  %v4686_v61 = vadd.f32 %v9084_v42, %v4621_v6 }
 0x711   : > { %v4736_v45 = vmul.f32 %v4718_v2, %v4686_v61  ;;  %v9048_v0 = vpop.f32.mrb[156].mxu0  ;;  %v9088_v57 = vpop.f32.mrb[156].mxu1  ;;  %v4689_v54 = vadd.f32 %v9087_v35, %v4624_v56 }
 0x712   : > { %v9049_v62 = vpop.f32.mrb[157].mxu0  ;;  %v9089_v46 = vpop.f32.mrb[157].mxu1 }
 0x713   : > { %v12038_v47 = vadd.f32 %v4736_v45, %v11738_v21  ;;  %v9050_v1 = vadd.f32 %v9049_v62, %v9048_v0  ;;  %v9090_v5 = vadd.f32 %v9089_v46, %v9088_v57  ;;  %v4737_v59 = vmul.f32 %v4722_v17, %v4689_v54  ;;  %v9051_v41 = vpop.f32.mrb[158].mxu0  ;;  %v9091_v4 = vpop.f32.mrb[158].mxu1 }
 0x714   : > { %v9052_v15 = vpop.f32.mrb[159].mxu0  ;;  %v9092_v18 = vpop.f32.mrb[159].mxu1 }
 0x715   : > { %v4629_v30 = vadd.f32 %v9050_v1, %v12017_v22  ;;  %v12045_v52 = vadd.f32 %v4737_v59, %v11744_v32  ;;  %v9053_v23 = vadd.f32 %v9052_v15, %v9051_v41  ;;  %v9093_v55 = vadd.f32 %v9092_v18, %v9091_v4  ;;  %v4726_v21 = vpop.permute.xlu1 %4725  ;;  %v4730_v32 = vpop.permute.xlu0 %4729 }
 0x717   : > { %v4632_v63 = vadd.f32 %v9053_v23, %v12017_v22  ;;  %v4694_v39 = vadd.f32 %v9090_v5, %v4629_v30 }
 0x719   : > { %v4738_v11 = vmul.f32 %v4726_v21, %v4694_v39  ;;  %v4998_v44 = vpop.f32.mrb[160].mxu0  ;;  %v5071_v40 = vpop.f32.mrb[160].mxu1  ;;  %v4697_v8 = vadd.f32 %v9093_v55, %v4632_v63  ;;  %v9849_v55 = vld [vmem:[%s12755_s4 + $0x608] ss:$16 sps:$4 sm:$0xff]   ;;  %v9854_v21 = vld [vmem:[%s12755_s4 + $0x624] ss:$16 sps:$4 sm:$0xff]  }
 0x71a   : > { %v4999_v16 = vadd.f32 %v4998_v44, %v12048_v43  ;;  %v5072_v14 = vadd.f32 %v5071_v40, %v12051_v53  ;;  %v5000_v7 = vpop.f32.mrb[161].mxu0  ;;  %v5073_v19 = vpop.f32.mrb[161].mxu1  ;;  %v9857_v44 = vld [vmem:[%s12755_s4 + $0x62c] ss:$16 sps:$4 sm:$0xff]  }
 0x71b   : > { %v12063_v22 = vadd.f32 %v4738_v11, %v11762_v51  ;;  %v5001_v42 = vadd.f32 %v5000_v7, %v12055_v48  ;;  %v4739_v36 = vmul.f32 %v4730_v32, %v4697_v8  ;;  %v5002_v34 = vpop.f32.mrb[162].mxu0  ;;  %v5075_v9 = vpop.f32.mrb[162].mxu1  ;;  %v5074_v38 = vadd.f32 %v5073_v19, %v12058_v37 }
 0x71c   : > { %v5003_v60 = vadd.f32 %v5002_v34, %v12048_v43  ;;  %v5076_v6 = vadd.f32 %v5075_v9, %v12051_v53  ;;  %v5004_v13 = vpop.f32.mrb[163].mxu0  ;;  %v5077_v35 = vpop.f32.mrb[163].mxu1  ;;  %v5110_v2 = vmax.f32 %v4999_v16, 0.0  ;;  %v5112_v61 = vmax.f32 %v5072_v14, 0.0 }
 0x71d   : > { %v12070_v56 = vadd.f32 %v4739_v36, %v11769_v50  ;;  %v5005_v51 = vadd.f32 %v5004_v13, %v12055_v48  ;;  %v5078_v0 = vadd.f32 %v5077_v35, %v12058_v37  ;;  %v5111_v57 = vmax.f32 %v5001_v42, 0.0  ;;  %v9846_v50 = vld [vmem:[%s12755_s4 + $0x600] ss:$16 sps:$4 sm:$0xff]   ;;  %v9855_v36 = vld [vmem:[%s12755_s4 + $0x628] ss:$16 sps:$4 sm:$0xff]  }
 0x71e   : > { %v5114_v17 = vmax.f32 %v5003_v60, 0.0  ;;  %v5116_v45 = vmax.f32 %v5076_v6, 0.0  ;;  %v5113_v62 = vmax.f32 %v5074_v38, 0.0  ;;  %v9852_v42 = vld [vmem:[%s12755_s4 + $0x620] ss:$16 sps:$4 sm:$0xff]  }
 0x71f   : > { %v5115_v54 = vmax.f32 %v5005_v51, 0.0  ;;  %v5117_v5 = vmax.f32 %v5078_v0, 0.0  ;;  %v9860_v6 = vld [vmem:[%s12755_s4 + $0x644] ss:$16 sps:$4 sm:$0xff]  }
 0x720   : > { %v5142_v46 = vpack.c.bf16 %v5114_v17, %v5110_v2  ;;  %v5144_v1 = vpack.c.bf16 %v5116_v45, %v5112_v61  ;;  %v9863_v45 = vld [vmem:[%s12755_s4 + $0x64c] ss:$16 sps:$4 sm:$0xff]  }
 0x721   : > { %v5143_v59 = vpack.c.bf16 %v5115_v54, %v5111_v57  ;;  %v5008_v41 = vpop.f32.mrb[164].mxu0  ;;  %v5081_v4 = vpop.f32.mrb[164].mxu1  ;;  %v5145_v10 = vpack.c.bf16 %v5117_v5, %v5113_v62 }
 0x722   : > { %v5009_v15 = vadd.f32 %v5008_v41, %v12048_v43  ;;  %v5082_v18 = vadd.f32 %v5081_v4, %v12051_v53  ;;  %v5010_v30 = vpop.f32.mrb[165].mxu0  ;;  %v5083_v23 = vpop.f32.mrb[165].mxu1  ;;  %v9861_v4 = vld [vmem:[%s12755_s4 + $0x648] ss:$16 sps:$4 sm:$0xff]  }
 0x723   : > { %v5011_v63 = vadd.f32 %v5010_v30, %v12055_v48  ;;  %v5084_v39 = vadd.f32 %v5083_v23, %v12058_v37  ;;  %v5012_v32 = vpop.f32.mrb[166].mxu0  ;;  %v5085_v11 = vpop.f32.mrb[166].mxu1  ;;  %5455 = vmatprep.mubr.bf16.mxu0 %v5143_v59  ;;  %5520 = vmatprep.mubr.bf16.mxu1 %v5145_v10  ;;  %v9869_v23 = vld [vmem:[%s12755_s4 + $0x66c] ss:$16 sps:$4 sm:$0xff]  }
 0x724   : > { %v5013_v40 = vadd.f32 %v5012_v32, %v12048_v43  ;;  %v5086_v8 = vadd.f32 %v5085_v11, %v12051_v53  ;;  %v5014_v16 = vpop.f32.mrb[167].mxu0  ;;  %v5087_v14 = vpop.f32.mrb[167].mxu1  ;;  %5456 = vmatmul.mubr.bf16.vlgmr.msra.gmra.mrb[176].mxu0 %v5142_v46  ;;  %5521 = vmatmul.mubr.bf16.vlgmr.msra.gmra.mrb[176].mxu1 %v5144_v1  ;;  %v5118_v34 = vmax.f32 %v5009_v15, 0.0  ;;  %v5120_v9 = vmax.f32 %v5082_v18, 0.0  ;;  %v9858_v46 = vld [vmem:[%s12755_s4 + $0x640] ss:$16 sps:$4 sm:$0xff]  }
 0x725   : > { %v5015_v7 = vadd.f32 %v5014_v16, %v12055_v48  ;;  %v5088_v19 = vadd.f32 %v5087_v14, %v12058_v37  ;;  %5818 = vmatpush1.bf16.msra.mxu0 %v9846_v50  ;;  %5891 = vmatpush1.bf16.msra.mxu1 %v9849_v55  ;;  %v5119_v13 = vmax.f32 %v5011_v63, 0.0  ;;  %v5121_v35 = vmax.f32 %v5084_v39, 0.0  ;;  %v9866_v50 = vld [vmem:[%s12755_s4 + $0x664] ss:$16 sps:$4 sm:$0xff]  }
 0x726   : > { %v5122_v38 = vmax.f32 %v5013_v40, 0.0  ;;  %v5124_v60 = vmax.f32 %v5086_v8, 0.0  ;;  %5819 = vmatprep.subr.bf16.mxu0 %v9854_v21  ;;  %5892 = vmatprep.subr.bf16.mxu1 %v9857_v44  ;;  %v9864_v44 = vld [vmem:[%s12755_s4 + $0x660] ss:$16 sps:$4 sm:$0xff]   ;;  %v9867_v40 = vld [vmem:[%s12755_s4 + $0x668] ss:$16 sps:$4 sm:$0xff]  }
 0x727   : > { %v5123_v2 = vmax.f32 %v5015_v7, 0.0  ;;  %v5125_v51 = vmax.f32 %v5088_v19, 0.0  ;;  %v9872_v19 = vld [vmem:[%s12755_s4 + $0x684] ss:$16 sps:$4 sm:$0xff]  }
 0x728   : > { %v5146_v61 = vpack.c.bf16 %v5122_v38, %v5118_v34  ;;  %v5148_v17 = vpack.c.bf16 %v5124_v60, %v5120_v9 }
 0x729   : > { %v5147_v0 = vpack.c.bf16 %v5123_v2, %v5119_v13  ;;  %v5149_v57 = vpack.c.bf16 %v5125_v51, %v5121_v35  ;;  %5820 = vmatpush1.bf16.msra.mxu0 %v9852_v42  ;;  %v5018_v54 = vpop.f32.mrb[168].mxu0  ;;  %v5091_v62 = vpop.f32.mrb[168].mxu1  ;;  %5893 = vmatpush1.bf16.msra.mxu1 %v9855_v36 }
 0x72a   : > { %v5019_v1 = vadd.f32 %v5018_v54, %v12048_v43  ;;  %v5092_v5 = vadd.f32 %v5091_v62, %v12051_v53  ;;  %v5020_v59 = vpop.f32.mrb[169].mxu0  ;;  %v5093_v41 = vpop.f32.mrb[169].mxu1  ;;  %5821 = vmatprep.subr.bf16.mxu0 %v9860_v6  ;;  %5894 = vmatprep.subr.bf16.mxu1 %v9863_v45  ;;  %v9875_v6 = vld [vmem:[%s12755_s4 + $0x68c] ss:$16 sps:$4 sm:$0xff]   ;;  %v9873_v54 = vld [vmem:[%s12755_s4 + $0x688] ss:$16 sps:$4 sm:$0xff]  }
 0x72b   : > { %v5021_v10 = vadd.f32 %v5020_v59, %v12055_v48  ;;  %v5094_v15 = vadd.f32 %v5093_v41, %v12058_v37  ;;  %v5022_v18 = vpop.f32.mrb[170].mxu0  ;;  %v5095_v30 = vpop.f32.mrb[170].mxu1  ;;  %5463 = vmatprep.mubr.bf16.mxu0 %v5147_v0  ;;  %5528 = vmatprep.mubr.bf16.mxu1 %v5149_v57  ;;  %v9878_v62 = vld [vmem:[%s12755_s4 + $0x6a4] ss:$16 sps:$4 sm:$0xff]   ;;  %v9881_v41 = vld [vmem:[%s12755_s4 + $0x6ac] ss:$16 sps:$4 sm:$0xff]  }
 0x72c   : > { %v5023_v55 = vadd.f32 %v5022_v18, %v12048_v43  ;;  %v5096_v21 = vadd.f32 %v5095_v30, %v12051_v53  ;;  %v5024_v63 = vpop.f32.mrb[171].mxu0  ;;  %v5097_v39 = vpop.f32.mrb[171].mxu1  ;;  %5464 = vmatmul.mubr.bf16.gmra.mrb[180].mxu0 %v5146_v61  ;;  %5529 = vmatmul.mubr.bf16.gmra.mrb[180].mxu1 %v5148_v17  ;;  %v5126_v8 = vmax.f32 %v5019_v1, 0.0  ;;  %v5128_v16 = vmax.f32 %v5092_v5, 0.0  ;;  %v9870_v61 = vld [vmem:[%s12755_s4 + $0x680] ss:$16 sps:$4 sm:$0xff]  }
 0x72d   : > { %v5025_v32 = vadd.f32 %v5024_v63, %v12055_v48  ;;  %v5098_v11 = vadd.f32 %v5097_v39, %v12058_v37  ;;  %5822 = vmatpush1.bf16.msra.mxu0 %v9858_v46  ;;  %5895 = vmatpush1.bf16.msra.mxu1 %v9861_v4  ;;  %v5127_v42 = vmax.f32 %v5021_v10, 0.0  ;;  %v5129_v36 = vmax.f32 %v5094_v15, 0.0 }
 0x72e   : > { %v5130_v14 = vmax.f32 %v5023_v55, 0.0  ;;  %v5132_v7 = vmax.f32 %v5096_v21, 0.0  ;;  %5823 = vmatprep.subr.bf16.mxu0 %v9866_v50  ;;  %5896 = vmatprep.subr.bf16.mxu1 %v9869_v23  ;;  %v9876_v23 = vld [vmem:[%s12755_s4 + $0x6a0] ss:$16 sps:$4 sm:$0xff]  }
 0x72f   : > { %v5131_v34 = vmax.f32 %v5025_v32, 0.0  ;;  %v5133_v9 = vmax.f32 %v5098_v11, 0.0 }
 0x730   : > { %v5150_v38 = vpack.c.bf16 %v5130_v14, %v5126_v8  ;;  %v5152_v60 = vpack.c.bf16 %v5132_v7, %v5128_v16  ;;  %v9887_v8 = vld [vmem:[%s12755_s4 + $0x6cc] ss:$16 sps:$4 sm:$0xff]   ;;  %v9882_v7 = vld [vmem:[%s12755_s4 + $0x6c0] ss:$16 sps:$4 sm:$0xff]  }
 0x731   : > { %v5151_v13 = vpack.c.bf16 %v5131_v34, %v5127_v42  ;;  %v5153_v35 = vpack.c.bf16 %v5133_v9, %v5129_v36  ;;  %5824 = vmatpush1.bf16.msra.mxu0 %v9864_v44  ;;  %v5028_v2 = vpop.f32.mrb[172].mxu0  ;;  %v5101_v51 = vpop.f32.mrb[172].mxu1  ;;  %5897 = vmatpush1.bf16.msra.mxu1 %v9867_v40  ;;  %v9890_v42 = vld [vmem:[%s12755_s4 + $0x6e4] ss:$16 sps:$4 sm:$0xff]   ;;  %v9893_v36 = vld [vmem:[%s12755_s4 + $0x6ec] ss:$16 sps:$4 sm:$0xff]  }
 0x732   : > { %v5029_v17 = vadd.f32 %v5028_v2, %v12048_v43  ;;  %v5102_v45 = vadd.f32 %v5101_v51, %v12051_v53  ;;  %v5030_v0 = vpop.f32.mrb[173].mxu0  ;;  %v5103_v57 = vpop.f32.mrb[173].mxu1  ;;  %5825 = vmatprep.subr.bf16.mxu0 %v9872_v19  ;;  %5898 = vmatprep.subr.bf16.mxu1 %v9875_v6  ;;  %v9885_v19 = vld [vmem:[%s12755_s4 + $0x6c8] ss:$16 sps:$4 sm:$0xff]   ;;  %v9888_v34 = vld [vmem:[%s12755_s4 + $0x6e0] ss:$16 sps:$4 sm:$0xff]  }
 0x733   : > { %v5031_v46 = vadd.f32 %v5030_v0, %v12055_v48  ;;  %v5104_v1 = vadd.f32 %v5103_v57, %v12058_v37  ;;  %v5032_v5 = vpop.f32.mrb[174].mxu0  ;;  %v5105_v59 = vpop.f32.mrb[174].mxu1  ;;  %5471 = vmatprep.mubr.bf16.mxu0 %v5151_v13  ;;  %5536 = vmatprep.mubr.bf16.mxu1 %v5153_v35  ;;  %v9891_v9 = vld [vmem:[%s12755_s4 + $0x6e8] ss:$16 sps:$4 sm:$0xff]   ;;  %v9895_v6 = vld [vmem:[%s12757_s6 + $0x600] sm:$0xff]   ;;  %v9903_v0 = vld [vmem:[%s12757_s6 + $0x610] sm:$0xff]  }
 0x734   : > { %v5033_v4 = vadd.f32 %v5032_v5, %v12048_v43  ;;  %v5106_v50 = vadd.f32 %v5105_v59, %v12051_v53  ;;  %v5034_v10 = vpop.f32.mrb[175].mxu0  ;;  %v5107_v15 = vpop.f32.mrb[175].mxu1  ;;  %5472 = vmatmul.mubr.bf16.gmra.mrb[184].mxu0 %v5150_v38  ;;  %5537 = vmatmul.mubr.bf16.gmra.mrb[184].mxu1 %v5152_v60  ;;  %v9879_v43 = vld [vmem:[%s12755_s4 + $0x6a8] ss:$16 sps:$4 sm:$0xff]   ;;  %v5134_v55 = vmax.f32 %v5029_v17, 0.0  ;;  %v5136_v53 = vmax.f32 %v5102_v45, 0.0 }
 0x735   : > { %v5035_v18 = vadd.f32 %v5034_v10, %v12055_v48  ;;  %v5108_v30 = vadd.f32 %v5107_v15, %v12058_v37  ;;  %5826 = vmatpush1.bf16.msra.mxu0 %v9870_v61  ;;  %5899 = vmatpush1.bf16.msra.mxu1 %v9873_v54  ;;  %v9884_v48 = vld [vmem:[%s12755_s4 + $0x6c4] ss:$16 sps:$4 sm:$0xff]   ;;  %v5135_v37 = vmax.f32 %v5031_v46, 0.0  ;;  %v5137_v39 = vmax.f32 %v5104_v1, 0.0  ;;  %v9898_v35 = vld [vmem:[%s12757_s6 + $0x648] sm:$0xff]   ;;  %v9906_v54 = vld [vmem:[%s12757_s6 + $0x658] sm:$0xff]  }
 0x736   : > { %v5138_v21 = vmax.f32 %v5033_v4, 0.0  ;;  %v5140_v63 = vmax.f32 %v5106_v50, 0.0  ;;  %5827 = vmatprep.subr.bf16.mxu0 %v9878_v62  ;;  %5900 = vmatprep.subr.bf16.mxu1 %v9881_v41  ;;  %v9894_v38 = vld [vmem:[%s12757_s6 + $0x640] sm:$0xff]   ;;  %v9900_v2 = vld [vmem:[%s12757_s6 + $0x6c8] sm:$0xff]   ;;  %v9902_v17 = vld [vmem:[%s12757_s6 + $0x650] sm:$0xff]  }
 0x737   : > { %v5139_v32 = vmax.f32 %v5035_v18, 0.0  ;;  %v5141_v11 = vmax.f32 %v5108_v30, 0.0  ;;  %v9896_v60 = vld [vmem:[%s12757_s6 + $0x6c0] sm:$0xff]   ;;  %v9899_v51 = vld [vmem:[%s12757_s6 + $0x608] sm:$0xff]   ;;  %v9904_v45 = vld [vmem:[%s12757_s6 + $0x6d0] sm:$0xff]  }
 0x738   : > { %v5154_v44 = vpack.c.bf16 %v5138_v21, %v5134_v55  ;;  %v5156_v40 = vpack.c.bf16 %v5140_v63, %v5136_v53  ;;  %v9897_v13 = vld [vmem:[%s12757_s6 + $0x680] sm:$0xff]   ;;  %v9901_v61 = vld [vmem:[%s12757_s6 + $0x688] sm:$0xff]   ;;  %v9905_v57 = vld [vmem:[%s12757_s6 + $0x690] sm:$0xff]  }
 0x739   : > { %v5155_v16 = vpack.c.bf16 %v5139_v32, %v5135_v37  ;;  %v5157_v14 = vpack.c.bf16 %v5141_v11, %v5137_v39  ;;  %5828 = vmatpush1.bf16.msra.mxu0 %v9876_v23  ;;  %5901 = vmatpush1.bf16.msra.mxu1 %v9879_v43  ;;  %v9907_v62 = vld [vmem:[%s12757_s6 + $0x618] sm:$0xff]   ;;  %v9910_v5 = vld [vmem:[%s12757_s6 + $0x660] sm:$0xff]   ;;  %v9914_v50 = vld [vmem:[%s12757_s6 + $0x668] sm:$0xff]   ;;  %v10060_v32 = vmov 6  }
 0x73a   : > { %5829 = vmatprep.subr.bf16.mxu0 %v9884_v48  ;;  %5902 = vmatprep.subr.bf16.mxu1 %v9887_v8  ;;  %v9908_v46 = vld [vmem:[%s12757_s6 + $0x6d8] sm:$0xff]   ;;  %v9912_v59 = vld [vmem:[%s12757_s6 + $0x6e0] sm:$0xff]   ;;  %v9915_v10 = vld [vmem:[%s12757_s6 + $0x628] sm:$0xff]  }
 0x73b   : > { %5479 = vmatprep.mubr.bf16.mxu0 %v5155_v16  ;;  %5544 = vmatprep.mubr.bf16.mxu1 %v5157_v14  ;;  %v9909_v1 = vld [vmem:[%s12757_s6 + $0x698] sm:$0xff]   ;;  %v9911_v41 = vld [vmem:[%s12757_s6 + $0x620] sm:$0xff]   ;;  %v9916_v15 = vld [vmem:[%s12757_s6 + $0x6e8] sm:$0xff]  }
 0x73c   : > { %5480 = vmatmul.mubr.bf16.gmra.mrb[188].mxu0 %v5154_v44  ;;  %5545 = vmatmul.mubr.bf16.gmra.mrb[188].mxu1 %v5156_v40  ;;  %v9913_v4 = vld [vmem:[%s12757_s6 + $0x6a0] sm:$0xff]   ;;  %v9917_v18 = vld [vmem:[%s12757_s6 + $0x6a8] sm:$0xff]   ;;  %v9918_v30 = vld [vmem:[%s12757_s6 + $0x670] sm:$0xff]  }
 0x73d   : > { %5830 = vmatpush1.bf16.msra.mxu0 %v9882_v7  ;;  %5903 = vmatpush1.bf16.msra.mxu1 %v9885_v19  ;;  %v9920_v23 = vld [vmem:[%s12757_s6 + $0x6f0] sm:$0xff]   ;;  %v9922_v53 = vld [vmem:[%s12757_s6 + $0x678] sm:$0xff]   ;;  %v12307_v11 = vld [vmem:[%s10449_s18] sm:$0xff] }
 0x73e   : > { %5831 = vmatprep.subr.bf16.mxu0 %v9890_v42  ;;  %5904 = vmatprep.subr.bf16.mxu1 %v9893_v36  ;;  %v9919_v43 = vld [vmem:[%s12757_s6 + $0x630] sm:$0xff]   ;;  %v9924_v21 = vld [vmem:[%s12757_s6 + $0x6f8] sm:$0xff]   ;;  %v12311_v44 = vld [vmem:[%s10449_s18 + $0x8] sm:$0xff] }
 0x73f   : > { %5849 = vmatprep.mubr.bf16.mxu0 %v10054_v20  ;;  %5922 = vmatprep.mubr.bf16.mxu1 %v10054_v20  ;;  %v9921_v55 = vld [vmem:[%s12757_s6 + $0x6b0] sm:$0xff]   ;;  %v9923_v63 = vld [vmem:[%s12757_s6 + $0x638] sm:$0xff]   ;;  %v12323_v16 = vld [vmem:[%s10449_s18 + $0x20] sm:$0xff] }
 0x740   : > { %v9925_v48 = vld [vmem:[%s12757_s6 + $0x6b8] sm:$0xff]   ;;  %v9928_v37 = vld [vmem:[%s12755_s4 + $0x704] ss:$16 sps:$4 sm:$0xff]   ;;  %9362 = vset.pattern.permute.xlu0 %v10060_v32  ;;  %9363 = vset.pattern.permute.xlu1 %v10060_v32  ;;  %v12327_v14 = vld [vmem:[%s10449_s18 + $0x28] sm:$0xff] }
 0x741   : > { %5832 = vmatpush1.bf16.msra.mxu0 %v9888_v34  ;;  %5905 = vmatpush1.bf16.msra.mxu1 %v9891_v9  ;;  %v9931_v39 = vld [vmem:[%s12755_s4 + $0x70c] ss:$16 sps:$4 sm:$0xff]   ;;  %v12315_v40 = vld [vmem:[%s10449_s18 + $0x10] sm:$0xff]  ;;  %v12341_v34 = vld [vmem:[%s12758_s7 + $0x5] ss:$0 sm:$0xff] }
 0x742   : > { %9174 = vmatprep.subr.bf16.mxu0 %v9894_v38  ;;  %9214 = vmatprep.subr.bf16.mxu1 %v9896_v60  ;;  %v12319_v8 = vld [vmem:[%s10449_s18 + $0x18] sm:$0xff]  ;;  %v12331_v7 = vld [vmem:[%s10449_s18 + $0x30] sm:$0xff] }
 0x743   : > { %6407 = vperm.xlu0 %9362, %v12307_v11   ;;  %6411 = vperm.xlu1 %9363, %v12311_v44   ;;  %v12335_v19 = vld [vmem:[%s10449_s18 + $0x38] sm:$0xff] }
 0x744   : > { %5850 = vmatmul.mubr.bf16.vlgmr.msra.gmra.mrb[192].mxu0 %v10311_v29  ;;  %5923 = vmatmul.mubr.bf16.vlgmr.msra.gmra.mrb[192].mxu1 %v10311_v29 }
 0x745   : > { %5859 = vmatprep.mubr.bf16.mxu0 %v10054_v20  ;;  %5932 = vmatprep.mubr.bf16.mxu1 %v10054_v20 }
 0x746   : > { %9175 = vmatpush3.bf16.msra.mxu0 %v9895_v6  ;;  %9215 = vmatpush3.bf16.msra.mxu1 %v9897_v13 }
 0x747   : > { %9176 = vmatprep.subr.bf16.mxu0 %v9898_v35  ;;  %9216 = vmatprep.subr.bf16.mxu1 %v9900_v2 }
 0x748   : > { %6415 = vperm.xlu1 %9363, %v12315_v40   ;;  %6419 = vperm.xlu0 %9362, %v12319_v8  }
 0x74a   : > { %9177 = vmatpush3.bf16.msra.mxu0 %v9899_v51  ;;  %9217 = vmatpush3.bf16.msra.mxu1 %v9901_v61 }
 0x74b   : > { %9178 = vmatprep.subr.bf16.mxu0 %v9902_v17  ;;  %9218 = vmatprep.subr.bf16.mxu1 %v9904_v45  ;;  %v5555_v45 = vpop.permute.xlu1 %5554 }
 0x74c   : > { %5860 = vmatmul.mubr.bf16.gmra.mrb[196].mxu0 %v10347_v28  ;;  %5933 = vmatmul.mubr.bf16.gmra.mrb[196].mxu1 %v10347_v28 }
 0x74d   : > { %5869 = vmatprep.mubr.bf16.mxu0 %v10054_v20  ;;  %5942 = vmatprep.mubr.bf16.mxu1 %v10054_v20 }
 0x74e   : > { %9179 = vmatpush3.bf16.msra.mxu0 %v9903_v0  ;;  %9219 = vmatpush3.bf16.msra.mxu1 %v9905_v57 }
 0x74f   : > { %9180 = vmatprep.subr.bf16.mxu0 %v9906_v54  ;;  %9220 = vmatprep.subr.bf16.mxu1 %v9908_v46 }
 0x750   : > { %6423 = vperm.xlu1 %9363, %v12323_v16   ;;  %6427 = vperm.xlu0 %9362, %v12327_v14  }
 0x752   : > { %9181 = vmatpush3.bf16.msra.mxu0 %v9907_v62  ;;  %9221 = vmatpush3.bf16.msra.mxu1 %v9909_v1  ;;  %v5559_v62 = vpop.permute.xlu0 %5558 }
 0x753   : > { %9182 = vmatprep.subr.bf16.mxu0 %v9910_v5  ;;  %9222 = vmatprep.subr.bf16.mxu1 %v9912_v59  ;;  %v5563_v59 = vpop.permute.xlu1 %5562 }
 0x754   : > { %5870 = vmatmul.mubr.bf16.gmra.mrb[200].mxu0 %v10383_v49  ;;  %5943 = vmatmul.mubr.bf16.gmra.mrb[200].mxu1 %v10383_v49 }
 0x755   : > { %5879 = vmatprep.mubr.bf16.mxu0 %v10054_v20  ;;  %5952 = vmatprep.mubr.bf16.mxu1 %v10054_v20 }
 0x756   : > { %9183 = vmatpush3.bf16.msra.mxu0 %v9911_v41  ;;  %9223 = vmatpush3.bf16.msra.mxu1 %v9913_v4 }
 0x757   : > { %9184 = vmatprep.subr.bf16.mxu0 %v9914_v50  ;;  %9224 = vmatprep.subr.bf16.mxu1 %v9916_v15 }
 0x758   : > { %6431 = vperm.xlu1 %9363, %v12331_v7   ;;  %6435 = vperm.xlu0 %9362, %v12335_v19  }
 0x75a   : > { %9185 = vmatpush3.bf16.msra.mxu0 %v9915_v10  ;;  %9225 = vmatpush3.bf16.msra.mxu1 %v9917_v18 }
 0x75b   : > { %9186 = vmatprep.subr.bf16.mxu0 %v9918_v30  ;;  %9226 = vmatprep.subr.bf16.mxu1 %v9920_v23 }
 0x75c   : > { %5880 = vmatmul.mubr.bf16.gmra.mrb[204].mxu0 %v10408_v58  ;;  %5953 = vmatmul.mubr.bf16.gmra.mrb[204].mxu1 %v10408_v58 }
 0x75e   : > { %9187 = vmatpush3.bf16.msra.mxu0 %v9919_v43  ;;  %9227 = vmatpush3.bf16.msra.mxu1 %v9921_v55 }
 0x75f   : > { %9188 = vmatprep.subr.bf16.mxu0 %v9922_v53  ;;  %9228 = vmatprep.subr.bf16.mxu1 %v9924_v21 }
 0x762   : > { %9189 = vmatpush3.bf16.msra.mxu0 %v9923_v63  ;;  %9229 = vmatpush3.bf16.msra.mxu1 %v9925_v48 }
 0x763   : > { %6670 = vmatprep.subr.bf16.mxu0 %v9928_v37  ;;  %6743 = vmatprep.subr.bf16.mxu1 %v9931_v39 }
 0x7f7   : > { %v9110_v42 = vpop.f32.mrb[176].mxu0  ;;  %v9150_v36 = vpop.f32.mrb[176].mxu1 }
 0x7f8   : > { %v9111_v9 = vpop.f32.mrb[177].mxu0  ;;  %v9151_v60 = vpop.f32.mrb[177].mxu1 }
 0x7f9   : > { %v9112_v38 = vadd.f32 %v9111_v9, %v9110_v42  ;;  %v9113_v6 = vpop.f32.mrb[178].mxu0  ;;  %v9152_v13 = vadd.f32 %v9151_v60, %v9150_v36  ;;  %v9153_v35 = vpop.f32.mrb[178].mxu1 }
 0x7fa   : > { %v9114_v2 = vpop.f32.mrb[179].mxu0  ;;  %v9154_v17 = vpop.f32.mrb[179].mxu1 }
 0x7fb   : > { %v5458_v51 = vadd.f32 %v9112_v38, %v12341_v34  ;;  %v9115_v61 = vadd.f32 %v9114_v2, %v9113_v6  ;;  %v9155_v0 = vadd.f32 %v9154_v17, %v9153_v35 }
 0x7fd   : > { %v5461_v57 = vadd.f32 %v9115_v61, %v12341_v34  ;;  %v5523_v54 = vadd.f32 %v9152_v13, %v5458_v51 }
 0x7ff   : > { %v5585_v46 = vmul.f32 %v5555_v45, %v5523_v54  ;;  %v9116_v1 = vpop.f32.mrb[180].mxu0  ;;  %v5526_v5 = vadd.f32 %v9155_v0, %v5461_v57  ;;  %v9156_v41 = vpop.f32.mrb[180].mxu1 }
 0x800   : > { %v9117_v4 = vpop.f32.mrb[181].mxu0  ;;  %v9157_v15 = vpop.f32.mrb[181].mxu1 }
 0x801   : > { %v12346_v50 = vadd.f32 %v5585_v46, %v12022_v3  ;;  %v9118_v10 = vadd.f32 %v9117_v4, %v9116_v1  ;;  %v5586_v18 = vmul.f32 %v5559_v62, %v5526_v5  ;;  %v9119_v30 = vpop.f32.mrb[182].mxu0  ;;  %v9158_v23 = vadd.f32 %v9157_v15, %v9156_v41  ;;  %v9159_v43 = vpop.f32.mrb[182].mxu1 }
 0x802   : > { %v9120_v55 = vpop.f32.mrb[183].mxu0  ;;  %v9160_v48 = vpop.f32.mrb[183].mxu1 }
 0x803   : > { %v5466_v53 = vadd.f32 %v9118_v10, %v12341_v34  ;;  %v12350_v21 = vadd.f32 %v5586_v18, %v12025_v12  ;;  %v9121_v63 = vadd.f32 %v9120_v55, %v9119_v30  ;;  %v9161_v37 = vadd.f32 %v9160_v48, %v9159_v43  ;;  %v5567_v3 = vpop.permute.xlu1 %5566  ;;  %v5571_v46 = vpop.permute.xlu0 %5570  ;;  %v8340_v55 = vld [vmem:[%s12756_s5 + $0x18] sm:$0xf] }
 0x805   : > { %v5469_v39 = vadd.f32 %v9121_v63, %v12341_v34  ;;  %v5531_v32 = vadd.f32 %v9158_v23, %v5466_v53 }
 0x807   : > { %v5587_v42 = vmul.f32 %v5563_v59, %v5531_v32  ;;  %v9122_v36 = vpop.f32.mrb[184].mxu0  ;;  %v5534_v9 = vadd.f32 %v9161_v37, %v5469_v39  ;;  %v9162_v38 = vpop.f32.mrb[184].mxu1 }
 0x808   : > { %v9123_v60 = vpop.f32.mrb[185].mxu0  ;;  %v9163_v2 = vpop.f32.mrb[185].mxu1 }
 0x809   : > { %v12354_v6 = vadd.f32 %v5587_v42, %v12030_v31  ;;  %v5588_v13 = vmul.f32 %v5567_v3, %v5534_v9  ;;  %v9124_v35 = vadd.f32 %v9123_v60, %v9122_v36  ;;  %v9125_v12 = vpop.f32.mrb[186].mxu0  ;;  %v9164_v51 = vadd.f32 %v9163_v2, %v9162_v38  ;;  %v9165_v61 = vpop.f32.mrb[186].mxu1 }
 0x80a   : > { %v9126_v17 = vpop.f32.mrb[187].mxu0  ;;  %v9166_v54 = vpop.f32.mrb[187].mxu1  ;;  %v12372_v36 = vrot.slane %v8340_v55, %v10483_v24  ;;  %v12376_v60 = vrot.slane %v8340_v55, %v10485_v25 }
 0x80b   : > { %v12357_v45 = vadd.f32 %v5588_v13, %v12034_v33  ;;  %v5474_v0 = vadd.f32 %v9124_v35, %v12341_v34  ;;  %v9127_v57 = vadd.f32 %v9126_v17, %v9125_v12  ;;  %v9167_v62 = vadd.f32 %v9166_v54, %v9165_v61  ;;  %v5575_v5 = vpop.permute.xlu1 %5574  ;;  %v5579_v42 = vpop.permute.xlu0 %5578 }
 0x80c   : > { %v12379_v13 = vrot.slane %v8340_v55, %v10490_v26  ;;  %v12382_v35 = vrot.slane %v8340_v55, %v10492_v27 }
 0x80d   : > { %v5477_v1 = vadd.f32 %v9127_v57, %v12341_v34  ;;  %v5539_v31 = vadd.f32 %v9164_v51, %v5474_v0 }
 0x80f   : > { %v5589_v59 = vmul.f32 %v5571_v46, %v5539_v31  ;;  %v9128_v41 = vpop.f32.mrb[188].mxu0  ;;  %v5542_v4 = vadd.f32 %v9167_v62, %v5477_v1  ;;  %v9168_v10 = vpop.f32.mrb[188].mxu1 }
 0x810   : > { %v9129_v15 = vpop.f32.mrb[189].mxu0  ;;  %v9169_v23 = vpop.f32.mrb[189].mxu1 }
 0x811   : > { %v12362_v18 = vadd.f32 %v5589_v59, %v12038_v47  ;;  %v5590_v33 = vmul.f32 %v5575_v5, %v5542_v4  ;;  %v9130_v30 = vadd.f32 %v9129_v15, %v9128_v41  ;;  %v9131_v43 = vpop.f32.mrb[190].mxu0  ;;  %v9170_v53 = vadd.f32 %v9169_v23, %v9168_v10  ;;  %v9171_v63 = vpop.f32.mrb[190].mxu1 }
 0x812   : > { %v9132_v48 = vpop.f32.mrb[191].mxu0  ;;  %v9172_v3 = vpop.f32.mrb[191].mxu1 }
 0x813   : > { %v12368_v37 = vadd.f32 %v5590_v33, %v12045_v52  ;;  %v5482_v39 = vadd.f32 %v9130_v30, %v12341_v34  ;;  %v9133_v32 = vadd.f32 %v9132_v48, %v9131_v43  ;;  %v9173_v47 = vadd.f32 %v9172_v3, %v9171_v63  ;;  %v5583_v52 = vpop.permute.xlu1 %5582 }
 0x815   : > { %v5485_v9 = vadd.f32 %v9133_v32, %v12341_v34  ;;  %v5547_v38 = vadd.f32 %v9170_v53, %v5482_v39 }
 0x817   : > { %v5591_v2 = vmul.f32 %v5579_v42, %v5547_v38  ;;  %v5851_v12 = vpop.f32.mrb[192].mxu0  ;;  %v5550_v51 = vadd.f32 %v9173_v47, %v5485_v9  ;;  %v5924_v17 = vpop.f32.mrb[192].mxu1 }
 0x818   : > { %v5852_v61 = vadd.f32 %v5851_v12, %v12372_v36  ;;  %v5853_v0 = vpop.f32.mrb[193].mxu0  ;;  %v5925_v57 = vadd.f32 %v5924_v17, %v12376_v60  ;;  %v5926_v46 = vpop.f32.mrb[193].mxu1  ;;  %v9929_v12 = vld [vmem:[%s12755_s4 + $0x708] ss:$16 sps:$4 sm:$0xff]  }
 0x819   : > { %v12386_v34 = vadd.f32 %v5591_v2, %v12063_v22  ;;  %v5592_v54 = vmul.f32 %v5583_v52, %v5550_v51  ;;  %v5854_v62 = vadd.f32 %v5853_v0, %v12379_v13  ;;  %v5855_v1 = vpop.f32.mrb[194].mxu0  ;;  %v5927_v31 = vadd.f32 %v5926_v46, %v12382_v35  ;;  %v5928_v59 = vpop.f32.mrb[194].mxu1  ;;  %v9926_v2 = vld [vmem:[%s12755_s4 + $0x700] ss:$16 sps:$4 sm:$0xff]  }
 0x81a   : > { %v5856_v5 = vadd.f32 %v5855_v1, %v12372_v36  ;;  %v5857_v41 = vpop.f32.mrb[195].mxu0  ;;  %v5929_v10 = vadd.f32 %v5928_v59, %v12376_v60  ;;  %v5930_v22 = vpop.f32.mrb[195].mxu1  ;;  %v5963_v15 = vmax.f32 %v5852_v61, 0.0  ;;  %v5965_v43 = vmax.f32 %v5925_v57, 0.0  ;;  %v9934_v57 = vld [vmem:[%s12755_s4 + $0x724] ss:$16 sps:$4 sm:$0xff]  }
 0x81b   : > { %v12393_v4 = vadd.f32 %v5592_v54, %v12070_v56  ;;  %v5858_v30 = vadd.f32 %v5857_v41, %v12379_v13  ;;  %v5931_v23 = vadd.f32 %v5930_v22, %v12382_v35  ;;  %v5964_v55 = vmax.f32 %v5854_v62, 0.0  ;;  %v9937_v54 = vld [vmem:[%s12755_s4 + $0x72c] ss:$16 sps:$4 sm:$0xff]  }
 0x81c   : > { %v5967_v33 = vmax.f32 %v5856_v5, 0.0  ;;  %v5969_v53 = vmax.f32 %v5929_v10, 0.0  ;;  %v5966_v63 = vmax.f32 %v5927_v31, 0.0 }
 0x81d   : > { %v5968_v39 = vmax.f32 %v5858_v30, 0.0  ;;  %v5970_v32 = vmax.f32 %v5931_v23, 0.0  ;;  %v9935_v30 = vld [vmem:[%s12755_s4 + $0x728] ss:$16 sps:$4 sm:$0xff]  }
 0x81e   : > { %v5995_v48 = vpack.c.bf16 %v5967_v33, %v5963_v15  ;;  %v5997_v3 = vpack.c.bf16 %v5969_v53, %v5965_v43  ;;  %v9932_v33 = vld [vmem:[%s12755_s4 + $0x720] ss:$16 sps:$4 sm:$0xff]  }
 0x81f   : > { %v5861_v47 = vpop.f32.mrb[196].mxu0  ;;  %v5996_v56 = vpack.c.bf16 %v5968_v39, %v5964_v55  ;;  %v5998_v42 = vpack.c.bf16 %v5970_v32, %v5966_v63  ;;  %v5934_v38 = vpop.f32.mrb[196].mxu1  ;;  %v9940_v63 = vld [vmem:[%s12755_s4 + $0x744] ss:$16 sps:$4 sm:$0xff]  }
 0x820   : > { %v5862_v9 = vadd.f32 %v5861_v47, %v12372_v36  ;;  %v5863_v52 = vpop.f32.mrb[197].mxu0  ;;  %v5935_v51 = vadd.f32 %v5934_v38, %v12376_v60  ;;  %v5936_v17 = vpop.f32.mrb[197].mxu1 }
 0x821   : > { %v5864_v61 = vadd.f32 %v5863_v52, %v12379_v13  ;;  %v5865_v0 = vpop.f32.mrb[198].mxu0  ;;  %v5937_v62 = vadd.f32 %v5936_v17, %v12382_v35  ;;  %v5938_v1 = vpop.f32.mrb[198].mxu1  ;;  %6308 = vmatprep.mubr.bf16.mxu0 %v5996_v56  ;;  %6373 = vmatprep.mubr.bf16.mxu1 %v5998_v42 }
 0x822   : > { %v5866_v46 = vadd.f32 %v5865_v0, %v12372_v36  ;;  %v5867_v31 = vpop.f32.mrb[199].mxu0  ;;  %v5939_v5 = vadd.f32 %v5938_v1, %v12376_v60  ;;  %v5940_v41 = vpop.f32.mrb[199].mxu1  ;;  %6309 = vmatmul.mubr.bf16.vlgmr.msra.gmra.mrb[208].mxu0 %v5995_v48  ;;  %6374 = vmatmul.mubr.bf16.vlgmr.msra.gmra.mrb[208].mxu1 %v5997_v3  ;;  %v5971_v10 = vmax.f32 %v5862_v9, 0.0  ;;  %v5973_v23 = vmax.f32 %v5935_v51, 0.0  ;;  %v9943_v3 = vld [vmem:[%s12755_s4 + $0x74c] ss:$16 sps:$4 sm:$0xff]  }
 0x823   : > { %v5868_v59 = vadd.f32 %v5867_v31, %v12379_v13  ;;  %v5941_v15 = vadd.f32 %v5940_v41, %v12382_v35  ;;  %6671 = vmatpush1.bf16.msra.mxu0 %v9926_v2  ;;  %6744 = vmatpush1.bf16.msra.mxu1 %v9929_v12  ;;  %v5972_v43 = vmax.f32 %v5864_v61, 0.0  ;;  %v5974_v48 = vmax.f32 %v5937_v62, 0.0  ;;  %v9938_v12 = vld [vmem:[%s12755_s4 + $0x740] ss:$16 sps:$4 sm:$0xff]   ;;  %v9941_v51 = vld [vmem:[%s12755_s4 + $0x748] ss:$16 sps:$4 sm:$0xff]  }
 0x824   : > { %v5975_v22 = vmax.f32 %v5866_v46, 0.0  ;;  %v5977_v55 = vmax.f32 %v5939_v5, 0.0  ;;  %6672 = vmatprep.subr.bf16.mxu0 %v9934_v57  ;;  %6745 = vmatprep.subr.bf16.mxu1 %v9937_v54  ;;  %v9946_v54 = vld [vmem:[%s12755_s4 + $0x764] ss:$16 sps:$4 sm:$0xff]   ;;  %v9949_v62 = vld [vmem:[%s12755_s4 + $0x76c] ss:$16 sps:$4 sm:$0xff]  }
 0x825   : > { %v5976_v53 = vmax.f32 %v5868_v59, 0.0  ;;  %v5978_v32 = vmax.f32 %v5941_v15, 0.0 }
 0x826   : > { %v5999_v39 = vpack.c.bf16 %v5975_v22, %v5971_v10  ;;  %v6001_v47 = vpack.c.bf16 %v5977_v55, %v5973_v23  ;;  %v9947_v23 = vld [vmem:[%s12755_s4 + $0x768] ss:$16 sps:$4 sm:$0xff]  }
 0x827   : > { %v6000_v56 = vpack.c.bf16 %v5976_v53, %v5972_v43  ;;  %v5871_v42 = vpop.f32.mrb[200].mxu0  ;;  %v6002_v9 = vpack.c.bf16 %v5978_v32, %v5974_v48  ;;  %6673 = vmatpush1.bf16.msra.mxu0 %v9932_v33  ;;  %v5944_v52 = vpop.f32.mrb[200].mxu1  ;;  %6746 = vmatpush1.bf16.msra.mxu1 %v9935_v30  ;;  %v9944_v30 = vld [vmem:[%s12755_s4 + $0x760] ss:$16 sps:$4 sm:$0xff]   ;;  %v9952_v48 = vld [vmem:[%s12755_s4 + $0x784] ss:$16 sps:$4 sm:$0xff]  }
 0x828   : > { %v5872_v38 = vadd.f32 %v5871_v42, %v12372_v36  ;;  %v5873_v2 = vpop.f32.mrb[201].mxu0  ;;  %v5945_v61 = vadd.f32 %v5944_v52, %v12376_v60  ;;  %v5946_v0 = vpop.f32.mrb[201].mxu1  ;;  %6674 = vmatprep.subr.bf16.mxu0 %v9940_v63  ;;  %6747 = vmatprep.subr.bf16.mxu1 %v9943_v3 }
 0x829   : > { %v5874_v17 = vadd.f32 %v5873_v2, %v12379_v13  ;;  %v5875_v57 = vpop.f32.mrb[202].mxu0  ;;  %6316 = vmatprep.mubr.bf16.mxu0 %v6000_v56  ;;  %v5947_v46 = vadd.f32 %v5946_v0, %v12382_v35  ;;  %v5948_v31 = vpop.f32.mrb[202].mxu1  ;;  %6381 = vmatprep.mubr.bf16.mxu1 %v6002_v9 }
 0x82a   : > { %v5876_v1 = vadd.f32 %v5875_v57, %v12372_v36  ;;  %v5877_v5 = vpop.f32.mrb[203].mxu0  ;;  %v5949_v59 = vadd.f32 %v5948_v31, %v12376_v60  ;;  %v5950_v10 = vpop.f32.mrb[203].mxu1  ;;  %6317 = vmatmul.mubr.bf16.gmra.mrb[212].mxu0 %v5999_v39  ;;  %6382 = vmatmul.mubr.bf16.gmra.mrb[212].mxu1 %v6001_v47  ;;  %v5979_v22 = vmax.f32 %v5872_v38, 0.0  ;;  %v5981_v43 = vmax.f32 %v5945_v61, 0.0  ;;  %v9955_v47 = vld [vmem:[%s12755_s4 + $0x78c] ss:$16 sps:$4 sm:$0xff]  }
 0x82b   : > { %v5878_v41 = vadd.f32 %v5877_v5, %v12379_v13  ;;  %v5951_v33 = vadd.f32 %v5950_v10, %v12382_v35  ;;  %6675 = vmatpush1.bf16.msra.mxu0 %v9938_v12  ;;  %6748 = vmatpush1.bf16.msra.mxu1 %v9941_v51  ;;  %v5980_v55 = vmax.f32 %v5874_v17, 0.0  ;;  %v5982_v39 = vmax.f32 %v5947_v46, 0.0  ;;  %v9950_v51 = vld [vmem:[%s12755_s4 + $0x780] ss:$16 sps:$4 sm:$0xff]   ;;  %v9953_v61 = vld [vmem:[%s12755_s4 + $0x788] ss:$16 sps:$4 sm:$0xff]  }
 0x82c   : > { %v5983_v15 = vmax.f32 %v5876_v1, 0.0  ;;  %v5985_v53 = vmax.f32 %v5949_v59, 0.0  ;;  %6676 = vmatprep.subr.bf16.mxu0 %v9946_v54  ;;  %6749 = vmatprep.subr.bf16.mxu1 %v9949_v62  ;;  %v9958_v62 = vld [vmem:[%s12755_s4 + $0x7a4] ss:$16 sps:$4 sm:$0xff]   ;;  %v9961_v46 = vld [vmem:[%s12755_s4 + $0x7ac] ss:$16 sps:$4 sm:$0xff]  }
 0x82d   : > { %v5984_v63 = vmax.f32 %v5878_v41, 0.0  ;;  %v5986_v3 = vmax.f32 %v5951_v33, 0.0 }
 0x82e   : > { %v6003_v32 = vpack.c.bf16 %v5983_v15, %v5979_v22  ;;  %v6005_v56 = vpack.c.bf16 %v5985_v53, %v5981_v43 }
 0x82f   : > { %v6004_v42 = vpack.c.bf16 %v5984_v63, %v5980_v55  ;;  %v5881_v9 = vpop.f32.mrb[204].mxu0  ;;  %v6006_v38 = vpack.c.bf16 %v5986_v3, %v5982_v39  ;;  %6677 = vmatpush1.bf16.msra.mxu0 %v9944_v30  ;;  %v5954_v2 = vpop.f32.mrb[204].mxu1  ;;  %6750 = vmatpush1.bf16.msra.mxu1 %v9947_v23  ;;  %v9959_v23 = vld [vmem:[%s12755_s4 + $0x7a8] ss:$16 sps:$4 sm:$0xff]   ;;  %v9967_v39 = vld [vmem:[%s12755_s4 + $0x7cc] ss:$16 sps:$4 sm:$0xff]  }
 0x830   : > { %v5882_v52 = vadd.f32 %v5881_v9, %v12372_v36  ;;  %v5883_v12 = vpop.f32.mrb[205].mxu0  ;;  %v5955_v17 = vadd.f32 %v5954_v2, %v12376_v60  ;;  %v5956_v57 = vpop.f32.mrb[205].mxu1  ;;  %6678 = vmatprep.subr.bf16.mxu0 %v9952_v48  ;;  %6751 = vmatprep.subr.bf16.mxu1 %v9955_v47  ;;  %v9970_v9 = vld [vmem:[%s12755_s4 + $0x7e4] ss:$16 sps:$4 sm:$0xff]   ;;  %v9971_v2 = vld [vmem:[%s12755_s4 + $0x7e8] ss:$16 sps:$4 sm:$0xff]  }
 0x831   : > { %v5884_v0 = vadd.f32 %v5883_v12, %v12379_v13  ;;  %v5885_v54 = vpop.f32.mrb[206].mxu0  ;;  %6324 = vmatprep.mubr.bf16.mxu0 %v6004_v42  ;;  %v5957_v1 = vadd.f32 %v5956_v57, %v12382_v35  ;;  %v5958_v5 = vpop.f32.mrb[206].mxu1  ;;  %6389 = vmatprep.mubr.bf16.mxu1 %v6006_v38  ;;  %v9965_v42 = vld [vmem:[%s12755_s4 + $0x7c8] ss:$16 sps:$4 sm:$0xff]   ;;  %v9973_v38 = vld [vmem:[%s12755_s4 + $0x7ec] ss:$16 sps:$4 sm:$0xff]  }
 0x832   : > { %v5886_v31 = vadd.f32 %v5885_v54, %v12372_v36  ;;  %v5887_v59 = vpop.f32.mrb[207].mxu0  ;;  %v5959_v41 = vadd.f32 %v5958_v5, %v12376_v60  ;;  %v5960_v22 = vpop.f32.mrb[207].mxu1  ;;  %6325 = vmatmul.mubr.bf16.gmra.mrb[216].mxu0 %v6003_v32  ;;  %6390 = vmatmul.mubr.bf16.gmra.mrb[216].mxu1 %v6005_v56  ;;  %v5987_v15 = vmax.f32 %v5882_v52, 0.0  ;;  %v9956_v36 = vld [vmem:[%s12755_s4 + $0x7a0] ss:$16 sps:$4 sm:$0xff]   ;;  %v5989_v60 = vmax.f32 %v5955_v17, 0.0 }
 0x833   : > { %v5888_v10 = vadd.f32 %v5887_v59, %v12379_v13  ;;  %v5961_v30 = vadd.f32 %v5960_v22, %v12382_v35  ;;  %6679 = vmatpush1.bf16.msra.mxu0 %v9950_v51  ;;  %6752 = vmatpush1.bf16.msra.mxu1 %v9953_v61  ;;  %v5988_v43 = vmax.f32 %v5884_v0, 0.0  ;;  %v9964_v35 = vld [vmem:[%s12755_s4 + $0x7c4] ss:$16 sps:$4 sm:$0xff]   ;;  %v5990_v53 = vmax.f32 %v5957_v1, 0.0  ;;  %v9962_v56 = vld [vmem:[%s12755_s4 + $0x7c0] ss:$16 sps:$4 sm:$0xff]  }
 0x834   : > { %v5991_v33 = vmax.f32 %v5886_v31, 0.0  ;;  %v5993_v13 = vmax.f32 %v5959_v41, 0.0  ;;  %6680 = vmatprep.subr.bf16.mxu0 %v9958_v62  ;;  %6753 = vmatprep.subr.bf16.mxu1 %v9961_v46  ;;  %v9968_v52 = vld [vmem:[%s12755_s4 + $0x7e0] ss:$16 sps:$4 sm:$0xff]   ;;  %v9980_v12 = vld [vmem:[%s12757_s6 + $0x7c8] sm:$0xff]   ;;  %v9986_v62 = vld [vmem:[%s12757_s6 + $0x758] sm:$0xff]  }
 0x835   : > { %v5992_v55 = vmax.f32 %v5888_v10, 0.0  ;;  %v5994_v48 = vmax.f32 %v5961_v30, 0.0  ;;  %v9979_v51 = vld [vmem:[%s12757_s6 + $0x708] sm:$0xff]   ;;  %v9982_v17 = vld [vmem:[%s12757_s6 + $0x750] sm:$0xff]   ;;  %v9988_v46 = vld [vmem:[%s12757_s6 + $0x7d8] sm:$0xff]  }
 0x836   : > { %v6007_v63 = vpack.c.bf16 %v5991_v33, %v5987_v15  ;;  %v6009_v32 = vpack.c.bf16 %v5993_v13, %v5989_v60  ;;  %v9981_v61 = vld [vmem:[%s12757_s6 + $0x788] sm:$0xff]   ;;  %v9984_v0 = vld [vmem:[%s12757_s6 + $0x7d0] sm:$0xff]   ;;  %v9987_v1 = vld [vmem:[%s12757_s6 + $0x718] sm:$0xff]  }
 0x837   : > { %v6008_v3 = vpack.c.bf16 %v5992_v55, %v5988_v43  ;;  %v6010_v47 = vpack.c.bf16 %v5994_v48, %v5990_v53  ;;  %6681 = vmatpush1.bf16.msra.mxu0 %v9956_v36  ;;  %6754 = vmatpush1.bf16.msra.mxu1 %v9959_v23  ;;  %v9983_v57 = vld [vmem:[%s12757_s6 + $0x710] sm:$0xff]   ;;  %v9989_v31 = vld [vmem:[%s12757_s6 + $0x798] sm:$0xff]   ;;  %v9990_v5 = vld [vmem:[%s12757_s6 + $0x760] sm:$0xff]  }
 0x838   : > { %6682 = vmatprep.subr.bf16.mxu0 %v9964_v35  ;;  %6755 = vmatprep.subr.bf16.mxu1 %v9967_v39  ;;  %v9985_v54 = vld [vmem:[%s12757_s6 + $0x790] sm:$0xff]   ;;  %v9992_v59 = vld [vmem:[%s12757_s6 + $0x7e0] sm:$0xff]   ;;  %v9994_v22 = vld [vmem:[%s12757_s6 + $0x768] sm:$0xff]  }
 0x839   : > { %6332 = vmatprep.mubr.bf16.mxu0 %v6008_v3  ;;  %6397 = vmatprep.mubr.bf16.mxu1 %v6010_v47  ;;  %v9991_v41 = vld [vmem:[%s12757_s6 + $0x720] sm:$0xff]   ;;  %v9996_v15 = vld [vmem:[%s12757_s6 + $0x7e8] sm:$0xff]   ;;  %v9998_v36 = vld [vmem:[%s12757_s6 + $0x770] sm:$0xff]  }
 0x83a   : > { %6333 = vmatmul.mubr.bf16.gmra.mrb[220].mxu0 %v6007_v63  ;;  %6398 = vmatmul.mubr.bf16.gmra.mrb[220].mxu1 %v6009_v32  ;;  %v9993_v10 = vld [vmem:[%s12757_s6 + $0x7a0] sm:$0xff]   ;;  %v9995_v33 = vld [vmem:[%s12757_s6 + $0x728] sm:$0xff]   ;;  %v10000_v23 = vld [vmem:[%s12757_s6 + $0x7f0] sm:$0xff]   ;;  %v10061_v63 = vmov 7  }
 0x83b   : > { %6683 = vmatpush1.bf16.msra.mxu0 %v9962_v56  ;;  %6756 = vmatpush1.bf16.msra.mxu1 %v9965_v42  ;;  %v9997_v30 = vld [vmem:[%s12757_s6 + $0x7a8] sm:$0xff]   ;;  %v9999_v60 = vld [vmem:[%s12757_s6 + $0x730] sm:$0xff]   ;;  %v10002_v13 = vld [vmem:[%s12757_s6 + $0x778] sm:$0xff]  }
 0x83c   : > { %6684 = vmatprep.subr.bf16.mxu0 %v9970_v9  ;;  %6757 = vmatprep.subr.bf16.mxu1 %v9973_v38  ;;  %v10001_v43 = vld [vmem:[%s12757_s6 + $0x7b0] sm:$0xff]   ;;  %v10004_v55 = vld [vmem:[%s12757_s6 + $0x7f8] sm:$0xff]  }
 0x83d   : > { %6702 = vmatprep.mubr.bf16.mxu0 %v10054_v20  ;;  %6775 = vmatprep.mubr.bf16.mxu1 %v10054_v20  ;;  %v10003_v35 = vld [vmem:[%s12757_s6 + $0x738] sm:$0xff]  }
 0x83e   : > { %v10005_v53 = vld [vmem:[%s12757_s6 + $0x7b8] sm:$0xff]   ;;  %9364 = vset.pattern.permute.xlu1 %v10061_v63  ;;  %9365 = vset.pattern.permute.xlu0 %v10061_v63 }
 0x83f   : > { %6685 = vmatpush1.bf16.msra.mxu0 %v9968_v52  ;;  %6758 = vmatpush1.bf16.msra.mxu1 %v9971_v2  ;;  %v6412_v52 = vpop.permute.xlu1 %6411 }
 0x840   : > { %7260 = vperm.xlu1 %9364, %v12307_v11   ;;  %7264 = vperm.xlu0 %9365, %v12311_v44   ;;  %v12635_v11 = vld [vmem:[%s12758_s7 + $0x6] ss:$0 sm:$0xff] }
 0x842   : > { %6703 = vmatmul.mubr.bf16.vlgmr.msra.gmra.mrb[224].mxu0 %v10311_v29  ;;  %6776 = vmatmul.mubr.bf16.vlgmr.msra.gmra.mrb[224].mxu1 %v10311_v29  ;;  %v9974_v29 = vld [vmem:[%s12757_s6 + $0x740] sm:$0xff]  }
 0x843   : > { %6712 = vmatprep.mubr.bf16.mxu0 %v10054_v20  ;;  %6785 = vmatprep.mubr.bf16.mxu1 %v10054_v20 }
 0x844   : > { %9254 = vmatprep.subr.bf16.mxu0 %v9974_v29  ;;  %7268 = vperm.xlu1 %9364, %v12315_v40  }
 0x845   : > { %7276 = vperm.xlu0 %9365, %v12323_v16  }
 0x848   : > { %7272 = vperm.xlu1 %9364, %v12319_v8  }
 0x849   : > { %7284 = vperm.xlu0 %9365, %v12331_v7  }
 0x84a   : > { %6713 = vmatmul.mubr.bf16.gmra.mrb[228].mxu0 %v10347_v28  ;;  %6786 = vmatmul.mubr.bf16.gmra.mrb[228].mxu1 %v10347_v28  ;;  %v9976_v28 = vld [vmem:[%s12757_s6 + $0x7c0] sm:$0xff]  }
 0x84b   : > { %6722 = vmatprep.mubr.bf16.mxu0 %v10054_v20  ;;  %6795 = vmatprep.mubr.bf16.mxu1 %v10054_v20 }
 0x84c   : > { %9294 = vmatprep.subr.bf16.mxu1 %v9976_v28  ;;  %7280 = vperm.xlu1 %9364, %v12327_v14  }
 0x850   : > { %7288 = vperm.xlu1 %9364, %v12335_v19   ;;  %v6408_v19 = vpop.permute.xlu0 %6407 }
 0x852   : > { %6723 = vmatmul.mubr.bf16.gmra.mrb[232].mxu0 %v10383_v49  ;;  %6796 = vmatmul.mubr.bf16.gmra.mrb[232].mxu1 %v10383_v49  ;;  %v9975_v49 = vld [vmem:[%s12757_s6 + $0x700] sm:$0xff]  }
 0x853   : > { %6732 = vmatprep.mubr.bf16.mxu0 %v10054_v20  ;;  %6805 = vmatprep.mubr.bf16.mxu1 %v10054_v20  ;;  %v9977_v20 = vld [vmem:[%s12757_s6 + $0x780] sm:$0xff]  }
 0x854   : > { %9255 = vmatpush3.bf16.msra.mxu0 %v9975_v49  ;;  %9295 = vmatpush3.bf16.msra.mxu1 %v9977_v20 }
 0x855   : > { %9296 = vmatprep.subr.bf16.mxu1 %v9980_v12 }
 0x858   : > { %9297 = vmatpush3.bf16.msra.mxu1 %v9981_v61 }
 0x859   : > { %9298 = vmatprep.subr.bf16.mxu1 %v9984_v0 }
 0x85a   : > { %6733 = vmatmul.mubr.bf16.gmra.mrb[236].mxu0 %v10408_v58  ;;  %6806 = vmatmul.mubr.bf16.gmra.mrb[236].mxu1 %v10408_v58  ;;  %v9978_v58 = vld [vmem:[%s12757_s6 + $0x748] sm:$0xff]  }
 0x85b   : > { %9256 = vmatprep.subr.bf16.mxu0 %v9978_v58 }
 0x85c   : > { %9257 = vmatpush3.bf16.msra.mxu0 %v9979_v51  ;;  %9299 = vmatpush3.bf16.msra.mxu1 %v9985_v54 }
 0x85d   : > { %9258 = vmatprep.subr.bf16.mxu0 %v9982_v17  ;;  %9300 = vmatprep.subr.bf16.mxu1 %v9988_v46 }
 0x860   : > { %9259 = vmatpush3.bf16.msra.mxu0 %v9983_v57  ;;  %9301 = vmatpush3.bf16.msra.mxu1 %v9989_v31 }
 0x861   : > { %9260 = vmatprep.subr.bf16.mxu0 %v9986_v62  ;;  %9302 = vmatprep.subr.bf16.mxu1 %v9992_v59  ;;  %v6416_v59 = vpop.permute.xlu1 %6415 }
 0x864   : > { %9261 = vmatpush3.bf16.msra.mxu0 %v9987_v1  ;;  %9303 = vmatpush3.bf16.msra.mxu1 %v9993_v10 }
 0x865   : > { %9262 = vmatprep.subr.bf16.mxu0 %v9990_v5  ;;  %9304 = vmatprep.subr.bf16.mxu1 %v9996_v15 }
 0x868   : > { %9263 = vmatpush3.bf16.msra.mxu0 %v9991_v41  ;;  %9305 = vmatpush3.bf16.msra.mxu1 %v9997_v30 }
 0x869   : > { %9264 = vmatprep.subr.bf16.mxu0 %v9994_v22  ;;  %9306 = vmatprep.subr.bf16.mxu1 %v10000_v23 }
 0x86c   : > { %9265 = vmatpush3.bf16.msra.mxu0 %v9995_v33  ;;  %9307 = vmatpush3.bf16.msra.mxu1 %v10001_v43 }
 0x86d   : > { %9266 = vmatprep.subr.bf16.mxu0 %v9998_v36  ;;  %9308 = vmatprep.subr.bf16.mxu1 %v10004_v55 }
 0x870   : > { %9267 = vmatpush3.bf16.msra.mxu0 %v9999_v60  ;;  %9309 = vmatpush3.bf16.msra.mxu1 %v10005_v53 }
 0x871   : > { %9268 = vmatprep.subr.bf16.mxu0 %v10002_v13 }
 0x874   : > { %9269 = vmatpush3.bf16.msra.mxu0 %v10003_v35 }
 0x8f5   : > { %v9190_v48 = vpop.f32.mrb[208].mxu0  ;;  %v9230_v39 = vpop.f32.mrb[208].mxu1 }
 0x8f6   : > { %v9191_v44 = vpop.f32.mrb[209].mxu0  ;;  %v9231_v32 = vpop.f32.mrb[209].mxu1 }
 0x8f7   : > { %v9192_v40 = vadd.f32 %v9191_v44, %v9190_v48  ;;  %v9232_v3 = vadd.f32 %v9231_v32, %v9230_v39  ;;  %v9193_v16 = vpop.f32.mrb[210].mxu0  ;;  %v9233_v47 = vpop.f32.mrb[210].mxu1 }
 0x8f8   : > { %v9194_v8 = vpop.f32.mrb[211].mxu0  ;;  %v9234_v56 = vpop.f32.mrb[211].mxu1 }
 0x8f9   : > { %v6311_v7 = vadd.f32 %v9192_v40, %v12635_v11  ;;  %v9195_v14 = vadd.f32 %v9194_v8, %v9193_v16  ;;  %v9235_v42 = vadd.f32 %v9234_v56, %v9233_v47  ;;  %v6424_v40 = vpop.permute.xlu1 %6423 }
 0x8fb   : > { %v6314_v9 = vadd.f32 %v9195_v14, %v12635_v11  ;;  %v6376_v38 = vadd.f32 %v9232_v3, %v6311_v7 }
 0x8fd   : > { %v6438_v2 = vmul.f32 %v6408_v19, %v6376_v38  ;;  %v9196_v29 = vpop.f32.mrb[212].mxu0  ;;  %v9236_v28 = vpop.f32.mrb[212].mxu1  ;;  %v6379_v49 = vadd.f32 %v9235_v42, %v6314_v9 }
 0x8fe   : > { %v9197_v20 = vpop.f32.mrb[213].mxu0  ;;  %v9237_v58 = vpop.f32.mrb[213].mxu1 }
 0x8ff   : > { %v12640_v12 = vadd.f32 %v6438_v2, %v12346_v50  ;;  %v6439_v51 = vmul.f32 %v6412_v52, %v6379_v49  ;;  %v9198_v61 = vadd.f32 %v9197_v20, %v9196_v29  ;;  %v9238_v17 = vadd.f32 %v9237_v58, %v9236_v28  ;;  %v9199_v0 = vpop.f32.mrb[214].mxu0  ;;  %v9239_v57 = vpop.f32.mrb[214].mxu1  ;;  %v8503_v29 = vld [vmem:[%s12756_s5 + $0x1c] sm:$0xf] }
 0x900   : > { %v9200_v54 = vpop.f32.mrb[215].mxu0  ;;  %v9240_v62 = vpop.f32.mrb[215].mxu1 }
 0x901   : > { %v12643_v46 = vadd.f32 %v6439_v51, %v12350_v21  ;;  %v6319_v1 = vadd.f32 %v9198_v61, %v12635_v11  ;;  %v9201_v31 = vadd.f32 %v9200_v54, %v9199_v0  ;;  %v9241_v5 = vadd.f32 %v9240_v62, %v9239_v57  ;;  %v6420_v50 = vpop.permute.xlu0 %6419 }
 0x902   : > { %v12669_v0 = vrot.slane %v8503_v29, %v10485_v25  ;;  %v12673_v62 = vrot.slane %v8503_v29, %v10490_v26 }
 0x903   : > { %v6322_v41 = vadd.f32 %v9201_v31, %v12635_v11  ;;  %v6384_v10 = vadd.f32 %v9238_v17, %v6319_v1  ;;  %v12666_v17 = vrot.slane %v8503_v29, %v10483_v24  ;;  %v12676_v1 = vrot.slane %v8503_v29, %v10492_v27 }
 0x905   : > { %v6440_v22 = vmul.f32 %v6416_v59, %v6384_v10  ;;  %v9202_v15 = vpop.f32.mrb[216].mxu0  ;;  %v9242_v33 = vpop.f32.mrb[216].mxu1  ;;  %v6387_v30 = vadd.f32 %v9241_v5, %v6322_v41 }
 0x906   : > { %v9203_v36 = vpop.f32.mrb[217].mxu0  ;;  %v9243_v23 = vpop.f32.mrb[217].mxu1 }
 0x907   : > { %v12648_v60 = vadd.f32 %v6440_v22, %v12354_v6  ;;  %v9204_v21 = vadd.f32 %v9203_v36, %v9202_v15  ;;  %v9244_v43 = vadd.f32 %v9243_v23, %v9242_v33  ;;  %v6441_v13 = vmul.f32 %v6420_v50, %v6387_v30  ;;  %v9205_v55 = vpop.f32.mrb[218].mxu0  ;;  %v9245_v35 = vpop.f32.mrb[218].mxu1 }
 0x908   : > { %v9206_v53 = vpop.f32.mrb[219].mxu0  ;;  %v9246_v63 = vpop.f32.mrb[219].mxu1 }
 0x909   : > { %v6327_v48 = vadd.f32 %v9204_v21, %v12635_v11  ;;  %v12652_v39 = vadd.f32 %v6441_v13, %v12357_v45  ;;  %v9207_v44 = vadd.f32 %v9206_v53, %v9205_v55  ;;  %v9247_v32 = vadd.f32 %v9246_v63, %v9245_v35  ;;  %v6428_v6 = vpop.permute.xlu0 %6427 }
 0x90b   : > { %v6330_v3 = vadd.f32 %v9207_v44, %v12635_v11  ;;  %v6392_v16 = vadd.f32 %v9244_v43, %v6327_v48 }
 0x90d   : > { %v6442_v47 = vmul.f32 %v6424_v40, %v6392_v16  ;;  %v9208_v8 = vpop.f32.mrb[220].mxu0  ;;  %v9248_v56 = vpop.f32.mrb[220].mxu1  ;;  %v6395_v7 = vadd.f32 %v9247_v32, %v6330_v3 }
 0x90e   : > { %v9209_v14 = vpop.f32.mrb[221].mxu0  ;;  %v9249_v42 = vpop.f32.mrb[221].mxu1 }
 0x90f   : > { %v12656_v19 = vadd.f32 %v6442_v47, %v12362_v18  ;;  %v9210_v9 = vadd.f32 %v9209_v14, %v9208_v8  ;;  %v9250_v38 = vadd.f32 %v9249_v42, %v9248_v56  ;;  %v6443_v45 = vmul.f32 %v6428_v6, %v6395_v7  ;;  %v9211_v52 = vpop.f32.mrb[222].mxu0  ;;  %v9251_v2 = vpop.f32.mrb[222].mxu1 }
 0x910   : > { %v9212_v28 = vpop.f32.mrb[223].mxu0  ;;  %v9252_v49 = vpop.f32.mrb[223].mxu1 }
 0x911   : > { %v6335_v20 = vadd.f32 %v9210_v9, %v12635_v11  ;;  %v12663_v58 = vadd.f32 %v6443_v45, %v12368_v37  ;;  %v9213_v51 = vadd.f32 %v9212_v28, %v9211_v52  ;;  %v9253_v61 = vadd.f32 %v9252_v49, %v9251_v2  ;;  %v6432_v18 = vpop.permute.xlu1 %6431  ;;  %v6436_v37 = vpop.permute.xlu0 %6435 }
 0x913   : > { %v6338_v57 = vadd.f32 %v9213_v51, %v12635_v11  ;;  %v6400_v54 = vadd.f32 %v9250_v38, %v6335_v20 }
 0x915   : > { %v6444_v31 = vmul.f32 %v6432_v18, %v6400_v54  ;;  %v6704_v5 = vpop.f32.mrb[224].mxu0  ;;  %v6777_v59 = vpop.f32.mrb[224].mxu1  ;;  %v6403_v41 = vadd.f32 %v9253_v61, %v6338_v57 }
 0x916   : > { %v6705_v24 = vadd.f32 %v6704_v5, %v12666_v17  ;;  %v6778_v10 = vadd.f32 %v6777_v59, %v12669_v0  ;;  %v6706_v25 = vpop.f32.mrb[225].mxu0  ;;  %v6779_v50 = vpop.f32.mrb[225].mxu1 }
 0x917   : > { %v12681_v11 = vadd.f32 %v6444_v31, %v12386_v34  ;;  %v6707_v26 = vadd.f32 %v6706_v25, %v12673_v62  ;;  %v6445_v22 = vmul.f32 %v6436_v37, %v6403_v41  ;;  %v6708_v15 = vpop.f32.mrb[226].mxu0  ;;  %v6781_v27 = vpop.f32.mrb[226].mxu1  ;;  %v6780_v33 = vadd.f32 %v6779_v50, %v12676_v1 }
 0x918   : > { %v6709_v30 = vadd.f32 %v6708_v15, %v12666_v17  ;;  %v6782_v36 = vadd.f32 %v6781_v27, %v12669_v0  ;;  %v6710_v23 = vpop.f32.mrb[227].mxu0  ;;  %v6783_v21 = vpop.f32.mrb[227].mxu1  ;;  %v6816_v43 = vmax.f32 %v6705_v24, 0.0  ;;  %v6818_v55 = vmax.f32 %v6778_v10, 0.0 }
 0x919   : > { %v12688_v13 = vadd.f32 %v6445_v22, %v12393_v4  ;;  %v6711_v34 = vadd.f32 %v6710_v23, %v12673_v62  ;;  %v6784_v63 = vadd.f32 %v6783_v21, %v12676_v1  ;;  %v6817_v48 = vmax.f32 %v6707_v26, 0.0 }
 0x91a   : > { %v6820_v35 = vmax.f32 %v6709_v30, 0.0  ;;  %v6822_v53 = vmax.f32 %v6782_v36, 0.0  ;;  %v6819_v32 = vmax.f32 %v6780_v33, 0.0 }
 0x91b   : > { %v6821_v44 = vmax.f32 %v6711_v34, 0.0  ;;  %v6823_v16 = vmax.f32 %v6784_v63, 0.0 }
 0x91c   : > { %v6848_v40 = vpack.c.bf16 %v6820_v35, %v6816_v43  ;;  %v6850_v3 = vpack.c.bf16 %v6822_v53, %v6818_v55 }
 0x91d   : > { %v6849_v6 = vpack.c.bf16 %v6821_v44, %v6817_v48  ;;  %v6714_v47 = vpop.f32.mrb[228].mxu0  ;;  %v6787_v8 = vpop.f32.mrb[228].mxu1  ;;  %v6851_v56 = vpack.c.bf16 %v6823_v16, %v6819_v32 }
 0x91e   : > { %v6715_v4 = vadd.f32 %v6714_v47, %v12666_v17  ;;  %v6788_v7 = vadd.f32 %v6787_v8, %v12669_v0  ;;  %v6716_v14 = vpop.f32.mrb[229].mxu0  ;;  %v6789_v42 = vpop.f32.mrb[229].mxu1 }
 0x91f   : > { %v6717_v9 = vadd.f32 %v6716_v14, %v12673_v62  ;;  %v6790_v38 = vadd.f32 %v6789_v42, %v12676_v1  ;;  %v6718_v45 = vpop.f32.mrb[230].mxu0  ;;  %v6791_v52 = vpop.f32.mrb[230].mxu1  ;;  %7161 = vmatprep.mubr.bf16.mxu0 %v6849_v6  ;;  %7226 = vmatprep.mubr.bf16.mxu1 %v6851_v56 }
 0x920   : > { %v6719_v2 = vadd.f32 %v6718_v45, %v12666_v17  ;;  %v6792_v29 = vadd.f32 %v6791_v52, %v12669_v0  ;;  %v6720_v28 = vpop.f32.mrb[231].mxu0  ;;  %v6793_v49 = vpop.f32.mrb[231].mxu1  ;;  %7162 = vmatmul.mubr.bf16.vlgmr.msra.gmra.mrb[240].mxu0 %v6848_v40  ;;  %7227 = vmatmul.mubr.bf16.vlgmr.msra.gmra.mrb[240].mxu1 %v6850_v3  ;;  %v6824_v61 = vmax.f32 %v6715_v4, 0.0  ;;  %v6826_v18 = vmax.f32 %v6788_v7, 0.0 }
 0x921   : > { %v6721_v20 = vadd.f32 %v6720_v28, %v12673_v62  ;;  %v6794_v51 = vadd.f32 %v6793_v49, %v12676_v1  ;;  %v6825_v37 = vmax.f32 %v6717_v9, 0.0  ;;  %v6827_v31 = vmax.f32 %v6790_v38, 0.0 }
 0x922   : > { %v6828_v57 = vmax.f32 %v6719_v2, 0.0  ;;  %v6830_v54 = vmax.f32 %v6792_v29, 0.0 }
 0x923   : > { %v6829_v5 = vmax.f32 %v6721_v20, 0.0  ;;  %v6831_v59 = vmax.f32 %v6794_v51, 0.0 }
 0x924   : > { %v6852_v41 = vpack.c.bf16 %v6828_v57, %v6824_v61  ;;  %v6854_v24 = vpack.c.bf16 %v6830_v54, %v6826_v18 }
 0x925   : > { %v6853_v10 = vpack.c.bf16 %v6829_v5, %v6825_v37  ;;  %v6855_v25 = vpack.c.bf16 %v6831_v59, %v6827_v31  ;;  %v6724_v50 = vpop.f32.mrb[232].mxu0  ;;  %v6797_v26 = vpop.f32.mrb[232].mxu1 }
 0x926   : > { %v6725_v22 = vadd.f32 %v6724_v50, %v12666_v17  ;;  %v6798_v15 = vadd.f32 %v6797_v26, %v12669_v0  ;;  %v6726_v27 = vpop.f32.mrb[233].mxu0  ;;  %v6799_v33 = vpop.f32.mrb[233].mxu1 }
 0x927   : > { %v6727_v30 = vadd.f32 %v6726_v27, %v12673_v62  ;;  %v6800_v36 = vadd.f32 %v6799_v33, %v12676_v1  ;;  %v6728_v23 = vpop.f32.mrb[234].mxu0  ;;  %v6801_v21 = vpop.f32.mrb[234].mxu1  ;;  %7169 = vmatprep.mubr.bf16.mxu0 %v6853_v10  ;;  %7234 = vmatprep.mubr.bf16.mxu1 %v6855_v25 }
 0x928   : > { %v6729_v43 = vadd.f32 %v6728_v23, %v12666_v17  ;;  %v6802_v34 = vadd.f32 %v6801_v21, %v12669_v0  ;;  %v6730_v55 = vpop.f32.mrb[235].mxu0  ;;  %v6803_v35 = vpop.f32.mrb[235].mxu1  ;;  %7170 = vmatmul.mubr.bf16.gmra.mrb[244].mxu0 %v6852_v41  ;;  %7235 = vmatmul.mubr.bf16.gmra.mrb[244].mxu1 %v6854_v24  ;;  %v6832_v48 = vmax.f32 %v6725_v22, 0.0  ;;  %v6834_v44 = vmax.f32 %v6798_v15, 0.0  ;;  %v12719_v15 = vld [vmem:[%s12758_s7 + $0x7] ss:$0 sm:$0xff] }
 0x929   : > { %v6731_v53 = vadd.f32 %v6730_v55, %v12673_v62  ;;  %v6804_v63 = vadd.f32 %v6803_v35, %v12676_v1  ;;  %v6833_v3 = vmax.f32 %v6727_v30, 0.0  ;;  %v6835_v16 = vmax.f32 %v6800_v36, 0.0  ;;  %v7261_v22 = vpop.permute.xlu1 %7260 }
 0x92a   : > { %v6836_v32 = vmax.f32 %v6729_v43, 0.0  ;;  %v6838_v40 = vmax.f32 %v6802_v34, 0.0 }
 0x92b   : > { %v6837_v6 = vmax.f32 %v6731_v53, 0.0  ;;  %v6839_v47 = vmax.f32 %v6804_v63, 0.0 }
 0x92c   : > { %v6856_v8 = vpack.c.bf16 %v6836_v32, %v6832_v48  ;;  %v6858_v56 = vpack.c.bf16 %v6838_v40, %v6834_v44  ;;  %v7265_v44 = vpop.permute.xlu0 %7264 }
 0x92d   : > { %v6857_v4 = vpack.c.bf16 %v6837_v6, %v6833_v3  ;;  %v6859_v7 = vpack.c.bf16 %v6839_v47, %v6835_v16  ;;  %v6734_v14 = vpop.f32.mrb[236].mxu0  ;;  %v6807_v42 = vpop.f32.mrb[236].mxu1 }
 0x92e   : > { %v6735_v9 = vadd.f32 %v6734_v14, %v12666_v17  ;;  %v6808_v38 = vadd.f32 %v6807_v42, %v12669_v0  ;;  %v6736_v45 = vpop.f32.mrb[237].mxu0  ;;  %v6809_v52 = vpop.f32.mrb[237].mxu1 }
 0x92f   : > { %v6737_v2 = vadd.f32 %v6736_v45, %v12673_v62  ;;  %v6810_v29 = vadd.f32 %v6809_v52, %v12676_v1  ;;  %v6738_v28 = vpop.f32.mrb[238].mxu0  ;;  %v6811_v49 = vpop.f32.mrb[238].mxu1  ;;  %7177 = vmatprep.mubr.bf16.mxu0 %v6857_v4  ;;  %7242 = vmatprep.mubr.bf16.mxu1 %v6859_v7 }
 0x930   : > { %v6739_v20 = vadd.f32 %v6738_v28, %v12666_v17  ;;  %v6812_v51 = vadd.f32 %v6811_v49, %v12669_v0  ;;  %v6740_v61 = vpop.f32.mrb[239].mxu0  ;;  %v6813_v18 = vpop.f32.mrb[239].mxu1  ;;  %7178 = vmatmul.mubr.bf16.gmra.mrb[248].mxu0 %v6856_v8  ;;  %7243 = vmatmul.mubr.bf16.gmra.mrb[248].mxu1 %v6858_v56  ;;  %v6840_v37 = vmax.f32 %v6735_v9, 0.0  ;;  %v6842_v31 = vmax.f32 %v6808_v38, 0.0 }
 0x931   : > { %v6741_v57 = vadd.f32 %v6740_v61, %v12673_v62  ;;  %v6814_v54 = vadd.f32 %v6813_v18, %v12676_v1  ;;  %v6841_v41 = vmax.f32 %v6737_v2, 0.0  ;;  %v6843_v24 = vmax.f32 %v6810_v29, 0.0  ;;  %v7269_v40 = vpop.permute.xlu1 %7268 }
 0x932   : > { %v6844_v5 = vmax.f32 %v6739_v20, 0.0  ;;  %v6846_v59 = vmax.f32 %v6812_v51, 0.0 }
 0x933   : > { %v6845_v10 = vmax.f32 %v6741_v57, 0.0  ;;  %v6847_v25 = vmax.f32 %v6814_v54, 0.0 }
 0x934   : > { %v6860_v50 = vpack.c.bf16 %v6844_v5, %v6840_v37  ;;  %v6862_v17 = vpack.c.bf16 %v6846_v59, %v6842_v31 }
 0x935   : > { %v6861_v26 = vpack.c.bf16 %v6845_v10, %v6841_v41  ;;  %v6863_v0 = vpack.c.bf16 %v6847_v25, %v6843_v24  ;;  %v7273_v51 = vpop.permute.xlu1 %7272 }
 0x937   : > { %7185 = vmatprep.mubr.bf16.mxu0 %v6861_v26  ;;  %7250 = vmatprep.mubr.bf16.mxu1 %v6863_v0 }
 0x938   : > { %7186 = vmatmul.mubr.bf16.gmra.mrb[252].mxu0 %v6860_v50  ;;  %7251 = vmatmul.mubr.bf16.gmra.mrb[252].mxu1 %v6862_v17 }
 0x9f3   : > { %v9270_v62 = vpop.f32.mrb[240].mxu0  ;;  %v9310_v1 = vpop.f32.mrb[240].mxu1 }
 0x9f4   : > { %v9271_v27 = vpop.f32.mrb[241].mxu0  ;;  %v9311_v30 = vpop.f32.mrb[241].mxu1 }
 0x9f5   : > { %v9272_v33 = vadd.f32 %v9271_v27, %v9270_v62  ;;  %v9273_v36 = vpop.f32.mrb[242].mxu0  ;;  %v9312_v23 = vadd.f32 %v9311_v30, %v9310_v1  ;;  %v9313_v21 = vpop.f32.mrb[242].mxu1 }
 0x9f6   : > { %v9274_v43 = vpop.f32.mrb[243].mxu0  ;;  %v9314_v35 = vpop.f32.mrb[243].mxu1 }
 0x9f7   : > { %v7164_v34 = vadd.f32 %v9272_v33, %v12719_v15  ;;  %v9275_v55 = vadd.f32 %v9274_v43, %v9273_v36  ;;  %v9315_v53 = vadd.f32 %v9314_v35, %v9313_v21  ;;  %v7281_v33 = vpop.permute.xlu1 %7280 }
 0x9f9   : > { %v7229_v63 = vadd.f32 %v9312_v23, %v7164_v34  ;;  %v7167_v48 = vadd.f32 %v9275_v55, %v12719_v15 }
 0x9fb   : > { %v7291_v32 = vmul.f32 %v7261_v22, %v7229_v63  ;;  %v9276_v3 = vpop.f32.mrb[244].mxu0  ;;  %v7232_v16 = vadd.f32 %v9315_v53, %v7167_v48  ;;  %v9316_v6 = vpop.f32.mrb[244].mxu1 }
 0x9fc   : > { %v9277_v47 = vpop.f32.mrb[245].mxu0  ;;  %v9317_v56 = vpop.f32.mrb[245].mxu1 }
 0x9fd   : > { %v9278_v8 = vadd.f32 %v9277_v47, %v9276_v3  ;;  %v7299_v4 = vadd.f32 %v7291_v32, %v12640_v12  ;;  %v7292_v7 = vmul.f32 %v7265_v44, %v7232_v16  ;;  %v9279_v14 = vpop.f32.mrb[246].mxu0  ;;  %v9318_v42 = vadd.f32 %v9317_v56, %v9316_v6  ;;  %v9319_v9 = vpop.f32.mrb[246].mxu1 }
 0x9fe   : > { %v9280_v38 = vpop.f32.mrb[247].mxu0  ;;  %v9320_v29 = vpop.f32.mrb[247].mxu1 }
 0x9ff   : > { %v7172_v45 = vadd.f32 %v9278_v8, %v12719_v15  ;;  %v7300_v52 = vadd.f32 %v7292_v7, %v12643_v46  ;;  %v9281_v2 = vadd.f32 %v9280_v38, %v9279_v14  ;;  %v9321_v28 = vadd.f32 %v9320_v29, %v9319_v9  ;;  %v7289_v14 = vpop.permute.xlu1 %7288 }
 0xa01   : > { %v7237_v12 = vadd.f32 %v9318_v42, %v7172_v45  ;;  %v8671_v49 = vpack.c.bf16 %v7300_v52, %v7299_v4  ;;  %v7175_v20 = vadd.f32 %v9281_v2, %v12719_v15 }
 0xa03   : > { %v7293_v61 = vmul.f32 %v7269_v40, %v7237_v12  ;;  %8672 = vst [vmem:[%s12731_s19] sm:$0xff] %v8671_v49   ;;  %v7240_v18 = vadd.f32 %v9321_v28, %v7175_v20  ;;  %v9282_v57 = vpop.f32.mrb[248].mxu0  ;;  %v9322_v46 = vpop.f32.mrb[248].mxu1 }
 0xa04   : > { %v9283_v54 = vpop.f32.mrb[249].mxu0  ;;  %v9323_v59 = vpop.f32.mrb[249].mxu1 }
 0xa05   : > { %v7301_v37 = vadd.f32 %v7293_v61, %v12648_v60  ;;  %v7294_v31 = vmul.f32 %v7273_v51, %v7240_v18  ;;  %v9284_v5 = vadd.f32 %v9283_v54, %v9282_v57  ;;  %v9285_v41 = vpop.f32.mrb[250].mxu0  ;;  %v9324_v24 = vadd.f32 %v9323_v59, %v9322_v46  ;;  %v9325_v10 = vpop.f32.mrb[250].mxu1 }
 0xa06   : > { %v9286_v25 = vpop.f32.mrb[251].mxu0  ;;  %v9326_v0 = vpop.f32.mrb[251].mxu1 }
 0xa07   : > { %v7302_v50 = vadd.f32 %v7294_v31, %v12652_v39  ;;  %v7180_v17 = vadd.f32 %v9284_v5, %v12719_v15  ;;  %v9287_v26 = vadd.f32 %v9286_v25, %v9285_v41  ;;  %v9327_v62 = vadd.f32 %v9326_v0, %v9325_v10  ;;  %v7277_v60 = vpop.permute.xlu0 %7276 }
 0xa09   : > { %v8676_v22 = vpack.c.bf16 %v7302_v50, %v7301_v37  ;;  %v7183_v1 = vadd.f32 %v9287_v26, %v12719_v15  ;;  %v7245_v27 = vadd.f32 %v9324_v24, %v7180_v17 }
 0xa0b   : > { %8691 = vst [vmem:[%s12731_s19 + $0x8] sm:$0xff] %v8676_v22   ;;  %v7248_v30 = vadd.f32 %v9327_v62, %v7183_v1  ;;  %v7295_v36 = vmul.f32 %v7277_v60, %v7245_v27  ;;  %v9288_v23 = vpop.f32.mrb[252].mxu0  ;;  %v9328_v21 = vpop.f32.mrb[252].mxu1 }
 0xa0c   : > { %v9289_v43 = vpop.f32.mrb[253].mxu0  ;;  %v9329_v35 = vpop.f32.mrb[253].mxu1 }
 0xa0d   : > { %v7296_v34 = vmul.f32 %v7281_v33, %v7248_v30  ;;  %v7303_v39 = vadd.f32 %v7295_v36, %v12656_v19  ;;  %v9290_v55 = vadd.f32 %v9289_v43, %v9288_v23  ;;  %v9291_v53 = vpop.f32.mrb[254].mxu0  ;;  %v9330_v63 = vadd.f32 %v9329_v35, %v9328_v21  ;;  %v9331_v48 = vpop.f32.mrb[254].mxu1 }
 0xa0e   : > { %v9292_v44 = vpop.f32.mrb[255].mxu0  ;;  %v9332_v16 = vpop.f32.mrb[255].mxu1 }
 0xa0f   : > { %v7304_v32 = vadd.f32 %v7296_v34, %v12663_v58  ;;  %v7188_v40 = vadd.f32 %v9290_v55, %v12719_v15  ;;  %v9293_v3 = vadd.f32 %v9292_v44, %v9291_v53  ;;  %v9333_v6 = vadd.f32 %v9332_v16, %v9331_v48  ;;  %v7285_v19 = vpop.permute.xlu0 %7284 }
 0xa11   : > { %v8681_v47 = vpack.c.bf16 %v7304_v32, %v7303_v39  ;;  %v7253_v8 = vadd.f32 %v9330_v63, %v7188_v40  ;;  %v7191_v56 = vadd.f32 %v9293_v3, %v12719_v15 }
 0xa13   : > { %8692 = vst [vmem:[%s12731_s19 + $0x10] sm:$0xff] %v8681_v47   ;;  %v7297_v4 = vmul.f32 %v7285_v19, %v7253_v8  ;;  %v7256_v7 = vadd.f32 %v9333_v6, %v7191_v56 }
 0xa15   : > { %v7305_v42 = vadd.f32 %v7297_v4, %v12681_v11  ;;  %v7298_v9 = vmul.f32 %v7289_v14, %v7256_v7 }
 0xa17   : > { %v7306_v58 = vadd.f32 %v7298_v9, %v12688_v13 }
 0xa19   : > { %v8686_v38 = vpack.c.bf16 %v7306_v58, %v7305_v42 }
 0xa1b   : > { %8693 = vst [vmem:[%s12731_s19 + $0x18] sm:$0xff] %v8686_v38  }
 0xa1c PF: > { %s18_s27 = sadd.s32 1, %s10052_s27  }
 0xa1d   : > { %p15_p4 = scmp.ge.s32.totalorder %s18_s27, 4  }
 0xa1f   :  { %17 = sbr.rel (!%p15_p4) target bundleno = 1 (0x1), region = 113 }

</bundles_post_ra>
